<compile_context>
chip_gen: v7x
topology: tpu7x:2x2x1
jax: 0.10.0
libtpu: 0.0.40
codegen_flags: <defaults>
</compile_context>

<pallas_src>
import jax
import jax.numpy as jnp
from jax import lax
from jax.experimental import pallas as pl
from jax.experimental.pallas import tpu as pltpu


_VMEM_LIMIT = 32 * 1024 * 1024   # safe on v5e/v6e (128 MiB) and v7x (64 MiB)
_TM_CONV = 256                   # max M tile for conv (im2col) matmuls
_M_ALIGN = 16                    # sublane alignment safe for bf16 (16,128) packing


def _round_up(a, b):
    return (a + b - 1) // b * b


def _choose_m_tiling(M, tm_max=_TM_CONV, align=_M_ALIGN):
    """Pick (tm, Mp): >=2 grid blocks when M allows (keeps both v7x TCs busy)
    and minimal zero-padding (conv1 at B=2: 5 x 160 = 800, zero waste)."""
    min_blocks = 2 if M >= 2 * align else 1
    n_lo = max(pl.cdiv(M, tm_max), min_blocks)
    best = None
    for n in range(n_lo, n_lo + 8):
        tm = _round_up(pl.cdiv(M, n), align)
        waste = n * tm - M
        if best is None or waste < best[2]:
            best = (tm, n * tm, waste)
    return best[0], best[1]


# ----------------------------------------------------------------------------
# Pallas kernel: M-tiled matmul + bias + ReLU (conv layers via im2col GEMM)
# ----------------------------------------------------------------------------
def _mm_bias_relu_kernel(x_ref, w_ref, b_ref, o_ref):
    acc = jnp.dot(x_ref[...], w_ref[...], preferred_element_type=jnp.float32)
    o_ref[...] = jnp.maximum(acc + b_ref[...], 0.0).astype(o_ref.dtype)


def matmul_bias_relu(x, w, b, out_dtype=jnp.bfloat16):
    """y = relu(x @ w + b). x:(M,K) bf16, w:(K,N) bf16, b:(N,) f32 -> (M,N)."""
    M, K = x.shape
    N = w.shape[1]
    tm, Mp = _choose_m_tiling(M)
    if Mp != M:
        x = jnp.pad(x, ((0, Mp - M), (0, 0)))

    flops = 2 * Mp * K * N
    bytes_accessed = (Mp * K * x.dtype.itemsize + K * N * w.dtype.itemsize
                      + N * 4 + Mp * N * jnp.dtype(out_dtype).itemsize)

    y = pl.pallas_call(
        _mm_bias_relu_kernel,
        out_shape=jax.ShapeDtypeStruct((Mp, N), out_dtype),
        grid_spec=pltpu.PrefetchScalarGridSpec(
            num_scalar_prefetch=0,
            grid=(Mp // tm,),
            in_specs=[
                pl.BlockSpec((tm, K), lambda i: (i, 0)),   # patch tile (streamed)
                pl.BlockSpec((K, N), lambda i: (0, 0)),    # weights (resident)
                pl.BlockSpec((1, N), lambda i: (0, 0)),    # bias (resident)
            ],
            out_specs=pl.BlockSpec((tm, N), lambda i: (i, 0)),
        ),
        compiler_params=pltpu.CompilerParams(
            dimension_semantics=("parallel",),
            vmem_limit_bytes=_VMEM_LIMIT),
        cost_estimate=pl.CostEstimate(
            flops=int(flops), transcendentals=0, bytes_accessed=int(bytes_accessed)),
    )(x, w, b.reshape(1, N))
    return y[:M] if Mp != M else y


# ----------------------------------------------------------------------------
# Pallas kernel: fused dueling heads
#   grid = (stream n in {global, action},)  -- whole per-stream W1 per step
# ----------------------------------------------------------------------------
def _heads_kernel(f_ref, w1_ref, b1_ref, w2_ref, b2_ref, o_ref):
    h = jnp.dot(f_ref[...], w1_ref[...], preferred_element_type=jnp.float32)
    h = jnp.maximum(h + b1_ref[0], 0.0)                     # (B, hidden) f32
    q = jnp.dot(h.astype(jnp.bfloat16), w2_ref[0],
                preferred_element_type=jnp.float32) + b2_ref[0]
    o_ref[0] = q                                            # (B, A) f32


def dueling_heads(f, w1, b1, w2, b2):
    """q = global_stream(f) + action_stream(f), streams fused in one call.

    f : (B, 3136) bf16 features (NHWC flatten order)
    w1: (3136, 2*hidden) bf16  [:, :hidden]=global L1, [:, hidden:]=action L1
    b1: (2, 1, hidden) f32     per-stream L1 bias
    w2: (2, hidden, A) bf16    [0]=g2_w broadcast over A, [1]=a2_w
    b2: (2, 1, A) f32          [0]=g2_b broadcast,        [1]=a2_b
    """
    B, K = f.shape
    two_h = w1.shape[1]
    hidden = two_h // 2
    A = w2.shape[-1]
    assert w1.shape[0] == K

    flops = 2 * B * K * two_h + 2 * (2 * B * hidden * A)
    bytes_accessed = (w1.size * 2 + 2 * f.size * 2 + w2.size * 2
                      + b1.size * 4 + b2.size * 4 + 2 * B * A * 4)

    partial = pl.pallas_call(
        _heads_kernel,
        out_shape=jax.ShapeDtypeStruct((2, B, A), jnp.float32),
        grid_spec=pltpu.PrefetchScalarGridSpec(
            num_scalar_prefetch=0,
            grid=(2,),
            in_specs=[
                pl.BlockSpec((B, K), lambda n: (0, 0)),            # features (small)
                pl.BlockSpec((K, hidden), lambda n: (0, n)),       # per-stream W1 block
                pl.BlockSpec((1, 1, hidden), lambda n: (n, 0, 0)),
                pl.BlockSpec((1, hidden, A), lambda n: (n, 0, 0)),
                pl.BlockSpec((1, 1, A), lambda n: (n, 0, 0)),
            ],
            out_specs=pl.BlockSpec((1, B, A), lambda n: (n, 0, 0)),
        ),
        compiler_params=pltpu.CompilerParams(
            dimension_semantics=("parallel",),      # v7x: one stream per TC
            vmem_limit_bytes=_VMEM_LIMIT),
        cost_estimate=pl.CostEstimate(
            flops=int(flops), transcendentals=0, bytes_accessed=int(bytes_accessed)),
    )(f, w1, b1, w2, b2)
    # q = global_value (broadcast over A) + action_values
    return partial[0] + partial[1]


# ----------------------------------------------------------------------------
# Conv layer = NHWC patch extraction (conv_general_dilated_patches, no gathers)
#              + Pallas GEMM+bias+ReLU kernel.  Output stays NHWC bf16.
# ----------------------------------------------------------------------------
# TODO(synk): fuse the three conv layers (activations < 150 KB/image, weights
# < 0.3 MB bf16) into a single VMEM-resident Pallas kernel to remove the two
# extra pallas_call launches and the intermediate patch-matrix HBM traffic.
def conv2d_relu(x_nhwc, w_mat, b, ksize, stride, pad):
    """NHWC conv + ReLU. w_mat:(cin*kh*kw, cout) bf16, rows in (cin,kh,kw) order."""
    B = x_nhwc.shape[0]
    cout = w_mat.shape[1]
    patches = lax.conv_general_dilated_patches(
        x_nhwc, filter_shape=(ksize, ksize),
        window_strides=(stride, stride),
        padding=[(pad, pad), (pad, pad)],
        dimension_numbers=("NHWC", "HWIO", "NHWC"))      # (B, oh, ow, cin*kh*kw)
    _, oh, ow, kk = patches.shape
    y = matmul_bias_relu(patches.reshape(B * oh * ow, kk), w_mat, b)
    return y.reshape(B, oh, ow, cout)                     # NHWC bf16


# ----------------------------------------------------------------------------
# SplitQNetwork forward (Pallas path)
# ----------------------------------------------------------------------------
def split_q_forward(packed, x):
    h = jnp.transpose(x, (0, 2, 3, 1)).astype(jnp.bfloat16)      # NCHW -> NHWC once
    h = conv2d_relu(h, packed["c1_w"], packed["c1_b"], 8, 4, 1)   # (B,20,20,32)
    h = conv2d_relu(h, packed["c2_w"], packed["c2_b"], 4, 2, 0)   # (B,9,9,64)
    h = conv2d_relu(h, packed["c3_w"], packed["c3_b"], 3, 1, 0)   # (B,7,7,64)
    f = h.reshape(x.shape[0], -1)                    # (B, 3136) bf16, (H,W,C) order
    return dueling_heads(f, packed["h_w1"], packed["h_b1"],
                         packed["h_w2"], packed["h_b2"])


# ----------------------------------------------------------------------------
# Parameter init (PyTorch default-like uniform(+-1/sqrt(fan_in))) and one-time
# packing of the dueling-head weights into the fused kernel layout.
# ----------------------------------------------------------------------------
def init_params(key, input_dim=4, output_dim=4, hidden_dim=512):
    ks = jax.random.split(key, 14)

    def u(k, shape, fan_in, dtype=jnp.float32):
        bound = 1.0 / jnp.sqrt(fan_in)
        return jax.random.uniform(k, shape, jnp.float32, -bound, bound).astype(dtype)

    flat = 64 * 7 * 7
    bf = jnp.bfloat16
    return {
        # conv weights as (cin*kh*kw, cout), rows in (cin, kh, kw) order
        "c1_w": u(ks[0], (input_dim * 8 * 8, 32), input_dim * 64, bf),
        "c1_b": u(ks[1], (32,), input_dim * 64),
        "c2_w": u(ks[2], (32 * 4 * 4, 64), 32 * 16, bf),
        "c2_b": u(ks[3], (64,), 32 * 16),
        "c3_w": u(ks[4], (64 * 3 * 3, 64), 64 * 9, bf),
        "c3_b": u(ks[5], (64,), 64 * 9),
        # linear weights stored (in, out); first-layer rows follow NHWC flatten
        "g1_w": u(ks[6], (flat, hidden_dim), flat, bf),
        "g1_b": u(ks[7], (hidden_dim,), flat),
        "g2_w": u(ks[8], (hidden_dim, 1), hidden_dim, bf),
        "g2_b": u(ks[9], (1,), hidden_dim),
        "a1_w": u(ks[10], (flat, hidden_dim), flat, bf),
        "a1_b": u(ks[11], (hidden_dim,), flat),
        "a2_w": u(ks[12], (hidden_dim, output_dim), hidden_dim, bf),
        "a2_b": u(ks[13], (output_dim,), hidden_dim),
    }


def pack_params(p):
    """One-time packing (do outside jit): concat head weights for the fused kernel."""
    A = p["a2_w"].shape[1]
    w1 = jnp.concatenate([p["g1_w"], p["a1_w"]], axis=1)          # (3136, 2*hidden) bf16
    b1 = jnp.stack([p["g1_b"], p["a1_b"]])[:, None, :]            # (2,1,hidden) f32
    w2 = jnp.stack([jnp.tile(p["g2_w"], (1, A)), p["a2_w"]])      # (2,hidden,A) bf16
    b2 = jnp.stack([jnp.broadcast_to(p["g2_b"], (A,)),
                    p["a2_b"]])[:, None, :]                       # (2,1,A) f32
    return {
        "c1_w": p["c1_w"], "c1_b": p["c1_b"],
        "c2_w": p["c2_w"], "c2_b": p["c2_b"],
        "c3_w": p["c3_w"], "c3_b": p["c3_b"],
        "h_w1": w1, "h_b1": b1, "h_w2": w2, "h_b2": b2,
    }


# ----------------------------------------------------------------------------
# Pure-JAX reference (lax.conv + jnp.dot), same bf16-in / f32-accumulate policy
# ----------------------------------------------------------------------------
def reference_forward(params, x):
    def conv(h, w_mat, b, ksize, stride, pad):
        cin = w_mat.shape[0] // (ksize * ksize)
        cout = w_mat.shape[1]
        w = w_mat.reshape(cin, ksize, ksize, cout).transpose(1, 2, 0, 3)  # HWIO
        y = lax.conv_general_dilated(
            h.astype(jnp.bfloat16), w, window_strides=(stride, stride),
            padding=[(pad, pad), (pad, pad)],
            dimension_numbers=("NHWC", "HWIO", "NHWC"),
            preferred_element_type=jnp.float32)
        return jnp.maximum(y + b[None, None, None, :], 0.0)

    h = jnp.transpose(x, (0, 2, 3, 1))
    h = conv(h, params["c1_w"], params["c1_b"], 8, 4, 1)
    h = conv(h, params["c2_w"], params["c2_b"], 4, 2, 0)
    h = conv(h, params["c3_w"], params["c3_b"], 3, 1, 0)
    f = h.reshape(x.shape[0], -1).astype(jnp.bfloat16)
    hg = jnp.maximum(jnp.dot(f, params["g1_w"],
                             preferred_element_type=jnp.float32) + params["g1_b"], 0.0)
    gv = jnp.dot(hg.astype(jnp.bfloat16), params["g2_w"],
                 preferred_element_type=jnp.float32) + params["g2_b"]
    ha = jnp.maximum(jnp.dot(f, params["a1_w"],
                             preferred_element_type=jnp.float32) + params["a1_b"], 0.0)
    av = jnp.dot(ha.astype(jnp.bfloat16), params["a2_w"],
                 preferred_element_type=jnp.float32) + params["a2_b"]
    return gv + av


if __name__ == "__main__":
    key = jax.random.PRNGKey(0)
    pkey, xkey = jax.random.split(key)
    params = init_params(pkey)
    packed = pack_params(params)     # one-time param packing, outside jit

    # batch=2, channels=4, spatial 84x84 (implied by the 64*7*7 Linear fan-in)
    x = jax.random.normal(xkey, (2, 4, 84, 84), jnp.float32)

    q = jax.block_until_ready(jax.jit(split_q_forward)(packed, x))
    assert q.shape == (2, 4) and q.dtype == jnp.float32

    q_ref = jax.block_until_ready(jax.jit(reference_forward)(params, x))
    assert jnp.allclose(q, q_ref, rtol=1e-3, atol=1e-3), (q, q_ref)

    print("KERNEL_OK")
</pallas_src>

<mosaic_0001>
module attributes {stable_mosaic.version = 11 : i64} {
  func.func @_mm_bias_relu_kernel(%arg0: i32, %arg1: memref<160x256xbf16, #tpu.memory_space<vmem>>, %arg2: memref<256x32xbf16, #tpu.memory_space<vmem>>, %arg3: memref<1x32xf32, #tpu.memory_space<vmem>>, %arg4: memref<160x32xbf16, #tpu.memory_space<vmem>>) attributes {dimension_semantics = [#tpu.dimension_semantics<parallel>], iteration_bounds = array<i64: 5>, scalar_prefetch = 0 : i64, scratch_operands = 0 : i64, tpu.core_type = #tpu.core_type<tc>, window_params = [{transform_indices = @transform_0, window_bounds = array<i64: 160, 256>}, {pipeline_mode = #tpu.pipeline_mode<synchronous>, transform_indices = @transform_1, window_bounds = array<i64: 256, 32>}, {pipeline_mode = #tpu.pipeline_mode<synchronous>, transform_indices = @transform_2, window_bounds = array<i64: 1, 32>}, {transform_indices = @transform_3, window_bounds = array<i64: 160, 32>}]} {
    %c0 = arith.constant 0 : index
    %c0_0 = arith.constant 0 : index
    %0 = vector.load %arg1[%c0, %c0_0] : memref<160x256xbf16, #tpu.memory_space<vmem>>, vector<160x256xbf16>
    %c0_1 = arith.constant 0 : index
    %c0_2 = arith.constant 0 : index
    %1 = vector.load %arg2[%c0_1, %c0_2] : memref<256x32xbf16, #tpu.memory_space<vmem>>, vector<256x32xbf16>
    %cst = arith.constant dense<0.000000e+00> : vector<160x32xf32>
    %2 = tpu.matmul %0, %1, %cst {dimension_numbers = #tpu.dot_dimension_numbers<[1], [0], [0], [1], [0, 0, 1, 1], [], []>} : vector<160x256xbf16>, vector<256x32xbf16>, vector<160x32xf32> -> vector<160x32xf32>
    %c0_3 = arith.constant 0 : index
    %c0_4 = arith.constant 0 : index
    %3 = vector.load %arg3[%c0_3, %c0_4] : memref<1x32xf32, #tpu.memory_space<vmem>>, vector<1x32xf32>
    %4 = vector.broadcast %3 : vector<1x32xf32> to vector<160x32xf32>
    %5 = arith.addf %2, %4 : vector<160x32xf32>
    %cst_5 = arith.constant 0.000000e+00 : f32
    %6 = vector.broadcast %cst_5 : f32 to vector<160x32xf32>
    %7 = arith.maximumf %5, %6 : vector<160x32xf32>
    %8 = arith.truncf %7 : vector<160x32xf32> to vector<160x32xbf16>
    %c0_6 = arith.constant 0 : index
    %c0_7 = arith.constant 0 : index
    %9 = vector.load %arg4[%c0_6, %c0_7] : memref<160x32xbf16, #tpu.memory_space<vmem>>, vector<160x32xbf16>
    tpu.vector_store %arg4[%c0_6, %c0_7], %8 {strides = array<i32>} : memref<160x32xbf16, #tpu.memory_space<vmem>>, vector<160x32xbf16>,
    return
  }
  func.func @transform_0(%arg0: i32) -> (i32, i32) {
    %c0_i32 = arith.constant 0 : i32
    %c0_i32_0 = arith.constant 0 : i32
    return %arg0, %c0_i32 : i32, i32
  }
  func.func @transform_1(%arg0: i32) -> (i32, i32) {
    %c0_i32 = arith.constant 0 : i32
    %c0_i32_0 = arith.constant 0 : i32
    %c0_i32_1 = arith.constant 0 : i32
    return %c0_i32, %c0_i32_0 : i32, i32
  }
  func.func @transform_2(%arg0: i32) -> (i32, i32) {
    %c0_i32 = arith.constant 0 : i32
    %c0_i32_0 = arith.constant 0 : i32
    %c0_i32_1 = arith.constant 0 : i32
    return %c0_i32, %c0_i32_0 : i32, i32
  }
  func.func @transform_3(%arg0: i32) -> (i32, i32) {
    %c0_i32 = arith.constant 0 : i32
    %c0_i32_0 = arith.constant 0 : i32
    return %arg0, %c0_i32 : i32, i32
  }
}

module attributes {stable_mosaic.version = 11 : i64} {
  func.func @_mm_bias_relu_kernel(%arg0: i32, %arg1: memref<96x512xbf16, #tpu.memory_space<vmem>>, %arg2: memref<512x64xbf16, #tpu.memory_space<vmem>>, %arg3: memref<1x64xf32, #tpu.memory_space<vmem>>, %arg4: memref<96x64xbf16, #tpu.memory_space<vmem>>) attributes {dimension_semantics = [#tpu.dimension_semantics<parallel>], iteration_bounds = array<i64: 2>, scalar_prefetch = 0 : i64, scratch_operands = 0 : i64, tpu.core_type = #tpu.core_type<tc>, window_params = [{transform_indices = @transform_0, window_bounds = array<i64: 96, 512>}, {pipeline_mode = #tpu.pipeline_mode<synchronous>, transform_indices = @transform_1, window_bounds = array<i64: 512, 64>}, {pipeline_mode = #tpu.pipeline_mode<synchronous>, transform_indices = @transform_2, window_bounds = array<i64: 1, 64>}, {transform_indices = @transform_3, window_bounds = array<i64: 96, 64>}]} {
    %c0 = arith.constant 0 : index
    %c0_0 = arith.constant 0 : index
    %0 = vector.load %arg1[%c0, %c0_0] : memref<96x512xbf16, #tpu.memory_space<vmem>>, vector<96x512xbf16>
    %c0_1 = arith.constant 0 : index
    %c0_2 = arith.constant 0 : index
    %1 = vector.load %arg2[%c0_1, %c0_2] : memref<512x64xbf16, #tpu.memory_space<vmem>>, vector<512x64xbf16>
    %cst = arith.constant dense<0.000000e+00> : vector<96x64xf32>
    %2 = tpu.matmul %0, %1, %cst {dimension_numbers = #tpu.dot_dimension_numbers<[1], [0], [0], [1], [0, 0, 1, 1], [], []>} : vector<96x512xbf16>, vector<512x64xbf16>, vector<96x64xf32> -> vector<96x64xf32>
    %c0_3 = arith.constant 0 : index
    %c0_4 = arith.constant 0 : index
    %3 = vector.load %arg3[%c0_3, %c0_4] : memref<1x64xf32, #tpu.memory_space<vmem>>, vector<1x64xf32>
    %4 = vector.broadcast %3 : vector<1x64xf32> to vector<96x64xf32>
    %5 = arith.addf %2, %4 : vector<96x64xf32>
    %cst_5 = arith.constant 0.000000e+00 : f32
    %6 = vector.broadcast %cst_5 : f32 to vector<96x64xf32>
    %7 = arith.maximumf %5, %6 : vector<96x64xf32>
    %8 = arith.truncf %7 : vector<96x64xf32> to vector<96x64xbf16>
    %c0_6 = arith.constant 0 : index
    %c0_7 = arith.constant 0 : index
    %9 = vector.load %arg4[%c0_6, %c0_7] : memref<96x64xbf16, #tpu.memory_space<vmem>>, vector<96x64xbf16>
    tpu.vector_store %arg4[%c0_6, %c0_7], %8 {strides = array<i32>} : memref<96x64xbf16, #tpu.memory_space<vmem>>, vector<96x64xbf16>,
    return
  }
  func.func @transform_0(%arg0: i32) -> (i32, i32) {
    %c0_i32 = arith.constant 0 : i32
    %c0_i32_0 = arith.constant 0 : i32
    return %arg0, %c0_i32 : i32, i32
  }
  func.func @transform_1(%arg0: i32) -> (i32, i32) {
    %c0_i32 = arith.constant 0 : i32
    %c0_i32_0 = arith.constant 0 : i32
    %c0_i32_1 = arith.constant 0 : i32
    return %c0_i32, %c0_i32_0 : i32, i32
  }
  func.func @transform_2(%arg0: i32) -> (i32, i32) {
    %c0_i32 = arith.constant 0 : i32
    %c0_i32_0 = arith.constant 0 : i32
    %c0_i32_1 = arith.constant 0 : i32
    return %c0_i32, %c0_i32_0 : i32, i32
  }
  func.func @transform_3(%arg0: i32) -> (i32, i32) {
    %c0_i32 = arith.constant 0 : i32
    %c0_i32_0 = arith.constant 0 : i32
    return %arg0, %c0_i32 : i32, i32
  }
}

module attributes {stable_mosaic.version = 11 : i64} {
  func.func @_mm_bias_relu_kernel(%arg0: i32, %arg1: memref<16x576xbf16, #tpu.memory_space<vmem>>, %arg2: memref<576x64xbf16, #tpu.memory_space<vmem>>, %arg3: memref<1x64xf32, #tpu.memory_space<vmem>>, %arg4: memref<16x64xbf16, #tpu.memory_space<vmem>>) attributes {dimension_semantics = [#tpu.dimension_semantics<parallel>], iteration_bounds = array<i64: 7>, scalar_prefetch = 0 : i64, scratch_operands = 0 : i64, tpu.core_type = #tpu.core_type<tc>, window_params = [{transform_indices = @transform_0, window_bounds = array<i64: 16, 576>}, {pipeline_mode = #tpu.pipeline_mode<synchronous>, transform_indices = @transform_1, window_bounds = array<i64: 576, 64>}, {pipeline_mode = #tpu.pipeline_mode<synchronous>, transform_indices = @transform_2, window_bounds = array<i64: 1, 64>}, {transform_indices = @transform_3, window_bounds = array<i64: 16, 64>}]} {
    %c0 = arith.constant 0 : index
    %c0_0 = arith.constant 0 : index
    %0 = vector.load %arg1[%c0, %c0_0] : memref<16x576xbf16, #tpu.memory_space<vmem>>, vector<16x576xbf16>
    %c0_1 = arith.constant 0 : index
    %c0_2 = arith.constant 0 : index
    %1 = vector.load %arg2[%c0_1, %c0_2] : memref<576x64xbf16, #tpu.memory_space<vmem>>, vector<576x64xbf16>
    %cst = arith.constant dense<0.000000e+00> : vector<16x64xf32>
    %2 = tpu.matmul %0, %1, %cst {dimension_numbers = #tpu.dot_dimension_numbers<[1], [0], [0], [1], [0, 0, 1, 1], [], []>} : vector<16x576xbf16>, vector<576x64xbf16>, vector<16x64xf32> -> vector<16x64xf32>
    %c0_3 = arith.constant 0 : index
    %c0_4 = arith.constant 0 : index
    %3 = vector.load %arg3[%c0_3, %c0_4] : memref<1x64xf32, #tpu.memory_space<vmem>>, vector<1x64xf32>
    %4 = vector.broadcast %3 : vector<1x64xf32> to vector<16x64xf32>
    %5 = arith.addf %2, %4 : vector<16x64xf32>
    %cst_5 = arith.constant 0.000000e+00 : f32
    %6 = vector.broadcast %cst_5 : f32 to vector<16x64xf32>
    %7 = arith.maximumf %5, %6 : vector<16x64xf32>
    %8 = arith.truncf %7 : vector<16x64xf32> to vector<16x64xbf16>
    %c0_6 = arith.constant 0 : index
    %c0_7 = arith.constant 0 : index
    %9 = vector.load %arg4[%c0_6, %c0_7] : memref<16x64xbf16, #tpu.memory_space<vmem>>, vector<16x64xbf16>
    tpu.vector_store %arg4[%c0_6, %c0_7], %8 {strides = array<i32>} : memref<16x64xbf16, #tpu.memory_space<vmem>>, vector<16x64xbf16>,
    return
  }
  func.func @transform_0(%arg0: i32) -> (i32, i32) {
    %c0_i32 = arith.constant 0 : i32
    %c0_i32_0 = arith.constant 0 : i32
    return %arg0, %c0_i32 : i32, i32
  }
  func.func @transform_1(%arg0: i32) -> (i32, i32) {
    %c0_i32 = arith.constant 0 : i32
    %c0_i32_0 = arith.constant 0 : i32
    %c0_i32_1 = arith.constant 0 : i32
    return %c0_i32, %c0_i32_0 : i32, i32
  }
  func.func @transform_2(%arg0: i32) -> (i32, i32) {
    %c0_i32 = arith.constant 0 : i32
    %c0_i32_0 = arith.constant 0 : i32
    %c0_i32_1 = arith.constant 0 : i32
    return %c0_i32, %c0_i32_0 : i32, i32
  }
  func.func @transform_3(%arg0: i32) -> (i32, i32) {
    %c0_i32 = arith.constant 0 : i32
    %c0_i32_0 = arith.constant 0 : i32
    return %arg0, %c0_i32 : i32, i32
  }
}

module attributes {stable_mosaic.version = 11 : i64} {
  func.func @_heads_kernel(%arg0: i32, %arg1: memref<2x3136xbf16, #tpu.memory_space<vmem>>, %arg2: memref<3136x512xbf16, #tpu.memory_space<vmem>>, %arg3: memref<1x1x512xf32, #tpu.memory_space<vmem>>, %arg4: memref<1x512x4xbf16, #tpu.memory_space<vmem>>, %arg5: memref<1x1x4xf32, #tpu.memory_space<vmem>>, %arg6: memref<1x2x4xf32, #tpu.memory_space<vmem>>) attributes {dimension_semantics = [#tpu.dimension_semantics<parallel>], iteration_bounds = array<i64: 2>, scalar_prefetch = 0 : i64, scratch_operands = 0 : i64, tpu.core_type = #tpu.core_type<tc>, window_params = [{pipeline_mode = #tpu.pipeline_mode<synchronous>, transform_indices = @transform_0, window_bounds = array<i64: 2, 3136>}, {transform_indices = @transform_1, window_bounds = array<i64: 3136, 512>}, {transform_indices = @transform_2, window_bounds = array<i64: 1, 1, 512>}, {transform_indices = @transform_3, window_bounds = array<i64: 1, 512, 4>}, {transform_indices = @transform_4, window_bounds = array<i64: 1, 1, 4>}, {transform_indices = @transform_5, window_bounds = array<i64: 1, 2, 4>}]} {
    %c0 = arith.constant 0 : index
    %c0_0 = arith.constant 0 : index
    %0 = vector.load %arg1[%c0, %c0_0] : memref<2x3136xbf16, #tpu.memory_space<vmem>>, vector<2x3136xbf16>
    %c0_1 = arith.constant 0 : index
    %c0_2 = arith.constant 0 : index
    %1 = vector.load %arg2[%c0_1, %c0_2] : memref<3136x512xbf16, #tpu.memory_space<vmem>>, vector<3136x512xbf16>
    %cst = arith.constant dense<0.000000e+00> : vector<2x512xf32>
    %2 = tpu.matmul %0, %1, %cst {dimension_numbers = #tpu.dot_dimension_numbers<[1], [0], [0], [1], [0, 0, 1, 1], [], []>} : vector<2x3136xbf16>, vector<3136x512xbf16>, vector<2x512xf32> -> vector<2x512xf32>
    %c0_3 = arith.constant 0 : index
    %c0_4 = arith.constant 0 : index
    %c0_5 = arith.constant 0 : index
    %3 = vector.load %arg3[%c0_3, %c0_4, %c0_5] : memref<1x1x512xf32, #tpu.memory_space<vmem>>, vector<1x1x512xf32>
    %4 = vector.shape_cast %3 : vector<1x1x512xf32> to vector<1x512xf32>
    %5 = vector.broadcast %4 : vector<1x512xf32> to vector<2x512xf32>
    %6 = arith.addf %2, %5 : vector<2x512xf32>
    %cst_6 = arith.constant 0.000000e+00 : f32
    %7 = vector.broadcast %cst_6 : f32 to vector<2x512xf32>
    %8 = arith.maximumf %6, %7 : vector<2x512xf32>
    %9 = arith.truncf %8 : vector<2x512xf32> to vector<2x512xbf16>
    %c0_7 = arith.constant 0 : index
    %c0_8 = arith.constant 0 : index
    %c0_9 = arith.constant 0 : index
    %10 = vector.load %arg4[%c0_7, %c0_8, %c0_9] : memref<1x512x4xbf16, #tpu.memory_space<vmem>>, vector<1x512x4xbf16>
    %11 = vector.shape_cast %10 : vector<1x512x4xbf16> to vector<512x4xbf16>
    %cst_10 = arith.constant dense<0.000000e+00> : vector<2x4xf32>
    %12 = tpu.matmul %9, %11, %cst_10 {dimension_numbers = #tpu.dot_dimension_numbers<[1], [0], [0], [1], [0, 0, 1, 1], [], []>} : vector<2x512xbf16>, vector<512x4xbf16>, vector<2x4xf32> -> vector<2x4xf32>
    %c0_11 = arith.constant 0 : index
    %c0_12 = arith.constant 0 : index
    %c0_13 = arith.constant 0 : index
    %13 = vector.load %arg5[%c0_11, %c0_12, %c0_13] : memref<1x1x4xf32, #tpu.memory_space<vmem>>, vector<1x1x4xf32>
    %14 = vector.shape_cast %13 : vector<1x1x4xf32> to vector<1x4xf32>
    %15 = vector.broadcast %14 : vector<1x4xf32> to vector<2x4xf32>
    %16 = arith.addf %12, %15 : vector<2x4xf32>
    %c0_14 = arith.constant 0 : index
    %c0_15 = arith.constant 0 : index
    %c0_16 = arith.constant 0 : index
    %17 = vector.load %arg6[%c0_14, %c0_15, %c0_16] : memref<1x2x4xf32, #tpu.memory_space<vmem>>, vector<1x2x4xf32>
    %18 = vector.shape_cast %17 : vector<1x2x4xf32> to vector<2x4xf32>
    %19 = vector.shape_cast %16 : vector<2x4xf32> to vector<1x2x4xf32>
    tpu.vector_store %arg6[%c0_14, %c0_15, %c0_16], %19 {strides = array<i32>} : memref<1x2x4xf32, #tpu.memory_space<vmem>>, vector<1x2x4xf32>,
    return
  }
  func.func @transform_0(%arg0: i32) -> (i32, i32) {
    %c0_i32 = arith.constant 0 : i32
    %c0_i32_0 = arith.constant 0 : i32
    %c0_i32_1 = arith.constant 0 : i32
    return %c0_i32, %c0_i32_0 : i32, i32
  }
  func.func @transform_1(%arg0: i32) -> (i32, i32) {
    %c0_i32 = arith.constant 0 : i32
    %c0_i32_0 = arith.constant 0 : i32
    return %c0_i32, %arg0 : i32, i32
  }
  func.func @transform_2(%arg0: i32) -> (i32, i32, i32) {
    %c0_i32 = arith.constant 0 : i32
    %c0_i32_0 = arith.constant 0 : i32
    %c0_i32_1 = arith.constant 0 : i32
    return %arg0, %c0_i32, %c0_i32_0 : i32, i32, i32
  }
  func.func @transform_3(%arg0: i32) -> (i32, i32, i32) {
    %c0_i32 = arith.constant 0 : i32
    %c0_i32_0 = arith.constant 0 : i32
    %c0_i32_1 = arith.constant 0 : i32
    return %arg0, %c0_i32, %c0_i32_0 : i32, i32, i32
  }
  func.func @transform_4(%arg0: i32) -> (i32, i32, i32) {
    %c0_i32 = arith.constant 0 : i32
    %c0_i32_0 = arith.constant 0 : i32
    %c0_i32_1 = arith.constant 0 : i32
    return %arg0, %c0_i32, %c0_i32_0 : i32, i32, i32
  }
  func.func @transform_5(%arg0: i32) -> (i32, i32, i32) {
    %c0_i32 = arith.constant 0 : i32
    %c0_i32_0 = arith.constant 0 : i32
    %c0_i32_1 = arith.constant 0 : i32
    return %arg0, %c0_i32, %c0_i32_0 : i32, i32, i32
  }
}

</mosaic_0001>

<bundles_post_ra>
// kernel: split_q_forward.4
= control target key start
LH: loop header
LB: loop body
LE: loop exit
PB: predicated region body
PF: predicated region fallthrough
CT: control target
= control target key end

     0   :  { %s985_s12 = smov 0   ;;  %s1143_s0 = inlined_call_operand.vmem [shape: bf16[800,256], index: 0, kind: input, shape index: {}]   ;;  %s1144_s1 = inlined_call_operand.vmem [shape: bf16[256,32], index: 1, kind: input, shape index: {}]   ;;  %s1145_s2 = inlined_call_operand.vmem [shape: f32[1,32], index: 2, kind: input, shape index: {}]   ;;  %s1146_s3 = inlined_call_operand.vmem [shape: bf16[800,32], index: 3, kind: output, shape index: {}]  }
   0x1 LB: > { %s723_s13 = sadd.s32 4294967295, %s963_s12   ;;  %p727_p0 = scmp.ge.s32.totalorder %s963_s12, 1  ;;  %s963_s12 = sphi %s985_s12, %s13_s12  }
   0x2   : > { %p139_p1 = scmp.lt.s32.totalorder %s963_s12, 6 }
   0x4   : > { %p140_p2 = pnand %p727_p0, %p139_p1 }
   0x5   : > { %v911_v0 = vld [vmem:[%s1144_s1 + $0x40] sm:$0xff] (!%p140_p2)   ;;  %s164_s16 = smul.u32 (!%p140_p2), 20, %s723_s13  ;;  %v913_v2 = vld [vmem:[%s1144_s1 + $0x48] sm:$0xff] (!%p140_p2)   ;;  %v915_v4 = vld [vmem:[%s1144_s1 + $0x50] sm:$0xff] (!%p140_p2)   ;;  %vm646_vm0 = vcmask (!%p140_p2), 257024  }
   0x6   : > { %143 = sbr.rel (%p140_p2) target bundleno = 294 (0x126), region = 32  ;;  %v912_v1 = vld [vmem:[%s1144_s1] sm:$0xff] (!%p140_p2)   ;;  %811 = vmatprep.subr.bf16.mxu0 (!%p140_p2), %v911_v0  ;;  %887 = vmatprep.subr.bf16.mxu1 (!%p140_p2), %v911_v0  ;;  %v914_v3 = vld [vmem:[%s1144_s1 + $0x8] sm:$0xff] (!%p140_p2)   ;;  %v916_v5 = vld [vmem:[%s1144_s1 + $0x10] sm:$0xff] (!%p140_p2)  }
   0x7   : > { %812 = vmatpush3.bf16.msra.mxu0 (!%p140_p2), %v912_v1  ;;  %895 = vmatpush3.bf16.msra.mxu1 (!%p140_p2), %v912_v1  ;;  %p165_p3 = scmp.lt.s32.totalorder (!%p140_p2), %s164_s16, 99  ;;  %v917_v6 = vld [vmem:[%s1144_s1 + $0x58] sm:$0xff] (!%p140_p2)   ;;  %v919_v8 = vld [vmem:[%s1144_s1 + $0x60] sm:$0xff] (!%p140_p2)   ;;  %v921_v10 = vld [vmem:[%s1144_s1 + $0x68] sm:$0xff] (!%p140_p2)  }
   0x8   : > { %813 = vmatprep.subr.bf16.mxu0 (!%p140_p2), %v913_v2  ;;  %888 = vmatprep.subr.bf16.mxu1 (!%p140_p2), %v913_v2  ;;  %v918_v7 = vld [vmem:[%s1144_s1 + $0x18] sm:$0xff] (!%p140_p2)   ;;  %v920_v9 = vld [vmem:[%s1144_s1 + $0x20] sm:$0xff] (!%p140_p2)   ;;  %v922_v13 = vld [vmem:[%s1144_s1 + $0x28] sm:$0xff] (!%p140_p2)  }
   0x9   : > { %v923_v14 = vld [vmem:[%s1144_s1 + $0x70] sm:$0xff] (!%p140_p2)   ;;  %v925_v16 = vld [vmem:[%s1144_s1 + $0x78] sm:$0xff] (!%p140_p2)   ;;  %v1072_v38 = vld [vmem:[%s1145_s2] ss:$0 sm:$0xff] (!%p140_p2) }
   0xa   : > { %v924_v15 = vld [vmem:[%s1144_s1 + $0x30] sm:$0xff] (!%p140_p2)   ;;  %v926_v17 = vld [vmem:[%s1144_s1 + $0x38] sm:$0xff] (!%p140_p2)  }
   0xb   : > { %814 = vmatpush3.bf16.msra.mxu0 (!%p140_p2), %v914_v3  ;;  %896 = vmatpush3.bf16.msra.mxu1 (!%p140_p2), %v914_v3 }
   0xc   : > { %815 = vmatprep.subr.bf16.mxu0 (!%p140_p2), %v915_v4  ;;  %889 = vmatprep.subr.bf16.mxu1 (!%p140_p2), %v915_v4 }
   0xd   : > { %s1148_s16 = smov (!%p165_p3, %s164_s16), 99 }
   0xe   : > { %s790_s4 = sshll.u32 %s1148_s16, 3  ;;  %s730_s28 = sshll.u32 %s1148_s16, 2 }
   0xf   : > { %816 = vmatpush3.bf16.msra.mxu0 %v916_v5  ;;  %897 = vmatpush3.bf16.msra.mxu1 %v916_v5  ;;  %s1026_s9 = scalar_lea.vmem %s1143_s0, %s790_s4  ;;  %s1082_s4 = scalar_lea.vmem %s1146_s3, %s730_s28 }
  0x10   : > { %817 = vmatprep.subr.bf16.mxu0 %v917_v6  ;;  %890 = vmatprep.subr.bf16.mxu1 %v917_v6  ;;  %v929_v11 = vld [vmem:[%s1026_s9 + $0x4] ss:$8 sps:$4 sm:$0xff]   ;;  %v932_v12 = vld [vmem:[%s1026_s9 + $0x54] ss:$8 sps:$4 sm:$0xff]   ;;  %v927_v18 = vld [vmem:[%s1026_s9] ss:$8 sps:$4 sm:$0xff]  }
  0x11   : > { %465 = vmatprep.mubr.bf16.mxu0 %v929_v11  ;;  %505 = vmatprep.mubr.bf16.mxu1 %v932_v12  ;;  %v930_v19 = vld [vmem:[%s1026_s9 + $0x50] ss:$8 sps:$4 sm:$0xff]   ;;  %v933_v20 = vld [vmem:[%s1026_s9 + $0x14] ss:$8 sps:$4 sm:$0xff]   ;;  %v935_v21 = vld [vmem:[%s1026_s9 + $0x64] ss:$8 sps:$4 sm:$0xff]  }
  0x12   : > { %v937_v22 = vld [vmem:[%s1026_s9 + $0x10] ss:$8 sps:$4 sm:$0xff]   ;;  %v938_v23 = vld [vmem:[%s1026_s9 + $0x60] ss:$8 sps:$4 sm:$0xff]   ;;  %v939_v24 = vld [vmem:[%s1026_s9 + $0x24] ss:$8 sps:$4 sm:$0xff]  }
  0x13   : > { %818 = vmatpush3.bf16.msra.mxu0 %v918_v7  ;;  %898 = vmatpush3.bf16.msra.mxu1 %v918_v7  ;;  %v941_v25 = vld [vmem:[%s1026_s9 + $0x74] ss:$8 sps:$4 sm:$0xff]   ;;  %v943_v26 = vld [vmem:[%s1026_s9 + $0x20] ss:$8 sps:$4 sm:$0xff]   ;;  %v944_v27 = vld [vmem:[%s1026_s9 + $0x70] ss:$8 sps:$4 sm:$0xff]  }
  0x14   : > { %819 = vmatprep.subr.bf16.mxu0 %v919_v8  ;;  %891 = vmatprep.subr.bf16.mxu1 %v919_v8  ;;  %v945_v28 = vld [vmem:[%s1026_s9 + $0x34] ss:$8 sps:$4 sm:$0xff]   ;;  %v947_v29 = vld [vmem:[%s1026_s9 + $0x84] ss:$8 sps:$4 sm:$0xff]   ;;  %v949_v30 = vld [vmem:[%s1026_s9 + $0x30] ss:$8 sps:$4 sm:$0xff]  }
  0x15   : > { %v950_v31 = vld [vmem:[%s1026_s9 + $0x80] ss:$8 sps:$4 sm:$0xff]   ;;  %v951_v32 = vld [vmem:[%s1026_s9 + $0x44] ss:$8 sps:$4 sm:$0xff]   ;;  %v953_v33 = vld [vmem:[%s1026_s9 + $0x94] ss:$8 sps:$4 sm:$0xff]  }
  0x16   : > { %v955_v34 = vld [vmem:[%s1026_s9 + $0x40] ss:$8 sps:$4 sm:$0xff]   ;;  %v956_v35 = vld [vmem:[%s1026_s9 + $0x90] ss:$8 sps:$4 sm:$0xff]  }
  0x17   : > { %820 = vmatpush3.bf16.msra.mxu0 %v920_v9  ;;  %899 = vmatpush3.bf16.msra.mxu1 %v920_v9 }
  0x18   : > { %821 = vmatprep.subr.bf16.mxu0 %v921_v10  ;;  %892 = vmatprep.subr.bf16.mxu1 %v921_v10 }
  0x1b   : > { %822 = vmatpush3.bf16.msra.mxu0 %v922_v13  ;;  %900 = vmatpush3.bf16.msra.mxu1 %v922_v13 }
  0x1c   : > { %823 = vmatprep.subr.bf16.mxu0 %v923_v14  ;;  %893 = vmatprep.subr.bf16.mxu1 %v923_v14 }
  0x1f   : > { %824 = vmatpush3.bf16.msra.mxu0 %v924_v15  ;;  %901 = vmatpush3.bf16.msra.mxu1 %v924_v15 }
  0x20   : > { %825 = vmatprep.subr.bf16.mxu0 %v925_v16  ;;  %894 = vmatprep.subr.bf16.mxu1 %v925_v16 }
  0x23   : > { %826 = vmatpush3.bf16.msra.mxu0 %v926_v17  ;;  %902 = vmatpush3.bf16.msra.mxu1 %v926_v17 }
  0x26   : > { %466 = vmatmul.mubr.bf16.vlgmr.msra.gmra.mrb[0].mxu0 %v927_v18  ;;  %506 = vmatmul.mubr.bf16.vlgmr.msra.gmra.mrb[0].mxu1 %v930_v19 }
  0x27   : > { %473 = vmatprep.mubr.bf16.mxu0 %v933_v20  ;;  %513 = vmatprep.mubr.bf16.mxu1 %v935_v21 }
  0x2e   : > { %474 = vmatmul.mubr.bf16.gmra.mrb[4].mxu0 %v937_v22  ;;  %514 = vmatmul.mubr.bf16.gmra.mrb[4].mxu1 %v938_v23 }
  0x2f   : > { %481 = vmatprep.mubr.bf16.mxu0 %v939_v24  ;;  %521 = vmatprep.mubr.bf16.mxu1 %v941_v25 }
  0x36   : > { %482 = vmatmul.mubr.bf16.gmra.mrb[8].mxu0 %v943_v26  ;;  %522 = vmatmul.mubr.bf16.gmra.mrb[8].mxu1 %v944_v27 }
  0x37   : > { %489 = vmatprep.mubr.bf16.mxu0 %v945_v28  ;;  %529 = vmatprep.mubr.bf16.mxu1 %v947_v29 }
  0x3e   : > { %490 = vmatmul.mubr.bf16.gmra.mrb[12].mxu0 %v949_v30  ;;  %530 = vmatmul.mubr.bf16.gmra.mrb[12].mxu1 %v950_v31 }
  0x3f   : > { %497 = vmatprep.mubr.bf16.mxu0 %v951_v32  ;;  %537 = vmatprep.mubr.bf16.mxu1 %v953_v33 }
  0x46   : > { %498 = vmatmul.mubr.bf16.gmra.mrb[16].mxu0 %v955_v34  ;;  %538 = vmatmul.mubr.bf16.gmra.mrb[16].mxu1 %v956_v35 }
  0xf9   : > { %v827_v36 = vpop.f32.mrb[0].mxu0  ;;  %v857_v37 = vpop.f32.mrb[0].mxu1 }
  0xfa   : > { %v828_v39 = vpop.f32.mrb[1].mxu0  ;;  %v858_v40 = vpop.f32.mrb[1].mxu1 }
  0xfb   : > { %v829_v41 = vadd.f32 %v828_v39, %v827_v36  ;;  %v859_v42 = vadd.f32 %v858_v40, %v857_v37  ;;  %v830_v43 = vpop.f32.mrb[2].mxu0  ;;  %v860_v44 = vpop.f32.mrb[2].mxu1 }
  0xfc   : > { %v831_v45 = vpop.f32.mrb[3].mxu0  ;;  %v861_v46 = vpop.f32.mrb[3].mxu1 }
  0xfd   : > { %v468_v47 = vadd.f32 %v829_v41, %v1072_v38  ;;  %v508_v48 = vadd.f32 %v859_v42, %v1072_v38  ;;  %v832_v49 = vadd.f32 %v831_v45, %v830_v43  ;;  %v862_v50 = vadd.f32 %v861_v46, %v860_v44 }
  0xff   : > { %v546_v51 = vmax.f32 %v468_v47, 0.0  ;;  %v556_v52 = vmax.f32 %v508_v48, 0.0  ;;  %v471_v53 = vadd.f32 %v832_v49, %v1072_v38  ;;  %v511_v54 = vadd.f32 %v862_v50, %v1072_v38 }
 0x101   : > { %v791_v55 = vpack.c.bf16 %v546_v51, %v546_v51  ;;  %v801_v56 = vpack.c.bf16 %v556_v52, %v556_v52  ;;  %v547_v57 = vmax.f32 %v471_v53, 0.0  ;;  %v557_v58 = vmax.f32 %v511_v54, 0.0  ;;  %v833_v59 = vpop.f32.mrb[4].mxu0  ;;  %v863_v60 = vpop.f32.mrb[4].mxu1 }
 0x102   : > { %v834_v61 = vpop.f32.mrb[5].mxu0  ;;  %v864_v62 = vpop.f32.mrb[5].mxu1 }
 0x103   : > { %647 = vst.msk [vmem:[%s1082_s4] sm:$0xf] %vm646_vm0, %v791_v55  ;;  %657 = vst.msk [vmem:[%s1082_s4 + $0x28] sm:$0xf] %vm646_vm0, %v801_v56  ;;  %v792_v63 = vpack.c.bf16 %v547_v57, %v547_v57  ;;  %v802_v0 = vpack.c.bf16 %v557_v58, %v557_v58  ;;  %v835_v1 = vadd.f32 %v834_v61, %v833_v59  ;;  %v836_v3 = vpop.f32.mrb[6].mxu0  ;;  %v866_v4 = vpop.f32.mrb[6].mxu1 }
 0x104   : > { %v865_v2 = vadd.f32 %v864_v62, %v863_v60  ;;  %v837_v5 = vpop.f32.mrb[7].mxu0  ;;  %v867_v6 = vpop.f32.mrb[7].mxu1 }
 0x105   : > { %648 = vst.msk [vmem:[%s1082_s4 + $0x4] sm:$0xf] %vm646_vm0, %v792_v63  ;;  %658 = vst.msk [vmem:[%s1082_s4 + $0x2c] sm:$0xf] %vm646_vm0, %v802_v0  ;;  %v476_v7 = vadd.f32 %v835_v1, %v1072_v38  ;;  %v838_v9 = vadd.f32 %v837_v5, %v836_v3  ;;  %v868_v10 = vadd.f32 %v867_v6, %v866_v4 }
 0x106   : > { %v516_v8 = vadd.f32 %v865_v2, %v1072_v38 }
 0x107   : > { %v548_v11 = vmax.f32 %v476_v7, 0.0  ;;  %v479_v13 = vadd.f32 %v838_v9, %v1072_v38  ;;  %v519_v14 = vadd.f32 %v868_v10, %v1072_v38 }
 0x108   : > { %v558_v12 = vmax.f32 %v516_v8, 0.0 }
 0x109   : > { %v793_v15 = vpack.c.bf16 %v548_v11, %v548_v11  ;;  %v549_v17 = vmax.f32 %v479_v13, 0.0  ;;  %v559_v18 = vmax.f32 %v519_v14, 0.0  ;;  %v839_v19 = vpop.f32.mrb[8].mxu0  ;;  %v869_v20 = vpop.f32.mrb[8].mxu1 }
 0x10a   : > { %v803_v16 = vpack.c.bf16 %v558_v12, %v558_v12  ;;  %v840_v21 = vpop.f32.mrb[9].mxu0  ;;  %v870_v22 = vpop.f32.mrb[9].mxu1 }
 0x10b   : > { %649 = vst.msk [vmem:[%s1082_s4 + $0x8] sm:$0xf] %vm646_vm0, %v793_v15  ;;  %v794_v23 = vpack.c.bf16 %v549_v17, %v549_v17  ;;  %v804_v24 = vpack.c.bf16 %v559_v18, %v559_v18  ;;  %v841_v25 = vadd.f32 %v840_v21, %v839_v19  ;;  %v871_v26 = vadd.f32 %v870_v22, %v869_v20  ;;  %v842_v27 = vpop.f32.mrb[10].mxu0  ;;  %v872_v28 = vpop.f32.mrb[10].mxu1 }
 0x10c   : > { %659 = vst.msk [vmem:[%s1082_s4 + $0x30] sm:$0xf] %vm646_vm0, %v803_v16  ;;  %v843_v29 = vpop.f32.mrb[11].mxu0  ;;  %v873_v30 = vpop.f32.mrb[11].mxu1 }
 0x10d   : > { %650 = vst.msk [vmem:[%s1082_s4 + $0xc] sm:$0xf] %vm646_vm0, %v794_v23  ;;  %660 = vst.msk [vmem:[%s1082_s4 + $0x34] sm:$0xf] %vm646_vm0, %v804_v24  ;;  %v484_v31 = vadd.f32 %v841_v25, %v1072_v38  ;;  %v524_v32 = vadd.f32 %v871_v26, %v1072_v38  ;;  %v844_v33 = vadd.f32 %v843_v29, %v842_v27 }
 0x10e   : > { %v874_v34 = vadd.f32 %v873_v30, %v872_v28 }
 0x10f   : > { %v550_v35 = vmax.f32 %v484_v31, 0.0  ;;  %v560_v36 = vmax.f32 %v524_v32, 0.0  ;;  %v487_v37 = vadd.f32 %v844_v33, %v1072_v38 }
 0x110   : > { %v527_v39 = vadd.f32 %v874_v34, %v1072_v38 }
 0x111   : > { %v795_v40 = vpack.c.bf16 %v550_v35, %v550_v35  ;;  %v805_v41 = vpack.c.bf16 %v560_v36, %v560_v36  ;;  %v551_v42 = vmax.f32 %v487_v37, 0.0  ;;  %v845_v44 = vpop.f32.mrb[12].mxu0  ;;  %v875_v45 = vpop.f32.mrb[12].mxu1 }
 0x112   : > { %v561_v43 = vmax.f32 %v527_v39, 0.0  ;;  %v846_v46 = vpop.f32.mrb[13].mxu0  ;;  %v876_v47 = vpop.f32.mrb[13].mxu1 }
 0x113   : > { %651 = vst.msk [vmem:[%s1082_s4 + $0x10] sm:$0xf] %vm646_vm0, %v795_v40  ;;  %661 = vst.msk [vmem:[%s1082_s4 + $0x38] sm:$0xf] %vm646_vm0, %v805_v41  ;;  %v796_v48 = vpack.c.bf16 %v551_v42, %v551_v42  ;;  %v847_v50 = vadd.f32 %v846_v46, %v845_v44  ;;  %v877_v51 = vadd.f32 %v876_v47, %v875_v45  ;;  %v848_v52 = vpop.f32.mrb[14].mxu0  ;;  %v878_v53 = vpop.f32.mrb[14].mxu1 }
 0x114   : > { %v806_v49 = vpack.c.bf16 %v561_v43, %v561_v43  ;;  %v849_v54 = vpop.f32.mrb[15].mxu0  ;;  %v879_v55 = vpop.f32.mrb[15].mxu1 }
 0x115   : > { %652 = vst.msk [vmem:[%s1082_s4 + $0x14] sm:$0xf] %vm646_vm0, %v796_v48  ;;  %v492_v56 = vadd.f32 %v847_v50, %v1072_v38  ;;  %v532_v57 = vadd.f32 %v877_v51, %v1072_v38  ;;  %v850_v58 = vadd.f32 %v849_v54, %v848_v52  ;;  %v880_v59 = vadd.f32 %v879_v55, %v878_v53 }
 0x116   : > { %662 = vst.msk [vmem:[%s1082_s4 + $0x3c] sm:$0xf] %vm646_vm0, %v806_v49 }
 0x117   : > { %v552_v60 = vmax.f32 %v492_v56, 0.0  ;;  %v562_v61 = vmax.f32 %v532_v57, 0.0  ;;  %v495_v62 = vadd.f32 %v850_v58, %v1072_v38  ;;  %v535_v63 = vadd.f32 %v880_v59, %v1072_v38 }
 0x119   : > { %v797_v0 = vpack.c.bf16 %v552_v60, %v552_v60  ;;  %v807_v1 = vpack.c.bf16 %v562_v61, %v562_v61  ;;  %v553_v2 = vmax.f32 %v495_v62, 0.0  ;;  %v563_v3 = vmax.f32 %v535_v63, 0.0  ;;  %v851_v4 = vpop.f32.mrb[16].mxu0  ;;  %v881_v5 = vpop.f32.mrb[16].mxu1 }
 0x11a   : > { %v852_v6 = vpop.f32.mrb[17].mxu0  ;;  %v882_v7 = vpop.f32.mrb[17].mxu1 }
 0x11b   : > { %653 = vst.msk [vmem:[%s1082_s4 + $0x18] sm:$0xf] %vm646_vm0, %v797_v0  ;;  %663 = vst.msk [vmem:[%s1082_s4 + $0x40] sm:$0xf] %vm646_vm0, %v807_v1  ;;  %v798_v8 = vpack.c.bf16 %v553_v2, %v553_v2  ;;  %v808_v9 = vpack.c.bf16 %v563_v3, %v563_v3  ;;  %v853_v10 = vadd.f32 %v852_v6, %v851_v4  ;;  %v854_v12 = vpop.f32.mrb[18].mxu0  ;;  %v884_v13 = vpop.f32.mrb[18].mxu1 }
 0x11c   : > { %v883_v11 = vadd.f32 %v882_v7, %v881_v5  ;;  %v855_v14 = vpop.f32.mrb[19].mxu0  ;;  %v885_v15 = vpop.f32.mrb[19].mxu1 }
 0x11d   : > { %654 = vst.msk [vmem:[%s1082_s4 + $0x1c] sm:$0xf] %vm646_vm0, %v798_v8  ;;  %664 = vst.msk [vmem:[%s1082_s4 + $0x44] sm:$0xf] %vm646_vm0, %v808_v9  ;;  %v500_v16 = vadd.f32 %v853_v10, %v1072_v38  ;;  %v856_v18 = vadd.f32 %v855_v14, %v854_v12  ;;  %v886_v19 = vadd.f32 %v885_v15, %v884_v13 }
 0x11e   : > { %v540_v17 = vadd.f32 %v883_v11, %v1072_v38 }
 0x11f   : > { %v554_v20 = vmax.f32 %v500_v16, 0.0  ;;  %v503_v22 = vadd.f32 %v856_v18, %v1072_v38  ;;  %v543_v23 = vadd.f32 %v886_v19, %v1072_v38 }
 0x120   : > { %v564_v21 = vmax.f32 %v540_v17, 0.0 }
 0x121   : > { %v799_v24 = vpack.c.bf16 %v554_v20, %v554_v20  ;;  %v555_v26 = vmax.f32 %v503_v22, 0.0  ;;  %v565_v27 = vmax.f32 %v543_v23, 0.0 }
 0x122   : > { %v809_v25 = vpack.c.bf16 %v564_v21, %v564_v21 }
 0x123   : > { %655 = vst.msk [vmem:[%s1082_s4 + $0x20] sm:$0xf] %vm646_vm0, %v799_v24  ;;  %v800_v28 = vpack.c.bf16 %v555_v26, %v555_v26  ;;  %v810_v29 = vpack.c.bf16 %v565_v27, %v565_v27 }
 0x124   : > { %665 = vst.msk [vmem:[%s1082_s4 + $0x48] sm:$0xf] %vm646_vm0, %v809_v25 }
 0x125   : > { %656 = vst.msk [vmem:[%s1082_s4 + $0x24] sm:$0xf] %vm646_vm0, %v800_v28  ;;  %666 = vst.msk [vmem:[%s1082_s4 + $0x4c] sm:$0xf] %vm646_vm0, %v810_v29 }
 0x126 PF: > { %s13_s12 = sadd.s32 1, %s963_s12  }
 0x127   : > { %p10_p4 = scmp.ge.s32.totalorder %s13_s12, 7  }
 0x129   :  { %12 = sbr.rel (!%p10_p4) target bundleno = 1 (0x1), region = 62 }

// kernel: split_q_forward.5
= control target key start
LH: loop header
LB: loop body
LE: loop exit
PB: predicated region body
PF: predicated region fallthrough
CT: control target
= control target key end

     0   :  { %s1176_s12 = smov 0   ;;  %s1364_s0 = inlined_call_operand.vmem [shape: bf16[192,512], index: 0, kind: input, shape index: {}]   ;;  %s1365_s1 = inlined_call_operand.vmem [shape: bf16[512,64], index: 1, kind: input, shape index: {}]   ;;  %s1366_s2 = inlined_call_operand.vmem [shape: f32[1,64], index: 2, kind: input, shape index: {}]   ;;  %s1367_s3 = inlined_call_operand.vmem [shape: bf16[192,64], index: 3, kind: output, shape index: {}]  }
   0x1 LB: > { %s876_s13 = sadd.s32 4294967295, %s1154_s12   ;;  %p880_p0 = scmp.ge.s32.totalorder %s1154_s12, 1  ;;  %s1154_s12 = sphi %s1176_s12, %s13_s12  }
   0x2   : > { %p139_p1 = scmp.lt.s32.totalorder %s1154_s12, 3 }
   0x4   : > { %p140_p2 = pnand %p880_p0, %p139_p1 }
   0x5   : > { %v1080_v0 = vld [vmem:[%s1365_s1 + $0x40] sm:$0xff] (!%p140_p2)   ;;  %v1084_v4 = vld [vmem:[%s1365_s1 + $0x48] sm:$0xff] (!%p140_p2)   ;;  %v1088_v8 = vld [vmem:[%s1365_s1 + $0x50] sm:$0xff] (!%p140_p2)   ;;  %s164_s19 = smul.u32 (!%p140_p2), 12, %s876_s13  ;;  %vm807_vm0 = vcmask (!%p140_p2), 519168  }
   0x6   : > { %143 = sbr.rel (%p140_p2) target bundleno = 305 (0x131), region = 32  ;;  %v1081_v1 = vld [vmem:[%s1365_s1 + $0xc0] sm:$0xff] (!%p140_p2)   ;;  %968 = vmatprep.subr.bf16.mxu0 (!%p140_p2), %v1080_v0  ;;  %v1085_v5 = vld [vmem:[%s1365_s1 + $0xc8] sm:$0xff] (!%p140_p2)   ;;  %v1089_v9 = vld [vmem:[%s1365_s1 + $0xd0] sm:$0xff] (!%p140_p2)  }
   0x7   : > { %v1082_v2 = vld [vmem:[%s1365_s1] sm:$0xff] (!%p140_p2)   ;;  %1020 = vmatprep.subr.bf16.mxu1 (!%p140_p2), %v1081_v1  ;;  %v1086_v6 = vld [vmem:[%s1365_s1 + $0x8] sm:$0xff] (!%p140_p2)   ;;  %v1090_v10 = vld [vmem:[%s1365_s1 + $0x10] sm:$0xff] (!%p140_p2)   ;;  %p165_p3 = scmp.lt.s32.totalorder (!%p140_p2), %s164_s19, 23 }
   0x8   : > { %v1083_v3 = vld [vmem:[%s1365_s1 + $0x80] sm:$0xff] (!%p140_p2)   ;;  %969 = vmatpush3.bf16.msra.mxu0 (!%p140_p2), %v1082_v2  ;;  %v1087_v7 = vld [vmem:[%s1365_s1 + $0x88] sm:$0xff] (!%p140_p2)   ;;  %v1091_v11 = vld [vmem:[%s1365_s1 + $0x90] sm:$0xff] (!%p140_p2)  }
   0x9   : > { %1021 = vmatpush3.bf16.msra.mxu1 (!%p140_p2), %v1083_v3  ;;  %970 = vmatprep.subr.bf16.mxu0 (!%p140_p2), %v1084_v4  ;;  %v1092_v12 = vld [vmem:[%s1365_s1 + $0x58] sm:$0xff] (!%p140_p2)   ;;  %v1096_v16 = vld [vmem:[%s1365_s1 + $0x60] sm:$0xff] (!%p140_p2)   ;;  %v1100_v20 = vld [vmem:[%s1365_s1 + $0x68] sm:$0xff] (!%p140_p2)  }
   0xa   : > { %1022 = vmatprep.subr.bf16.mxu1 (!%p140_p2), %v1085_v5  ;;  %v1093_v13 = vld [vmem:[%s1365_s1 + $0xd8] sm:$0xff] (!%p140_p2)   ;;  %v1097_v17 = vld [vmem:[%s1365_s1 + $0xe0] sm:$0xff] (!%p140_p2)   ;;  %v1101_v21 = vld [vmem:[%s1365_s1 + $0xe8] sm:$0xff] (!%p140_p2)  }
   0xb   : > { %v1094_v14 = vld [vmem:[%s1365_s1 + $0x18] sm:$0xff] (!%p140_p2)   ;;  %v1098_v18 = vld [vmem:[%s1365_s1 + $0x20] sm:$0xff] (!%p140_p2)   ;;  %v1102_v22 = vld [vmem:[%s1365_s1 + $0x28] sm:$0xff] (!%p140_p2)  }
   0xc   : > { %971 = vmatpush3.bf16.msra.mxu0 (!%p140_p2), %v1086_v6  ;;  %v1095_v15 = vld [vmem:[%s1365_s1 + $0x98] sm:$0xff] (!%p140_p2)   ;;  %v1099_v19 = vld [vmem:[%s1365_s1 + $0xa0] sm:$0xff] (!%p140_p2)   ;;  %v1103_v23 = vld [vmem:[%s1365_s1 + $0xa8] sm:$0xff] (!%p140_p2)  }
   0xd   : > { %1023 = vmatpush3.bf16.msra.mxu1 %v1087_v7  ;;  %972 = vmatprep.subr.bf16.mxu0 %v1088_v8  ;;  %s1369_s19 = smov (!%p165_p3, %s164_s19), 23  ;;  %v1104_v24 = vld [vmem:[%s1365_s1 + $0x70] sm:$0xff]   ;;  %v1108_v28 = vld [vmem:[%s1365_s1 + $0x78] sm:$0xff]   ;;  %v1317_v58 = vld [vmem:[%s1366_s2] ss:$0 sm:$0xff] }
   0xe   : > { %1024 = vmatprep.subr.bf16.mxu1 %v1089_v9  ;;  %v1105_v25 = vld [vmem:[%s1365_s1 + $0xf0] sm:$0xff]   ;;  %s955_s18 = sshll.u32 %s1369_s19, 4  ;;  %v1109_v29 = vld [vmem:[%s1365_s1 + $0xf8] sm:$0xff]   ;;  %s883_s7 = sshll.u32 %s1369_s19, 2 }
   0xf   : > { %v1106_v26 = vld [vmem:[%s1365_s1 + $0x30] sm:$0xff]   ;;  %s1282_s13 = scalar_lea.vmem %s1364_s0, %s955_s18  ;;  %v1110_v30 = vld [vmem:[%s1365_s1 + $0x38] sm:$0xff]   ;;  %s1325_s10 = scalar_lea.vmem %s1367_s3, %s883_s7 }
  0x10   : > { %973 = vmatpush3.bf16.msra.mxu0 %v1090_v10  ;;  %v1107_v27 = vld [vmem:[%s1365_s1 + $0xb0] sm:$0xff]   ;;  %v1111_v31 = vld [vmem:[%s1365_s1 + $0xb8] sm:$0xff]  }
  0x11   : > { %1025 = vmatpush3.bf16.msra.mxu1 %v1091_v11  ;;  %974 = vmatprep.subr.bf16.mxu0 %v1092_v12  ;;  %v1112_v32 = vld [vmem:[%s1282_s13] ss:$16 sps:$4 sm:$0xff]   ;;  %v1114_v33 = vld [vmem:[%s1282_s13 + $0x4] ss:$16 sps:$4 sm:$0xff]   ;;  %v1115_v34 = vld [vmem:[%s1282_s13 + $0x8] ss:$16 sps:$4 sm:$0xff]  }
  0x12   : > { %1026 = vmatprep.subr.bf16.mxu1 %v1093_v13  ;;  %v1117_v35 = vld [vmem:[%s1282_s13 + $0xc] ss:$16 sps:$4 sm:$0xff]   ;;  %617 = vmatprep.mubr.bf16.mxu0 %v1114_v33  ;;  %v1118_v36 = vld [vmem:[%s1282_s13 + $0x24] ss:$16 sps:$4 sm:$0xff]   ;;  %v1122_v38 = vld [vmem:[%s1282_s13 + $0x20] ss:$16 sps:$4 sm:$0xff]  }
  0x13   : > { %698 = vmatprep.mubr.bf16.mxu1 %v1117_v35  ;;  %v1120_v37 = vld [vmem:[%s1282_s13 + $0x2c] ss:$16 sps:$4 sm:$0xff]   ;;  %v1123_v39 = vld [vmem:[%s1282_s13 + $0x28] ss:$16 sps:$4 sm:$0xff]   ;;  %v1124_v40 = vld [vmem:[%s1282_s13 + $0x44] ss:$16 sps:$4 sm:$0xff]  }
  0x14   : > { %975 = vmatpush3.bf16.msra.mxu0 %v1094_v14  ;;  %v1126_v41 = vld [vmem:[%s1282_s13 + $0x4c] ss:$16 sps:$4 sm:$0xff]   ;;  %v1128_v42 = vld [vmem:[%s1282_s13 + $0x40] ss:$16 sps:$4 sm:$0xff]   ;;  %v1129_v43 = vld [vmem:[%s1282_s13 + $0x48] ss:$16 sps:$4 sm:$0xff]  }
  0x15   : > { %1027 = vmatpush3.bf16.msra.mxu1 %v1095_v15  ;;  %976 = vmatprep.subr.bf16.mxu0 %v1096_v16  ;;  %v1130_v44 = vld [vmem:[%s1282_s13 + $0x64] ss:$16 sps:$4 sm:$0xff]   ;;  %v1132_v45 = vld [vmem:[%s1282_s13 + $0x6c] ss:$16 sps:$4 sm:$0xff]   ;;  %v1134_v46 = vld [vmem:[%s1282_s13 + $0x60] ss:$16 sps:$4 sm:$0xff]  }
  0x16   : > { %1028 = vmatprep.subr.bf16.mxu1 %v1097_v17  ;;  %v1135_v47 = vld [vmem:[%s1282_s13 + $0x68] ss:$16 sps:$4 sm:$0xff]   ;;  %v1136_v48 = vld [vmem:[%s1282_s13 + $0x84] ss:$16 sps:$4 sm:$0xff]   ;;  %v1138_v49 = vld [vmem:[%s1282_s13 + $0x8c] ss:$16 sps:$4 sm:$0xff]  }
  0x17   : > { %v1140_v50 = vld [vmem:[%s1282_s13 + $0x80] ss:$16 sps:$4 sm:$0xff]   ;;  %v1141_v51 = vld [vmem:[%s1282_s13 + $0x88] ss:$16 sps:$4 sm:$0xff]   ;;  %v1142_v52 = vld [vmem:[%s1282_s13 + $0xa4] ss:$16 sps:$4 sm:$0xff]  }
  0x18   : > { %977 = vmatpush3.bf16.msra.mxu0 %v1098_v18  ;;  %v1144_v53 = vld [vmem:[%s1282_s13 + $0xac] ss:$16 sps:$4 sm:$0xff]   ;;  %v1146_v54 = vld [vmem:[%s1282_s13 + $0xa0] ss:$16 sps:$4 sm:$0xff]   ;;  %v1147_v55 = vld [vmem:[%s1282_s13 + $0xa8] ss:$16 sps:$4 sm:$0xff]  }
  0x19   : > { %1029 = vmatpush3.bf16.msra.mxu1 %v1099_v19  ;;  %978 = vmatprep.subr.bf16.mxu0 %v1100_v20 }
  0x1a   : > { %1030 = vmatprep.subr.bf16.mxu1 %v1101_v21 }
  0x1c   : > { %979 = vmatpush3.bf16.msra.mxu0 %v1102_v22 }
  0x1d   : > { %1031 = vmatpush3.bf16.msra.mxu1 %v1103_v23  ;;  %980 = vmatprep.subr.bf16.mxu0 %v1104_v24 }
  0x1e   : > { %1032 = vmatprep.subr.bf16.mxu1 %v1105_v25 }
  0x20   : > { %981 = vmatpush3.bf16.msra.mxu0 %v1106_v26 }
  0x21   : > { %1033 = vmatpush3.bf16.msra.mxu1 %v1107_v27  ;;  %982 = vmatprep.subr.bf16.mxu0 %v1108_v28 }
  0x22   : > { %1034 = vmatprep.subr.bf16.mxu1 %v1109_v29 }
  0x24   : > { %983 = vmatpush3.bf16.msra.mxu0 %v1110_v30 }
  0x25   : > { %1035 = vmatpush3.bf16.msra.mxu1 %v1111_v31 }
  0x27   : > { %618 = vmatmul.mubr.bf16.vlgmr.msra.gmra.mrb[0].mxu0 %v1112_v32 }
  0x28   : > { %699 = vmatmul.mubr.bf16.vlgmr.msra.gmra.mrb[0].mxu1 %v1115_v34  ;;  %625 = vmatprep.mubr.bf16.mxu0 %v1118_v36 }
  0x29   : > { %706 = vmatprep.mubr.bf16.mxu1 %v1120_v37 }
  0x2f   : > { %626 = vmatmul.mubr.bf16.gmra.mrb[4].mxu0 %v1122_v38 }
  0x30   : > { %707 = vmatmul.mubr.bf16.gmra.mrb[4].mxu1 %v1123_v39  ;;  %633 = vmatprep.mubr.bf16.mxu0 %v1124_v40 }
  0x31   : > { %714 = vmatprep.mubr.bf16.mxu1 %v1126_v41 }
  0x37   : > { %634 = vmatmul.mubr.bf16.gmra.mrb[8].mxu0 %v1128_v42 }
  0x38   : > { %715 = vmatmul.mubr.bf16.gmra.mrb[8].mxu1 %v1129_v43  ;;  %641 = vmatprep.mubr.bf16.mxu0 %v1130_v44 }
  0x39   : > { %722 = vmatprep.mubr.bf16.mxu1 %v1132_v45 }
  0x3f   : > { %642 = vmatmul.mubr.bf16.gmra.mrb[12].mxu0 %v1134_v46 }
  0x40   : > { %723 = vmatmul.mubr.bf16.gmra.mrb[12].mxu1 %v1135_v47  ;;  %649 = vmatprep.mubr.bf16.mxu0 %v1136_v48 }
  0x41   : > { %730 = vmatprep.mubr.bf16.mxu1 %v1138_v49 }
  0x47   : > { %650 = vmatmul.mubr.bf16.gmra.mrb[16].mxu0 %v1140_v50 }
  0x48   : > { %731 = vmatmul.mubr.bf16.gmra.mrb[16].mxu1 %v1141_v51  ;;  %657 = vmatprep.mubr.bf16.mxu0 %v1142_v52 }
  0x49   : > { %738 = vmatprep.mubr.bf16.mxu1 %v1144_v53 }
  0x4f   : > { %658 = vmatmul.mubr.bf16.gmra.mrb[20].mxu0 %v1146_v54 }
  0x50   : > { %739 = vmatmul.mubr.bf16.gmra.mrb[20].mxu1 %v1147_v55 }
  0xfa   : > { %v984_v56 = vpop.f32.mrb[0].mxu0 }
  0xfb   : > { %v1036_v57 = vpop.f32.mrb[0].mxu1  ;;  %v985_v59 = vpop.f32.mrb[1].mxu0 }
  0xfc   : > { %v986_v60 = vadd.f32 %v985_v59, %v984_v56  ;;  %v1037_v61 = vpop.f32.mrb[1].mxu1  ;;  %v987_v62 = vpop.f32.mrb[2].mxu0 }
  0xfd   : > { %v1038_v63 = vadd.f32 %v1037_v61, %v1036_v57  ;;  %v1039_v0 = vpop.f32.mrb[2].mxu1  ;;  %v988_v1 = vpop.f32.mrb[3].mxu0 }
  0xfe   : > { %v620_v2 = vadd.f32 %v986_v60, %v1317_v58  ;;  %v989_v3 = vadd.f32 %v988_v1, %v987_v62  ;;  %v1040_v4 = vpop.f32.mrb[3].mxu1 }
  0xff   : > { %v1041_v5 = vadd.f32 %v1040_v4, %v1039_v0 }
 0x100   : > { %v701_v6 = vadd.f32 %v1038_v63, %v620_v2  ;;  %v623_v7 = vadd.f32 %v989_v3, %v1317_v58 }
 0x102   : > { %v747_v8 = vmax.f32 %v701_v6, 0.0  ;;  %v704_v9 = vadd.f32 %v1041_v5, %v623_v7  ;;  %v990_v10 = vpop.f32.mrb[4].mxu0 }
 0x103   : > { %v1042_v11 = vpop.f32.mrb[4].mxu1  ;;  %v991_v12 = vpop.f32.mrb[5].mxu0 }
 0x104   : > { %v956_v13 = vpack.c.bf16 %v747_v8, %v747_v8  ;;  %v748_v14 = vmax.f32 %v704_v9, 0.0  ;;  %v992_v15 = vadd.f32 %v991_v12, %v990_v10  ;;  %v1043_v16 = vpop.f32.mrb[5].mxu1  ;;  %v993_v17 = vpop.f32.mrb[6].mxu0 }
 0x105   : > { %v1044_v18 = vadd.f32 %v1043_v16, %v1042_v11  ;;  %v1045_v19 = vpop.f32.mrb[6].mxu1  ;;  %v994_v20 = vpop.f32.mrb[7].mxu0 }
 0x106   : > { %808 = vst.msk [vmem:[%s1325_s10] sm:$0xf] %vm807_vm0, %v956_v13  ;;  %v957_v21 = vpack.c.bf16 %v748_v14, %v748_v14  ;;  %v628_v22 = vadd.f32 %v992_v15, %v1317_v58  ;;  %v995_v23 = vadd.f32 %v994_v20, %v993_v17  ;;  %v1046_v24 = vpop.f32.mrb[7].mxu1 }
 0x107   : > { %v1047_v25 = vadd.f32 %v1046_v24, %v1045_v19 }
 0x108   : > { %809 = vst.msk [vmem:[%s1325_s10 + $0x4] sm:$0xf] %vm807_vm0, %v957_v21  ;;  %v709_v26 = vadd.f32 %v1044_v18, %v628_v22  ;;  %v631_v27 = vadd.f32 %v995_v23, %v1317_v58 }
 0x10a   : > { %v749_v28 = vmax.f32 %v709_v26, 0.0  ;;  %v712_v29 = vadd.f32 %v1047_v25, %v631_v27  ;;  %v996_v30 = vpop.f32.mrb[8].mxu0 }
 0x10b   : > { %v1048_v31 = vpop.f32.mrb[8].mxu1  ;;  %v997_v32 = vpop.f32.mrb[9].mxu0 }
 0x10c   : > { %v958_v33 = vpack.c.bf16 %v749_v28, %v749_v28  ;;  %v750_v34 = vmax.f32 %v712_v29, 0.0  ;;  %v998_v35 = vadd.f32 %v997_v32, %v996_v30  ;;  %v1049_v36 = vpop.f32.mrb[9].mxu1  ;;  %v999_v37 = vpop.f32.mrb[10].mxu0 }
 0x10d   : > { %v1050_v38 = vadd.f32 %v1049_v36, %v1048_v31  ;;  %v1051_v39 = vpop.f32.mrb[10].mxu1  ;;  %v1000_v40 = vpop.f32.mrb[11].mxu0 }
 0x10e   : > { %810 = vst.msk [vmem:[%s1325_s10 + $0x8] sm:$0xf] %vm807_vm0, %v958_v33  ;;  %v959_v41 = vpack.c.bf16 %v750_v34, %v750_v34  ;;  %v636_v42 = vadd.f32 %v998_v35, %v1317_v58  ;;  %v1001_v43 = vadd.f32 %v1000_v40, %v999_v37  ;;  %v1052_v44 = vpop.f32.mrb[11].mxu1 }
 0x10f   : > { %v1053_v45 = vadd.f32 %v1052_v44, %v1051_v39 }
 0x110   : > { %811 = vst.msk [vmem:[%s1325_s10 + $0xc] sm:$0xf] %vm807_vm0, %v959_v41  ;;  %v717_v46 = vadd.f32 %v1050_v38, %v636_v42  ;;  %v639_v47 = vadd.f32 %v1001_v43, %v1317_v58 }
 0x112   : > { %v751_v48 = vmax.f32 %v717_v46, 0.0  ;;  %v720_v49 = vadd.f32 %v1053_v45, %v639_v47  ;;  %v1002_v50 = vpop.f32.mrb[12].mxu0 }
 0x113   : > { %v1054_v51 = vpop.f32.mrb[12].mxu1  ;;  %v1003_v52 = vpop.f32.mrb[13].mxu0 }
 0x114   : > { %v960_v53 = vpack.c.bf16 %v751_v48, %v751_v48  ;;  %v752_v54 = vmax.f32 %v720_v49, 0.0  ;;  %v1004_v55 = vadd.f32 %v1003_v52, %v1002_v50  ;;  %v1055_v56 = vpop.f32.mrb[13].mxu1  ;;  %v1005_v57 = vpop.f32.mrb[14].mxu0 }
 0x115   : > { %v1056_v59 = vadd.f32 %v1055_v56, %v1054_v51  ;;  %v1057_v60 = vpop.f32.mrb[14].mxu1  ;;  %v1006_v61 = vpop.f32.mrb[15].mxu0 }
 0x116   : > { %812 = vst.msk [vmem:[%s1325_s10 + $0x10] sm:$0xf] %vm807_vm0, %v960_v53  ;;  %v961_v62 = vpack.c.bf16 %v752_v54, %v752_v54  ;;  %v644_v63 = vadd.f32 %v1004_v55, %v1317_v58  ;;  %v1007_v0 = vadd.f32 %v1006_v61, %v1005_v57  ;;  %v1058_v1 = vpop.f32.mrb[15].mxu1 }
 0x117   : > { %v1059_v2 = vadd.f32 %v1058_v1, %v1057_v60 }
 0x118   : > { %813 = vst.msk [vmem:[%s1325_s10 + $0x14] sm:$0xf] %vm807_vm0, %v961_v62  ;;  %v725_v3 = vadd.f32 %v1056_v59, %v644_v63  ;;  %v647_v4 = vadd.f32 %v1007_v0, %v1317_v58 }
 0x11a   : > { %v753_v5 = vmax.f32 %v725_v3, 0.0  ;;  %v728_v6 = vadd.f32 %v1059_v2, %v647_v4  ;;  %v1008_v7 = vpop.f32.mrb[16].mxu0 }
 0x11b   : > { %v1060_v8 = vpop.f32.mrb[16].mxu1  ;;  %v1009_v9 = vpop.f32.mrb[17].mxu0 }
 0x11c   : > { %v962_v10 = vpack.c.bf16 %v753_v5, %v753_v5  ;;  %v754_v11 = vmax.f32 %v728_v6, 0.0  ;;  %v1010_v12 = vadd.f32 %v1009_v9, %v1008_v7  ;;  %v1061_v13 = vpop.f32.mrb[17].mxu1  ;;  %v1011_v14 = vpop.f32.mrb[18].mxu0 }
 0x11d   : > { %v1062_v15 = vadd.f32 %v1061_v13, %v1060_v8  ;;  %v1063_v16 = vpop.f32.mrb[18].mxu1  ;;  %v1012_v17 = vpop.f32.mrb[19].mxu0 }
 0x11e   : > { %814 = vst.msk [vmem:[%s1325_s10 + $0x18] sm:$0xf] %vm807_vm0, %v962_v10  ;;  %v963_v18 = vpack.c.bf16 %v754_v11, %v754_v11  ;;  %v652_v19 = vadd.f32 %v1010_v12, %v1317_v58  ;;  %v1013_v20 = vadd.f32 %v1012_v17, %v1011_v14  ;;  %v1064_v21 = vpop.f32.mrb[19].mxu1 }
 0x11f   : > { %v1065_v22 = vadd.f32 %v1064_v21, %v1063_v16 }
 0x120   : > { %815 = vst.msk [vmem:[%s1325_s10 + $0x1c] sm:$0xf] %vm807_vm0, %v963_v18  ;;  %v733_v23 = vadd.f32 %v1062_v15, %v652_v19  ;;  %v655_v24 = vadd.f32 %v1013_v20, %v1317_v58 }
 0x122   : > { %v755_v25 = vmax.f32 %v733_v23, 0.0  ;;  %v736_v26 = vadd.f32 %v1065_v22, %v655_v24  ;;  %v1014_v27 = vpop.f32.mrb[20].mxu0 }
 0x123   : > { %v1066_v28 = vpop.f32.mrb[20].mxu1  ;;  %v1015_v29 = vpop.f32.mrb[21].mxu0 }
 0x124   : > { %v964_v30 = vpack.c.bf16 %v755_v25, %v755_v25  ;;  %v756_v31 = vmax.f32 %v736_v26, 0.0  ;;  %v1016_v32 = vadd.f32 %v1015_v29, %v1014_v27  ;;  %v1067_v33 = vpop.f32.mrb[21].mxu1  ;;  %v1017_v34 = vpop.f32.mrb[22].mxu0 }
 0x125   : > { %v1068_v35 = vadd.f32 %v1067_v33, %v1066_v28  ;;  %v1069_v36 = vpop.f32.mrb[22].mxu1  ;;  %v1018_v37 = vpop.f32.mrb[23].mxu0 }
 0x126   : > { %816 = vst.msk [vmem:[%s1325_s10 + $0x20] sm:$0xf] %vm807_vm0, %v964_v30  ;;  %v965_v38 = vpack.c.bf16 %v756_v31, %v756_v31  ;;  %v660_v39 = vadd.f32 %v1016_v32, %v1317_v58  ;;  %v1019_v40 = vadd.f32 %v1018_v37, %v1017_v34  ;;  %v1070_v41 = vpop.f32.mrb[23].mxu1 }
 0x127   : > { %v1071_v42 = vadd.f32 %v1070_v41, %v1069_v36 }
 0x128   : > { %817 = vst.msk [vmem:[%s1325_s10 + $0x24] sm:$0xf] %vm807_vm0, %v965_v38  ;;  %v741_v43 = vadd.f32 %v1068_v35, %v660_v39  ;;  %v663_v44 = vadd.f32 %v1019_v40, %v1317_v58 }
 0x12a   : > { %v757_v45 = vmax.f32 %v741_v43, 0.0  ;;  %v744_v46 = vadd.f32 %v1071_v42, %v663_v44 }
 0x12c   : > { %v966_v47 = vpack.c.bf16 %v757_v45, %v757_v45  ;;  %v758_v48 = vmax.f32 %v744_v46, 0.0 }
 0x12e   : > { %818 = vst.msk [vmem:[%s1325_s10 + $0x28] sm:$0xf] %vm807_vm0, %v966_v47  ;;  %v967_v49 = vpack.c.bf16 %v758_v48, %v758_v48 }
 0x130   : > { %819 = vst.msk [vmem:[%s1325_s10 + $0x2c] sm:$0xf] %vm807_vm0, %v967_v49 }
 0x131 PF: > { %s13_s12 = sadd.s32 1, %s1154_s12  }
 0x132   : > { %p10_p4 = scmp.ge.s32.totalorder %s13_s12, 4  }
 0x134   :  { %12 = sbr.rel (!%p10_p4) target bundleno = 1 (0x1), region = 62 }

// kernel: split_q_forward.6
= control target key start
LH: loop header
LB: loop body
LE: loop exit
PB: predicated region body
PF: predicated region fallthrough
CT: control target
= control target key end

     0   :  { %s903_s12 = smov 0   ;;  %s1044_s0 = inlined_call_operand.vmem [shape: bf16[112,576], index: 0, kind: input, shape index: {}]   ;;  %s1045_s1 = inlined_call_operand.vmem [shape: bf16[576,64], index: 1, kind: input, shape index: {}]   ;;  %s1046_s2 = inlined_call_operand.vmem [shape: f32[1,64], index: 2, kind: input, shape index: {}]   ;;  %s1047_s3 = inlined_call_operand.vmem [shape: bf16[112,64], index: 3, kind: output, shape index: {}]  }
   0x1 LB: > { %s700_s13 = sadd.s32 4294967295, %s879_s12   ;;  %p704_p0 = scmp.ge.s32.totalorder %s879_s12, 1  ;;  %s879_s12 = sphi %s903_s12, %s13_s12  }
   0x2   : > { %p139_p1 = scmp.lt.s32.totalorder %s879_s12, 8 }
   0x4   : > { %p140_p2 = pnand %p704_p0, %p139_p1 }
   0x5   : > { %v830_v0 = vld [vmem:[%s1045_s1 + $0x40] sm:$0xff] (!%p140_p2)   ;;  %v834_v4 = vld [vmem:[%s1045_s1 + $0x48] sm:$0xff] (!%p140_p2)   ;;  %v838_v8 = vld [vmem:[%s1045_s1 + $0x50] sm:$0xff] (!%p140_p2)   ;;  %s705_s17 = sshll.u32 (!%p140_p2), %s700_s13, 1  ;;  %v881_v33 = vmov (!%p140_p2), 0.0   ;;  %vm882_vm0 = vmmov (!%p140_p2), 0  }
   0x6   : > { %143 = sbr.rel (%p140_p2) target bundleno = 275 (0x113), region = 32  ;;  %v831_v1 = vld [vmem:[%s1045_s1] sm:$0xff] (!%p140_p2)   ;;  %758 = vmatprep.subr.bf16.mxu0 (!%p140_p2), %v830_v0  ;;  %v835_v5 = vld [vmem:[%s1045_s1 + $0x8] sm:$0xff] (!%p140_p2)   ;;  %v839_v9 = vld [vmem:[%s1045_s1 + $0x10] sm:$0xff] (!%p140_p2)   ;;  %p165_p3 = scmp.lt.s32.totalorder (!%p140_p2), %s705_s17, 13  ;;  %vm504_vm1 = vcmask (!%p140_p2), 523264  }
   0x7   : > { %v832_v2 = vld [vmem:[%s1045_s1 + $0xc0] sm:$0xff] (!%p140_p2)   ;;  %759 = vmatpush3.bf16.msra.mxu0 (!%p140_p2), %v831_v1  ;;  %v836_v6 = vld [vmem:[%s1045_s1 + $0xc8] sm:$0xff] (!%p140_p2)   ;;  %v840_v10 = vld [vmem:[%s1045_s1 + $0xd0] sm:$0xff] (!%p140_p2)   ;;  %vm641_vm2 = vcmask (!%p140_p2), 519168  }
   0x8   : > { %v833_v3 = vld [vmem:[%s1045_s1 + $0x80] sm:$0xff] (!%p140_p2)   ;;  %780 = vmatprep.subr.bf16.mxu1 (!%p140_p2), %v832_v2  ;;  %760 = vmatprep.subr.bf16.mxu0 (!%p140_p2), %v834_v4  ;;  %v837_v7 = vld [vmem:[%s1045_s1 + $0x88] sm:$0xff] (!%p140_p2)   ;;  %v841_v11 = vld [vmem:[%s1045_s1 + $0x90] sm:$0xff] (!%p140_p2)  }
   0x9   : > { %781 = vmatpush3.bf16.msra.mxu1 (!%p140_p2), %v833_v3  ;;  %v842_v12 = vld [vmem:[%s1045_s1 + $0x58] sm:$0xff] (!%p140_p2)   ;;  %v846_v16 = vld [vmem:[%s1045_s1 + $0x60] sm:$0xff] (!%p140_p2)   ;;  %v850_v20 = vld [vmem:[%s1045_s1 + $0x68] sm:$0xff] (!%p140_p2)  }
   0xa   : > { %782 = vmatprep.subr.bf16.mxu1 (!%p140_p2), %v836_v6  ;;  %v843_v13 = vld [vmem:[%s1045_s1 + $0x18] sm:$0xff] (!%p140_p2)   ;;  %v847_v17 = vld [vmem:[%s1045_s1 + $0x20] sm:$0xff] (!%p140_p2)   ;;  %v851_v21 = vld [vmem:[%s1045_s1 + $0x28] sm:$0xff] (!%p140_p2)  }
   0xb   : > { %761 = vmatpush3.bf16.msra.mxu0 (!%p140_p2), %v835_v5  ;;  %v844_v14 = vld [vmem:[%s1045_s1 + $0xd8] sm:$0xff] (!%p140_p2)   ;;  %v848_v18 = vld [vmem:[%s1045_s1 + $0xe0] sm:$0xff] (!%p140_p2)   ;;  %v852_v22 = vld [vmem:[%s1045_s1 + $0xe8] sm:$0xff] (!%p140_p2)  }
   0xc   : > { %762 = vmatprep.subr.bf16.mxu0 (!%p140_p2), %v838_v8  ;;  %v845_v15 = vld [vmem:[%s1045_s1 + $0x98] sm:$0xff] (!%p140_p2)   ;;  %v849_v19 = vld [vmem:[%s1045_s1 + $0xa0] sm:$0xff] (!%p140_p2)   ;;  %v853_v23 = vld [vmem:[%s1045_s1 + $0xa8] sm:$0xff] (!%p140_p2)  }
   0xd   : > { %783 = vmatpush3.bf16.msra.mxu1 %v837_v7  ;;  %s1049_s17 = smov (!%p165_p3, %s705_s17), 13  ;;  %v854_v24 = vld [vmem:[%s1045_s1 + $0x70] sm:$0xff]   ;;  %v858_v28 = vld [vmem:[%s1045_s1 + $0x78] sm:$0xff]   ;;  %v868_v37 = vld [vmem:[%s1045_s1 + $0x100] sm:$0xff]  }
   0xe   : > { %784 = vmatprep.subr.bf16.mxu1 %v840_v10  ;;  %s819_s14 = smul.u32 20, %s1049_s17  ;;  %v855_v25 = vld [vmem:[%s1045_s1 + $0x30] sm:$0xff]   ;;  %v859_v29 = vld [vmem:[%s1045_s1 + $0x38] sm:$0xff]   ;;  %v869_v38 = vld [vmem:[%s1045_s1 + $0x108] sm:$0xff]   ;;  %s708_s18 = sshll.u32 %s1049_s17, 2 }
   0xf   : > { %763 = vmatpush3.bf16.msra.mxu0 %v839_v9  ;;  %v856_v26 = vld [vmem:[%s1045_s1 + $0xf0] sm:$0xff]   ;;  %v860_v30 = vld [vmem:[%s1045_s1 + $0xf8] sm:$0xff]   ;;  %v709_v43 = vld [vmem:[%s1046_s2] ss:$0 sm:$0xff]  ;;  %s175_s21 = scalar_lea.vmem %s1047_s3, %s708_s18 }
  0x10   : > { %764 = vmatprep.subr.bf16.mxu0 %v842_v12  ;;  %v857_v27 = vld [vmem:[%s1045_s1 + $0xb0] sm:$0xff]   ;;  %s1006_s13 = scalar_lea.vmem %s1044_s0, %s819_s14  ;;  %v864_v34 = vld [vmem:[%s1045_s1 + $0xb8] sm:$0xff]  }
  0x11   : > { %785 = vmatpush3.bf16.msra.mxu1 %v841_v11  ;;  %v861_v31 = vld [vmem:[%s1006_s13] ss:$20 sps:$4 sm:$0xff]   ;;  %v863_v32 = vld [vmem:[%s1006_s13 + $0x4] ss:$20 sps:$4 sm:$0xff]   ;;  %v865_v35 = vld [vmem:[%s1006_s13 + $0x8] ss:$20 sps:$4 sm:$0xff]  }
  0x12   : > { %786 = vmatprep.subr.bf16.mxu1 %v844_v14  ;;  %540 = vmatprep.mubr.bf16.mxu0 %v863_v32  ;;  %v867_v36 = vld [vmem:[%s1006_s13 + $0xc] ss:$20 sps:$4 sm:$0xff]   ;;  %v870_v39 = vld [vmem:[%s1045_s1 + $0x110] sm:$0xff]   ;;  %v871_v40 = vld [vmem:[%s1045_s1 + $0x118] sm:$0xff]  }
  0x13   : > { %765 = vmatpush3.bf16.msra.mxu0 %v843_v13  ;;  %581 = vmatprep.mubr.bf16.mxu1 %v867_v36  ;;  %v872_v41 = vld [vmem:[%s1006_s13 + $0x10] ss:$20 sps:$4 sm:$0xff]  }
  0x14   : > { %766 = vmatprep.subr.bf16.mxu0 %v846_v16 }
  0x15   : > { %787 = vmatpush3.bf16.msra.mxu1 %v845_v15 }
  0x16   : > { %788 = vmatprep.subr.bf16.mxu1 %v848_v18 }
  0x17   : > { %767 = vmatpush3.bf16.msra.mxu0 %v847_v17 }
  0x18   : > { %768 = vmatprep.subr.bf16.mxu0 %v850_v20 }
  0x19   : > { %789 = vmatpush3.bf16.msra.mxu1 %v849_v19 }
  0x1a   : > { %790 = vmatprep.subr.bf16.mxu1 %v852_v22 }
  0x1b   : > { %769 = vmatpush3.bf16.msra.mxu0 %v851_v21 }
  0x1c   : > { %770 = vmatprep.subr.bf16.mxu0 %v854_v24 }
  0x1d   : > { %791 = vmatpush3.bf16.msra.mxu1 %v853_v23 }
  0x1e   : > { %792 = vmatprep.subr.bf16.mxu1 %v856_v26 }
  0x1f   : > { %771 = vmatpush3.bf16.msra.mxu0 %v855_v25 }
  0x20   : > { %772 = vmatprep.subr.bf16.mxu0 %v858_v28 }
  0x21   : > { %793 = vmatpush3.bf16.msra.mxu1 %v857_v27 }
  0x22   : > { %794 = vmatprep.subr.bf16.mxu1 %v860_v30 }
  0x23   : > { %773 = vmatpush3.bf16.msra.mxu0 %v859_v29 }
  0x24   : > { %807 = vmatprep.subr.bf16.mxu0 %v881_v33 }
  0x25   : > { %795 = vmatpush3.bf16.msra.mxu1 %v864_v34 }
  0x26   : > { %541 = vmatmul.mubr.bf16.vlgmr.msra.gmra.mrb[0].mxu0 %v861_v31 }
  0x27   : > { %815 = vmatprep.mubr.msk.bf16.mxu0 %vm882_vm0, %v881_v33  ;;  %808 = vmatpush3.bf16.msra.mxu0 %v868_v37 }
  0x28   : > { %582 = vmatmul.mubr.bf16.vlgmr.msra.gmra.mrb[0].mxu1 %v865_v35  ;;  %809 = vmatprep.subr.bf16.mxu0 %v881_v33 }
  0x2b   : > { %810 = vmatpush3.bf16.msra.mxu0 %v869_v38 }
  0x2c   : > { %811 = vmatprep.subr.bf16.mxu0 %v881_v33 }
  0x2f   : > { %812 = vmatpush3.bf16.msra.mxu0 %v870_v39 }
  0x30   : > { %813 = vmatprep.subr.bf16.mxu0 %v881_v33 }
  0x33   : > { %814 = vmatpush3.bf16.msra.mxu0 %v871_v40 }
  0x36   : > { %816 = vmatmul.mubr.msk.bf16.vlgmr.msra.gmra.mrb[4].mxu0 %vm504_vm1, %v872_v41 }
  0xf9   : > { %v774_v42 = vpop.f32.mrb[0].mxu0 }
  0xfa   : > { %v775_v44 = vpop.f32.mrb[1].mxu0 }
  0xfb   : > { %v776_v45 = vadd.f32 %v775_v44, %v774_v42  ;;  %v777_v46 = vpop.f32.mrb[2].mxu0  ;;  %v796_v47 = vpop.f32.mrb[0].mxu1 }
  0xfc   : > { %v778_v48 = vpop.f32.mrb[3].mxu0  ;;  %v797_v51 = vpop.f32.mrb[1].mxu1 }
  0xfd   : > { %v543_v49 = vadd.f32 %v776_v45, %v709_v43  ;;  %v779_v50 = vadd.f32 %v778_v48, %v777_v46  ;;  %v798_v52 = vadd.f32 %v797_v51, %v796_v47  ;;  %v799_v53 = vpop.f32.mrb[2].mxu1 }
  0xfe   : > { %v800_v55 = vpop.f32.mrb[3].mxu1 }
  0xff   : > { %v546_v54 = vadd.f32 %v779_v50, %v709_v43  ;;  %v801_v56 = vadd.f32 %v800_v55, %v799_v53  ;;  %v584_v57 = vadd.f32 %v798_v52, %v543_v49 }
 0x101   : > { %v587_v58 = vadd.f32 %v801_v56, %v546_v54 }
 0x109   : > { %v624_v59 = vpop.f32.mrb[4].mxu0 }
 0x10a   : > { %v625_v60 = vadd.f32 %v624_v59, %v584_v57  ;;  %v817_v61 = vpop.f32.mrb[5].mxu0 }
 0x10b   : > { %v627_v62 = vpop.f32.mrb[6].mxu0 }
 0x10c   : > { %v631_v63 = vmax.f32 %v625_v60, 0.0  ;;  %v628_v0 = vadd.f32 %v627_v62, %v587_v58  ;;  %v818_v1 = vpop.f32.mrb[7].mxu0 }
 0x10e   : > { %v756_v2 = vpack.c.bf16 %v631_v63, %v631_v63  ;;  %v632_v3 = vmax.f32 %v628_v0, 0.0 }
 0x110   : > { %642 = vst.msk [vmem:[%s175_s21] sm:$0xf] %vm641_vm2, %v756_v2  ;;  %v757_v4 = vpack.c.bf16 %v632_v3, %v632_v3 }
 0x112   : > { %643 = vst.msk [vmem:[%s175_s21 + $0x4] sm:$0xf] %vm641_vm2, %v757_v4 }
 0x113 PF: > { %s13_s12 = sadd.s32 1, %s879_s12  }
 0x114   : > { %p10_p4 = scmp.ge.s32.totalorder %s13_s12, 9  }
 0x116   :  { %12 = sbr.rel (!%p10_p4) target bundleno = 1 (0x1), region = 62 }

// kernel: split_q_forward.7
= control target key start
LH: loop header
LB: loop body
LE: loop exit
PB: predicated region body
PF: predicated region fallthrough
CT: control target
= control target key end

     0   :  { %s10572_s18 = smov 0   ;;  %s10574_s19 = smov 0   ;;  %s13187_s0 = inlined_call_operand.vmem [shape: bf16[2,3136], index: 0, kind: input, shape index: {}]   ;;  %s13188_s1 = inlined_call_operand.vmem [shape: bf16[3136,1024], index: 1, kind: input, shape index: {}]   ;;  %s13189_s2 = inlined_call_operand.vmem [shape: f32[2,1,512], index: 2, kind: input, shape index: {}]   ;;  %s13190_s3 = inlined_call_operand.vmem [shape: bf16[2,512,4], index: 3, kind: input, shape index: {}]   ;;  %s13191_s4 = inlined_call_operand.vmem [shape: f32[2,1,4], index: 4, kind: input, shape index: {}]   ;;  %s13192_s5 = inlined_call_operand.vmem [shape: f32[2,2,4], index: 5, kind: output, shape index: {}]  }
   0x1   :  { %s10576_s20 = smov 0  }
   0x2 LB: > { %s8296_s21 = sadd.s32 4294967295, %s10538_s20   ;;  %s10589_s22 = sadd.s32 1, %s10538_s20   ;;  %s10538_s20 = sphi %s10576_s20, %s13195_s20   ;;  %s10534_s19 = sphi %s10574_s19, %s13194_s19   ;;  %s10530_s18 = sphi %s10572_s18, %s13193_s18  }
   0x3   : > { %s40_s23 = ssub.s32 %s10538_s20, %s10589_s22  ;;  %s43_s24 = sadd.s32 1, %s10534_s19 }
   0x4   : > { %p41_p0 = scmp.eq.s32.totalorder %s40_s23, 0  ;;  %p50_p1 = scmp.ne.s32.totalorder %s10534_s19, %s10530_s18 }
   0x5   : > { %p51_p2 = scmp.eq.s32.totalorder %s10538_s20, 0  ;;  %p8299_p4 = scmp.ge.s32.totalorder %s10538_s20, 2 }
   0x6   : > { %s10598_s25 = scalar_select %p41_p0, %s10534_s19, %s43_s24  }
   0x7   : > { %p52_p3 = por %p51_p2, %p50_p1  ;;  %183 = sbr.rel (%p8299_p4) target bundleno = 410 (0x19a), region = 20 }
   0xe   : > { %186 = sbr.rel (!%p52_p3) target bundleno = 410 (0x19a), region = 24  ;;  %s188_s26 = sand.u32 (%p52_p3), 1, %s10534_s19  }
   0xf   : > { %s9129_s27 = sshll.u32 (%p52_p3), %s10538_s20, 4  ;;  %s9275_s28 = smul.u32 (%p52_p3), 6272, %s188_s26 }
  0x10   : > { %s10606_s6 = scalar_lea.vmem (%p52_p3), %s13188_s1, %s9129_s27 }
  0x11   : > { %v206_v0 = vld [vmem:[%s10606_s6] sm:$0xff] (%p52_p3)  ;;  %v208_v1 = vld [vmem:[%s10606_s6 + $0x8] sm:$0xff] (%p52_p3)  ;;  %s10614_s7 = scalar_lea.vmem (%p52_p3), [#allocation2], %s9275_s28 }
  0x12   : > { %v210_v2 = vld [vmem:[%s10606_s6 + $0x20] sm:$0xff] (%p52_p3)  ;;  %v212_v3 = vld [vmem:[%s10606_s6 + $0x28] sm:$0xff] (%p52_p3)  ;;  %207 = vst [vmem:[%s10614_s7] sm:$0xff] (%p52_p3), %v206_v0  ;;  %209 = vst [vmem:[%s10614_s7 + $0x8] sm:$0xff] (%p52_p3), %v208_v1 }
  0x13   : > { %v214_v4 = vld [vmem:[%s10606_s6 + $0x40] sm:$0xff] (%p52_p3)  ;;  %v216_v5 = vld [vmem:[%s10606_s6 + $0x48] sm:$0xff] (%p52_p3)  ;;  %211 = vst [vmem:[%s10614_s7 + $0x10] sm:$0xff] (%p52_p3), %v210_v2  ;;  %213 = vst [vmem:[%s10614_s7 + $0x18] sm:$0xff] (%p52_p3), %v212_v3 }
  0x14   : > { %215 = vst [vmem:[%s10614_s7 + $0x20] sm:$0xff] (%p52_p3), %v214_v4  ;;  %217 = vst [vmem:[%s10614_s7 + $0x28] sm:$0xff] (%p52_p3), %v216_v5  ;;  %v218_v6 = vld [vmem:[%s10606_s6 + $0x60] sm:$0xff] (%p52_p3)  ;;  %v220_v7 = vld [vmem:[%s10606_s6 + $0x68] sm:$0xff] (%p52_p3) }
  0x15   : > { %v222_v8 = vld [vmem:[%s10606_s6 + $0x80] sm:$0xff]  ;;  %219 = vst [vmem:[%s10614_s7 + $0x30] sm:$0xff] %v218_v6  ;;  %221 = vst [vmem:[%s10614_s7 + $0x38] sm:$0xff] %v220_v7  ;;  %v224_v9 = vld [vmem:[%s10606_s6 + $0x88] sm:$0xff] }
  0x16   : > { %223 = vst [vmem:[%s10614_s7 + $0x40] sm:$0xff] %v222_v8  ;;  %v226_v10 = vld [vmem:[%s10606_s6 + $0xa0] sm:$0xff]  ;;  %v228_v11 = vld [vmem:[%s10606_s6 + $0xa8] sm:$0xff]  ;;  %225 = vst [vmem:[%s10614_s7 + $0x48] sm:$0xff] %v224_v9 }
  0x17   : > { %227 = vst [vmem:[%s10614_s7 + $0x50] sm:$0xff] %v226_v10  ;;  %229 = vst [vmem:[%s10614_s7 + $0x58] sm:$0xff] %v228_v11  ;;  %v230_v12 = vld [vmem:[%s10606_s6 + $0xc0] sm:$0xff]  ;;  %v232_v13 = vld [vmem:[%s10606_s6 + $0xc8] sm:$0xff] }
  0x18   : > { %v234_v14 = vld [vmem:[%s10606_s6 + $0xe0] sm:$0xff]  ;;  %231 = vst [vmem:[%s10614_s7 + $0x60] sm:$0xff] %v230_v12  ;;  %233 = vst [vmem:[%s10614_s7 + $0x68] sm:$0xff] %v232_v13  ;;  %v236_v15 = vld [vmem:[%s10606_s6 + $0xe8] sm:$0xff] }
  0x19   : > { %235 = vst [vmem:[%s10614_s7 + $0x70] sm:$0xff] %v234_v14  ;;  %v238_v16 = vld [vmem:[%s10606_s6 + $0x100] sm:$0xff]  ;;  %v240_v17 = vld [vmem:[%s10606_s6 + $0x108] sm:$0xff]  ;;  %237 = vst [vmem:[%s10614_s7 + $0x78] sm:$0xff] %v236_v15 }
  0x1a   : > { %239 = vst [vmem:[%s10614_s7 + $0x80] sm:$0xff] %v238_v16  ;;  %241 = vst [vmem:[%s10614_s7 + $0x88] sm:$0xff] %v240_v17  ;;  %v242_v18 = vld [vmem:[%s10606_s6 + $0x120] sm:$0xff]  ;;  %v244_v19 = vld [vmem:[%s10606_s6 + $0x128] sm:$0xff] }
  0x1b   : > { %v246_v20 = vld [vmem:[%s10606_s6 + $0x140] sm:$0xff]  ;;  %243 = vst [vmem:[%s10614_s7 + $0x90] sm:$0xff] %v242_v18  ;;  %245 = vst [vmem:[%s10614_s7 + $0x98] sm:$0xff] %v244_v19  ;;  %v248_v21 = vld [vmem:[%s10606_s6 + $0x148] sm:$0xff] }
  0x1c   : > { %247 = vst [vmem:[%s10614_s7 + $0xa0] sm:$0xff] %v246_v20  ;;  %v250_v22 = vld [vmem:[%s10606_s6 + $0x160] sm:$0xff]  ;;  %v252_v23 = vld [vmem:[%s10606_s6 + $0x168] sm:$0xff]  ;;  %249 = vst [vmem:[%s10614_s7 + $0xa8] sm:$0xff] %v248_v21 }
  0x1d   : > { %251 = vst [vmem:[%s10614_s7 + $0xb0] sm:$0xff] %v250_v22  ;;  %253 = vst [vmem:[%s10614_s7 + $0xb8] sm:$0xff] %v252_v23  ;;  %v254_v24 = vld [vmem:[%s10606_s6 + $0x180] sm:$0xff]  ;;  %v256_v25 = vld [vmem:[%s10606_s6 + $0x188] sm:$0xff] }
  0x1e   : > { %v258_v26 = vld [vmem:[%s10606_s6 + $0x1a0] sm:$0xff]  ;;  %255 = vst [vmem:[%s10614_s7 + $0xc0] sm:$0xff] %v254_v24  ;;  %257 = vst [vmem:[%s10614_s7 + $0xc8] sm:$0xff] %v256_v25  ;;  %v260_v27 = vld [vmem:[%s10606_s6 + $0x1a8] sm:$0xff] }
  0x1f   : > { %259 = vst [vmem:[%s10614_s7 + $0xd0] sm:$0xff] %v258_v26  ;;  %v262_v28 = vld [vmem:[%s10606_s6 + $0x1c0] sm:$0xff]  ;;  %v264_v29 = vld [vmem:[%s10606_s6 + $0x1c8] sm:$0xff]  ;;  %261 = vst [vmem:[%s10614_s7 + $0xd8] sm:$0xff] %v260_v27 }
  0x20   : > { %263 = vst [vmem:[%s10614_s7 + $0xe0] sm:$0xff] %v262_v28  ;;  %265 = vst [vmem:[%s10614_s7 + $0xe8] sm:$0xff] %v264_v29  ;;  %v266_v30 = vld [vmem:[%s10606_s6 + $0x1e0] sm:$0xff]  ;;  %v268_v31 = vld [vmem:[%s10606_s6 + $0x1e8] sm:$0xff] }
  0x21   : > { %v270_v32 = vld [vmem:[%s10606_s6 + $0x200] sm:$0xff]  ;;  %267 = vst [vmem:[%s10614_s7 + $0xf0] sm:$0xff] %v266_v30  ;;  %269 = vst [vmem:[%s10614_s7 + $0xf8] sm:$0xff] %v268_v31  ;;  %v272_v33 = vld [vmem:[%s10606_s6 + $0x208] sm:$0xff] }
  0x22   : > { %271 = vst [vmem:[%s10614_s7 + $0x100] sm:$0xff] %v270_v32  ;;  %v274_v34 = vld [vmem:[%s10606_s6 + $0x220] sm:$0xff]  ;;  %v276_v35 = vld [vmem:[%s10606_s6 + $0x228] sm:$0xff]  ;;  %273 = vst [vmem:[%s10614_s7 + $0x108] sm:$0xff] %v272_v33 }
  0x23   : > { %275 = vst [vmem:[%s10614_s7 + $0x110] sm:$0xff] %v274_v34  ;;  %277 = vst [vmem:[%s10614_s7 + $0x118] sm:$0xff] %v276_v35  ;;  %v278_v36 = vld [vmem:[%s10606_s6 + $0x240] sm:$0xff]  ;;  %v280_v37 = vld [vmem:[%s10606_s6 + $0x248] sm:$0xff] }
  0x24   : > { %v282_v38 = vld [vmem:[%s10606_s6 + $0x260] sm:$0xff]  ;;  %279 = vst [vmem:[%s10614_s7 + $0x120] sm:$0xff] %v278_v36  ;;  %281 = vst [vmem:[%s10614_s7 + $0x128] sm:$0xff] %v280_v37  ;;  %v284_v39 = vld [vmem:[%s10606_s6 + $0x268] sm:$0xff] }
  0x25   : > { %283 = vst [vmem:[%s10614_s7 + $0x130] sm:$0xff] %v282_v38  ;;  %v286_v40 = vld [vmem:[%s10606_s6 + $0x280] sm:$0xff]  ;;  %v288_v41 = vld [vmem:[%s10606_s6 + $0x288] sm:$0xff]  ;;  %285 = vst [vmem:[%s10614_s7 + $0x138] sm:$0xff] %v284_v39 }
  0x26   : > { %287 = vst [vmem:[%s10614_s7 + $0x140] sm:$0xff] %v286_v40  ;;  %289 = vst [vmem:[%s10614_s7 + $0x148] sm:$0xff] %v288_v41  ;;  %v290_v42 = vld [vmem:[%s10606_s6 + $0x2a0] sm:$0xff]  ;;  %v292_v43 = vld [vmem:[%s10606_s6 + $0x2a8] sm:$0xff] }
  0x27   : > { %v294_v44 = vld [vmem:[%s10606_s6 + $0x2c0] sm:$0xff]  ;;  %291 = vst [vmem:[%s10614_s7 + $0x150] sm:$0xff] %v290_v42  ;;  %293 = vst [vmem:[%s10614_s7 + $0x158] sm:$0xff] %v292_v43  ;;  %v296_v45 = vld [vmem:[%s10606_s6 + $0x2c8] sm:$0xff] }
  0x28   : > { %295 = vst [vmem:[%s10614_s7 + $0x160] sm:$0xff] %v294_v44  ;;  %v298_v46 = vld [vmem:[%s10606_s6 + $0x2e0] sm:$0xff]  ;;  %v300_v47 = vld [vmem:[%s10606_s6 + $0x2e8] sm:$0xff]  ;;  %297 = vst [vmem:[%s10614_s7 + $0x168] sm:$0xff] %v296_v45 }
  0x29   : > { %299 = vst [vmem:[%s10614_s7 + $0x170] sm:$0xff] %v298_v46  ;;  %301 = vst [vmem:[%s10614_s7 + $0x178] sm:$0xff] %v300_v47  ;;  %v302_v48 = vld [vmem:[%s10606_s6 + $0x300] sm:$0xff]  ;;  %v304_v49 = vld [vmem:[%s10606_s6 + $0x308] sm:$0xff] }
  0x2a   : > { %v306_v50 = vld [vmem:[%s10606_s6 + $0x320] sm:$0xff]  ;;  %303 = vst [vmem:[%s10614_s7 + $0x180] sm:$0xff] %v302_v48  ;;  %305 = vst [vmem:[%s10614_s7 + $0x188] sm:$0xff] %v304_v49  ;;  %v308_v51 = vld [vmem:[%s10606_s6 + $0x328] sm:$0xff] }
  0x2b   : > { %307 = vst [vmem:[%s10614_s7 + $0x190] sm:$0xff] %v306_v50  ;;  %v310_v52 = vld [vmem:[%s10606_s6 + $0x340] sm:$0xff]  ;;  %v312_v53 = vld [vmem:[%s10606_s6 + $0x348] sm:$0xff]  ;;  %309 = vst [vmem:[%s10614_s7 + $0x198] sm:$0xff] %v308_v51 }
  0x2c   : > { %311 = vst [vmem:[%s10614_s7 + $0x1a0] sm:$0xff] %v310_v52  ;;  %313 = vst [vmem:[%s10614_s7 + $0x1a8] sm:$0xff] %v312_v53  ;;  %v314_v54 = vld [vmem:[%s10606_s6 + $0x360] sm:$0xff]  ;;  %v316_v55 = vld [vmem:[%s10606_s6 + $0x368] sm:$0xff] }
  0x2d   : > { %v318_v56 = vld [vmem:[%s10606_s6 + $0x380] sm:$0xff]  ;;  %315 = vst [vmem:[%s10614_s7 + $0x1b0] sm:$0xff] %v314_v54  ;;  %317 = vst [vmem:[%s10614_s7 + $0x1b8] sm:$0xff] %v316_v55  ;;  %v320_v57 = vld [vmem:[%s10606_s6 + $0x388] sm:$0xff] }
  0x2e   : > { %319 = vst [vmem:[%s10614_s7 + $0x1c0] sm:$0xff] %v318_v56  ;;  %v322_v58 = vld [vmem:[%s10606_s6 + $0x3a0] sm:$0xff]  ;;  %v324_v59 = vld [vmem:[%s10606_s6 + $0x3a8] sm:$0xff]  ;;  %321 = vst [vmem:[%s10614_s7 + $0x1c8] sm:$0xff] %v320_v57 }
  0x2f   : > { %323 = vst [vmem:[%s10614_s7 + $0x1d0] sm:$0xff] %v322_v58  ;;  %325 = vst [vmem:[%s10614_s7 + $0x1d8] sm:$0xff] %v324_v59  ;;  %v326_v60 = vld [vmem:[%s10606_s6 + $0x3c0] sm:$0xff]  ;;  %v328_v61 = vld [vmem:[%s10606_s6 + $0x3c8] sm:$0xff] }
  0x30   : > { %v330_v62 = vld [vmem:[%s10606_s6 + $0x3e0] sm:$0xff]  ;;  %327 = vst [vmem:[%s10614_s7 + $0x1e0] sm:$0xff] %v326_v60  ;;  %329 = vst [vmem:[%s10614_s7 + $0x1e8] sm:$0xff] %v328_v61  ;;  %v332_v63 = vld [vmem:[%s10606_s6 + $0x3e8] sm:$0xff] }
  0x31   : > { %331 = vst [vmem:[%s10614_s7 + $0x1f0] sm:$0xff] %v330_v62  ;;  %v334_v0 = vld [vmem:[%s10606_s6 + $0x400] sm:$0xff]  ;;  %v336_v1 = vld [vmem:[%s10606_s6 + $0x408] sm:$0xff]  ;;  %333 = vst [vmem:[%s10614_s7 + $0x1f8] sm:$0xff] %v332_v63 }
  0x32   : > { %335 = vst [vmem:[%s10614_s7 + $0x200] sm:$0xff] %v334_v0  ;;  %337 = vst [vmem:[%s10614_s7 + $0x208] sm:$0xff] %v336_v1  ;;  %v338_v2 = vld [vmem:[%s10606_s6 + $0x420] sm:$0xff]  ;;  %v340_v3 = vld [vmem:[%s10606_s6 + $0x428] sm:$0xff] }
  0x33   : > { %v342_v4 = vld [vmem:[%s10606_s6 + $0x440] sm:$0xff]  ;;  %339 = vst [vmem:[%s10614_s7 + $0x210] sm:$0xff] %v338_v2  ;;  %341 = vst [vmem:[%s10614_s7 + $0x218] sm:$0xff] %v340_v3  ;;  %v344_v5 = vld [vmem:[%s10606_s6 + $0x448] sm:$0xff] }
  0x34   : > { %343 = vst [vmem:[%s10614_s7 + $0x220] sm:$0xff] %v342_v4  ;;  %v346_v6 = vld [vmem:[%s10606_s6 + $0x460] sm:$0xff]  ;;  %v348_v7 = vld [vmem:[%s10606_s6 + $0x468] sm:$0xff]  ;;  %345 = vst [vmem:[%s10614_s7 + $0x228] sm:$0xff] %v344_v5 }
  0x35   : > { %347 = vst [vmem:[%s10614_s7 + $0x230] sm:$0xff] %v346_v6  ;;  %349 = vst [vmem:[%s10614_s7 + $0x238] sm:$0xff] %v348_v7  ;;  %v350_v8 = vld [vmem:[%s10606_s6 + $0x480] sm:$0xff]  ;;  %v352_v9 = vld [vmem:[%s10606_s6 + $0x488] sm:$0xff] }
  0x36   : > { %v354_v10 = vld [vmem:[%s10606_s6 + $0x4a0] sm:$0xff]  ;;  %351 = vst [vmem:[%s10614_s7 + $0x240] sm:$0xff] %v350_v8  ;;  %353 = vst [vmem:[%s10614_s7 + $0x248] sm:$0xff] %v352_v9  ;;  %v356_v11 = vld [vmem:[%s10606_s6 + $0x4a8] sm:$0xff] }
  0x37   : > { %355 = vst [vmem:[%s10614_s7 + $0x250] sm:$0xff] %v354_v10  ;;  %v358_v12 = vld [vmem:[%s10606_s6 + $0x4c0] sm:$0xff]  ;;  %v360_v13 = vld [vmem:[%s10606_s6 + $0x4c8] sm:$0xff]  ;;  %357 = vst [vmem:[%s10614_s7 + $0x258] sm:$0xff] %v356_v11 }
  0x38   : > { %359 = vst [vmem:[%s10614_s7 + $0x260] sm:$0xff] %v358_v12  ;;  %361 = vst [vmem:[%s10614_s7 + $0x268] sm:$0xff] %v360_v13  ;;  %v362_v14 = vld [vmem:[%s10606_s6 + $0x4e0] sm:$0xff]  ;;  %v364_v15 = vld [vmem:[%s10606_s6 + $0x4e8] sm:$0xff] }
  0x39   : > { %v366_v16 = vld [vmem:[%s10606_s6 + $0x500] sm:$0xff]  ;;  %363 = vst [vmem:[%s10614_s7 + $0x270] sm:$0xff] %v362_v14  ;;  %365 = vst [vmem:[%s10614_s7 + $0x278] sm:$0xff] %v364_v15  ;;  %v368_v17 = vld [vmem:[%s10606_s6 + $0x508] sm:$0xff] }
  0x3a   : > { %367 = vst [vmem:[%s10614_s7 + $0x280] sm:$0xff] %v366_v16  ;;  %v370_v18 = vld [vmem:[%s10606_s6 + $0x520] sm:$0xff]  ;;  %v372_v19 = vld [vmem:[%s10606_s6 + $0x528] sm:$0xff]  ;;  %369 = vst [vmem:[%s10614_s7 + $0x288] sm:$0xff] %v368_v17 }
  0x3b   : > { %371 = vst [vmem:[%s10614_s7 + $0x290] sm:$0xff] %v370_v18  ;;  %373 = vst [vmem:[%s10614_s7 + $0x298] sm:$0xff] %v372_v19  ;;  %v374_v20 = vld [vmem:[%s10606_s6 + $0x540] sm:$0xff]  ;;  %v376_v21 = vld [vmem:[%s10606_s6 + $0x548] sm:$0xff] }
  0x3c   : > { %v378_v22 = vld [vmem:[%s10606_s6 + $0x560] sm:$0xff]  ;;  %375 = vst [vmem:[%s10614_s7 + $0x2a0] sm:$0xff] %v374_v20  ;;  %377 = vst [vmem:[%s10614_s7 + $0x2a8] sm:$0xff] %v376_v21  ;;  %v380_v23 = vld [vmem:[%s10606_s6 + $0x568] sm:$0xff] }
  0x3d   : > { %379 = vst [vmem:[%s10614_s7 + $0x2b0] sm:$0xff] %v378_v22  ;;  %v382_v24 = vld [vmem:[%s10606_s6 + $0x580] sm:$0xff]  ;;  %v384_v25 = vld [vmem:[%s10606_s6 + $0x588] sm:$0xff]  ;;  %381 = vst [vmem:[%s10614_s7 + $0x2b8] sm:$0xff] %v380_v23 }
  0x3e   : > { %383 = vst [vmem:[%s10614_s7 + $0x2c0] sm:$0xff] %v382_v24  ;;  %385 = vst [vmem:[%s10614_s7 + $0x2c8] sm:$0xff] %v384_v25  ;;  %v386_v26 = vld [vmem:[%s10606_s6 + $0x5a0] sm:$0xff]  ;;  %v388_v27 = vld [vmem:[%s10606_s6 + $0x5a8] sm:$0xff] }
  0x3f   : > { %v390_v28 = vld [vmem:[%s10606_s6 + $0x5c0] sm:$0xff]  ;;  %387 = vst [vmem:[%s10614_s7 + $0x2d0] sm:$0xff] %v386_v26  ;;  %389 = vst [vmem:[%s10614_s7 + $0x2d8] sm:$0xff] %v388_v27  ;;  %v392_v29 = vld [vmem:[%s10606_s6 + $0x5c8] sm:$0xff] }
  0x40   : > { %391 = vst [vmem:[%s10614_s7 + $0x2e0] sm:$0xff] %v390_v28  ;;  %v394_v30 = vld [vmem:[%s10606_s6 + $0x5e0] sm:$0xff]  ;;  %v396_v31 = vld [vmem:[%s10606_s6 + $0x5e8] sm:$0xff]  ;;  %393 = vst [vmem:[%s10614_s7 + $0x2e8] sm:$0xff] %v392_v29 }
  0x41   : > { %395 = vst [vmem:[%s10614_s7 + $0x2f0] sm:$0xff] %v394_v30  ;;  %397 = vst [vmem:[%s10614_s7 + $0x2f8] sm:$0xff] %v396_v31  ;;  %v398_v32 = vld [vmem:[%s10606_s6 + $0x600] sm:$0xff]  ;;  %v400_v33 = vld [vmem:[%s10606_s6 + $0x608] sm:$0xff] }
  0x42   : > { %v402_v34 = vld [vmem:[%s10606_s6 + $0x620] sm:$0xff]  ;;  %399 = vst [vmem:[%s10614_s7 + $0x300] sm:$0xff] %v398_v32  ;;  %401 = vst [vmem:[%s10614_s7 + $0x308] sm:$0xff] %v400_v33  ;;  %v404_v35 = vld [vmem:[%s10606_s6 + $0x628] sm:$0xff] }
  0x43   : > { %403 = vst [vmem:[%s10614_s7 + $0x310] sm:$0xff] %v402_v34  ;;  %v406_v36 = vld [vmem:[%s10606_s6 + $0x640] sm:$0xff]  ;;  %v408_v37 = vld [vmem:[%s10606_s6 + $0x648] sm:$0xff]  ;;  %405 = vst [vmem:[%s10614_s7 + $0x318] sm:$0xff] %v404_v35 }
  0x44   : > { %407 = vst [vmem:[%s10614_s7 + $0x320] sm:$0xff] %v406_v36  ;;  %409 = vst [vmem:[%s10614_s7 + $0x328] sm:$0xff] %v408_v37  ;;  %v410_v38 = vld [vmem:[%s10606_s6 + $0x660] sm:$0xff]  ;;  %v412_v39 = vld [vmem:[%s10606_s6 + $0x668] sm:$0xff] }
  0x45   : > { %v414_v40 = vld [vmem:[%s10606_s6 + $0x680] sm:$0xff]  ;;  %411 = vst [vmem:[%s10614_s7 + $0x330] sm:$0xff] %v410_v38  ;;  %413 = vst [vmem:[%s10614_s7 + $0x338] sm:$0xff] %v412_v39  ;;  %v416_v41 = vld [vmem:[%s10606_s6 + $0x688] sm:$0xff] }
  0x46   : > { %415 = vst [vmem:[%s10614_s7 + $0x340] sm:$0xff] %v414_v40  ;;  %v418_v42 = vld [vmem:[%s10606_s6 + $0x6a0] sm:$0xff]  ;;  %v420_v43 = vld [vmem:[%s10606_s6 + $0x6a8] sm:$0xff]  ;;  %417 = vst [vmem:[%s10614_s7 + $0x348] sm:$0xff] %v416_v41 }
  0x47   : > { %419 = vst [vmem:[%s10614_s7 + $0x350] sm:$0xff] %v418_v42  ;;  %421 = vst [vmem:[%s10614_s7 + $0x358] sm:$0xff] %v420_v43  ;;  %v422_v44 = vld [vmem:[%s10606_s6 + $0x6c0] sm:$0xff]  ;;  %v424_v45 = vld [vmem:[%s10606_s6 + $0x6c8] sm:$0xff] }
  0x48   : > { %v426_v46 = vld [vmem:[%s10606_s6 + $0x6e0] sm:$0xff]  ;;  %423 = vst [vmem:[%s10614_s7 + $0x360] sm:$0xff] %v422_v44  ;;  %425 = vst [vmem:[%s10614_s7 + $0x368] sm:$0xff] %v424_v45  ;;  %v428_v47 = vld [vmem:[%s10606_s6 + $0x6e8] sm:$0xff] }
  0x49   : > { %427 = vst [vmem:[%s10614_s7 + $0x370] sm:$0xff] %v426_v46  ;;  %v430_v48 = vld [vmem:[%s10606_s6 + $0x700] sm:$0xff]  ;;  %v432_v49 = vld [vmem:[%s10606_s6 + $0x708] sm:$0xff]  ;;  %429 = vst [vmem:[%s10614_s7 + $0x378] sm:$0xff] %v428_v47 }
  0x4a   : > { %431 = vst [vmem:[%s10614_s7 + $0x380] sm:$0xff] %v430_v48  ;;  %433 = vst [vmem:[%s10614_s7 + $0x388] sm:$0xff] %v432_v49  ;;  %v434_v50 = vld [vmem:[%s10606_s6 + $0x720] sm:$0xff]  ;;  %v436_v51 = vld [vmem:[%s10606_s6 + $0x728] sm:$0xff] }
  0x4b   : > { %v438_v52 = vld [vmem:[%s10606_s6 + $0x740] sm:$0xff]  ;;  %435 = vst [vmem:[%s10614_s7 + $0x390] sm:$0xff] %v434_v50  ;;  %437 = vst [vmem:[%s10614_s7 + $0x398] sm:$0xff] %v436_v51  ;;  %v440_v53 = vld [vmem:[%s10606_s6 + $0x748] sm:$0xff] }
  0x4c   : > { %439 = vst [vmem:[%s10614_s7 + $0x3a0] sm:$0xff] %v438_v52  ;;  %v442_v54 = vld [vmem:[%s10606_s6 + $0x760] sm:$0xff]  ;;  %v444_v55 = vld [vmem:[%s10606_s6 + $0x768] sm:$0xff]  ;;  %441 = vst [vmem:[%s10614_s7 + $0x3a8] sm:$0xff] %v440_v53 }
  0x4d   : > { %443 = vst [vmem:[%s10614_s7 + $0x3b0] sm:$0xff] %v442_v54  ;;  %445 = vst [vmem:[%s10614_s7 + $0x3b8] sm:$0xff] %v444_v55  ;;  %v446_v56 = vld [vmem:[%s10606_s6 + $0x780] sm:$0xff]  ;;  %v448_v57 = vld [vmem:[%s10606_s6 + $0x788] sm:$0xff] }
  0x4e   : > { %v450_v58 = vld [vmem:[%s10606_s6 + $0x7a0] sm:$0xff]  ;;  %447 = vst [vmem:[%s10614_s7 + $0x3c0] sm:$0xff] %v446_v56  ;;  %449 = vst [vmem:[%s10614_s7 + $0x3c8] sm:$0xff] %v448_v57  ;;  %v452_v59 = vld [vmem:[%s10606_s6 + $0x7a8] sm:$0xff] }
  0x4f   : > { %451 = vst [vmem:[%s10614_s7 + $0x3d0] sm:$0xff] %v450_v58  ;;  %v454_v60 = vld [vmem:[%s10606_s6 + $0x7c0] sm:$0xff]  ;;  %v456_v61 = vld [vmem:[%s10606_s6 + $0x7c8] sm:$0xff]  ;;  %453 = vst [vmem:[%s10614_s7 + $0x3d8] sm:$0xff] %v452_v59 }
  0x50   : > { %455 = vst [vmem:[%s10614_s7 + $0x3e0] sm:$0xff] %v454_v60  ;;  %457 = vst [vmem:[%s10614_s7 + $0x3e8] sm:$0xff] %v456_v61  ;;  %v458_v62 = vld [vmem:[%s10606_s6 + $0x7e0] sm:$0xff]  ;;  %v460_v63 = vld [vmem:[%s10606_s6 + $0x7e8] sm:$0xff] }
  0x51   : > { %v462_v0 = vld [vmem:[%s10606_s6 + $0x800] sm:$0xff]  ;;  %459 = vst [vmem:[%s10614_s7 + $0x3f0] sm:$0xff] %v458_v62  ;;  %461 = vst [vmem:[%s10614_s7 + $0x3f8] sm:$0xff] %v460_v63  ;;  %v464_v1 = vld [vmem:[%s10606_s6 + $0x808] sm:$0xff] }
  0x52   : > { %463 = vst [vmem:[%s10614_s7 + $0x400] sm:$0xff] %v462_v0  ;;  %v466_v2 = vld [vmem:[%s10606_s6 + $0x820] sm:$0xff]  ;;  %v468_v3 = vld [vmem:[%s10606_s6 + $0x828] sm:$0xff]  ;;  %465 = vst [vmem:[%s10614_s7 + $0x408] sm:$0xff] %v464_v1 }
  0x53   : > { %467 = vst [vmem:[%s10614_s7 + $0x410] sm:$0xff] %v466_v2  ;;  %469 = vst [vmem:[%s10614_s7 + $0x418] sm:$0xff] %v468_v3  ;;  %v470_v4 = vld [vmem:[%s10606_s6 + $0x840] sm:$0xff]  ;;  %v472_v5 = vld [vmem:[%s10606_s6 + $0x848] sm:$0xff] }
  0x54   : > { %v474_v6 = vld [vmem:[%s10606_s6 + $0x860] sm:$0xff]  ;;  %471 = vst [vmem:[%s10614_s7 + $0x420] sm:$0xff] %v470_v4  ;;  %473 = vst [vmem:[%s10614_s7 + $0x428] sm:$0xff] %v472_v5  ;;  %v476_v7 = vld [vmem:[%s10606_s6 + $0x868] sm:$0xff] }
  0x55   : > { %475 = vst [vmem:[%s10614_s7 + $0x430] sm:$0xff] %v474_v6  ;;  %v478_v8 = vld [vmem:[%s10606_s6 + $0x880] sm:$0xff]  ;;  %v480_v9 = vld [vmem:[%s10606_s6 + $0x888] sm:$0xff]  ;;  %477 = vst [vmem:[%s10614_s7 + $0x438] sm:$0xff] %v476_v7 }
  0x56   : > { %479 = vst [vmem:[%s10614_s7 + $0x440] sm:$0xff] %v478_v8  ;;  %481 = vst [vmem:[%s10614_s7 + $0x448] sm:$0xff] %v480_v9  ;;  %v482_v10 = vld [vmem:[%s10606_s6 + $0x8a0] sm:$0xff]  ;;  %v484_v11 = vld [vmem:[%s10606_s6 + $0x8a8] sm:$0xff] }
  0x57   : > { %v486_v12 = vld [vmem:[%s10606_s6 + $0x8c0] sm:$0xff]  ;;  %483 = vst [vmem:[%s10614_s7 + $0x450] sm:$0xff] %v482_v10  ;;  %485 = vst [vmem:[%s10614_s7 + $0x458] sm:$0xff] %v484_v11  ;;  %v488_v13 = vld [vmem:[%s10606_s6 + $0x8c8] sm:$0xff] }
  0x58   : > { %487 = vst [vmem:[%s10614_s7 + $0x460] sm:$0xff] %v486_v12  ;;  %v490_v14 = vld [vmem:[%s10606_s6 + $0x8e0] sm:$0xff]  ;;  %v492_v15 = vld [vmem:[%s10606_s6 + $0x8e8] sm:$0xff]  ;;  %489 = vst [vmem:[%s10614_s7 + $0x468] sm:$0xff] %v488_v13 }
  0x59   : > { %491 = vst [vmem:[%s10614_s7 + $0x470] sm:$0xff] %v490_v14  ;;  %493 = vst [vmem:[%s10614_s7 + $0x478] sm:$0xff] %v492_v15  ;;  %v494_v16 = vld [vmem:[%s10606_s6 + $0x900] sm:$0xff]  ;;  %v496_v17 = vld [vmem:[%s10606_s6 + $0x908] sm:$0xff] }
  0x5a   : > { %v498_v18 = vld [vmem:[%s10606_s6 + $0x920] sm:$0xff]  ;;  %495 = vst [vmem:[%s10614_s7 + $0x480] sm:$0xff] %v494_v16  ;;  %497 = vst [vmem:[%s10614_s7 + $0x488] sm:$0xff] %v496_v17  ;;  %v500_v19 = vld [vmem:[%s10606_s6 + $0x928] sm:$0xff] }
  0x5b   : > { %499 = vst [vmem:[%s10614_s7 + $0x490] sm:$0xff] %v498_v18  ;;  %v502_v20 = vld [vmem:[%s10606_s6 + $0x940] sm:$0xff]  ;;  %v504_v21 = vld [vmem:[%s10606_s6 + $0x948] sm:$0xff]  ;;  %501 = vst [vmem:[%s10614_s7 + $0x498] sm:$0xff] %v500_v19 }
  0x5c   : > { %503 = vst [vmem:[%s10614_s7 + $0x4a0] sm:$0xff] %v502_v20  ;;  %505 = vst [vmem:[%s10614_s7 + $0x4a8] sm:$0xff] %v504_v21  ;;  %v506_v22 = vld [vmem:[%s10606_s6 + $0x960] sm:$0xff]  ;;  %v508_v23 = vld [vmem:[%s10606_s6 + $0x968] sm:$0xff] }
  0x5d   : > { %v510_v24 = vld [vmem:[%s10606_s6 + $0x980] sm:$0xff]  ;;  %507 = vst [vmem:[%s10614_s7 + $0x4b0] sm:$0xff] %v506_v22  ;;  %509 = vst [vmem:[%s10614_s7 + $0x4b8] sm:$0xff] %v508_v23  ;;  %v512_v25 = vld [vmem:[%s10606_s6 + $0x988] sm:$0xff] }
  0x5e   : > { %511 = vst [vmem:[%s10614_s7 + $0x4c0] sm:$0xff] %v510_v24  ;;  %v514_v26 = vld [vmem:[%s10606_s6 + $0x9a0] sm:$0xff]  ;;  %v516_v27 = vld [vmem:[%s10606_s6 + $0x9a8] sm:$0xff]  ;;  %513 = vst [vmem:[%s10614_s7 + $0x4c8] sm:$0xff] %v512_v25 }
  0x5f   : > { %515 = vst [vmem:[%s10614_s7 + $0x4d0] sm:$0xff] %v514_v26  ;;  %517 = vst [vmem:[%s10614_s7 + $0x4d8] sm:$0xff] %v516_v27  ;;  %v518_v28 = vld [vmem:[%s10606_s6 + $0x9c0] sm:$0xff]  ;;  %v520_v29 = vld [vmem:[%s10606_s6 + $0x9c8] sm:$0xff] }
  0x60   : > { %v522_v30 = vld [vmem:[%s10606_s6 + $0x9e0] sm:$0xff]  ;;  %519 = vst [vmem:[%s10614_s7 + $0x4e0] sm:$0xff] %v518_v28  ;;  %521 = vst [vmem:[%s10614_s7 + $0x4e8] sm:$0xff] %v520_v29  ;;  %v524_v31 = vld [vmem:[%s10606_s6 + $0x9e8] sm:$0xff] }
  0x61   : > { %523 = vst [vmem:[%s10614_s7 + $0x4f0] sm:$0xff] %v522_v30  ;;  %v526_v32 = vld [vmem:[%s10606_s6 + $0xa00] sm:$0xff]  ;;  %v528_v33 = vld [vmem:[%s10606_s6 + $0xa08] sm:$0xff]  ;;  %525 = vst [vmem:[%s10614_s7 + $0x4f8] sm:$0xff] %v524_v31 }
  0x62   : > { %527 = vst [vmem:[%s10614_s7 + $0x500] sm:$0xff] %v526_v32  ;;  %529 = vst [vmem:[%s10614_s7 + $0x508] sm:$0xff] %v528_v33  ;;  %v530_v34 = vld [vmem:[%s10606_s6 + $0xa20] sm:$0xff]  ;;  %v532_v35 = vld [vmem:[%s10606_s6 + $0xa28] sm:$0xff] }
  0x63   : > { %v534_v36 = vld [vmem:[%s10606_s6 + $0xa40] sm:$0xff]  ;;  %531 = vst [vmem:[%s10614_s7 + $0x510] sm:$0xff] %v530_v34  ;;  %533 = vst [vmem:[%s10614_s7 + $0x518] sm:$0xff] %v532_v35  ;;  %v536_v37 = vld [vmem:[%s10606_s6 + $0xa48] sm:$0xff] }
  0x64   : > { %535 = vst [vmem:[%s10614_s7 + $0x520] sm:$0xff] %v534_v36  ;;  %v538_v38 = vld [vmem:[%s10606_s6 + $0xa60] sm:$0xff]  ;;  %v540_v39 = vld [vmem:[%s10606_s6 + $0xa68] sm:$0xff]  ;;  %537 = vst [vmem:[%s10614_s7 + $0x528] sm:$0xff] %v536_v37 }
  0x65   : > { %539 = vst [vmem:[%s10614_s7 + $0x530] sm:$0xff] %v538_v38  ;;  %541 = vst [vmem:[%s10614_s7 + $0x538] sm:$0xff] %v540_v39  ;;  %v542_v40 = vld [vmem:[%s10606_s6 + $0xa80] sm:$0xff]  ;;  %v544_v41 = vld [vmem:[%s10606_s6 + $0xa88] sm:$0xff] }
  0x66   : > { %v546_v42 = vld [vmem:[%s10606_s6 + $0xaa0] sm:$0xff]  ;;  %543 = vst [vmem:[%s10614_s7 + $0x540] sm:$0xff] %v542_v40  ;;  %545 = vst [vmem:[%s10614_s7 + $0x548] sm:$0xff] %v544_v41  ;;  %v548_v43 = vld [vmem:[%s10606_s6 + $0xaa8] sm:$0xff] }
  0x67   : > { %547 = vst [vmem:[%s10614_s7 + $0x550] sm:$0xff] %v546_v42  ;;  %v550_v44 = vld [vmem:[%s10606_s6 + $0xac0] sm:$0xff]  ;;  %v552_v45 = vld [vmem:[%s10606_s6 + $0xac8] sm:$0xff]  ;;  %549 = vst [vmem:[%s10614_s7 + $0x558] sm:$0xff] %v548_v43 }
  0x68   : > { %551 = vst [vmem:[%s10614_s7 + $0x560] sm:$0xff] %v550_v44  ;;  %553 = vst [vmem:[%s10614_s7 + $0x568] sm:$0xff] %v552_v45  ;;  %v554_v46 = vld [vmem:[%s10606_s6 + $0xae0] sm:$0xff]  ;;  %v556_v47 = vld [vmem:[%s10606_s6 + $0xae8] sm:$0xff] }
  0x69   : > { %v558_v48 = vld [vmem:[%s10606_s6 + $0xb00] sm:$0xff]  ;;  %555 = vst [vmem:[%s10614_s7 + $0x570] sm:$0xff] %v554_v46  ;;  %557 = vst [vmem:[%s10614_s7 + $0x578] sm:$0xff] %v556_v47  ;;  %v560_v49 = vld [vmem:[%s10606_s6 + $0xb08] sm:$0xff] }
  0x6a   : > { %559 = vst [vmem:[%s10614_s7 + $0x580] sm:$0xff] %v558_v48  ;;  %v562_v50 = vld [vmem:[%s10606_s6 + $0xb20] sm:$0xff]  ;;  %v564_v51 = vld [vmem:[%s10606_s6 + $0xb28] sm:$0xff]  ;;  %561 = vst [vmem:[%s10614_s7 + $0x588] sm:$0xff] %v560_v49 }
  0x6b   : > { %563 = vst [vmem:[%s10614_s7 + $0x590] sm:$0xff] %v562_v50  ;;  %565 = vst [vmem:[%s10614_s7 + $0x598] sm:$0xff] %v564_v51  ;;  %v566_v52 = vld [vmem:[%s10606_s6 + $0xb40] sm:$0xff]  ;;  %v568_v53 = vld [vmem:[%s10606_s6 + $0xb48] sm:$0xff] }
  0x6c   : > { %v570_v54 = vld [vmem:[%s10606_s6 + $0xb60] sm:$0xff]  ;;  %567 = vst [vmem:[%s10614_s7 + $0x5a0] sm:$0xff] %v566_v52  ;;  %569 = vst [vmem:[%s10614_s7 + $0x5a8] sm:$0xff] %v568_v53  ;;  %v572_v55 = vld [vmem:[%s10606_s6 + $0xb68] sm:$0xff] }
  0x6d   : > { %571 = vst [vmem:[%s10614_s7 + $0x5b0] sm:$0xff] %v570_v54  ;;  %v574_v56 = vld [vmem:[%s10606_s6 + $0xb80] sm:$0xff]  ;;  %v576_v57 = vld [vmem:[%s10606_s6 + $0xb88] sm:$0xff]  ;;  %573 = vst [vmem:[%s10614_s7 + $0x5b8] sm:$0xff] %v572_v55 }
  0x6e   : > { %575 = vst [vmem:[%s10614_s7 + $0x5c0] sm:$0xff] %v574_v56  ;;  %577 = vst [vmem:[%s10614_s7 + $0x5c8] sm:$0xff] %v576_v57  ;;  %v578_v58 = vld [vmem:[%s10606_s6 + $0xba0] sm:$0xff]  ;;  %v580_v59 = vld [vmem:[%s10606_s6 + $0xba8] sm:$0xff] }
  0x6f   : > { %v582_v60 = vld [vmem:[%s10606_s6 + $0xbc0] sm:$0xff]  ;;  %579 = vst [vmem:[%s10614_s7 + $0x5d0] sm:$0xff] %v578_v58  ;;  %581 = vst [vmem:[%s10614_s7 + $0x5d8] sm:$0xff] %v580_v59  ;;  %v584_v61 = vld [vmem:[%s10606_s6 + $0xbc8] sm:$0xff] }
  0x70   : > { %583 = vst [vmem:[%s10614_s7 + $0x5e0] sm:$0xff] %v582_v60  ;;  %v586_v62 = vld [vmem:[%s10606_s6 + $0xbe0] sm:$0xff]  ;;  %v588_v63 = vld [vmem:[%s10606_s6 + $0xbe8] sm:$0xff]  ;;  %585 = vst [vmem:[%s10614_s7 + $0x5e8] sm:$0xff] %v584_v61 }
  0x71   : > { %587 = vst [vmem:[%s10614_s7 + $0x5f0] sm:$0xff] %v586_v62  ;;  %589 = vst [vmem:[%s10614_s7 + $0x5f8] sm:$0xff] %v588_v63  ;;  %v590_v0 = vld [vmem:[%s10606_s6 + $0xc00] sm:$0xff]  ;;  %v592_v1 = vld [vmem:[%s10606_s6 + $0xc08] sm:$0xff] }
  0x72   : > { %v594_v2 = vld [vmem:[%s10606_s6 + $0xc20] sm:$0xff]  ;;  %591 = vst [vmem:[%s10614_s7 + $0x600] sm:$0xff] %v590_v0  ;;  %593 = vst [vmem:[%s10614_s7 + $0x608] sm:$0xff] %v592_v1  ;;  %v596_v3 = vld [vmem:[%s10606_s6 + $0xc28] sm:$0xff] }
  0x73   : > { %595 = vst [vmem:[%s10614_s7 + $0x610] sm:$0xff] %v594_v2  ;;  %v598_v4 = vld [vmem:[%s10606_s6 + $0xc40] sm:$0xff]  ;;  %v600_v5 = vld [vmem:[%s10606_s6 + $0xc48] sm:$0xff]  ;;  %597 = vst [vmem:[%s10614_s7 + $0x618] sm:$0xff] %v596_v3 }
  0x74   : > { %599 = vst [vmem:[%s10614_s7 + $0x620] sm:$0xff] %v598_v4  ;;  %601 = vst [vmem:[%s10614_s7 + $0x628] sm:$0xff] %v600_v5  ;;  %v602_v6 = vld [vmem:[%s10606_s6 + $0xc60] sm:$0xff]  ;;  %v604_v7 = vld [vmem:[%s10606_s6 + $0xc68] sm:$0xff] }
  0x75   : > { %v606_v8 = vld [vmem:[%s10606_s6 + $0xc80] sm:$0xff]  ;;  %603 = vst [vmem:[%s10614_s7 + $0x630] sm:$0xff] %v602_v6  ;;  %605 = vst [vmem:[%s10614_s7 + $0x638] sm:$0xff] %v604_v7  ;;  %v608_v9 = vld [vmem:[%s10606_s6 + $0xc88] sm:$0xff] }
  0x76   : > { %607 = vst [vmem:[%s10614_s7 + $0x640] sm:$0xff] %v606_v8  ;;  %v610_v10 = vld [vmem:[%s10606_s6 + $0xca0] sm:$0xff]  ;;  %v612_v11 = vld [vmem:[%s10606_s6 + $0xca8] sm:$0xff]  ;;  %609 = vst [vmem:[%s10614_s7 + $0x648] sm:$0xff] %v608_v9 }
  0x77   : > { %611 = vst [vmem:[%s10614_s7 + $0x650] sm:$0xff] %v610_v10  ;;  %613 = vst [vmem:[%s10614_s7 + $0x658] sm:$0xff] %v612_v11  ;;  %v614_v12 = vld [vmem:[%s10606_s6 + $0xcc0] sm:$0xff]  ;;  %v616_v13 = vld [vmem:[%s10606_s6 + $0xcc8] sm:$0xff] }
  0x78   : > { %v618_v14 = vld [vmem:[%s10606_s6 + $0xce0] sm:$0xff]  ;;  %615 = vst [vmem:[%s10614_s7 + $0x660] sm:$0xff] %v614_v12  ;;  %617 = vst [vmem:[%s10614_s7 + $0x668] sm:$0xff] %v616_v13  ;;  %v620_v15 = vld [vmem:[%s10606_s6 + $0xce8] sm:$0xff] }
  0x79   : > { %619 = vst [vmem:[%s10614_s7 + $0x670] sm:$0xff] %v618_v14  ;;  %v622_v16 = vld [vmem:[%s10606_s6 + $0xd00] sm:$0xff]  ;;  %v624_v17 = vld [vmem:[%s10606_s6 + $0xd08] sm:$0xff]  ;;  %621 = vst [vmem:[%s10614_s7 + $0x678] sm:$0xff] %v620_v15 }
  0x7a   : > { %623 = vst [vmem:[%s10614_s7 + $0x680] sm:$0xff] %v622_v16  ;;  %625 = vst [vmem:[%s10614_s7 + $0x688] sm:$0xff] %v624_v17  ;;  %v626_v18 = vld [vmem:[%s10606_s6 + $0xd20] sm:$0xff]  ;;  %v628_v19 = vld [vmem:[%s10606_s6 + $0xd28] sm:$0xff] }
  0x7b   : > { %v630_v20 = vld [vmem:[%s10606_s6 + $0xd40] sm:$0xff]  ;;  %627 = vst [vmem:[%s10614_s7 + $0x690] sm:$0xff] %v626_v18  ;;  %629 = vst [vmem:[%s10614_s7 + $0x698] sm:$0xff] %v628_v19  ;;  %v632_v21 = vld [vmem:[%s10606_s6 + $0xd48] sm:$0xff] }
  0x7c   : > { %631 = vst [vmem:[%s10614_s7 + $0x6a0] sm:$0xff] %v630_v20  ;;  %v634_v22 = vld [vmem:[%s10606_s6 + $0xd60] sm:$0xff]  ;;  %v636_v23 = vld [vmem:[%s10606_s6 + $0xd68] sm:$0xff]  ;;  %633 = vst [vmem:[%s10614_s7 + $0x6a8] sm:$0xff] %v632_v21 }
  0x7d   : > { %635 = vst [vmem:[%s10614_s7 + $0x6b0] sm:$0xff] %v634_v22  ;;  %637 = vst [vmem:[%s10614_s7 + $0x6b8] sm:$0xff] %v636_v23  ;;  %v638_v24 = vld [vmem:[%s10606_s6 + $0xd80] sm:$0xff]  ;;  %v640_v25 = vld [vmem:[%s10606_s6 + $0xd88] sm:$0xff] }
  0x7e   : > { %v642_v26 = vld [vmem:[%s10606_s6 + $0xda0] sm:$0xff]  ;;  %639 = vst [vmem:[%s10614_s7 + $0x6c0] sm:$0xff] %v638_v24  ;;  %641 = vst [vmem:[%s10614_s7 + $0x6c8] sm:$0xff] %v640_v25  ;;  %v644_v27 = vld [vmem:[%s10606_s6 + $0xda8] sm:$0xff] }
  0x7f   : > { %643 = vst [vmem:[%s10614_s7 + $0x6d0] sm:$0xff] %v642_v26  ;;  %v646_v28 = vld [vmem:[%s10606_s6 + $0xdc0] sm:$0xff]  ;;  %v648_v29 = vld [vmem:[%s10606_s6 + $0xdc8] sm:$0xff]  ;;  %645 = vst [vmem:[%s10614_s7 + $0x6d8] sm:$0xff] %v644_v27 }
  0x80   : > { %647 = vst [vmem:[%s10614_s7 + $0x6e0] sm:$0xff] %v646_v28  ;;  %649 = vst [vmem:[%s10614_s7 + $0x6e8] sm:$0xff] %v648_v29  ;;  %v650_v30 = vld [vmem:[%s10606_s6 + $0xde0] sm:$0xff]  ;;  %v652_v31 = vld [vmem:[%s10606_s6 + $0xde8] sm:$0xff] }
  0x81   : > { %v654_v32 = vld [vmem:[%s10606_s6 + $0xe00] sm:$0xff]  ;;  %651 = vst [vmem:[%s10614_s7 + $0x6f0] sm:$0xff] %v650_v30  ;;  %653 = vst [vmem:[%s10614_s7 + $0x6f8] sm:$0xff] %v652_v31  ;;  %v656_v33 = vld [vmem:[%s10606_s6 + $0xe08] sm:$0xff] }
  0x82   : > { %655 = vst [vmem:[%s10614_s7 + $0x700] sm:$0xff] %v654_v32  ;;  %v658_v34 = vld [vmem:[%s10606_s6 + $0xe20] sm:$0xff]  ;;  %v660_v35 = vld [vmem:[%s10606_s6 + $0xe28] sm:$0xff]  ;;  %657 = vst [vmem:[%s10614_s7 + $0x708] sm:$0xff] %v656_v33 }
  0x83   : > { %659 = vst [vmem:[%s10614_s7 + $0x710] sm:$0xff] %v658_v34  ;;  %661 = vst [vmem:[%s10614_s7 + $0x718] sm:$0xff] %v660_v35  ;;  %v662_v36 = vld [vmem:[%s10606_s6 + $0xe40] sm:$0xff]  ;;  %v664_v37 = vld [vmem:[%s10606_s6 + $0xe48] sm:$0xff] }
  0x84   : > { %v666_v38 = vld [vmem:[%s10606_s6 + $0xe60] sm:$0xff]  ;;  %663 = vst [vmem:[%s10614_s7 + $0x720] sm:$0xff] %v662_v36  ;;  %665 = vst [vmem:[%s10614_s7 + $0x728] sm:$0xff] %v664_v37  ;;  %v668_v39 = vld [vmem:[%s10606_s6 + $0xe68] sm:$0xff] }
  0x85   : > { %667 = vst [vmem:[%s10614_s7 + $0x730] sm:$0xff] %v666_v38  ;;  %v670_v40 = vld [vmem:[%s10606_s6 + $0xe80] sm:$0xff]  ;;  %v672_v41 = vld [vmem:[%s10606_s6 + $0xe88] sm:$0xff]  ;;  %669 = vst [vmem:[%s10614_s7 + $0x738] sm:$0xff] %v668_v39 }
  0x86   : > { %671 = vst [vmem:[%s10614_s7 + $0x740] sm:$0xff] %v670_v40  ;;  %673 = vst [vmem:[%s10614_s7 + $0x748] sm:$0xff] %v672_v41  ;;  %v674_v42 = vld [vmem:[%s10606_s6 + $0xea0] sm:$0xff]  ;;  %v676_v43 = vld [vmem:[%s10606_s6 + $0xea8] sm:$0xff] }
  0x87   : > { %v678_v44 = vld [vmem:[%s10606_s6 + $0xec0] sm:$0xff]  ;;  %675 = vst [vmem:[%s10614_s7 + $0x750] sm:$0xff] %v674_v42  ;;  %677 = vst [vmem:[%s10614_s7 + $0x758] sm:$0xff] %v676_v43  ;;  %v680_v45 = vld [vmem:[%s10606_s6 + $0xec8] sm:$0xff] }
  0x88   : > { %679 = vst [vmem:[%s10614_s7 + $0x760] sm:$0xff] %v678_v44  ;;  %v682_v46 = vld [vmem:[%s10606_s6 + $0xee0] sm:$0xff]  ;;  %v684_v47 = vld [vmem:[%s10606_s6 + $0xee8] sm:$0xff]  ;;  %681 = vst [vmem:[%s10614_s7 + $0x768] sm:$0xff] %v680_v45 }
  0x89   : > { %683 = vst [vmem:[%s10614_s7 + $0x770] sm:$0xff] %v682_v46  ;;  %685 = vst [vmem:[%s10614_s7 + $0x778] sm:$0xff] %v684_v47  ;;  %v686_v48 = vld [vmem:[%s10606_s6 + $0xf00] sm:$0xff]  ;;  %v688_v49 = vld [vmem:[%s10606_s6 + $0xf08] sm:$0xff] }
  0x8a   : > { %v690_v50 = vld [vmem:[%s10606_s6 + $0xf20] sm:$0xff]  ;;  %687 = vst [vmem:[%s10614_s7 + $0x780] sm:$0xff] %v686_v48  ;;  %689 = vst [vmem:[%s10614_s7 + $0x788] sm:$0xff] %v688_v49  ;;  %v692_v51 = vld [vmem:[%s10606_s6 + $0xf28] sm:$0xff] }
  0x8b   : > { %691 = vst [vmem:[%s10614_s7 + $0x790] sm:$0xff] %v690_v50  ;;  %v694_v52 = vld [vmem:[%s10606_s6 + $0xf40] sm:$0xff]  ;;  %v696_v53 = vld [vmem:[%s10606_s6 + $0xf48] sm:$0xff]  ;;  %693 = vst [vmem:[%s10614_s7 + $0x798] sm:$0xff] %v692_v51 }
  0x8c   : > { %695 = vst [vmem:[%s10614_s7 + $0x7a0] sm:$0xff] %v694_v52  ;;  %697 = vst [vmem:[%s10614_s7 + $0x7a8] sm:$0xff] %v696_v53  ;;  %v698_v54 = vld [vmem:[%s10606_s6 + $0xf60] sm:$0xff]  ;;  %v700_v55 = vld [vmem:[%s10606_s6 + $0xf68] sm:$0xff] }
  0x8d   : > { %v702_v56 = vld [vmem:[%s10606_s6 + $0xf80] sm:$0xff]  ;;  %699 = vst [vmem:[%s10614_s7 + $0x7b0] sm:$0xff] %v698_v54  ;;  %701 = vst [vmem:[%s10614_s7 + $0x7b8] sm:$0xff] %v700_v55  ;;  %v704_v57 = vld [vmem:[%s10606_s6 + $0xf88] sm:$0xff] }
  0x8e   : > { %703 = vst [vmem:[%s10614_s7 + $0x7c0] sm:$0xff] %v702_v56  ;;  %v706_v58 = vld [vmem:[%s10606_s6 + $0xfa0] sm:$0xff]  ;;  %v708_v59 = vld [vmem:[%s10606_s6 + $0xfa8] sm:$0xff]  ;;  %705 = vst [vmem:[%s10614_s7 + $0x7c8] sm:$0xff] %v704_v57 }
  0x8f   : > { %707 = vst [vmem:[%s10614_s7 + $0x7d0] sm:$0xff] %v706_v58  ;;  %709 = vst [vmem:[%s10614_s7 + $0x7d8] sm:$0xff] %v708_v59  ;;  %v710_v60 = vld [vmem:[%s10606_s6 + $0xfc0] sm:$0xff]  ;;  %v712_v61 = vld [vmem:[%s10606_s6 + $0xfc8] sm:$0xff] }
  0x90   : > { %v714_v62 = vld [vmem:[%s10606_s6 + $0xfe0] sm:$0xff]  ;;  %711 = vst [vmem:[%s10614_s7 + $0x7e0] sm:$0xff] %v710_v60  ;;  %713 = vst [vmem:[%s10614_s7 + $0x7e8] sm:$0xff] %v712_v61  ;;  %v716_v63 = vld [vmem:[%s10606_s6 + $0xfe8] sm:$0xff] }
  0x91   : > { %715 = vst [vmem:[%s10614_s7 + $0x7f0] sm:$0xff] %v714_v62  ;;  %v718_v0 = vld [vmem:[%s10606_s6 + $0x1000] sm:$0xff]  ;;  %v720_v1 = vld [vmem:[%s10606_s6 + $0x1008] sm:$0xff]  ;;  %717 = vst [vmem:[%s10614_s7 + $0x7f8] sm:$0xff] %v716_v63 }
  0x92   : > { %719 = vst [vmem:[%s10614_s7 + $0x800] sm:$0xff] %v718_v0  ;;  %721 = vst [vmem:[%s10614_s7 + $0x808] sm:$0xff] %v720_v1  ;;  %v722_v2 = vld [vmem:[%s10606_s6 + $0x1020] sm:$0xff]  ;;  %v724_v3 = vld [vmem:[%s10606_s6 + $0x1028] sm:$0xff] }
  0x93   : > { %v726_v4 = vld [vmem:[%s10606_s6 + $0x1040] sm:$0xff]  ;;  %723 = vst [vmem:[%s10614_s7 + $0x810] sm:$0xff] %v722_v2  ;;  %725 = vst [vmem:[%s10614_s7 + $0x818] sm:$0xff] %v724_v3  ;;  %v728_v5 = vld [vmem:[%s10606_s6 + $0x1048] sm:$0xff] }
  0x94   : > { %727 = vst [vmem:[%s10614_s7 + $0x820] sm:$0xff] %v726_v4  ;;  %v730_v6 = vld [vmem:[%s10606_s6 + $0x1060] sm:$0xff]  ;;  %v732_v7 = vld [vmem:[%s10606_s6 + $0x1068] sm:$0xff]  ;;  %729 = vst [vmem:[%s10614_s7 + $0x828] sm:$0xff] %v728_v5 }
  0x95   : > { %731 = vst [vmem:[%s10614_s7 + $0x830] sm:$0xff] %v730_v6  ;;  %733 = vst [vmem:[%s10614_s7 + $0x838] sm:$0xff] %v732_v7  ;;  %v734_v8 = vld [vmem:[%s10606_s6 + $0x1080] sm:$0xff]  ;;  %v736_v9 = vld [vmem:[%s10606_s6 + $0x1088] sm:$0xff] }
  0x96   : > { %v738_v10 = vld [vmem:[%s10606_s6 + $0x10a0] sm:$0xff]  ;;  %735 = vst [vmem:[%s10614_s7 + $0x840] sm:$0xff] %v734_v8  ;;  %737 = vst [vmem:[%s10614_s7 + $0x848] sm:$0xff] %v736_v9  ;;  %v740_v11 = vld [vmem:[%s10606_s6 + $0x10a8] sm:$0xff] }
  0x97   : > { %739 = vst [vmem:[%s10614_s7 + $0x850] sm:$0xff] %v738_v10  ;;  %v742_v12 = vld [vmem:[%s10606_s6 + $0x10c0] sm:$0xff]  ;;  %v744_v13 = vld [vmem:[%s10606_s6 + $0x10c8] sm:$0xff]  ;;  %741 = vst [vmem:[%s10614_s7 + $0x858] sm:$0xff] %v740_v11 }
  0x98   : > { %743 = vst [vmem:[%s10614_s7 + $0x860] sm:$0xff] %v742_v12  ;;  %745 = vst [vmem:[%s10614_s7 + $0x868] sm:$0xff] %v744_v13  ;;  %v746_v14 = vld [vmem:[%s10606_s6 + $0x10e0] sm:$0xff]  ;;  %v748_v15 = vld [vmem:[%s10606_s6 + $0x10e8] sm:$0xff] }
  0x99   : > { %v750_v16 = vld [vmem:[%s10606_s6 + $0x1100] sm:$0xff]  ;;  %747 = vst [vmem:[%s10614_s7 + $0x870] sm:$0xff] %v746_v14  ;;  %749 = vst [vmem:[%s10614_s7 + $0x878] sm:$0xff] %v748_v15  ;;  %v752_v17 = vld [vmem:[%s10606_s6 + $0x1108] sm:$0xff] }
  0x9a   : > { %751 = vst [vmem:[%s10614_s7 + $0x880] sm:$0xff] %v750_v16  ;;  %v754_v18 = vld [vmem:[%s10606_s6 + $0x1120] sm:$0xff]  ;;  %v756_v19 = vld [vmem:[%s10606_s6 + $0x1128] sm:$0xff]  ;;  %753 = vst [vmem:[%s10614_s7 + $0x888] sm:$0xff] %v752_v17 }
  0x9b   : > { %755 = vst [vmem:[%s10614_s7 + $0x890] sm:$0xff] %v754_v18  ;;  %757 = vst [vmem:[%s10614_s7 + $0x898] sm:$0xff] %v756_v19  ;;  %v758_v20 = vld [vmem:[%s10606_s6 + $0x1140] sm:$0xff]  ;;  %v760_v21 = vld [vmem:[%s10606_s6 + $0x1148] sm:$0xff] }
  0x9c   : > { %v762_v22 = vld [vmem:[%s10606_s6 + $0x1160] sm:$0xff]  ;;  %759 = vst [vmem:[%s10614_s7 + $0x8a0] sm:$0xff] %v758_v20  ;;  %761 = vst [vmem:[%s10614_s7 + $0x8a8] sm:$0xff] %v760_v21  ;;  %v764_v23 = vld [vmem:[%s10606_s6 + $0x1168] sm:$0xff] }
  0x9d   : > { %763 = vst [vmem:[%s10614_s7 + $0x8b0] sm:$0xff] %v762_v22  ;;  %v766_v24 = vld [vmem:[%s10606_s6 + $0x1180] sm:$0xff]  ;;  %v768_v25 = vld [vmem:[%s10606_s6 + $0x1188] sm:$0xff]  ;;  %765 = vst [vmem:[%s10614_s7 + $0x8b8] sm:$0xff] %v764_v23 }
  0x9e   : > { %767 = vst [vmem:[%s10614_s7 + $0x8c0] sm:$0xff] %v766_v24  ;;  %769 = vst [vmem:[%s10614_s7 + $0x8c8] sm:$0xff] %v768_v25  ;;  %v770_v26 = vld [vmem:[%s10606_s6 + $0x11a0] sm:$0xff]  ;;  %v772_v27 = vld [vmem:[%s10606_s6 + $0x11a8] sm:$0xff] }
  0x9f   : > { %v774_v28 = vld [vmem:[%s10606_s6 + $0x11c0] sm:$0xff]  ;;  %771 = vst [vmem:[%s10614_s7 + $0x8d0] sm:$0xff] %v770_v26  ;;  %773 = vst [vmem:[%s10614_s7 + $0x8d8] sm:$0xff] %v772_v27  ;;  %v776_v29 = vld [vmem:[%s10606_s6 + $0x11c8] sm:$0xff] }
  0xa0   : > { %775 = vst [vmem:[%s10614_s7 + $0x8e0] sm:$0xff] %v774_v28  ;;  %v778_v30 = vld [vmem:[%s10606_s6 + $0x11e0] sm:$0xff]  ;;  %v780_v31 = vld [vmem:[%s10606_s6 + $0x11e8] sm:$0xff]  ;;  %777 = vst [vmem:[%s10614_s7 + $0x8e8] sm:$0xff] %v776_v29 }
  0xa1   : > { %779 = vst [vmem:[%s10614_s7 + $0x8f0] sm:$0xff] %v778_v30  ;;  %781 = vst [vmem:[%s10614_s7 + $0x8f8] sm:$0xff] %v780_v31  ;;  %v782_v32 = vld [vmem:[%s10606_s6 + $0x1200] sm:$0xff]  ;;  %v784_v33 = vld [vmem:[%s10606_s6 + $0x1208] sm:$0xff] }
  0xa2   : > { %v786_v34 = vld [vmem:[%s10606_s6 + $0x1220] sm:$0xff]  ;;  %783 = vst [vmem:[%s10614_s7 + $0x900] sm:$0xff] %v782_v32  ;;  %785 = vst [vmem:[%s10614_s7 + $0x908] sm:$0xff] %v784_v33  ;;  %v788_v35 = vld [vmem:[%s10606_s6 + $0x1228] sm:$0xff] }
  0xa3   : > { %787 = vst [vmem:[%s10614_s7 + $0x910] sm:$0xff] %v786_v34  ;;  %v790_v36 = vld [vmem:[%s10606_s6 + $0x1240] sm:$0xff]  ;;  %v792_v37 = vld [vmem:[%s10606_s6 + $0x1248] sm:$0xff]  ;;  %789 = vst [vmem:[%s10614_s7 + $0x918] sm:$0xff] %v788_v35 }
  0xa4   : > { %791 = vst [vmem:[%s10614_s7 + $0x920] sm:$0xff] %v790_v36  ;;  %793 = vst [vmem:[%s10614_s7 + $0x928] sm:$0xff] %v792_v37  ;;  %v794_v38 = vld [vmem:[%s10606_s6 + $0x1260] sm:$0xff]  ;;  %v796_v39 = vld [vmem:[%s10606_s6 + $0x1268] sm:$0xff] }
  0xa5   : > { %v798_v40 = vld [vmem:[%s10606_s6 + $0x1280] sm:$0xff]  ;;  %795 = vst [vmem:[%s10614_s7 + $0x930] sm:$0xff] %v794_v38  ;;  %797 = vst [vmem:[%s10614_s7 + $0x938] sm:$0xff] %v796_v39  ;;  %v800_v41 = vld [vmem:[%s10606_s6 + $0x1288] sm:$0xff] }
  0xa6   : > { %799 = vst [vmem:[%s10614_s7 + $0x940] sm:$0xff] %v798_v40  ;;  %v802_v42 = vld [vmem:[%s10606_s6 + $0x12a0] sm:$0xff]  ;;  %v804_v43 = vld [vmem:[%s10606_s6 + $0x12a8] sm:$0xff]  ;;  %801 = vst [vmem:[%s10614_s7 + $0x948] sm:$0xff] %v800_v41 }
  0xa7   : > { %803 = vst [vmem:[%s10614_s7 + $0x950] sm:$0xff] %v802_v42  ;;  %805 = vst [vmem:[%s10614_s7 + $0x958] sm:$0xff] %v804_v43  ;;  %v806_v44 = vld [vmem:[%s10606_s6 + $0x12c0] sm:$0xff]  ;;  %v808_v45 = vld [vmem:[%s10606_s6 + $0x12c8] sm:$0xff] }
  0xa8   : > { %v810_v46 = vld [vmem:[%s10606_s6 + $0x12e0] sm:$0xff]  ;;  %807 = vst [vmem:[%s10614_s7 + $0x960] sm:$0xff] %v806_v44  ;;  %809 = vst [vmem:[%s10614_s7 + $0x968] sm:$0xff] %v808_v45  ;;  %v812_v47 = vld [vmem:[%s10606_s6 + $0x12e8] sm:$0xff] }
  0xa9   : > { %811 = vst [vmem:[%s10614_s7 + $0x970] sm:$0xff] %v810_v46  ;;  %v814_v48 = vld [vmem:[%s10606_s6 + $0x1300] sm:$0xff]  ;;  %v816_v49 = vld [vmem:[%s10606_s6 + $0x1308] sm:$0xff]  ;;  %813 = vst [vmem:[%s10614_s7 + $0x978] sm:$0xff] %v812_v47 }
  0xaa   : > { %815 = vst [vmem:[%s10614_s7 + $0x980] sm:$0xff] %v814_v48  ;;  %817 = vst [vmem:[%s10614_s7 + $0x988] sm:$0xff] %v816_v49  ;;  %v818_v50 = vld [vmem:[%s10606_s6 + $0x1320] sm:$0xff]  ;;  %v820_v51 = vld [vmem:[%s10606_s6 + $0x1328] sm:$0xff] }
  0xab   : > { %v822_v52 = vld [vmem:[%s10606_s6 + $0x1340] sm:$0xff]  ;;  %819 = vst [vmem:[%s10614_s7 + $0x990] sm:$0xff] %v818_v50  ;;  %821 = vst [vmem:[%s10614_s7 + $0x998] sm:$0xff] %v820_v51  ;;  %v824_v53 = vld [vmem:[%s10606_s6 + $0x1348] sm:$0xff] }
  0xac   : > { %823 = vst [vmem:[%s10614_s7 + $0x9a0] sm:$0xff] %v822_v52  ;;  %v826_v54 = vld [vmem:[%s10606_s6 + $0x1360] sm:$0xff]  ;;  %v828_v55 = vld [vmem:[%s10606_s6 + $0x1368] sm:$0xff]  ;;  %825 = vst [vmem:[%s10614_s7 + $0x9a8] sm:$0xff] %v824_v53 }
  0xad   : > { %827 = vst [vmem:[%s10614_s7 + $0x9b0] sm:$0xff] %v826_v54  ;;  %829 = vst [vmem:[%s10614_s7 + $0x9b8] sm:$0xff] %v828_v55  ;;  %v830_v56 = vld [vmem:[%s10606_s6 + $0x1380] sm:$0xff]  ;;  %v832_v57 = vld [vmem:[%s10606_s6 + $0x1388] sm:$0xff] }
  0xae   : > { %v834_v58 = vld [vmem:[%s10606_s6 + $0x13a0] sm:$0xff]  ;;  %831 = vst [vmem:[%s10614_s7 + $0x9c0] sm:$0xff] %v830_v56  ;;  %833 = vst [vmem:[%s10614_s7 + $0x9c8] sm:$0xff] %v832_v57  ;;  %v836_v59 = vld [vmem:[%s10606_s6 + $0x13a8] sm:$0xff] }
  0xaf   : > { %835 = vst [vmem:[%s10614_s7 + $0x9d0] sm:$0xff] %v834_v58  ;;  %v838_v60 = vld [vmem:[%s10606_s6 + $0x13c0] sm:$0xff]  ;;  %v840_v61 = vld [vmem:[%s10606_s6 + $0x13c8] sm:$0xff]  ;;  %837 = vst [vmem:[%s10614_s7 + $0x9d8] sm:$0xff] %v836_v59 }
  0xb0   : > { %839 = vst [vmem:[%s10614_s7 + $0x9e0] sm:$0xff] %v838_v60  ;;  %841 = vst [vmem:[%s10614_s7 + $0x9e8] sm:$0xff] %v840_v61  ;;  %v842_v62 = vld [vmem:[%s10606_s6 + $0x13e0] sm:$0xff]  ;;  %v844_v63 = vld [vmem:[%s10606_s6 + $0x13e8] sm:$0xff] }
  0xb1   : > { %v846_v0 = vld [vmem:[%s10606_s6 + $0x1400] sm:$0xff]  ;;  %843 = vst [vmem:[%s10614_s7 + $0x9f0] sm:$0xff] %v842_v62  ;;  %845 = vst [vmem:[%s10614_s7 + $0x9f8] sm:$0xff] %v844_v63  ;;  %v848_v1 = vld [vmem:[%s10606_s6 + $0x1408] sm:$0xff] }
  0xb2   : > { %847 = vst [vmem:[%s10614_s7 + $0xa00] sm:$0xff] %v846_v0  ;;  %v850_v2 = vld [vmem:[%s10606_s6 + $0x1420] sm:$0xff]  ;;  %v852_v3 = vld [vmem:[%s10606_s6 + $0x1428] sm:$0xff]  ;;  %849 = vst [vmem:[%s10614_s7 + $0xa08] sm:$0xff] %v848_v1 }
  0xb3   : > { %851 = vst [vmem:[%s10614_s7 + $0xa10] sm:$0xff] %v850_v2  ;;  %853 = vst [vmem:[%s10614_s7 + $0xa18] sm:$0xff] %v852_v3  ;;  %v854_v4 = vld [vmem:[%s10606_s6 + $0x1440] sm:$0xff]  ;;  %v856_v5 = vld [vmem:[%s10606_s6 + $0x1448] sm:$0xff] }
  0xb4   : > { %v858_v6 = vld [vmem:[%s10606_s6 + $0x1460] sm:$0xff]  ;;  %855 = vst [vmem:[%s10614_s7 + $0xa20] sm:$0xff] %v854_v4  ;;  %857 = vst [vmem:[%s10614_s7 + $0xa28] sm:$0xff] %v856_v5  ;;  %v860_v7 = vld [vmem:[%s10606_s6 + $0x1468] sm:$0xff] }
  0xb5   : > { %859 = vst [vmem:[%s10614_s7 + $0xa30] sm:$0xff] %v858_v6  ;;  %v862_v8 = vld [vmem:[%s10606_s6 + $0x1480] sm:$0xff]  ;;  %v864_v9 = vld [vmem:[%s10606_s6 + $0x1488] sm:$0xff]  ;;  %861 = vst [vmem:[%s10614_s7 + $0xa38] sm:$0xff] %v860_v7 }
  0xb6   : > { %863 = vst [vmem:[%s10614_s7 + $0xa40] sm:$0xff] %v862_v8  ;;  %865 = vst [vmem:[%s10614_s7 + $0xa48] sm:$0xff] %v864_v9  ;;  %v866_v10 = vld [vmem:[%s10606_s6 + $0x14a0] sm:$0xff]  ;;  %v868_v11 = vld [vmem:[%s10606_s6 + $0x14a8] sm:$0xff] }
  0xb7   : > { %v870_v12 = vld [vmem:[%s10606_s6 + $0x14c0] sm:$0xff]  ;;  %867 = vst [vmem:[%s10614_s7 + $0xa50] sm:$0xff] %v866_v10  ;;  %869 = vst [vmem:[%s10614_s7 + $0xa58] sm:$0xff] %v868_v11  ;;  %v872_v13 = vld [vmem:[%s10606_s6 + $0x14c8] sm:$0xff] }
  0xb8   : > { %871 = vst [vmem:[%s10614_s7 + $0xa60] sm:$0xff] %v870_v12  ;;  %v874_v14 = vld [vmem:[%s10606_s6 + $0x14e0] sm:$0xff]  ;;  %v876_v15 = vld [vmem:[%s10606_s6 + $0x14e8] sm:$0xff]  ;;  %873 = vst [vmem:[%s10614_s7 + $0xa68] sm:$0xff] %v872_v13 }
  0xb9   : > { %875 = vst [vmem:[%s10614_s7 + $0xa70] sm:$0xff] %v874_v14  ;;  %877 = vst [vmem:[%s10614_s7 + $0xa78] sm:$0xff] %v876_v15  ;;  %v878_v16 = vld [vmem:[%s10606_s6 + $0x1500] sm:$0xff]  ;;  %v880_v17 = vld [vmem:[%s10606_s6 + $0x1508] sm:$0xff] }
  0xba   : > { %v882_v18 = vld [vmem:[%s10606_s6 + $0x1520] sm:$0xff]  ;;  %879 = vst [vmem:[%s10614_s7 + $0xa80] sm:$0xff] %v878_v16  ;;  %881 = vst [vmem:[%s10614_s7 + $0xa88] sm:$0xff] %v880_v17  ;;  %v884_v19 = vld [vmem:[%s10606_s6 + $0x1528] sm:$0xff] }
  0xbb   : > { %883 = vst [vmem:[%s10614_s7 + $0xa90] sm:$0xff] %v882_v18  ;;  %v886_v20 = vld [vmem:[%s10606_s6 + $0x1540] sm:$0xff]  ;;  %v888_v21 = vld [vmem:[%s10606_s6 + $0x1548] sm:$0xff]  ;;  %885 = vst [vmem:[%s10614_s7 + $0xa98] sm:$0xff] %v884_v19 }
  0xbc   : > { %887 = vst [vmem:[%s10614_s7 + $0xaa0] sm:$0xff] %v886_v20  ;;  %889 = vst [vmem:[%s10614_s7 + $0xaa8] sm:$0xff] %v888_v21  ;;  %v890_v22 = vld [vmem:[%s10606_s6 + $0x1560] sm:$0xff]  ;;  %v892_v23 = vld [vmem:[%s10606_s6 + $0x1568] sm:$0xff] }
  0xbd   : > { %v894_v24 = vld [vmem:[%s10606_s6 + $0x1580] sm:$0xff]  ;;  %891 = vst [vmem:[%s10614_s7 + $0xab0] sm:$0xff] %v890_v22  ;;  %893 = vst [vmem:[%s10614_s7 + $0xab8] sm:$0xff] %v892_v23  ;;  %v896_v25 = vld [vmem:[%s10606_s6 + $0x1588] sm:$0xff] }
  0xbe   : > { %895 = vst [vmem:[%s10614_s7 + $0xac0] sm:$0xff] %v894_v24  ;;  %v898_v26 = vld [vmem:[%s10606_s6 + $0x15a0] sm:$0xff]  ;;  %v900_v27 = vld [vmem:[%s10606_s6 + $0x15a8] sm:$0xff]  ;;  %897 = vst [vmem:[%s10614_s7 + $0xac8] sm:$0xff] %v896_v25 }
  0xbf   : > { %899 = vst [vmem:[%s10614_s7 + $0xad0] sm:$0xff] %v898_v26  ;;  %901 = vst [vmem:[%s10614_s7 + $0xad8] sm:$0xff] %v900_v27  ;;  %v902_v28 = vld [vmem:[%s10606_s6 + $0x15c0] sm:$0xff]  ;;  %v904_v29 = vld [vmem:[%s10606_s6 + $0x15c8] sm:$0xff] }
  0xc0   : > { %v906_v30 = vld [vmem:[%s10606_s6 + $0x15e0] sm:$0xff]  ;;  %903 = vst [vmem:[%s10614_s7 + $0xae0] sm:$0xff] %v902_v28  ;;  %905 = vst [vmem:[%s10614_s7 + $0xae8] sm:$0xff] %v904_v29  ;;  %v908_v31 = vld [vmem:[%s10606_s6 + $0x15e8] sm:$0xff] }
  0xc1   : > { %907 = vst [vmem:[%s10614_s7 + $0xaf0] sm:$0xff] %v906_v30  ;;  %v910_v32 = vld [vmem:[%s10606_s6 + $0x1600] sm:$0xff]  ;;  %v912_v33 = vld [vmem:[%s10606_s6 + $0x1608] sm:$0xff]  ;;  %909 = vst [vmem:[%s10614_s7 + $0xaf8] sm:$0xff] %v908_v31 }
  0xc2   : > { %911 = vst [vmem:[%s10614_s7 + $0xb00] sm:$0xff] %v910_v32  ;;  %913 = vst [vmem:[%s10614_s7 + $0xb08] sm:$0xff] %v912_v33  ;;  %v914_v34 = vld [vmem:[%s10606_s6 + $0x1620] sm:$0xff]  ;;  %v916_v35 = vld [vmem:[%s10606_s6 + $0x1628] sm:$0xff] }
  0xc3   : > { %v918_v36 = vld [vmem:[%s10606_s6 + $0x1640] sm:$0xff]  ;;  %915 = vst [vmem:[%s10614_s7 + $0xb10] sm:$0xff] %v914_v34  ;;  %917 = vst [vmem:[%s10614_s7 + $0xb18] sm:$0xff] %v916_v35  ;;  %v920_v37 = vld [vmem:[%s10606_s6 + $0x1648] sm:$0xff] }
  0xc4   : > { %919 = vst [vmem:[%s10614_s7 + $0xb20] sm:$0xff] %v918_v36  ;;  %v922_v38 = vld [vmem:[%s10606_s6 + $0x1660] sm:$0xff]  ;;  %v924_v39 = vld [vmem:[%s10606_s6 + $0x1668] sm:$0xff]  ;;  %921 = vst [vmem:[%s10614_s7 + $0xb28] sm:$0xff] %v920_v37 }
  0xc5   : > { %923 = vst [vmem:[%s10614_s7 + $0xb30] sm:$0xff] %v922_v38  ;;  %925 = vst [vmem:[%s10614_s7 + $0xb38] sm:$0xff] %v924_v39  ;;  %v926_v40 = vld [vmem:[%s10606_s6 + $0x1680] sm:$0xff]  ;;  %v928_v41 = vld [vmem:[%s10606_s6 + $0x1688] sm:$0xff] }
  0xc6   : > { %v930_v42 = vld [vmem:[%s10606_s6 + $0x16a0] sm:$0xff]  ;;  %927 = vst [vmem:[%s10614_s7 + $0xb40] sm:$0xff] %v926_v40  ;;  %929 = vst [vmem:[%s10614_s7 + $0xb48] sm:$0xff] %v928_v41  ;;  %v932_v43 = vld [vmem:[%s10606_s6 + $0x16a8] sm:$0xff] }
  0xc7   : > { %931 = vst [vmem:[%s10614_s7 + $0xb50] sm:$0xff] %v930_v42  ;;  %v934_v44 = vld [vmem:[%s10606_s6 + $0x16c0] sm:$0xff]  ;;  %v936_v45 = vld [vmem:[%s10606_s6 + $0x16c8] sm:$0xff]  ;;  %933 = vst [vmem:[%s10614_s7 + $0xb58] sm:$0xff] %v932_v43 }
  0xc8   : > { %935 = vst [vmem:[%s10614_s7 + $0xb60] sm:$0xff] %v934_v44  ;;  %937 = vst [vmem:[%s10614_s7 + $0xb68] sm:$0xff] %v936_v45  ;;  %v938_v46 = vld [vmem:[%s10606_s6 + $0x16e0] sm:$0xff]  ;;  %v940_v47 = vld [vmem:[%s10606_s6 + $0x16e8] sm:$0xff] }
  0xc9   : > { %v942_v48 = vld [vmem:[%s10606_s6 + $0x1700] sm:$0xff]  ;;  %939 = vst [vmem:[%s10614_s7 + $0xb70] sm:$0xff] %v938_v46  ;;  %941 = vst [vmem:[%s10614_s7 + $0xb78] sm:$0xff] %v940_v47  ;;  %v944_v49 = vld [vmem:[%s10606_s6 + $0x1708] sm:$0xff] }
  0xca   : > { %943 = vst [vmem:[%s10614_s7 + $0xb80] sm:$0xff] %v942_v48  ;;  %v946_v50 = vld [vmem:[%s10606_s6 + $0x1720] sm:$0xff]  ;;  %v948_v51 = vld [vmem:[%s10606_s6 + $0x1728] sm:$0xff]  ;;  %945 = vst [vmem:[%s10614_s7 + $0xb88] sm:$0xff] %v944_v49 }
  0xcb   : > { %947 = vst [vmem:[%s10614_s7 + $0xb90] sm:$0xff] %v946_v50  ;;  %949 = vst [vmem:[%s10614_s7 + $0xb98] sm:$0xff] %v948_v51  ;;  %v950_v52 = vld [vmem:[%s10606_s6 + $0x1740] sm:$0xff]  ;;  %v952_v53 = vld [vmem:[%s10606_s6 + $0x1748] sm:$0xff] }
  0xcc   : > { %v954_v54 = vld [vmem:[%s10606_s6 + $0x1760] sm:$0xff]  ;;  %951 = vst [vmem:[%s10614_s7 + $0xba0] sm:$0xff] %v950_v52  ;;  %953 = vst [vmem:[%s10614_s7 + $0xba8] sm:$0xff] %v952_v53  ;;  %v956_v55 = vld [vmem:[%s10606_s6 + $0x1768] sm:$0xff] }
  0xcd   : > { %955 = vst [vmem:[%s10614_s7 + $0xbb0] sm:$0xff] %v954_v54  ;;  %v958_v56 = vld [vmem:[%s10606_s6 + $0x1780] sm:$0xff]  ;;  %v960_v57 = vld [vmem:[%s10606_s6 + $0x1788] sm:$0xff]  ;;  %957 = vst [vmem:[%s10614_s7 + $0xbb8] sm:$0xff] %v956_v55 }
  0xce   : > { %959 = vst [vmem:[%s10614_s7 + $0xbc0] sm:$0xff] %v958_v56  ;;  %961 = vst [vmem:[%s10614_s7 + $0xbc8] sm:$0xff] %v960_v57  ;;  %v962_v58 = vld [vmem:[%s10606_s6 + $0x17a0] sm:$0xff]  ;;  %v964_v59 = vld [vmem:[%s10606_s6 + $0x17a8] sm:$0xff] }
  0xcf   : > { %v966_v60 = vld [vmem:[%s10606_s6 + $0x17c0] sm:$0xff]  ;;  %963 = vst [vmem:[%s10614_s7 + $0xbd0] sm:$0xff] %v962_v58  ;;  %965 = vst [vmem:[%s10614_s7 + $0xbd8] sm:$0xff] %v964_v59  ;;  %v968_v61 = vld [vmem:[%s10606_s6 + $0x17c8] sm:$0xff] }
  0xd0   : > { %967 = vst [vmem:[%s10614_s7 + $0xbe0] sm:$0xff] %v966_v60  ;;  %v970_v62 = vld [vmem:[%s10606_s6 + $0x17e0] sm:$0xff]  ;;  %v972_v63 = vld [vmem:[%s10606_s6 + $0x17e8] sm:$0xff]  ;;  %969 = vst [vmem:[%s10614_s7 + $0xbe8] sm:$0xff] %v968_v61 }
  0xd1   : > { %971 = vst [vmem:[%s10614_s7 + $0xbf0] sm:$0xff] %v970_v62  ;;  %973 = vst [vmem:[%s10614_s7 + $0xbf8] sm:$0xff] %v972_v63  ;;  %v974_v0 = vld [vmem:[%s10606_s6 + $0x1800] sm:$0xff]  ;;  %v976_v1 = vld [vmem:[%s10606_s6 + $0x1808] sm:$0xff] }
  0xd2   : > { %v978_v2 = vld [vmem:[%s10606_s6 + $0x1820] sm:$0xff]  ;;  %975 = vst [vmem:[%s10614_s7 + $0xc00] sm:$0xff] %v974_v0  ;;  %977 = vst [vmem:[%s10614_s7 + $0xc08] sm:$0xff] %v976_v1  ;;  %v980_v3 = vld [vmem:[%s10606_s6 + $0x1828] sm:$0xff] }
  0xd3   : > { %979 = vst [vmem:[%s10614_s7 + $0xc10] sm:$0xff] %v978_v2  ;;  %v982_v4 = vld [vmem:[%s10606_s6 + $0x1840] sm:$0xff]  ;;  %v984_v5 = vld [vmem:[%s10606_s6 + $0x1848] sm:$0xff]  ;;  %981 = vst [vmem:[%s10614_s7 + $0xc18] sm:$0xff] %v980_v3 }
  0xd4   : > { %983 = vst [vmem:[%s10614_s7 + $0xc20] sm:$0xff] %v982_v4  ;;  %985 = vst [vmem:[%s10614_s7 + $0xc28] sm:$0xff] %v984_v5  ;;  %v986_v6 = vld [vmem:[%s10606_s6 + $0x1860] sm:$0xff]  ;;  %v988_v7 = vld [vmem:[%s10606_s6 + $0x1868] sm:$0xff] }
  0xd5   : > { %v990_v8 = vld [vmem:[%s10606_s6 + $0x1880] sm:$0xff]  ;;  %987 = vst [vmem:[%s10614_s7 + $0xc30] sm:$0xff] %v986_v6  ;;  %989 = vst [vmem:[%s10614_s7 + $0xc38] sm:$0xff] %v988_v7  ;;  %v992_v9 = vld [vmem:[%s10606_s6 + $0x1888] sm:$0xff] }
  0xd6   : > { %991 = vst [vmem:[%s10614_s7 + $0xc40] sm:$0xff] %v990_v8  ;;  %v994_v10 = vld [vmem:[%s10606_s6 + $0x18a0] sm:$0xff]  ;;  %v996_v11 = vld [vmem:[%s10606_s6 + $0x18a8] sm:$0xff]  ;;  %993 = vst [vmem:[%s10614_s7 + $0xc48] sm:$0xff] %v992_v9 }
  0xd7   : > { %995 = vst [vmem:[%s10614_s7 + $0xc50] sm:$0xff] %v994_v10  ;;  %997 = vst [vmem:[%s10614_s7 + $0xc58] sm:$0xff] %v996_v11  ;;  %v998_v12 = vld [vmem:[%s10606_s6 + $0x18c0] sm:$0xff]  ;;  %v1000_v13 = vld [vmem:[%s10606_s6 + $0x18c8] sm:$0xff] }
  0xd8   : > { %v1002_v14 = vld [vmem:[%s10606_s6 + $0x18e0] sm:$0xff]  ;;  %999 = vst [vmem:[%s10614_s7 + $0xc60] sm:$0xff] %v998_v12  ;;  %1001 = vst [vmem:[%s10614_s7 + $0xc68] sm:$0xff] %v1000_v13  ;;  %v1004_v15 = vld [vmem:[%s10606_s6 + $0x18e8] sm:$0xff] }
  0xd9   : > { %1003 = vst [vmem:[%s10614_s7 + $0xc70] sm:$0xff] %v1002_v14  ;;  %v1006_v16 = vld [vmem:[%s10606_s6 + $0x1900] sm:$0xff]  ;;  %v1008_v17 = vld [vmem:[%s10606_s6 + $0x1908] sm:$0xff]  ;;  %1005 = vst [vmem:[%s10614_s7 + $0xc78] sm:$0xff] %v1004_v15 }
  0xda   : > { %1007 = vst [vmem:[%s10614_s7 + $0xc80] sm:$0xff] %v1006_v16  ;;  %1009 = vst [vmem:[%s10614_s7 + $0xc88] sm:$0xff] %v1008_v17  ;;  %v1010_v18 = vld [vmem:[%s10606_s6 + $0x1920] sm:$0xff]  ;;  %v1012_v19 = vld [vmem:[%s10606_s6 + $0x1928] sm:$0xff] }
  0xdb   : > { %v1014_v20 = vld [vmem:[%s10606_s6 + $0x1940] sm:$0xff]  ;;  %1011 = vst [vmem:[%s10614_s7 + $0xc90] sm:$0xff] %v1010_v18  ;;  %1013 = vst [vmem:[%s10614_s7 + $0xc98] sm:$0xff] %v1012_v19  ;;  %v1016_v21 = vld [vmem:[%s10606_s6 + $0x1948] sm:$0xff] }
  0xdc   : > { %1015 = vst [vmem:[%s10614_s7 + $0xca0] sm:$0xff] %v1014_v20  ;;  %v1018_v22 = vld [vmem:[%s10606_s6 + $0x1960] sm:$0xff]  ;;  %v1020_v23 = vld [vmem:[%s10606_s6 + $0x1968] sm:$0xff]  ;;  %1017 = vst [vmem:[%s10614_s7 + $0xca8] sm:$0xff] %v1016_v21 }
  0xdd   : > { %1019 = vst [vmem:[%s10614_s7 + $0xcb0] sm:$0xff] %v1018_v22  ;;  %1021 = vst [vmem:[%s10614_s7 + $0xcb8] sm:$0xff] %v1020_v23  ;;  %v1022_v24 = vld [vmem:[%s10606_s6 + $0x1980] sm:$0xff]  ;;  %v1024_v25 = vld [vmem:[%s10606_s6 + $0x1988] sm:$0xff] }
  0xde   : > { %v1026_v26 = vld [vmem:[%s10606_s6 + $0x19a0] sm:$0xff]  ;;  %1023 = vst [vmem:[%s10614_s7 + $0xcc0] sm:$0xff] %v1022_v24  ;;  %1025 = vst [vmem:[%s10614_s7 + $0xcc8] sm:$0xff] %v1024_v25  ;;  %v1028_v27 = vld [vmem:[%s10606_s6 + $0x19a8] sm:$0xff] }
  0xdf   : > { %1027 = vst [vmem:[%s10614_s7 + $0xcd0] sm:$0xff] %v1026_v26  ;;  %v1030_v28 = vld [vmem:[%s10606_s6 + $0x19c0] sm:$0xff]  ;;  %v1032_v29 = vld [vmem:[%s10606_s6 + $0x19c8] sm:$0xff]  ;;  %1029 = vst [vmem:[%s10614_s7 + $0xcd8] sm:$0xff] %v1028_v27 }
  0xe0   : > { %1031 = vst [vmem:[%s10614_s7 + $0xce0] sm:$0xff] %v1030_v28  ;;  %1033 = vst [vmem:[%s10614_s7 + $0xce8] sm:$0xff] %v1032_v29  ;;  %v1034_v30 = vld [vmem:[%s10606_s6 + $0x19e0] sm:$0xff]  ;;  %v1036_v31 = vld [vmem:[%s10606_s6 + $0x19e8] sm:$0xff] }
  0xe1   : > { %v1038_v32 = vld [vmem:[%s10606_s6 + $0x1a00] sm:$0xff]  ;;  %1035 = vst [vmem:[%s10614_s7 + $0xcf0] sm:$0xff] %v1034_v30  ;;  %1037 = vst [vmem:[%s10614_s7 + $0xcf8] sm:$0xff] %v1036_v31  ;;  %v1040_v33 = vld [vmem:[%s10606_s6 + $0x1a08] sm:$0xff] }
  0xe2   : > { %1039 = vst [vmem:[%s10614_s7 + $0xd00] sm:$0xff] %v1038_v32  ;;  %v1042_v34 = vld [vmem:[%s10606_s6 + $0x1a20] sm:$0xff]  ;;  %v1044_v35 = vld [vmem:[%s10606_s6 + $0x1a28] sm:$0xff]  ;;  %1041 = vst [vmem:[%s10614_s7 + $0xd08] sm:$0xff] %v1040_v33 }
  0xe3   : > { %1043 = vst [vmem:[%s10614_s7 + $0xd10] sm:$0xff] %v1042_v34  ;;  %1045 = vst [vmem:[%s10614_s7 + $0xd18] sm:$0xff] %v1044_v35  ;;  %v1046_v36 = vld [vmem:[%s10606_s6 + $0x1a40] sm:$0xff]  ;;  %v1048_v37 = vld [vmem:[%s10606_s6 + $0x1a48] sm:$0xff] }
  0xe4   : > { %v1050_v38 = vld [vmem:[%s10606_s6 + $0x1a60] sm:$0xff]  ;;  %1047 = vst [vmem:[%s10614_s7 + $0xd20] sm:$0xff] %v1046_v36  ;;  %1049 = vst [vmem:[%s10614_s7 + $0xd28] sm:$0xff] %v1048_v37  ;;  %v1052_v39 = vld [vmem:[%s10606_s6 + $0x1a68] sm:$0xff] }
  0xe5   : > { %1051 = vst [vmem:[%s10614_s7 + $0xd30] sm:$0xff] %v1050_v38  ;;  %v1054_v40 = vld [vmem:[%s10606_s6 + $0x1a80] sm:$0xff]  ;;  %v1056_v41 = vld [vmem:[%s10606_s6 + $0x1a88] sm:$0xff]  ;;  %1053 = vst [vmem:[%s10614_s7 + $0xd38] sm:$0xff] %v1052_v39 }
  0xe6   : > { %1055 = vst [vmem:[%s10614_s7 + $0xd40] sm:$0xff] %v1054_v40  ;;  %1057 = vst [vmem:[%s10614_s7 + $0xd48] sm:$0xff] %v1056_v41  ;;  %v1058_v42 = vld [vmem:[%s10606_s6 + $0x1aa0] sm:$0xff]  ;;  %v1060_v43 = vld [vmem:[%s10606_s6 + $0x1aa8] sm:$0xff] }
  0xe7   : > { %v1062_v44 = vld [vmem:[%s10606_s6 + $0x1ac0] sm:$0xff]  ;;  %1059 = vst [vmem:[%s10614_s7 + $0xd50] sm:$0xff] %v1058_v42  ;;  %1061 = vst [vmem:[%s10614_s7 + $0xd58] sm:$0xff] %v1060_v43  ;;  %v1064_v45 = vld [vmem:[%s10606_s6 + $0x1ac8] sm:$0xff] }
  0xe8   : > { %1063 = vst [vmem:[%s10614_s7 + $0xd60] sm:$0xff] %v1062_v44  ;;  %v1066_v46 = vld [vmem:[%s10606_s6 + $0x1ae0] sm:$0xff]  ;;  %v1068_v47 = vld [vmem:[%s10606_s6 + $0x1ae8] sm:$0xff]  ;;  %1065 = vst [vmem:[%s10614_s7 + $0xd68] sm:$0xff] %v1064_v45 }
  0xe9   : > { %1067 = vst [vmem:[%s10614_s7 + $0xd70] sm:$0xff] %v1066_v46  ;;  %1069 = vst [vmem:[%s10614_s7 + $0xd78] sm:$0xff] %v1068_v47  ;;  %v1070_v48 = vld [vmem:[%s10606_s6 + $0x1b00] sm:$0xff]  ;;  %v1072_v49 = vld [vmem:[%s10606_s6 + $0x1b08] sm:$0xff] }
  0xea   : > { %v1074_v50 = vld [vmem:[%s10606_s6 + $0x1b20] sm:$0xff]  ;;  %1071 = vst [vmem:[%s10614_s7 + $0xd80] sm:$0xff] %v1070_v48  ;;  %1073 = vst [vmem:[%s10614_s7 + $0xd88] sm:$0xff] %v1072_v49  ;;  %v1076_v51 = vld [vmem:[%s10606_s6 + $0x1b28] sm:$0xff] }
  0xeb   : > { %1075 = vst [vmem:[%s10614_s7 + $0xd90] sm:$0xff] %v1074_v50  ;;  %v1078_v52 = vld [vmem:[%s10606_s6 + $0x1b40] sm:$0xff]  ;;  %v1080_v53 = vld [vmem:[%s10606_s6 + $0x1b48] sm:$0xff]  ;;  %1077 = vst [vmem:[%s10614_s7 + $0xd98] sm:$0xff] %v1076_v51 }
  0xec   : > { %1079 = vst [vmem:[%s10614_s7 + $0xda0] sm:$0xff] %v1078_v52  ;;  %1081 = vst [vmem:[%s10614_s7 + $0xda8] sm:$0xff] %v1080_v53  ;;  %v1082_v54 = vld [vmem:[%s10606_s6 + $0x1b60] sm:$0xff]  ;;  %v1084_v55 = vld [vmem:[%s10606_s6 + $0x1b68] sm:$0xff] }
  0xed   : > { %v1086_v56 = vld [vmem:[%s10606_s6 + $0x1b80] sm:$0xff]  ;;  %1083 = vst [vmem:[%s10614_s7 + $0xdb0] sm:$0xff] %v1082_v54  ;;  %1085 = vst [vmem:[%s10614_s7 + $0xdb8] sm:$0xff] %v1084_v55  ;;  %v1088_v57 = vld [vmem:[%s10606_s6 + $0x1b88] sm:$0xff] }
  0xee   : > { %1087 = vst [vmem:[%s10614_s7 + $0xdc0] sm:$0xff] %v1086_v56  ;;  %v1090_v58 = vld [vmem:[%s10606_s6 + $0x1ba0] sm:$0xff]  ;;  %v1092_v59 = vld [vmem:[%s10606_s6 + $0x1ba8] sm:$0xff]  ;;  %1089 = vst [vmem:[%s10614_s7 + $0xdc8] sm:$0xff] %v1088_v57 }
  0xef   : > { %1091 = vst [vmem:[%s10614_s7 + $0xdd0] sm:$0xff] %v1090_v58  ;;  %1093 = vst [vmem:[%s10614_s7 + $0xdd8] sm:$0xff] %v1092_v59  ;;  %v1094_v60 = vld [vmem:[%s10606_s6 + $0x1bc0] sm:$0xff]  ;;  %v1096_v61 = vld [vmem:[%s10606_s6 + $0x1bc8] sm:$0xff] }
  0xf0   : > { %v1098_v62 = vld [vmem:[%s10606_s6 + $0x1be0] sm:$0xff]  ;;  %1095 = vst [vmem:[%s10614_s7 + $0xde0] sm:$0xff] %v1094_v60  ;;  %1097 = vst [vmem:[%s10614_s7 + $0xde8] sm:$0xff] %v1096_v61  ;;  %v1100_v63 = vld [vmem:[%s10606_s6 + $0x1be8] sm:$0xff] }
  0xf1   : > { %1099 = vst [vmem:[%s10614_s7 + $0xdf0] sm:$0xff] %v1098_v62  ;;  %v1102_v0 = vld [vmem:[%s10606_s6 + $0x1c00] sm:$0xff]  ;;  %v1104_v1 = vld [vmem:[%s10606_s6 + $0x1c08] sm:$0xff]  ;;  %1101 = vst [vmem:[%s10614_s7 + $0xdf8] sm:$0xff] %v1100_v63 }
  0xf2   : > { %1103 = vst [vmem:[%s10614_s7 + $0xe00] sm:$0xff] %v1102_v0  ;;  %1105 = vst [vmem:[%s10614_s7 + $0xe08] sm:$0xff] %v1104_v1  ;;  %v1106_v2 = vld [vmem:[%s10606_s6 + $0x1c20] sm:$0xff]  ;;  %v1108_v3 = vld [vmem:[%s10606_s6 + $0x1c28] sm:$0xff] }
  0xf3   : > { %v1110_v4 = vld [vmem:[%s10606_s6 + $0x1c40] sm:$0xff]  ;;  %1107 = vst [vmem:[%s10614_s7 + $0xe10] sm:$0xff] %v1106_v2  ;;  %1109 = vst [vmem:[%s10614_s7 + $0xe18] sm:$0xff] %v1108_v3  ;;  %v1112_v5 = vld [vmem:[%s10606_s6 + $0x1c48] sm:$0xff] }
  0xf4   : > { %1111 = vst [vmem:[%s10614_s7 + $0xe20] sm:$0xff] %v1110_v4  ;;  %v1114_v6 = vld [vmem:[%s10606_s6 + $0x1c60] sm:$0xff]  ;;  %v1116_v7 = vld [vmem:[%s10606_s6 + $0x1c68] sm:$0xff]  ;;  %1113 = vst [vmem:[%s10614_s7 + $0xe28] sm:$0xff] %v1112_v5 }
  0xf5   : > { %1115 = vst [vmem:[%s10614_s7 + $0xe30] sm:$0xff] %v1114_v6  ;;  %1117 = vst [vmem:[%s10614_s7 + $0xe38] sm:$0xff] %v1116_v7  ;;  %v1118_v8 = vld [vmem:[%s10606_s6 + $0x1c80] sm:$0xff]  ;;  %v1120_v9 = vld [vmem:[%s10606_s6 + $0x1c88] sm:$0xff] }
  0xf6   : > { %v1122_v10 = vld [vmem:[%s10606_s6 + $0x1ca0] sm:$0xff]  ;;  %1119 = vst [vmem:[%s10614_s7 + $0xe40] sm:$0xff] %v1118_v8  ;;  %1121 = vst [vmem:[%s10614_s7 + $0xe48] sm:$0xff] %v1120_v9  ;;  %v1124_v11 = vld [vmem:[%s10606_s6 + $0x1ca8] sm:$0xff] }
  0xf7   : > { %1123 = vst [vmem:[%s10614_s7 + $0xe50] sm:$0xff] %v1122_v10  ;;  %v1126_v12 = vld [vmem:[%s10606_s6 + $0x1cc0] sm:$0xff]  ;;  %v1128_v13 = vld [vmem:[%s10606_s6 + $0x1cc8] sm:$0xff]  ;;  %1125 = vst [vmem:[%s10614_s7 + $0xe58] sm:$0xff] %v1124_v11 }
  0xf8   : > { %1127 = vst [vmem:[%s10614_s7 + $0xe60] sm:$0xff] %v1126_v12  ;;  %1129 = vst [vmem:[%s10614_s7 + $0xe68] sm:$0xff] %v1128_v13  ;;  %v1130_v14 = vld [vmem:[%s10606_s6 + $0x1ce0] sm:$0xff]  ;;  %v1132_v15 = vld [vmem:[%s10606_s6 + $0x1ce8] sm:$0xff] }
  0xf9   : > { %v1134_v16 = vld [vmem:[%s10606_s6 + $0x1d00] sm:$0xff]  ;;  %1131 = vst [vmem:[%s10614_s7 + $0xe70] sm:$0xff] %v1130_v14  ;;  %1133 = vst [vmem:[%s10614_s7 + $0xe78] sm:$0xff] %v1132_v15  ;;  %v1136_v17 = vld [vmem:[%s10606_s6 + $0x1d08] sm:$0xff] }
  0xfa   : > { %1135 = vst [vmem:[%s10614_s7 + $0xe80] sm:$0xff] %v1134_v16  ;;  %v1138_v18 = vld [vmem:[%s10606_s6 + $0x1d20] sm:$0xff]  ;;  %v1140_v19 = vld [vmem:[%s10606_s6 + $0x1d28] sm:$0xff]  ;;  %1137 = vst [vmem:[%s10614_s7 + $0xe88] sm:$0xff] %v1136_v17 }
  0xfb   : > { %1139 = vst [vmem:[%s10614_s7 + $0xe90] sm:$0xff] %v1138_v18  ;;  %1141 = vst [vmem:[%s10614_s7 + $0xe98] sm:$0xff] %v1140_v19  ;;  %v1142_v20 = vld [vmem:[%s10606_s6 + $0x1d40] sm:$0xff]  ;;  %v1144_v21 = vld [vmem:[%s10606_s6 + $0x1d48] sm:$0xff] }
  0xfc   : > { %v1146_v22 = vld [vmem:[%s10606_s6 + $0x1d60] sm:$0xff]  ;;  %1143 = vst [vmem:[%s10614_s7 + $0xea0] sm:$0xff] %v1142_v20  ;;  %1145 = vst [vmem:[%s10614_s7 + $0xea8] sm:$0xff] %v1144_v21  ;;  %v1148_v23 = vld [vmem:[%s10606_s6 + $0x1d68] sm:$0xff] }
  0xfd   : > { %1147 = vst [vmem:[%s10614_s7 + $0xeb0] sm:$0xff] %v1146_v22  ;;  %v1150_v24 = vld [vmem:[%s10606_s6 + $0x1d80] sm:$0xff]  ;;  %v1152_v25 = vld [vmem:[%s10606_s6 + $0x1d88] sm:$0xff]  ;;  %1149 = vst [vmem:[%s10614_s7 + $0xeb8] sm:$0xff] %v1148_v23 }
  0xfe   : > { %1151 = vst [vmem:[%s10614_s7 + $0xec0] sm:$0xff] %v1150_v24  ;;  %1153 = vst [vmem:[%s10614_s7 + $0xec8] sm:$0xff] %v1152_v25  ;;  %v1154_v26 = vld [vmem:[%s10606_s6 + $0x1da0] sm:$0xff]  ;;  %v1156_v27 = vld [vmem:[%s10606_s6 + $0x1da8] sm:$0xff] }
  0xff   : > { %v1158_v28 = vld [vmem:[%s10606_s6 + $0x1dc0] sm:$0xff]  ;;  %1155 = vst [vmem:[%s10614_s7 + $0xed0] sm:$0xff] %v1154_v26  ;;  %1157 = vst [vmem:[%s10614_s7 + $0xed8] sm:$0xff] %v1156_v27  ;;  %v1160_v29 = vld [vmem:[%s10606_s6 + $0x1dc8] sm:$0xff] }
 0x100   : > { %1159 = vst [vmem:[%s10614_s7 + $0xee0] sm:$0xff] %v1158_v28  ;;  %v1162_v30 = vld [vmem:[%s10606_s6 + $0x1de0] sm:$0xff]  ;;  %v1164_v31 = vld [vmem:[%s10606_s6 + $0x1de8] sm:$0xff]  ;;  %1161 = vst [vmem:[%s10614_s7 + $0xee8] sm:$0xff] %v1160_v29 }
 0x101   : > { %1163 = vst [vmem:[%s10614_s7 + $0xef0] sm:$0xff] %v1162_v30  ;;  %1165 = vst [vmem:[%s10614_s7 + $0xef8] sm:$0xff] %v1164_v31  ;;  %v1166_v32 = vld [vmem:[%s10606_s6 + $0x1e00] sm:$0xff]  ;;  %v1168_v33 = vld [vmem:[%s10606_s6 + $0x1e08] sm:$0xff] }
 0x102   : > { %v1170_v34 = vld [vmem:[%s10606_s6 + $0x1e20] sm:$0xff]  ;;  %1167 = vst [vmem:[%s10614_s7 + $0xf00] sm:$0xff] %v1166_v32  ;;  %1169 = vst [vmem:[%s10614_s7 + $0xf08] sm:$0xff] %v1168_v33  ;;  %v1172_v35 = vld [vmem:[%s10606_s6 + $0x1e28] sm:$0xff] }
 0x103   : > { %1171 = vst [vmem:[%s10614_s7 + $0xf10] sm:$0xff] %v1170_v34  ;;  %v1174_v36 = vld [vmem:[%s10606_s6 + $0x1e40] sm:$0xff]  ;;  %v1176_v37 = vld [vmem:[%s10606_s6 + $0x1e48] sm:$0xff]  ;;  %1173 = vst [vmem:[%s10614_s7 + $0xf18] sm:$0xff] %v1172_v35 }
 0x104   : > { %1175 = vst [vmem:[%s10614_s7 + $0xf20] sm:$0xff] %v1174_v36  ;;  %1177 = vst [vmem:[%s10614_s7 + $0xf28] sm:$0xff] %v1176_v37  ;;  %v1178_v38 = vld [vmem:[%s10606_s6 + $0x1e60] sm:$0xff]  ;;  %v1180_v39 = vld [vmem:[%s10606_s6 + $0x1e68] sm:$0xff] }
 0x105   : > { %v1182_v40 = vld [vmem:[%s10606_s6 + $0x1e80] sm:$0xff]  ;;  %1179 = vst [vmem:[%s10614_s7 + $0xf30] sm:$0xff] %v1178_v38  ;;  %1181 = vst [vmem:[%s10614_s7 + $0xf38] sm:$0xff] %v1180_v39  ;;  %v1184_v41 = vld [vmem:[%s10606_s6 + $0x1e88] sm:$0xff] }
 0x106   : > { %1183 = vst [vmem:[%s10614_s7 + $0xf40] sm:$0xff] %v1182_v40  ;;  %v1186_v42 = vld [vmem:[%s10606_s6 + $0x1ea0] sm:$0xff]  ;;  %v1188_v43 = vld [vmem:[%s10606_s6 + $0x1ea8] sm:$0xff]  ;;  %1185 = vst [vmem:[%s10614_s7 + $0xf48] sm:$0xff] %v1184_v41 }
 0x107   : > { %1187 = vst [vmem:[%s10614_s7 + $0xf50] sm:$0xff] %v1186_v42  ;;  %1189 = vst [vmem:[%s10614_s7 + $0xf58] sm:$0xff] %v1188_v43  ;;  %v1190_v44 = vld [vmem:[%s10606_s6 + $0x1ec0] sm:$0xff]  ;;  %v1192_v45 = vld [vmem:[%s10606_s6 + $0x1ec8] sm:$0xff] }
 0x108   : > { %v1194_v46 = vld [vmem:[%s10606_s6 + $0x1ee0] sm:$0xff]  ;;  %1191 = vst [vmem:[%s10614_s7 + $0xf60] sm:$0xff] %v1190_v44  ;;  %1193 = vst [vmem:[%s10614_s7 + $0xf68] sm:$0xff] %v1192_v45  ;;  %v1196_v47 = vld [vmem:[%s10606_s6 + $0x1ee8] sm:$0xff] }
 0x109   : > { %1195 = vst [vmem:[%s10614_s7 + $0xf70] sm:$0xff] %v1194_v46  ;;  %v1198_v48 = vld [vmem:[%s10606_s6 + $0x1f00] sm:$0xff]  ;;  %v1200_v49 = vld [vmem:[%s10606_s6 + $0x1f08] sm:$0xff]  ;;  %1197 = vst [vmem:[%s10614_s7 + $0xf78] sm:$0xff] %v1196_v47 }
 0x10a   : > { %1199 = vst [vmem:[%s10614_s7 + $0xf80] sm:$0xff] %v1198_v48  ;;  %1201 = vst [vmem:[%s10614_s7 + $0xf88] sm:$0xff] %v1200_v49  ;;  %v1202_v50 = vld [vmem:[%s10606_s6 + $0x1f20] sm:$0xff]  ;;  %v1204_v51 = vld [vmem:[%s10606_s6 + $0x1f28] sm:$0xff] }
 0x10b   : > { %v1206_v52 = vld [vmem:[%s10606_s6 + $0x1f40] sm:$0xff]  ;;  %1203 = vst [vmem:[%s10614_s7 + $0xf90] sm:$0xff] %v1202_v50  ;;  %1205 = vst [vmem:[%s10614_s7 + $0xf98] sm:$0xff] %v1204_v51  ;;  %v1208_v53 = vld [vmem:[%s10606_s6 + $0x1f48] sm:$0xff] }
 0x10c   : > { %1207 = vst [vmem:[%s10614_s7 + $0xfa0] sm:$0xff] %v1206_v52  ;;  %v1210_v54 = vld [vmem:[%s10606_s6 + $0x1f60] sm:$0xff]  ;;  %v1212_v55 = vld [vmem:[%s10606_s6 + $0x1f68] sm:$0xff]  ;;  %1209 = vst [vmem:[%s10614_s7 + $0xfa8] sm:$0xff] %v1208_v53 }
 0x10d   : > { %1211 = vst [vmem:[%s10614_s7 + $0xfb0] sm:$0xff] %v1210_v54  ;;  %1213 = vst [vmem:[%s10614_s7 + $0xfb8] sm:$0xff] %v1212_v55  ;;  %v1214_v56 = vld [vmem:[%s10606_s6 + $0x1f80] sm:$0xff]  ;;  %v1216_v57 = vld [vmem:[%s10606_s6 + $0x1f88] sm:$0xff] }
 0x10e   : > { %v1218_v58 = vld [vmem:[%s10606_s6 + $0x1fa0] sm:$0xff]  ;;  %1215 = vst [vmem:[%s10614_s7 + $0xfc0] sm:$0xff] %v1214_v56  ;;  %1217 = vst [vmem:[%s10614_s7 + $0xfc8] sm:$0xff] %v1216_v57  ;;  %v1220_v59 = vld [vmem:[%s10606_s6 + $0x1fa8] sm:$0xff] }
 0x10f   : > { %1219 = vst [vmem:[%s10614_s7 + $0xfd0] sm:$0xff] %v1218_v58  ;;  %v1222_v60 = vld [vmem:[%s10606_s6 + $0x1fc0] sm:$0xff]  ;;  %v1224_v61 = vld [vmem:[%s10606_s6 + $0x1fc8] sm:$0xff]  ;;  %1221 = vst [vmem:[%s10614_s7 + $0xfd8] sm:$0xff] %v1220_v59 }
 0x110   : > { %1223 = vst [vmem:[%s10614_s7 + $0xfe0] sm:$0xff] %v1222_v60  ;;  %1225 = vst [vmem:[%s10614_s7 + $0xfe8] sm:$0xff] %v1224_v61  ;;  %v1226_v62 = vld [vmem:[%s10606_s6 + $0x1fe0] sm:$0xff]  ;;  %v1228_v63 = vld [vmem:[%s10606_s6 + $0x1fe8] sm:$0xff] }
 0x111   : > { %v1230_v0 = vld [vmem:[%s10606_s6 + $0x2000] sm:$0xff]  ;;  %1227 = vst [vmem:[%s10614_s7 + $0xff0] sm:$0xff] %v1226_v62  ;;  %1229 = vst [vmem:[%s10614_s7 + $0xff8] sm:$0xff] %v1228_v63  ;;  %v1232_v1 = vld [vmem:[%s10606_s6 + $0x2008] sm:$0xff] }
 0x112   : > { %1231 = vst [vmem:[%s10614_s7 + $0x1000] sm:$0xff] %v1230_v0  ;;  %v1234_v2 = vld [vmem:[%s10606_s6 + $0x2020] sm:$0xff]  ;;  %v1236_v3 = vld [vmem:[%s10606_s6 + $0x2028] sm:$0xff]  ;;  %1233 = vst [vmem:[%s10614_s7 + $0x1008] sm:$0xff] %v1232_v1 }
 0x113   : > { %1235 = vst [vmem:[%s10614_s7 + $0x1010] sm:$0xff] %v1234_v2  ;;  %1237 = vst [vmem:[%s10614_s7 + $0x1018] sm:$0xff] %v1236_v3  ;;  %v1238_v4 = vld [vmem:[%s10606_s6 + $0x2040] sm:$0xff]  ;;  %v1240_v5 = vld [vmem:[%s10606_s6 + $0x2048] sm:$0xff] }
 0x114   : > { %v1242_v6 = vld [vmem:[%s10606_s6 + $0x2060] sm:$0xff]  ;;  %1239 = vst [vmem:[%s10614_s7 + $0x1020] sm:$0xff] %v1238_v4  ;;  %1241 = vst [vmem:[%s10614_s7 + $0x1028] sm:$0xff] %v1240_v5  ;;  %v1244_v7 = vld [vmem:[%s10606_s6 + $0x2068] sm:$0xff] }
 0x115   : > { %1243 = vst [vmem:[%s10614_s7 + $0x1030] sm:$0xff] %v1242_v6  ;;  %v1246_v8 = vld [vmem:[%s10606_s6 + $0x2080] sm:$0xff]  ;;  %v1248_v9 = vld [vmem:[%s10606_s6 + $0x2088] sm:$0xff]  ;;  %1245 = vst [vmem:[%s10614_s7 + $0x1038] sm:$0xff] %v1244_v7 }
 0x116   : > { %1247 = vst [vmem:[%s10614_s7 + $0x1040] sm:$0xff] %v1246_v8  ;;  %1249 = vst [vmem:[%s10614_s7 + $0x1048] sm:$0xff] %v1248_v9  ;;  %v1250_v10 = vld [vmem:[%s10606_s6 + $0x20a0] sm:$0xff]  ;;  %v1252_v11 = vld [vmem:[%s10606_s6 + $0x20a8] sm:$0xff] }
 0x117   : > { %v1254_v12 = vld [vmem:[%s10606_s6 + $0x20c0] sm:$0xff]  ;;  %1251 = vst [vmem:[%s10614_s7 + $0x1050] sm:$0xff] %v1250_v10  ;;  %1253 = vst [vmem:[%s10614_s7 + $0x1058] sm:$0xff] %v1252_v11  ;;  %v1256_v13 = vld [vmem:[%s10606_s6 + $0x20c8] sm:$0xff] }
 0x118   : > { %1255 = vst [vmem:[%s10614_s7 + $0x1060] sm:$0xff] %v1254_v12  ;;  %v1258_v14 = vld [vmem:[%s10606_s6 + $0x20e0] sm:$0xff]  ;;  %v1260_v15 = vld [vmem:[%s10606_s6 + $0x20e8] sm:$0xff]  ;;  %1257 = vst [vmem:[%s10614_s7 + $0x1068] sm:$0xff] %v1256_v13 }
 0x119   : > { %1259 = vst [vmem:[%s10614_s7 + $0x1070] sm:$0xff] %v1258_v14  ;;  %1261 = vst [vmem:[%s10614_s7 + $0x1078] sm:$0xff] %v1260_v15  ;;  %v1262_v16 = vld [vmem:[%s10606_s6 + $0x2100] sm:$0xff]  ;;  %v1264_v17 = vld [vmem:[%s10606_s6 + $0x2108] sm:$0xff] }
 0x11a   : > { %v1266_v18 = vld [vmem:[%s10606_s6 + $0x2120] sm:$0xff]  ;;  %1263 = vst [vmem:[%s10614_s7 + $0x1080] sm:$0xff] %v1262_v16  ;;  %1265 = vst [vmem:[%s10614_s7 + $0x1088] sm:$0xff] %v1264_v17  ;;  %v1268_v19 = vld [vmem:[%s10606_s6 + $0x2128] sm:$0xff] }
 0x11b   : > { %1267 = vst [vmem:[%s10614_s7 + $0x1090] sm:$0xff] %v1266_v18  ;;  %v1270_v20 = vld [vmem:[%s10606_s6 + $0x2140] sm:$0xff]  ;;  %v1272_v21 = vld [vmem:[%s10606_s6 + $0x2148] sm:$0xff]  ;;  %1269 = vst [vmem:[%s10614_s7 + $0x1098] sm:$0xff] %v1268_v19 }
 0x11c   : > { %1271 = vst [vmem:[%s10614_s7 + $0x10a0] sm:$0xff] %v1270_v20  ;;  %1273 = vst [vmem:[%s10614_s7 + $0x10a8] sm:$0xff] %v1272_v21  ;;  %v1274_v22 = vld [vmem:[%s10606_s6 + $0x2160] sm:$0xff]  ;;  %v1276_v23 = vld [vmem:[%s10606_s6 + $0x2168] sm:$0xff] }
 0x11d   : > { %v1278_v24 = vld [vmem:[%s10606_s6 + $0x2180] sm:$0xff]  ;;  %1275 = vst [vmem:[%s10614_s7 + $0x10b0] sm:$0xff] %v1274_v22  ;;  %1277 = vst [vmem:[%s10614_s7 + $0x10b8] sm:$0xff] %v1276_v23  ;;  %v1280_v25 = vld [vmem:[%s10606_s6 + $0x2188] sm:$0xff] }
 0x11e   : > { %1279 = vst [vmem:[%s10614_s7 + $0x10c0] sm:$0xff] %v1278_v24  ;;  %v1282_v26 = vld [vmem:[%s10606_s6 + $0x21a0] sm:$0xff]  ;;  %v1284_v27 = vld [vmem:[%s10606_s6 + $0x21a8] sm:$0xff]  ;;  %1281 = vst [vmem:[%s10614_s7 + $0x10c8] sm:$0xff] %v1280_v25 }
 0x11f   : > { %1283 = vst [vmem:[%s10614_s7 + $0x10d0] sm:$0xff] %v1282_v26  ;;  %1285 = vst [vmem:[%s10614_s7 + $0x10d8] sm:$0xff] %v1284_v27  ;;  %v1286_v28 = vld [vmem:[%s10606_s6 + $0x21c0] sm:$0xff]  ;;  %v1288_v29 = vld [vmem:[%s10606_s6 + $0x21c8] sm:$0xff] }
 0x120   : > { %v1290_v30 = vld [vmem:[%s10606_s6 + $0x21e0] sm:$0xff]  ;;  %1287 = vst [vmem:[%s10614_s7 + $0x10e0] sm:$0xff] %v1286_v28  ;;  %1289 = vst [vmem:[%s10614_s7 + $0x10e8] sm:$0xff] %v1288_v29  ;;  %v1292_v31 = vld [vmem:[%s10606_s6 + $0x21e8] sm:$0xff] }
 0x121   : > { %1291 = vst [vmem:[%s10614_s7 + $0x10f0] sm:$0xff] %v1290_v30  ;;  %v1294_v32 = vld [vmem:[%s10606_s6 + $0x2200] sm:$0xff]  ;;  %v1296_v33 = vld [vmem:[%s10606_s6 + $0x2208] sm:$0xff]  ;;  %1293 = vst [vmem:[%s10614_s7 + $0x10f8] sm:$0xff] %v1292_v31 }
 0x122   : > { %1295 = vst [vmem:[%s10614_s7 + $0x1100] sm:$0xff] %v1294_v32  ;;  %1297 = vst [vmem:[%s10614_s7 + $0x1108] sm:$0xff] %v1296_v33  ;;  %v1298_v34 = vld [vmem:[%s10606_s6 + $0x2220] sm:$0xff]  ;;  %v1300_v35 = vld [vmem:[%s10606_s6 + $0x2228] sm:$0xff] }
 0x123   : > { %v1302_v36 = vld [vmem:[%s10606_s6 + $0x2240] sm:$0xff]  ;;  %1299 = vst [vmem:[%s10614_s7 + $0x1110] sm:$0xff] %v1298_v34  ;;  %1301 = vst [vmem:[%s10614_s7 + $0x1118] sm:$0xff] %v1300_v35  ;;  %v1304_v37 = vld [vmem:[%s10606_s6 + $0x2248] sm:$0xff] }
 0x124   : > { %1303 = vst [vmem:[%s10614_s7 + $0x1120] sm:$0xff] %v1302_v36  ;;  %v1306_v38 = vld [vmem:[%s10606_s6 + $0x2260] sm:$0xff]  ;;  %v1308_v39 = vld [vmem:[%s10606_s6 + $0x2268] sm:$0xff]  ;;  %1305 = vst [vmem:[%s10614_s7 + $0x1128] sm:$0xff] %v1304_v37 }
 0x125   : > { %1307 = vst [vmem:[%s10614_s7 + $0x1130] sm:$0xff] %v1306_v38  ;;  %1309 = vst [vmem:[%s10614_s7 + $0x1138] sm:$0xff] %v1308_v39  ;;  %v1310_v40 = vld [vmem:[%s10606_s6 + $0x2280] sm:$0xff]  ;;  %v1312_v41 = vld [vmem:[%s10606_s6 + $0x2288] sm:$0xff] }
 0x126   : > { %v1314_v42 = vld [vmem:[%s10606_s6 + $0x22a0] sm:$0xff]  ;;  %1311 = vst [vmem:[%s10614_s7 + $0x1140] sm:$0xff] %v1310_v40  ;;  %1313 = vst [vmem:[%s10614_s7 + $0x1148] sm:$0xff] %v1312_v41  ;;  %v1316_v43 = vld [vmem:[%s10606_s6 + $0x22a8] sm:$0xff] }
 0x127   : > { %1315 = vst [vmem:[%s10614_s7 + $0x1150] sm:$0xff] %v1314_v42  ;;  %v1318_v44 = vld [vmem:[%s10606_s6 + $0x22c0] sm:$0xff]  ;;  %v1320_v45 = vld [vmem:[%s10606_s6 + $0x22c8] sm:$0xff]  ;;  %1317 = vst [vmem:[%s10614_s7 + $0x1158] sm:$0xff] %v1316_v43 }
 0x128   : > { %1319 = vst [vmem:[%s10614_s7 + $0x1160] sm:$0xff] %v1318_v44  ;;  %1321 = vst [vmem:[%s10614_s7 + $0x1168] sm:$0xff] %v1320_v45  ;;  %v1322_v46 = vld [vmem:[%s10606_s6 + $0x22e0] sm:$0xff]  ;;  %v1324_v47 = vld [vmem:[%s10606_s6 + $0x22e8] sm:$0xff] }
 0x129   : > { %v1326_v48 = vld [vmem:[%s10606_s6 + $0x2300] sm:$0xff]  ;;  %1323 = vst [vmem:[%s10614_s7 + $0x1170] sm:$0xff] %v1322_v46  ;;  %1325 = vst [vmem:[%s10614_s7 + $0x1178] sm:$0xff] %v1324_v47  ;;  %v1328_v49 = vld [vmem:[%s10606_s6 + $0x2308] sm:$0xff] }
 0x12a   : > { %1327 = vst [vmem:[%s10614_s7 + $0x1180] sm:$0xff] %v1326_v48  ;;  %v1330_v50 = vld [vmem:[%s10606_s6 + $0x2320] sm:$0xff]  ;;  %v1332_v51 = vld [vmem:[%s10606_s6 + $0x2328] sm:$0xff]  ;;  %1329 = vst [vmem:[%s10614_s7 + $0x1188] sm:$0xff] %v1328_v49 }
 0x12b   : > { %1331 = vst [vmem:[%s10614_s7 + $0x1190] sm:$0xff] %v1330_v50  ;;  %1333 = vst [vmem:[%s10614_s7 + $0x1198] sm:$0xff] %v1332_v51  ;;  %v1334_v52 = vld [vmem:[%s10606_s6 + $0x2340] sm:$0xff]  ;;  %v1336_v53 = vld [vmem:[%s10606_s6 + $0x2348] sm:$0xff] }
 0x12c   : > { %v1338_v54 = vld [vmem:[%s10606_s6 + $0x2360] sm:$0xff]  ;;  %1335 = vst [vmem:[%s10614_s7 + $0x11a0] sm:$0xff] %v1334_v52  ;;  %1337 = vst [vmem:[%s10614_s7 + $0x11a8] sm:$0xff] %v1336_v53  ;;  %v1340_v55 = vld [vmem:[%s10606_s6 + $0x2368] sm:$0xff] }
 0x12d   : > { %1339 = vst [vmem:[%s10614_s7 + $0x11b0] sm:$0xff] %v1338_v54  ;;  %v1342_v56 = vld [vmem:[%s10606_s6 + $0x2380] sm:$0xff]  ;;  %v1344_v57 = vld [vmem:[%s10606_s6 + $0x2388] sm:$0xff]  ;;  %1341 = vst [vmem:[%s10614_s7 + $0x11b8] sm:$0xff] %v1340_v55 }
 0x12e   : > { %1343 = vst [vmem:[%s10614_s7 + $0x11c0] sm:$0xff] %v1342_v56  ;;  %1345 = vst [vmem:[%s10614_s7 + $0x11c8] sm:$0xff] %v1344_v57  ;;  %v1346_v58 = vld [vmem:[%s10606_s6 + $0x23a0] sm:$0xff]  ;;  %v1348_v59 = vld [vmem:[%s10606_s6 + $0x23a8] sm:$0xff] }
 0x12f   : > { %v1350_v60 = vld [vmem:[%s10606_s6 + $0x23c0] sm:$0xff]  ;;  %1347 = vst [vmem:[%s10614_s7 + $0x11d0] sm:$0xff] %v1346_v58  ;;  %1349 = vst [vmem:[%s10614_s7 + $0x11d8] sm:$0xff] %v1348_v59  ;;  %v1352_v61 = vld [vmem:[%s10606_s6 + $0x23c8] sm:$0xff] }
 0x130   : > { %1351 = vst [vmem:[%s10614_s7 + $0x11e0] sm:$0xff] %v1350_v60  ;;  %v1354_v62 = vld [vmem:[%s10606_s6 + $0x23e0] sm:$0xff]  ;;  %v1356_v63 = vld [vmem:[%s10606_s6 + $0x23e8] sm:$0xff]  ;;  %1353 = vst [vmem:[%s10614_s7 + $0x11e8] sm:$0xff] %v1352_v61 }
 0x131   : > { %1355 = vst [vmem:[%s10614_s7 + $0x11f0] sm:$0xff] %v1354_v62  ;;  %1357 = vst [vmem:[%s10614_s7 + $0x11f8] sm:$0xff] %v1356_v63  ;;  %v1358_v0 = vld [vmem:[%s10606_s6 + $0x2400] sm:$0xff]  ;;  %v1360_v1 = vld [vmem:[%s10606_s6 + $0x2408] sm:$0xff] }
 0x132   : > { %v1362_v2 = vld [vmem:[%s10606_s6 + $0x2420] sm:$0xff]  ;;  %1359 = vst [vmem:[%s10614_s7 + $0x1200] sm:$0xff] %v1358_v0  ;;  %1361 = vst [vmem:[%s10614_s7 + $0x1208] sm:$0xff] %v1360_v1  ;;  %v1364_v3 = vld [vmem:[%s10606_s6 + $0x2428] sm:$0xff] }
 0x133   : > { %1363 = vst [vmem:[%s10614_s7 + $0x1210] sm:$0xff] %v1362_v2  ;;  %v1366_v4 = vld [vmem:[%s10606_s6 + $0x2440] sm:$0xff]  ;;  %v1368_v5 = vld [vmem:[%s10606_s6 + $0x2448] sm:$0xff]  ;;  %1365 = vst [vmem:[%s10614_s7 + $0x1218] sm:$0xff] %v1364_v3 }
 0x134   : > { %1367 = vst [vmem:[%s10614_s7 + $0x1220] sm:$0xff] %v1366_v4  ;;  %1369 = vst [vmem:[%s10614_s7 + $0x1228] sm:$0xff] %v1368_v5  ;;  %v1370_v6 = vld [vmem:[%s10606_s6 + $0x2460] sm:$0xff]  ;;  %v1372_v7 = vld [vmem:[%s10606_s6 + $0x2468] sm:$0xff] }
 0x135   : > { %v1374_v8 = vld [vmem:[%s10606_s6 + $0x2480] sm:$0xff]  ;;  %1371 = vst [vmem:[%s10614_s7 + $0x1230] sm:$0xff] %v1370_v6  ;;  %1373 = vst [vmem:[%s10614_s7 + $0x1238] sm:$0xff] %v1372_v7  ;;  %v1376_v9 = vld [vmem:[%s10606_s6 + $0x2488] sm:$0xff] }
 0x136   : > { %1375 = vst [vmem:[%s10614_s7 + $0x1240] sm:$0xff] %v1374_v8  ;;  %v1378_v10 = vld [vmem:[%s10606_s6 + $0x24a0] sm:$0xff]  ;;  %v1380_v11 = vld [vmem:[%s10606_s6 + $0x24a8] sm:$0xff]  ;;  %1377 = vst [vmem:[%s10614_s7 + $0x1248] sm:$0xff] %v1376_v9 }
 0x137   : > { %1379 = vst [vmem:[%s10614_s7 + $0x1250] sm:$0xff] %v1378_v10  ;;  %1381 = vst [vmem:[%s10614_s7 + $0x1258] sm:$0xff] %v1380_v11  ;;  %v1382_v12 = vld [vmem:[%s10606_s6 + $0x24c0] sm:$0xff]  ;;  %v1384_v13 = vld [vmem:[%s10606_s6 + $0x24c8] sm:$0xff] }
 0x138   : > { %v1386_v14 = vld [vmem:[%s10606_s6 + $0x24e0] sm:$0xff]  ;;  %1383 = vst [vmem:[%s10614_s7 + $0x1260] sm:$0xff] %v1382_v12  ;;  %1385 = vst [vmem:[%s10614_s7 + $0x1268] sm:$0xff] %v1384_v13  ;;  %v1388_v15 = vld [vmem:[%s10606_s6 + $0x24e8] sm:$0xff] }
 0x139   : > { %1387 = vst [vmem:[%s10614_s7 + $0x1270] sm:$0xff] %v1386_v14  ;;  %v1390_v16 = vld [vmem:[%s10606_s6 + $0x2500] sm:$0xff]  ;;  %v1392_v17 = vld [vmem:[%s10606_s6 + $0x2508] sm:$0xff]  ;;  %1389 = vst [vmem:[%s10614_s7 + $0x1278] sm:$0xff] %v1388_v15 }
 0x13a   : > { %1391 = vst [vmem:[%s10614_s7 + $0x1280] sm:$0xff] %v1390_v16  ;;  %1393 = vst [vmem:[%s10614_s7 + $0x1288] sm:$0xff] %v1392_v17  ;;  %v1394_v18 = vld [vmem:[%s10606_s6 + $0x2520] sm:$0xff]  ;;  %v1396_v19 = vld [vmem:[%s10606_s6 + $0x2528] sm:$0xff] }
 0x13b   : > { %v1398_v20 = vld [vmem:[%s10606_s6 + $0x2540] sm:$0xff]  ;;  %1395 = vst [vmem:[%s10614_s7 + $0x1290] sm:$0xff] %v1394_v18  ;;  %1397 = vst [vmem:[%s10614_s7 + $0x1298] sm:$0xff] %v1396_v19  ;;  %v1400_v21 = vld [vmem:[%s10606_s6 + $0x2548] sm:$0xff] }
 0x13c   : > { %1399 = vst [vmem:[%s10614_s7 + $0x12a0] sm:$0xff] %v1398_v20  ;;  %v1402_v22 = vld [vmem:[%s10606_s6 + $0x2560] sm:$0xff]  ;;  %v1404_v23 = vld [vmem:[%s10606_s6 + $0x2568] sm:$0xff]  ;;  %1401 = vst [vmem:[%s10614_s7 + $0x12a8] sm:$0xff] %v1400_v21 }
 0x13d   : > { %1403 = vst [vmem:[%s10614_s7 + $0x12b0] sm:$0xff] %v1402_v22  ;;  %1405 = vst [vmem:[%s10614_s7 + $0x12b8] sm:$0xff] %v1404_v23  ;;  %v1406_v24 = vld [vmem:[%s10606_s6 + $0x2580] sm:$0xff]  ;;  %v1408_v25 = vld [vmem:[%s10606_s6 + $0x2588] sm:$0xff] }
 0x13e   : > { %v1410_v26 = vld [vmem:[%s10606_s6 + $0x25a0] sm:$0xff]  ;;  %1407 = vst [vmem:[%s10614_s7 + $0x12c0] sm:$0xff] %v1406_v24  ;;  %1409 = vst [vmem:[%s10614_s7 + $0x12c8] sm:$0xff] %v1408_v25  ;;  %v1412_v27 = vld [vmem:[%s10606_s6 + $0x25a8] sm:$0xff] }
 0x13f   : > { %1411 = vst [vmem:[%s10614_s7 + $0x12d0] sm:$0xff] %v1410_v26  ;;  %v1414_v28 = vld [vmem:[%s10606_s6 + $0x25c0] sm:$0xff]  ;;  %v1416_v29 = vld [vmem:[%s10606_s6 + $0x25c8] sm:$0xff]  ;;  %1413 = vst [vmem:[%s10614_s7 + $0x12d8] sm:$0xff] %v1412_v27 }
 0x140   : > { %1415 = vst [vmem:[%s10614_s7 + $0x12e0] sm:$0xff] %v1414_v28  ;;  %1417 = vst [vmem:[%s10614_s7 + $0x12e8] sm:$0xff] %v1416_v29  ;;  %v1418_v30 = vld [vmem:[%s10606_s6 + $0x25e0] sm:$0xff]  ;;  %v1420_v31 = vld [vmem:[%s10606_s6 + $0x25e8] sm:$0xff] }
 0x141   : > { %v1422_v32 = vld [vmem:[%s10606_s6 + $0x2600] sm:$0xff]  ;;  %1419 = vst [vmem:[%s10614_s7 + $0x12f0] sm:$0xff] %v1418_v30  ;;  %1421 = vst [vmem:[%s10614_s7 + $0x12f8] sm:$0xff] %v1420_v31  ;;  %v1424_v33 = vld [vmem:[%s10606_s6 + $0x2608] sm:$0xff] }
 0x142   : > { %1423 = vst [vmem:[%s10614_s7 + $0x1300] sm:$0xff] %v1422_v32  ;;  %v1426_v34 = vld [vmem:[%s10606_s6 + $0x2620] sm:$0xff]  ;;  %v1428_v35 = vld [vmem:[%s10606_s6 + $0x2628] sm:$0xff]  ;;  %1425 = vst [vmem:[%s10614_s7 + $0x1308] sm:$0xff] %v1424_v33 }
 0x143   : > { %1427 = vst [vmem:[%s10614_s7 + $0x1310] sm:$0xff] %v1426_v34  ;;  %1429 = vst [vmem:[%s10614_s7 + $0x1318] sm:$0xff] %v1428_v35  ;;  %v1430_v36 = vld [vmem:[%s10606_s6 + $0x2640] sm:$0xff]  ;;  %v1432_v37 = vld [vmem:[%s10606_s6 + $0x2648] sm:$0xff] }
 0x144   : > { %v1434_v38 = vld [vmem:[%s10606_s6 + $0x2660] sm:$0xff]  ;;  %1431 = vst [vmem:[%s10614_s7 + $0x1320] sm:$0xff] %v1430_v36  ;;  %1433 = vst [vmem:[%s10614_s7 + $0x1328] sm:$0xff] %v1432_v37  ;;  %v1436_v39 = vld [vmem:[%s10606_s6 + $0x2668] sm:$0xff] }
 0x145   : > { %1435 = vst [vmem:[%s10614_s7 + $0x1330] sm:$0xff] %v1434_v38  ;;  %v1438_v40 = vld [vmem:[%s10606_s6 + $0x2680] sm:$0xff]  ;;  %v1440_v41 = vld [vmem:[%s10606_s6 + $0x2688] sm:$0xff]  ;;  %1437 = vst [vmem:[%s10614_s7 + $0x1338] sm:$0xff] %v1436_v39 }
 0x146   : > { %1439 = vst [vmem:[%s10614_s7 + $0x1340] sm:$0xff] %v1438_v40  ;;  %1441 = vst [vmem:[%s10614_s7 + $0x1348] sm:$0xff] %v1440_v41  ;;  %v1442_v42 = vld [vmem:[%s10606_s6 + $0x26a0] sm:$0xff]  ;;  %v1444_v43 = vld [vmem:[%s10606_s6 + $0x26a8] sm:$0xff] }
 0x147   : > { %v1446_v44 = vld [vmem:[%s10606_s6 + $0x26c0] sm:$0xff]  ;;  %1443 = vst [vmem:[%s10614_s7 + $0x1350] sm:$0xff] %v1442_v42  ;;  %1445 = vst [vmem:[%s10614_s7 + $0x1358] sm:$0xff] %v1444_v43  ;;  %v1448_v45 = vld [vmem:[%s10606_s6 + $0x26c8] sm:$0xff] }
 0x148   : > { %1447 = vst [vmem:[%s10614_s7 + $0x1360] sm:$0xff] %v1446_v44  ;;  %v1450_v46 = vld [vmem:[%s10606_s6 + $0x26e0] sm:$0xff]  ;;  %v1452_v47 = vld [vmem:[%s10606_s6 + $0x26e8] sm:$0xff]  ;;  %1449 = vst [vmem:[%s10614_s7 + $0x1368] sm:$0xff] %v1448_v45 }
 0x149   : > { %1451 = vst [vmem:[%s10614_s7 + $0x1370] sm:$0xff] %v1450_v46  ;;  %1453 = vst [vmem:[%s10614_s7 + $0x1378] sm:$0xff] %v1452_v47  ;;  %v1454_v48 = vld [vmem:[%s10606_s6 + $0x2700] sm:$0xff]  ;;  %v1456_v49 = vld [vmem:[%s10606_s6 + $0x2708] sm:$0xff] }
 0x14a   : > { %v1458_v50 = vld [vmem:[%s10606_s6 + $0x2720] sm:$0xff]  ;;  %1455 = vst [vmem:[%s10614_s7 + $0x1380] sm:$0xff] %v1454_v48  ;;  %1457 = vst [vmem:[%s10614_s7 + $0x1388] sm:$0xff] %v1456_v49  ;;  %v1460_v51 = vld [vmem:[%s10606_s6 + $0x2728] sm:$0xff] }
 0x14b   : > { %1459 = vst [vmem:[%s10614_s7 + $0x1390] sm:$0xff] %v1458_v50  ;;  %v1462_v52 = vld [vmem:[%s10606_s6 + $0x2740] sm:$0xff]  ;;  %v1464_v53 = vld [vmem:[%s10606_s6 + $0x2748] sm:$0xff]  ;;  %1461 = vst [vmem:[%s10614_s7 + $0x1398] sm:$0xff] %v1460_v51 }
 0x14c   : > { %1463 = vst [vmem:[%s10614_s7 + $0x13a0] sm:$0xff] %v1462_v52  ;;  %1465 = vst [vmem:[%s10614_s7 + $0x13a8] sm:$0xff] %v1464_v53  ;;  %v1466_v54 = vld [vmem:[%s10606_s6 + $0x2760] sm:$0xff]  ;;  %v1468_v55 = vld [vmem:[%s10606_s6 + $0x2768] sm:$0xff] }
 0x14d   : > { %v1470_v56 = vld [vmem:[%s10606_s6 + $0x2780] sm:$0xff]  ;;  %1467 = vst [vmem:[%s10614_s7 + $0x13b0] sm:$0xff] %v1466_v54  ;;  %1469 = vst [vmem:[%s10614_s7 + $0x13b8] sm:$0xff] %v1468_v55  ;;  %v1472_v57 = vld [vmem:[%s10606_s6 + $0x2788] sm:$0xff] }
 0x14e   : > { %1471 = vst [vmem:[%s10614_s7 + $0x13c0] sm:$0xff] %v1470_v56  ;;  %v1474_v58 = vld [vmem:[%s10606_s6 + $0x27a0] sm:$0xff]  ;;  %v1476_v59 = vld [vmem:[%s10606_s6 + $0x27a8] sm:$0xff]  ;;  %1473 = vst [vmem:[%s10614_s7 + $0x13c8] sm:$0xff] %v1472_v57 }
 0x14f   : > { %1475 = vst [vmem:[%s10614_s7 + $0x13d0] sm:$0xff] %v1474_v58  ;;  %1477 = vst [vmem:[%s10614_s7 + $0x13d8] sm:$0xff] %v1476_v59  ;;  %v1478_v60 = vld [vmem:[%s10606_s6 + $0x27c0] sm:$0xff]  ;;  %v1480_v61 = vld [vmem:[%s10606_s6 + $0x27c8] sm:$0xff] }
 0x150   : > { %v1482_v62 = vld [vmem:[%s10606_s6 + $0x27e0] sm:$0xff]  ;;  %1479 = vst [vmem:[%s10614_s7 + $0x13e0] sm:$0xff] %v1478_v60  ;;  %1481 = vst [vmem:[%s10614_s7 + $0x13e8] sm:$0xff] %v1480_v61  ;;  %v1484_v63 = vld [vmem:[%s10606_s6 + $0x27e8] sm:$0xff] }
 0x151   : > { %1483 = vst [vmem:[%s10614_s7 + $0x13f0] sm:$0xff] %v1482_v62  ;;  %v1486_v0 = vld [vmem:[%s10606_s6 + $0x2800] sm:$0xff]  ;;  %v1488_v1 = vld [vmem:[%s10606_s6 + $0x2808] sm:$0xff]  ;;  %1485 = vst [vmem:[%s10614_s7 + $0x13f8] sm:$0xff] %v1484_v63 }
 0x152   : > { %1487 = vst [vmem:[%s10614_s7 + $0x1400] sm:$0xff] %v1486_v0  ;;  %1489 = vst [vmem:[%s10614_s7 + $0x1408] sm:$0xff] %v1488_v1  ;;  %v1490_v2 = vld [vmem:[%s10606_s6 + $0x2820] sm:$0xff]  ;;  %v1492_v3 = vld [vmem:[%s10606_s6 + $0x2828] sm:$0xff] }
 0x153   : > { %v1494_v4 = vld [vmem:[%s10606_s6 + $0x2840] sm:$0xff]  ;;  %1491 = vst [vmem:[%s10614_s7 + $0x1410] sm:$0xff] %v1490_v2  ;;  %1493 = vst [vmem:[%s10614_s7 + $0x1418] sm:$0xff] %v1492_v3  ;;  %v1496_v5 = vld [vmem:[%s10606_s6 + $0x2848] sm:$0xff] }
 0x154   : > { %1495 = vst [vmem:[%s10614_s7 + $0x1420] sm:$0xff] %v1494_v4  ;;  %v1498_v6 = vld [vmem:[%s10606_s6 + $0x2860] sm:$0xff]  ;;  %v1500_v7 = vld [vmem:[%s10606_s6 + $0x2868] sm:$0xff]  ;;  %1497 = vst [vmem:[%s10614_s7 + $0x1428] sm:$0xff] %v1496_v5 }
 0x155   : > { %1499 = vst [vmem:[%s10614_s7 + $0x1430] sm:$0xff] %v1498_v6  ;;  %1501 = vst [vmem:[%s10614_s7 + $0x1438] sm:$0xff] %v1500_v7  ;;  %v1502_v8 = vld [vmem:[%s10606_s6 + $0x2880] sm:$0xff]  ;;  %v1504_v9 = vld [vmem:[%s10606_s6 + $0x2888] sm:$0xff] }
 0x156   : > { %v1506_v10 = vld [vmem:[%s10606_s6 + $0x28a0] sm:$0xff]  ;;  %1503 = vst [vmem:[%s10614_s7 + $0x1440] sm:$0xff] %v1502_v8  ;;  %1505 = vst [vmem:[%s10614_s7 + $0x1448] sm:$0xff] %v1504_v9  ;;  %v1508_v11 = vld [vmem:[%s10606_s6 + $0x28a8] sm:$0xff] }
 0x157   : > { %1507 = vst [vmem:[%s10614_s7 + $0x1450] sm:$0xff] %v1506_v10  ;;  %v1510_v12 = vld [vmem:[%s10606_s6 + $0x28c0] sm:$0xff]  ;;  %v1512_v13 = vld [vmem:[%s10606_s6 + $0x28c8] sm:$0xff]  ;;  %1509 = vst [vmem:[%s10614_s7 + $0x1458] sm:$0xff] %v1508_v11 }
 0x158   : > { %1511 = vst [vmem:[%s10614_s7 + $0x1460] sm:$0xff] %v1510_v12  ;;  %1513 = vst [vmem:[%s10614_s7 + $0x1468] sm:$0xff] %v1512_v13  ;;  %v1514_v14 = vld [vmem:[%s10606_s6 + $0x28e0] sm:$0xff]  ;;  %v1516_v15 = vld [vmem:[%s10606_s6 + $0x28e8] sm:$0xff] }
 0x159   : > { %v1518_v16 = vld [vmem:[%s10606_s6 + $0x2900] sm:$0xff]  ;;  %1515 = vst [vmem:[%s10614_s7 + $0x1470] sm:$0xff] %v1514_v14  ;;  %1517 = vst [vmem:[%s10614_s7 + $0x1478] sm:$0xff] %v1516_v15  ;;  %v1520_v17 = vld [vmem:[%s10606_s6 + $0x2908] sm:$0xff] }
 0x15a   : > { %1519 = vst [vmem:[%s10614_s7 + $0x1480] sm:$0xff] %v1518_v16  ;;  %v1522_v18 = vld [vmem:[%s10606_s6 + $0x2920] sm:$0xff]  ;;  %v1524_v19 = vld [vmem:[%s10606_s6 + $0x2928] sm:$0xff]  ;;  %1521 = vst [vmem:[%s10614_s7 + $0x1488] sm:$0xff] %v1520_v17 }
 0x15b   : > { %1523 = vst [vmem:[%s10614_s7 + $0x1490] sm:$0xff] %v1522_v18  ;;  %1525 = vst [vmem:[%s10614_s7 + $0x1498] sm:$0xff] %v1524_v19  ;;  %v1526_v20 = vld [vmem:[%s10606_s6 + $0x2940] sm:$0xff]  ;;  %v1528_v21 = vld [vmem:[%s10606_s6 + $0x2948] sm:$0xff] }
 0x15c   : > { %v1530_v22 = vld [vmem:[%s10606_s6 + $0x2960] sm:$0xff]  ;;  %1527 = vst [vmem:[%s10614_s7 + $0x14a0] sm:$0xff] %v1526_v20  ;;  %1529 = vst [vmem:[%s10614_s7 + $0x14a8] sm:$0xff] %v1528_v21  ;;  %v1532_v23 = vld [vmem:[%s10606_s6 + $0x2968] sm:$0xff] }
 0x15d   : > { %1531 = vst [vmem:[%s10614_s7 + $0x14b0] sm:$0xff] %v1530_v22  ;;  %v1534_v24 = vld [vmem:[%s10606_s6 + $0x2980] sm:$0xff]  ;;  %v1536_v25 = vld [vmem:[%s10606_s6 + $0x2988] sm:$0xff]  ;;  %1533 = vst [vmem:[%s10614_s7 + $0x14b8] sm:$0xff] %v1532_v23 }
 0x15e   : > { %1535 = vst [vmem:[%s10614_s7 + $0x14c0] sm:$0xff] %v1534_v24  ;;  %1537 = vst [vmem:[%s10614_s7 + $0x14c8] sm:$0xff] %v1536_v25  ;;  %v1538_v26 = vld [vmem:[%s10606_s6 + $0x29a0] sm:$0xff]  ;;  %v1540_v27 = vld [vmem:[%s10606_s6 + $0x29a8] sm:$0xff] }
 0x15f   : > { %v1542_v28 = vld [vmem:[%s10606_s6 + $0x29c0] sm:$0xff]  ;;  %1539 = vst [vmem:[%s10614_s7 + $0x14d0] sm:$0xff] %v1538_v26  ;;  %1541 = vst [vmem:[%s10614_s7 + $0x14d8] sm:$0xff] %v1540_v27  ;;  %v1544_v29 = vld [vmem:[%s10606_s6 + $0x29c8] sm:$0xff] }
 0x160   : > { %1543 = vst [vmem:[%s10614_s7 + $0x14e0] sm:$0xff] %v1542_v28  ;;  %v1546_v30 = vld [vmem:[%s10606_s6 + $0x29e0] sm:$0xff]  ;;  %v1548_v31 = vld [vmem:[%s10606_s6 + $0x29e8] sm:$0xff]  ;;  %1545 = vst [vmem:[%s10614_s7 + $0x14e8] sm:$0xff] %v1544_v29 }
 0x161   : > { %1547 = vst [vmem:[%s10614_s7 + $0x14f0] sm:$0xff] %v1546_v30  ;;  %1549 = vst [vmem:[%s10614_s7 + $0x14f8] sm:$0xff] %v1548_v31  ;;  %v1550_v32 = vld [vmem:[%s10606_s6 + $0x2a00] sm:$0xff]  ;;  %v1552_v33 = vld [vmem:[%s10606_s6 + $0x2a08] sm:$0xff] }
 0x162   : > { %v1554_v34 = vld [vmem:[%s10606_s6 + $0x2a20] sm:$0xff]  ;;  %1551 = vst [vmem:[%s10614_s7 + $0x1500] sm:$0xff] %v1550_v32  ;;  %1553 = vst [vmem:[%s10614_s7 + $0x1508] sm:$0xff] %v1552_v33  ;;  %v1556_v35 = vld [vmem:[%s10606_s6 + $0x2a28] sm:$0xff] }
 0x163   : > { %1555 = vst [vmem:[%s10614_s7 + $0x1510] sm:$0xff] %v1554_v34  ;;  %v1558_v36 = vld [vmem:[%s10606_s6 + $0x2a40] sm:$0xff]  ;;  %v1560_v37 = vld [vmem:[%s10606_s6 + $0x2a48] sm:$0xff]  ;;  %1557 = vst [vmem:[%s10614_s7 + $0x1518] sm:$0xff] %v1556_v35 }
 0x164   : > { %1559 = vst [vmem:[%s10614_s7 + $0x1520] sm:$0xff] %v1558_v36  ;;  %1561 = vst [vmem:[%s10614_s7 + $0x1528] sm:$0xff] %v1560_v37  ;;  %v1562_v38 = vld [vmem:[%s10606_s6 + $0x2a60] sm:$0xff]  ;;  %v1564_v39 = vld [vmem:[%s10606_s6 + $0x2a68] sm:$0xff] }
 0x165   : > { %v1566_v40 = vld [vmem:[%s10606_s6 + $0x2a80] sm:$0xff]  ;;  %1563 = vst [vmem:[%s10614_s7 + $0x1530] sm:$0xff] %v1562_v38  ;;  %1565 = vst [vmem:[%s10614_s7 + $0x1538] sm:$0xff] %v1564_v39  ;;  %v1568_v41 = vld [vmem:[%s10606_s6 + $0x2a88] sm:$0xff] }
 0x166   : > { %1567 = vst [vmem:[%s10614_s7 + $0x1540] sm:$0xff] %v1566_v40  ;;  %v1570_v42 = vld [vmem:[%s10606_s6 + $0x2aa0] sm:$0xff]  ;;  %v1572_v43 = vld [vmem:[%s10606_s6 + $0x2aa8] sm:$0xff]  ;;  %1569 = vst [vmem:[%s10614_s7 + $0x1548] sm:$0xff] %v1568_v41 }
 0x167   : > { %1571 = vst [vmem:[%s10614_s7 + $0x1550] sm:$0xff] %v1570_v42  ;;  %1573 = vst [vmem:[%s10614_s7 + $0x1558] sm:$0xff] %v1572_v43  ;;  %v1574_v44 = vld [vmem:[%s10606_s6 + $0x2ac0] sm:$0xff]  ;;  %v1576_v45 = vld [vmem:[%s10606_s6 + $0x2ac8] sm:$0xff] }
 0x168   : > { %v1578_v46 = vld [vmem:[%s10606_s6 + $0x2ae0] sm:$0xff]  ;;  %1575 = vst [vmem:[%s10614_s7 + $0x1560] sm:$0xff] %v1574_v44  ;;  %1577 = vst [vmem:[%s10614_s7 + $0x1568] sm:$0xff] %v1576_v45  ;;  %v1580_v47 = vld [vmem:[%s10606_s6 + $0x2ae8] sm:$0xff] }
 0x169   : > { %1579 = vst [vmem:[%s10614_s7 + $0x1570] sm:$0xff] %v1578_v46  ;;  %v1582_v48 = vld [vmem:[%s10606_s6 + $0x2b00] sm:$0xff]  ;;  %v1584_v49 = vld [vmem:[%s10606_s6 + $0x2b08] sm:$0xff]  ;;  %1581 = vst [vmem:[%s10614_s7 + $0x1578] sm:$0xff] %v1580_v47 }
 0x16a   : > { %1583 = vst [vmem:[%s10614_s7 + $0x1580] sm:$0xff] %v1582_v48  ;;  %1585 = vst [vmem:[%s10614_s7 + $0x1588] sm:$0xff] %v1584_v49  ;;  %v1586_v50 = vld [vmem:[%s10606_s6 + $0x2b20] sm:$0xff]  ;;  %v1588_v51 = vld [vmem:[%s10606_s6 + $0x2b28] sm:$0xff] }
 0x16b   : > { %v1590_v52 = vld [vmem:[%s10606_s6 + $0x2b40] sm:$0xff]  ;;  %1587 = vst [vmem:[%s10614_s7 + $0x1590] sm:$0xff] %v1586_v50  ;;  %1589 = vst [vmem:[%s10614_s7 + $0x1598] sm:$0xff] %v1588_v51  ;;  %v1592_v53 = vld [vmem:[%s10606_s6 + $0x2b48] sm:$0xff] }
 0x16c   : > { %1591 = vst [vmem:[%s10614_s7 + $0x15a0] sm:$0xff] %v1590_v52  ;;  %v1594_v54 = vld [vmem:[%s10606_s6 + $0x2b60] sm:$0xff]  ;;  %v1596_v55 = vld [vmem:[%s10606_s6 + $0x2b68] sm:$0xff]  ;;  %1593 = vst [vmem:[%s10614_s7 + $0x15a8] sm:$0xff] %v1592_v53 }
 0x16d   : > { %1595 = vst [vmem:[%s10614_s7 + $0x15b0] sm:$0xff] %v1594_v54  ;;  %1597 = vst [vmem:[%s10614_s7 + $0x15b8] sm:$0xff] %v1596_v55  ;;  %v1598_v56 = vld [vmem:[%s10606_s6 + $0x2b80] sm:$0xff]  ;;  %v1600_v57 = vld [vmem:[%s10606_s6 + $0x2b88] sm:$0xff] }
 0x16e   : > { %v1602_v58 = vld [vmem:[%s10606_s6 + $0x2ba0] sm:$0xff]  ;;  %1599 = vst [vmem:[%s10614_s7 + $0x15c0] sm:$0xff] %v1598_v56  ;;  %1601 = vst [vmem:[%s10614_s7 + $0x15c8] sm:$0xff] %v1600_v57  ;;  %v1604_v59 = vld [vmem:[%s10606_s6 + $0x2ba8] sm:$0xff] }
 0x16f   : > { %1603 = vst [vmem:[%s10614_s7 + $0x15d0] sm:$0xff] %v1602_v58  ;;  %v1606_v60 = vld [vmem:[%s10606_s6 + $0x2bc0] sm:$0xff]  ;;  %v1608_v61 = vld [vmem:[%s10606_s6 + $0x2bc8] sm:$0xff]  ;;  %1605 = vst [vmem:[%s10614_s7 + $0x15d8] sm:$0xff] %v1604_v59 }
 0x170   : > { %1607 = vst [vmem:[%s10614_s7 + $0x15e0] sm:$0xff] %v1606_v60  ;;  %1609 = vst [vmem:[%s10614_s7 + $0x15e8] sm:$0xff] %v1608_v61  ;;  %v1610_v62 = vld [vmem:[%s10606_s6 + $0x2be0] sm:$0xff]  ;;  %v1612_v63 = vld [vmem:[%s10606_s6 + $0x2be8] sm:$0xff] }
 0x171   : > { %v1614_v0 = vld [vmem:[%s10606_s6 + $0x2c00] sm:$0xff]  ;;  %1611 = vst [vmem:[%s10614_s7 + $0x15f0] sm:$0xff] %v1610_v62  ;;  %1613 = vst [vmem:[%s10614_s7 + $0x15f8] sm:$0xff] %v1612_v63  ;;  %v1616_v1 = vld [vmem:[%s10606_s6 + $0x2c08] sm:$0xff] }
 0x172   : > { %1615 = vst [vmem:[%s10614_s7 + $0x1600] sm:$0xff] %v1614_v0  ;;  %v1618_v2 = vld [vmem:[%s10606_s6 + $0x2c20] sm:$0xff]  ;;  %v1620_v3 = vld [vmem:[%s10606_s6 + $0x2c28] sm:$0xff]  ;;  %1617 = vst [vmem:[%s10614_s7 + $0x1608] sm:$0xff] %v1616_v1 }
 0x173   : > { %1619 = vst [vmem:[%s10614_s7 + $0x1610] sm:$0xff] %v1618_v2  ;;  %1621 = vst [vmem:[%s10614_s7 + $0x1618] sm:$0xff] %v1620_v3  ;;  %v1622_v4 = vld [vmem:[%s10606_s6 + $0x2c40] sm:$0xff]  ;;  %v1624_v5 = vld [vmem:[%s10606_s6 + $0x2c48] sm:$0xff] }
 0x174   : > { %v1626_v6 = vld [vmem:[%s10606_s6 + $0x2c60] sm:$0xff]  ;;  %1623 = vst [vmem:[%s10614_s7 + $0x1620] sm:$0xff] %v1622_v4  ;;  %1625 = vst [vmem:[%s10614_s7 + $0x1628] sm:$0xff] %v1624_v5  ;;  %v1628_v7 = vld [vmem:[%s10606_s6 + $0x2c68] sm:$0xff] }
 0x175   : > { %1627 = vst [vmem:[%s10614_s7 + $0x1630] sm:$0xff] %v1626_v6  ;;  %v1630_v8 = vld [vmem:[%s10606_s6 + $0x2c80] sm:$0xff]  ;;  %v1632_v9 = vld [vmem:[%s10606_s6 + $0x2c88] sm:$0xff]  ;;  %1629 = vst [vmem:[%s10614_s7 + $0x1638] sm:$0xff] %v1628_v7 }
 0x176   : > { %1631 = vst [vmem:[%s10614_s7 + $0x1640] sm:$0xff] %v1630_v8  ;;  %1633 = vst [vmem:[%s10614_s7 + $0x1648] sm:$0xff] %v1632_v9  ;;  %v1634_v10 = vld [vmem:[%s10606_s6 + $0x2ca0] sm:$0xff]  ;;  %v1636_v11 = vld [vmem:[%s10606_s6 + $0x2ca8] sm:$0xff] }
 0x177   : > { %v1638_v12 = vld [vmem:[%s10606_s6 + $0x2cc0] sm:$0xff]  ;;  %1635 = vst [vmem:[%s10614_s7 + $0x1650] sm:$0xff] %v1634_v10  ;;  %1637 = vst [vmem:[%s10614_s7 + $0x1658] sm:$0xff] %v1636_v11  ;;  %v1640_v13 = vld [vmem:[%s10606_s6 + $0x2cc8] sm:$0xff] }
 0x178   : > { %1639 = vst [vmem:[%s10614_s7 + $0x1660] sm:$0xff] %v1638_v12  ;;  %v1642_v14 = vld [vmem:[%s10606_s6 + $0x2ce0] sm:$0xff]  ;;  %v1644_v15 = vld [vmem:[%s10606_s6 + $0x2ce8] sm:$0xff]  ;;  %1641 = vst [vmem:[%s10614_s7 + $0x1668] sm:$0xff] %v1640_v13 }
 0x179   : > { %1643 = vst [vmem:[%s10614_s7 + $0x1670] sm:$0xff] %v1642_v14  ;;  %1645 = vst [vmem:[%s10614_s7 + $0x1678] sm:$0xff] %v1644_v15  ;;  %v1646_v16 = vld [vmem:[%s10606_s6 + $0x2d00] sm:$0xff]  ;;  %v1648_v17 = vld [vmem:[%s10606_s6 + $0x2d08] sm:$0xff] }
 0x17a   : > { %v1650_v18 = vld [vmem:[%s10606_s6 + $0x2d20] sm:$0xff]  ;;  %1647 = vst [vmem:[%s10614_s7 + $0x1680] sm:$0xff] %v1646_v16  ;;  %1649 = vst [vmem:[%s10614_s7 + $0x1688] sm:$0xff] %v1648_v17  ;;  %v1652_v19 = vld [vmem:[%s10606_s6 + $0x2d28] sm:$0xff] }
 0x17b   : > { %1651 = vst [vmem:[%s10614_s7 + $0x1690] sm:$0xff] %v1650_v18  ;;  %v1654_v20 = vld [vmem:[%s10606_s6 + $0x2d40] sm:$0xff]  ;;  %v1656_v21 = vld [vmem:[%s10606_s6 + $0x2d48] sm:$0xff]  ;;  %1653 = vst [vmem:[%s10614_s7 + $0x1698] sm:$0xff] %v1652_v19 }
 0x17c   : > { %1655 = vst [vmem:[%s10614_s7 + $0x16a0] sm:$0xff] %v1654_v20  ;;  %1657 = vst [vmem:[%s10614_s7 + $0x16a8] sm:$0xff] %v1656_v21  ;;  %v1658_v22 = vld [vmem:[%s10606_s6 + $0x2d60] sm:$0xff]  ;;  %v1660_v23 = vld [vmem:[%s10606_s6 + $0x2d68] sm:$0xff] }
 0x17d   : > { %v1662_v24 = vld [vmem:[%s10606_s6 + $0x2d80] sm:$0xff]  ;;  %1659 = vst [vmem:[%s10614_s7 + $0x16b0] sm:$0xff] %v1658_v22  ;;  %1661 = vst [vmem:[%s10614_s7 + $0x16b8] sm:$0xff] %v1660_v23  ;;  %v1664_v25 = vld [vmem:[%s10606_s6 + $0x2d88] sm:$0xff] }
 0x17e   : > { %1663 = vst [vmem:[%s10614_s7 + $0x16c0] sm:$0xff] %v1662_v24  ;;  %v1666_v26 = vld [vmem:[%s10606_s6 + $0x2da0] sm:$0xff]  ;;  %v1668_v27 = vld [vmem:[%s10606_s6 + $0x2da8] sm:$0xff]  ;;  %1665 = vst [vmem:[%s10614_s7 + $0x16c8] sm:$0xff] %v1664_v25 }
 0x17f   : > { %1667 = vst [vmem:[%s10614_s7 + $0x16d0] sm:$0xff] %v1666_v26  ;;  %1669 = vst [vmem:[%s10614_s7 + $0x16d8] sm:$0xff] %v1668_v27  ;;  %v1670_v28 = vld [vmem:[%s10606_s6 + $0x2dc0] sm:$0xff]  ;;  %v1672_v29 = vld [vmem:[%s10606_s6 + $0x2dc8] sm:$0xff] }
 0x180   : > { %v1674_v30 = vld [vmem:[%s10606_s6 + $0x2de0] sm:$0xff]  ;;  %1671 = vst [vmem:[%s10614_s7 + $0x16e0] sm:$0xff] %v1670_v28  ;;  %1673 = vst [vmem:[%s10614_s7 + $0x16e8] sm:$0xff] %v1672_v29  ;;  %v1676_v31 = vld [vmem:[%s10606_s6 + $0x2de8] sm:$0xff] }
 0x181   : > { %1675 = vst [vmem:[%s10614_s7 + $0x16f0] sm:$0xff] %v1674_v30  ;;  %v1678_v32 = vld [vmem:[%s10606_s6 + $0x2e00] sm:$0xff]  ;;  %v1680_v33 = vld [vmem:[%s10606_s6 + $0x2e08] sm:$0xff]  ;;  %1677 = vst [vmem:[%s10614_s7 + $0x16f8] sm:$0xff] %v1676_v31 }
 0x182   : > { %1679 = vst [vmem:[%s10614_s7 + $0x1700] sm:$0xff] %v1678_v32  ;;  %1681 = vst [vmem:[%s10614_s7 + $0x1708] sm:$0xff] %v1680_v33  ;;  %v1682_v34 = vld [vmem:[%s10606_s6 + $0x2e20] sm:$0xff]  ;;  %v1684_v35 = vld [vmem:[%s10606_s6 + $0x2e28] sm:$0xff] }
 0x183   : > { %v1686_v36 = vld [vmem:[%s10606_s6 + $0x2e40] sm:$0xff]  ;;  %1683 = vst [vmem:[%s10614_s7 + $0x1710] sm:$0xff] %v1682_v34  ;;  %1685 = vst [vmem:[%s10614_s7 + $0x1718] sm:$0xff] %v1684_v35  ;;  %v1688_v37 = vld [vmem:[%s10606_s6 + $0x2e48] sm:$0xff] }
 0x184   : > { %1687 = vst [vmem:[%s10614_s7 + $0x1720] sm:$0xff] %v1686_v36  ;;  %v1690_v38 = vld [vmem:[%s10606_s6 + $0x2e60] sm:$0xff]  ;;  %v1692_v39 = vld [vmem:[%s10606_s6 + $0x2e68] sm:$0xff]  ;;  %1689 = vst [vmem:[%s10614_s7 + $0x1728] sm:$0xff] %v1688_v37 }
 0x185   : > { %1691 = vst [vmem:[%s10614_s7 + $0x1730] sm:$0xff] %v1690_v38  ;;  %1693 = vst [vmem:[%s10614_s7 + $0x1738] sm:$0xff] %v1692_v39  ;;  %v1694_v40 = vld [vmem:[%s10606_s6 + $0x2e80] sm:$0xff]  ;;  %v1696_v41 = vld [vmem:[%s10606_s6 + $0x2e88] sm:$0xff] }
 0x186   : > { %v1698_v42 = vld [vmem:[%s10606_s6 + $0x2ea0] sm:$0xff]  ;;  %1695 = vst [vmem:[%s10614_s7 + $0x1740] sm:$0xff] %v1694_v40  ;;  %1697 = vst [vmem:[%s10614_s7 + $0x1748] sm:$0xff] %v1696_v41  ;;  %v1700_v43 = vld [vmem:[%s10606_s6 + $0x2ea8] sm:$0xff] }
 0x187   : > { %1699 = vst [vmem:[%s10614_s7 + $0x1750] sm:$0xff] %v1698_v42  ;;  %v1702_v44 = vld [vmem:[%s10606_s6 + $0x2ec0] sm:$0xff]  ;;  %v1704_v45 = vld [vmem:[%s10606_s6 + $0x2ec8] sm:$0xff]  ;;  %1701 = vst [vmem:[%s10614_s7 + $0x1758] sm:$0xff] %v1700_v43 }
 0x188   : > { %1703 = vst [vmem:[%s10614_s7 + $0x1760] sm:$0xff] %v1702_v44  ;;  %1705 = vst [vmem:[%s10614_s7 + $0x1768] sm:$0xff] %v1704_v45  ;;  %v1706_v46 = vld [vmem:[%s10606_s6 + $0x2ee0] sm:$0xff]  ;;  %v1708_v47 = vld [vmem:[%s10606_s6 + $0x2ee8] sm:$0xff] }
 0x189   : > { %v1710_v48 = vld [vmem:[%s10606_s6 + $0x2f00] sm:$0xff]  ;;  %1707 = vst [vmem:[%s10614_s7 + $0x1770] sm:$0xff] %v1706_v46  ;;  %1709 = vst [vmem:[%s10614_s7 + $0x1778] sm:$0xff] %v1708_v47  ;;  %v1712_v49 = vld [vmem:[%s10606_s6 + $0x2f08] sm:$0xff] }
 0x18a   : > { %1711 = vst [vmem:[%s10614_s7 + $0x1780] sm:$0xff] %v1710_v48  ;;  %v1714_v50 = vld [vmem:[%s10606_s6 + $0x2f20] sm:$0xff]  ;;  %v1716_v51 = vld [vmem:[%s10606_s6 + $0x2f28] sm:$0xff]  ;;  %1713 = vst [vmem:[%s10614_s7 + $0x1788] sm:$0xff] %v1712_v49 }
 0x18b   : > { %1715 = vst [vmem:[%s10614_s7 + $0x1790] sm:$0xff] %v1714_v50  ;;  %1717 = vst [vmem:[%s10614_s7 + $0x1798] sm:$0xff] %v1716_v51  ;;  %v1718_v52 = vld [vmem:[%s10606_s6 + $0x2f40] sm:$0xff]  ;;  %v1720_v53 = vld [vmem:[%s10606_s6 + $0x2f48] sm:$0xff] }
 0x18c   : > { %v1722_v54 = vld [vmem:[%s10606_s6 + $0x2f60] sm:$0xff]  ;;  %1719 = vst [vmem:[%s10614_s7 + $0x17a0] sm:$0xff] %v1718_v52  ;;  %1721 = vst [vmem:[%s10614_s7 + $0x17a8] sm:$0xff] %v1720_v53  ;;  %v1724_v55 = vld [vmem:[%s10606_s6 + $0x2f68] sm:$0xff] }
 0x18d   : > { %1723 = vst [vmem:[%s10614_s7 + $0x17b0] sm:$0xff] %v1722_v54  ;;  %v1726_v56 = vld [vmem:[%s10606_s6 + $0x2f80] sm:$0xff]  ;;  %v1728_v57 = vld [vmem:[%s10606_s6 + $0x2f88] sm:$0xff]  ;;  %1725 = vst [vmem:[%s10614_s7 + $0x17b8] sm:$0xff] %v1724_v55 }
 0x18e   : > { %1727 = vst [vmem:[%s10614_s7 + $0x17c0] sm:$0xff] %v1726_v56  ;;  %1729 = vst [vmem:[%s10614_s7 + $0x17c8] sm:$0xff] %v1728_v57  ;;  %v1730_v58 = vld [vmem:[%s10606_s6 + $0x2fa0] sm:$0xff]  ;;  %v1732_v59 = vld [vmem:[%s10606_s6 + $0x2fa8] sm:$0xff] }
 0x18f   : > { %v1734_v60 = vld [vmem:[%s10606_s6 + $0x2fc0] sm:$0xff]  ;;  %1731 = vst [vmem:[%s10614_s7 + $0x17d0] sm:$0xff] %v1730_v58  ;;  %1733 = vst [vmem:[%s10614_s7 + $0x17d8] sm:$0xff] %v1732_v59  ;;  %v1736_v61 = vld [vmem:[%s10606_s6 + $0x2fc8] sm:$0xff] }
 0x190   : > { %1735 = vst [vmem:[%s10614_s7 + $0x17e0] sm:$0xff] %v1734_v60  ;;  %v1738_v62 = vld [vmem:[%s10606_s6 + $0x2fe0] sm:$0xff]  ;;  %v1740_v63 = vld [vmem:[%s10606_s6 + $0x2fe8] sm:$0xff]  ;;  %1737 = vst [vmem:[%s10614_s7 + $0x17e8] sm:$0xff] %v1736_v61 }
 0x191   : > { %1739 = vst [vmem:[%s10614_s7 + $0x17f0] sm:$0xff] %v1738_v62  ;;  %1741 = vst [vmem:[%s10614_s7 + $0x17f8] sm:$0xff] %v1740_v63  ;;  %v1742_v0 = vld [vmem:[%s10606_s6 + $0x3000] sm:$0xff]  ;;  %v1744_v1 = vld [vmem:[%s10606_s6 + $0x3008] sm:$0xff] }
 0x192   : > { %v1746_v2 = vld [vmem:[%s10606_s6 + $0x3020] sm:$0xff]  ;;  %1743 = vst [vmem:[%s10614_s7 + $0x1800] sm:$0xff] %v1742_v0  ;;  %1745 = vst [vmem:[%s10614_s7 + $0x1808] sm:$0xff] %v1744_v1  ;;  %v1748_v3 = vld [vmem:[%s10606_s6 + $0x3028] sm:$0xff] }
 0x193   : > { %1747 = vst [vmem:[%s10614_s7 + $0x1810] sm:$0xff] %v1746_v2  ;;  %v1750_v4 = vld [vmem:[%s10606_s6 + $0x3040] sm:$0xff]  ;;  %v1752_v5 = vld [vmem:[%s10606_s6 + $0x3048] sm:$0xff]  ;;  %1749 = vst [vmem:[%s10614_s7 + $0x1818] sm:$0xff] %v1748_v3 }
 0x194   : > { %1751 = vst [vmem:[%s10614_s7 + $0x1820] sm:$0xff] %v1750_v4  ;;  %1753 = vst [vmem:[%s10614_s7 + $0x1828] sm:$0xff] %v1752_v5  ;;  %v1754_v6 = vld [vmem:[%s10606_s6 + $0x3060] sm:$0xff]  ;;  %v1756_v7 = vld [vmem:[%s10606_s6 + $0x3068] sm:$0xff] }
 0x195   : > { %v1758_v8 = vld [vmem:[%s10606_s6 + $0x3080] sm:$0xff]  ;;  %1755 = vst [vmem:[%s10614_s7 + $0x1830] sm:$0xff] %v1754_v6  ;;  %1757 = vst [vmem:[%s10614_s7 + $0x1838] sm:$0xff] %v1756_v7  ;;  %v1760_v9 = vld [vmem:[%s10606_s6 + $0x3088] sm:$0xff] }
 0x196   : > { %1759 = vst [vmem:[%s10614_s7 + $0x1840] sm:$0xff] %v1758_v8  ;;  %v1762_v10 = vld [vmem:[%s10606_s6 + $0x30a0] sm:$0xff]  ;;  %v1764_v11 = vld [vmem:[%s10606_s6 + $0x30a8] sm:$0xff]  ;;  %1761 = vst [vmem:[%s10614_s7 + $0x1848] sm:$0xff] %v1760_v9 }
 0x197   : > { %1763 = vst [vmem:[%s10614_s7 + $0x1850] sm:$0xff] %v1762_v10  ;;  %1765 = vst [vmem:[%s10614_s7 + $0x1858] sm:$0xff] %v1764_v11  ;;  %v1766_v12 = vld [vmem:[%s10606_s6 + $0x30c0] sm:$0xff]  ;;  %v1768_v13 = vld [vmem:[%s10606_s6 + $0x30c8] sm:$0xff] }
 0x198   : > { %v1770_v14 = vld [vmem:[%s10606_s6 + $0x30e0] sm:$0xff]  ;;  %1767 = vst [vmem:[%s10614_s7 + $0x1860] sm:$0xff] %v1766_v12  ;;  %1769 = vst [vmem:[%s10614_s7 + $0x1868] sm:$0xff] %v1768_v13  ;;  %v1772_v15 = vld [vmem:[%s10606_s6 + $0x30e8] sm:$0xff] }
 0x199   : > { %1771 = vst [vmem:[%s10614_s7 + $0x1870] sm:$0xff] %v1770_v14  ;;  %1773 = vst [vmem:[%s10614_s7 + $0x1878] sm:$0xff] %v1772_v15 }
 0x19a PF: > { %p8302_p5 = scmp.ge.s32.totalorder %s10538_s20, 1  ;;  %p1799_p6 = scmp.lt.s32.totalorder %s10538_s20, 3 }
 0x19c   : > { %p1800_p7 = pnand %p8302_p5, %p1799_p6 }
 0x19d   : > { %s1806_s8 = sand.u32 (!%p1800_p7), 1, %s10530_s18   ;;  %v2652_v16 = vlaneseq (!%p1800_p7)  ;;  %v10540_v17 = vmov (!%p1800_p7), 1966171168   ;;  %v12186_v20 = vld [vmem:[%s13187_s0] sm:$0xff] (!%p1800_p7)  ;;  %p1845_p8 = scmp.lt.s32.totalorder (!%p1800_p7), %s8296_s21, 1  ;;  %vm6781_vm0 = vcmask (!%p1800_p7), 523264  }
 0x19e   : > { %1803 = sbr.rel (%p1800_p7) target bundleno = 1643 (0x66b), region = 59  ;;  %v2678_v18 = vunpack.c.l.s4 (!%p1800_p7), %v10540_v17  ;;  %vm8202_vm1 = vcmask (!%p1800_p7), 25600  }
 0x19f   : > { %s9276_s9 = smul.u32 (!%p1800_p7), 6272, %s1806_s8  ;;  %v12181_v19 = vshrl.u32 (!%p1800_p7), %v2652_v16, 7 }
 0x1a0   : > { %v2679_v21 = vunpack.c.0.s8 (!%p1800_p7), %v2678_v18 }
 0x1a1   : > { %s12188_s12 = scalar_lea.vmem (!%p1800_p7), [#allocation2], %s9276_s9 }
 0x1a2   : > { %v9303_v22 = vld [vmem:[%s12188_s12 + $0x4] ss:$16 sps:$4 sm:$0xff] (!%p1800_p7)   ;;  %v9305_v23 = vld [vmem:[%s12188_s12 + $0xc] ss:$16 sps:$4 sm:$0xff] (!%p1800_p7)   ;;  %v12193_v24 = vsub.s32 (!%p1800_p7), %v2679_v21, %v12181_v19  ;;  %v9307_v25 = vld [vmem:[%s12188_s12] ss:$16 sps:$4 sm:$0xff] (!%p1800_p7)  }
 0x1a3   : > { %6785 = vmatprep.subr.bf16.mxu0 (!%p1800_p7), %v9303_v22  ;;  %v9308_v26 = vld [vmem:[%s12188_s12 + $0x8] ss:$16 sps:$4 sm:$0xff] (!%p1800_p7)   ;;  %7318 = vmatprep.subr.bf16.mxu1 (!%p1800_p7), %v9305_v23  ;;  %v9309_v27 = vld [vmem:[%s12188_s12 + $0x24] ss:$16 sps:$4 sm:$0xff] (!%p1800_p7)   ;;  %v9311_v29 = vld [vmem:[%s12188_s12 + $0x2c] ss:$16 sps:$4 sm:$0xff] (!%p1800_p7)  }
 0x1a4   : > { %v12200_v28 = vrot.slane (!%p1800_p7), %v12186_v20, %v12193_v24  ;;  %6786 = vmatpush1.bf16.msra.mxu0 (!%p1800_p7), %v9307_v25  ;;  %7319 = vmatpush1.bf16.msra.mxu1 (!%p1800_p7), %v9308_v26  ;;  %v9313_v30 = vld [vmem:[%s12188_s12 + $0x20] ss:$16 sps:$4 sm:$0xff] (!%p1800_p7)   ;;  %v9314_v31 = vld [vmem:[%s12188_s12 + $0x28] ss:$16 sps:$4 sm:$0xff] (!%p1800_p7)   ;;  %v9315_v33 = vld [vmem:[%s12188_s12 + $0x44] ss:$16 sps:$4 sm:$0xff] (!%p1800_p7)  }
 0x1a5   : > { %6787 = vmatprep.subr.bf16.mxu0 %v9309_v27  ;;  %7320 = vmatprep.subr.bf16.mxu1 %v9311_v29  ;;  %v9317_v34 = vld [vmem:[%s12188_s12 + $0x4c] ss:$16 sps:$4 sm:$0xff]   ;;  %v9319_v35 = vld [vmem:[%s12188_s12 + $0x40] ss:$16 sps:$4 sm:$0xff]   ;;  %v9320_v36 = vld [vmem:[%s12188_s12 + $0x48] ss:$16 sps:$4 sm:$0xff]  }
 0x1a6   : > { %v2691_v32 = vcombine.high %v12200_v28, %v12200_v28  ;;  %v9321_v38 = vld [vmem:[%s12188_s12 + $0x64] ss:$16 sps:$4 sm:$0xff]   ;;  %v9323_v39 = vld [vmem:[%s12188_s12 + $0x6c] ss:$16 sps:$4 sm:$0xff]   ;;  %v9325_v40 = vld [vmem:[%s12188_s12 + $0x60] ss:$16 sps:$4 sm:$0xff]  }
 0x1a7   : > { %v9326_v41 = vld [vmem:[%s12188_s12 + $0x68] ss:$16 sps:$4 sm:$0xff]   ;;  %v9327_v42 = vld [vmem:[%s12188_s12 + $0x84] ss:$16 sps:$4 sm:$0xff]   ;;  %v9329_v43 = vld [vmem:[%s12188_s12 + $0x8c] ss:$16 sps:$4 sm:$0xff]  }
 0x1a8   : > { %v12212_v37 = vrot.slane %v2691_v32, %v12193_v24  ;;  %6788 = vmatpush1.bf16.msra.mxu0 %v9313_v30  ;;  %7321 = vmatpush1.bf16.msra.mxu1 %v9314_v31  ;;  %v9331_v44 = vld [vmem:[%s12188_s12 + $0x80] ss:$16 sps:$4 sm:$0xff]   ;;  %v9332_v45 = vld [vmem:[%s12188_s12 + $0x88] ss:$16 sps:$4 sm:$0xff]   ;;  %v9333_v46 = vld [vmem:[%s12188_s12 + $0xa4] ss:$16 sps:$4 sm:$0xff]  }
 0x1a9   : > { %6789 = vmatprep.subr.bf16.mxu0 %v9315_v33  ;;  %7322 = vmatprep.subr.bf16.mxu1 %v9317_v34  ;;  %v9335_v47 = vld [vmem:[%s12188_s12 + $0xac] ss:$16 sps:$4 sm:$0xff]   ;;  %v9337_v48 = vld [vmem:[%s12188_s12 + $0xa0] ss:$16 sps:$4 sm:$0xff]   ;;  %v9338_v49 = vld [vmem:[%s12188_s12 + $0xa8] ss:$16 sps:$4 sm:$0xff]   ;;  %v12274_v34 = vrot.slane %v12200_v28, %v12193_v24 }
 0x1aa   : > { %6817 = vmatprep.mubr.bf16.mxu0 %v12212_v37  ;;  %7350 = vmatprep.mubr.bf16.mxu1 %v12212_v37  ;;  %v9339_v50 = vld [vmem:[%s12188_s12 + $0xc4] ss:$16 sps:$4 sm:$0xff]   ;;  %v9341_v51 = vld [vmem:[%s12188_s12 + $0xcc] ss:$16 sps:$4 sm:$0xff]   ;;  %v9343_v52 = vld [vmem:[%s12188_s12 + $0xc0] ss:$16 sps:$4 sm:$0xff]  }
 0x1ab   : > { %v9344_v53 = vld [vmem:[%s12188_s12 + $0xc8] ss:$16 sps:$4 sm:$0xff]   ;;  %v9345_v54 = vld [vmem:[%s12188_s12 + $0xe4] ss:$16 sps:$4 sm:$0xff]   ;;  %v9347_v55 = vld [vmem:[%s12188_s12 + $0xec] ss:$16 sps:$4 sm:$0xff]  }
 0x1ac   : > { %6790 = vmatpush1.bf16.msra.mxu0 %v9319_v35  ;;  %7323 = vmatpush1.bf16.msra.mxu1 %v9320_v36  ;;  %v9349_v56 = vld [vmem:[%s12188_s12 + $0xe0] ss:$16 sps:$4 sm:$0xff]   ;;  %v9350_v57 = vld [vmem:[%s12188_s12 + $0xe8] ss:$16 sps:$4 sm:$0xff]   ;;  %v9351_v58 = vld [vmem:[%s12188_s12 + $0x104] ss:$16 sps:$4 sm:$0xff]  }
 0x1ad   : > { %6791 = vmatprep.subr.bf16.mxu0 %v9321_v38  ;;  %7324 = vmatprep.subr.bf16.mxu1 %v9323_v39  ;;  %v9353_v59 = vld [vmem:[%s12188_s12 + $0x10c] ss:$16 sps:$4 sm:$0xff]   ;;  %v9355_v60 = vld [vmem:[%s12188_s12 + $0x100] ss:$16 sps:$4 sm:$0xff]   ;;  %v9356_v61 = vld [vmem:[%s12188_s12 + $0x108] ss:$16 sps:$4 sm:$0xff]   ;;  %v2723_v38 = vcombine.high %v12212_v37, %v12212_v37 }
 0x1ae   : > { %v9357_v62 = vld [vmem:[%s12188_s12 + $0x124] ss:$16 sps:$4 sm:$0xff]   ;;  %v9359_v63 = vld [vmem:[%s12188_s12 + $0x12c] ss:$16 sps:$4 sm:$0xff]   ;;  %v9361_v0 = vld [vmem:[%s12188_s12 + $0x120] ss:$16 sps:$4 sm:$0xff]  }
 0x1af   : > { %v9362_v1 = vld [vmem:[%s12188_s12 + $0x128] ss:$16 sps:$4 sm:$0xff]   ;;  %v9363_v2 = vld [vmem:[%s12188_s12 + $0x144] ss:$16 sps:$4 sm:$0xff]   ;;  %v9365_v3 = vld [vmem:[%s12188_s12 + $0x14c] ss:$16 sps:$4 sm:$0xff]  }
 0x1b0   : > { %6792 = vmatpush1.bf16.msra.mxu0 %v9325_v40  ;;  %7325 = vmatpush1.bf16.msra.mxu1 %v9326_v41  ;;  %v9367_v4 = vld [vmem:[%s12188_s12 + $0x140] ss:$16 sps:$4 sm:$0xff]   ;;  %v9368_v5 = vld [vmem:[%s12188_s12 + $0x148] ss:$16 sps:$4 sm:$0xff]   ;;  %v9369_v6 = vld [vmem:[%s12188_s12 + $0x164] ss:$16 sps:$4 sm:$0xff]  }
 0x1b1   : > { %6793 = vmatprep.subr.bf16.mxu0 %v9327_v42  ;;  %7326 = vmatprep.subr.bf16.mxu1 %v9329_v43  ;;  %v9371_v7 = vld [vmem:[%s12188_s12 + $0x16c] ss:$16 sps:$4 sm:$0xff]   ;;  %v9373_v8 = vld [vmem:[%s12188_s12 + $0x160] ss:$16 sps:$4 sm:$0xff]   ;;  %v9374_v9 = vld [vmem:[%s12188_s12 + $0x168] ss:$16 sps:$4 sm:$0xff]  }
 0x1b2   : > { %v9375_v10 = vld [vmem:[%s12188_s12 + $0x184] ss:$16 sps:$4 sm:$0xff]   ;;  %v9377_v11 = vld [vmem:[%s12188_s12 + $0x18c] ss:$16 sps:$4 sm:$0xff]   ;;  %v9379_v12 = vld [vmem:[%s12188_s12 + $0x180] ss:$16 sps:$4 sm:$0xff]  }
 0x1b3   : > { %v9380_v13 = vld [vmem:[%s12188_s12 + $0x188] ss:$16 sps:$4 sm:$0xff]   ;;  %v9381_v14 = vld [vmem:[%s12188_s12 + $0x1a4] ss:$16 sps:$4 sm:$0xff]   ;;  %v9383_v15 = vld [vmem:[%s12188_s12 + $0x1ac] ss:$16 sps:$4 sm:$0xff]  }
 0x1b4   : > { %6794 = vmatpush1.bf16.msra.mxu0 %v9331_v44  ;;  %7327 = vmatpush1.bf16.msra.mxu1 %v9332_v45  ;;  %v9385_v16 = vld [vmem:[%s12188_s12 + $0x1a0] ss:$16 sps:$4 sm:$0xff]   ;;  %v9386_v17 = vld [vmem:[%s12188_s12 + $0x1a8] ss:$16 sps:$4 sm:$0xff]   ;;  %v9387_v18 = vld [vmem:[%s12188_s12 + $0x1c4] ss:$16 sps:$4 sm:$0xff]  }
 0x1b5   : > { %6795 = vmatprep.subr.bf16.mxu0 %v9333_v46  ;;  %7328 = vmatprep.subr.bf16.mxu1 %v9335_v47  ;;  %v9389_v21 = vld [vmem:[%s12188_s12 + $0x1cc] ss:$16 sps:$4 sm:$0xff]   ;;  %v9391_v22 = vld [vmem:[%s12188_s12 + $0x1c0] ss:$16 sps:$4 sm:$0xff]   ;;  %v9392_v23 = vld [vmem:[%s12188_s12 + $0x1c8] ss:$16 sps:$4 sm:$0xff]  }
 0x1b6   : > { %v9393_v25 = vld [vmem:[%s12188_s12 + $0x1e4] ss:$16 sps:$4 sm:$0xff]   ;;  %v9395_v26 = vld [vmem:[%s12188_s12 + $0x1ec] ss:$16 sps:$4 sm:$0xff]   ;;  %v9397_v27 = vld [vmem:[%s12188_s12 + $0x1e0] ss:$16 sps:$4 sm:$0xff]  }
 0x1b7   : > { %v9398_v29 = vld [vmem:[%s12188_s12 + $0x1e8] ss:$16 sps:$4 sm:$0xff]   ;;  %v9401_v30 = vld [vmem:[%s12188_s12 + $0x204] ss:$16 sps:$4 sm:$0xff]   ;;  %v9404_v31 = vld [vmem:[%s12188_s12 + $0x20c] ss:$16 sps:$4 sm:$0xff]  }
 0x1b8   : > { %6796 = vmatpush1.bf16.msra.mxu0 %v9337_v48  ;;  %7329 = vmatpush1.bf16.msra.mxu1 %v9338_v49  ;;  %v9399_v32 = vld [vmem:[%s12188_s12 + $0x200] ss:$16 sps:$4 sm:$0xff]   ;;  %v9402_v33 = vld [vmem:[%s12188_s12 + $0x208] ss:$16 sps:$4 sm:$0xff]   ;;  %v9407_v35 = vld [vmem:[%s12188_s12 + $0x224] ss:$16 sps:$4 sm:$0xff]  }
 0x1b9   : > { %6797 = vmatprep.subr.bf16.mxu0 %v9339_v50  ;;  %7330 = vmatprep.subr.bf16.mxu1 %v9341_v51  ;;  %v9410_v36 = vld [vmem:[%s12188_s12 + $0x22c] ss:$16 sps:$4 sm:$0xff]   ;;  %v9405_v39 = vld [vmem:[%s12188_s12 + $0x220] ss:$16 sps:$4 sm:$0xff]   ;;  %v9408_v28 = vld [vmem:[%s12188_s12 + $0x228] ss:$16 sps:$4 sm:$0xff]  }
 0x1ba   : > { %v9413_v40 = vld [vmem:[%s12188_s12 + $0x244] ss:$16 sps:$4 sm:$0xff]   ;;  %v9416_v41 = vld [vmem:[%s12188_s12 + $0x24c] ss:$16 sps:$4 sm:$0xff]   ;;  %v9411_v37 = vld [vmem:[%s12188_s12 + $0x240] ss:$16 sps:$4 sm:$0xff]  }
 0x1bb   : > { %v9414_v42 = vld [vmem:[%s12188_s12 + $0x248] ss:$16 sps:$4 sm:$0xff]   ;;  %v9419_v43 = vld [vmem:[%s12188_s12 + $0x264] ss:$16 sps:$4 sm:$0xff]   ;;  %v9422_v44 = vld [vmem:[%s12188_s12 + $0x26c] ss:$16 sps:$4 sm:$0xff]  }
 0x1bc   : > { %6798 = vmatpush1.bf16.msra.mxu0 %v9343_v52  ;;  %7331 = vmatpush1.bf16.msra.mxu1 %v9344_v53  ;;  %v9417_v45 = vld [vmem:[%s12188_s12 + $0x260] ss:$16 sps:$4 sm:$0xff]   ;;  %v9420_v46 = vld [vmem:[%s12188_s12 + $0x268] ss:$16 sps:$4 sm:$0xff]   ;;  %v9425_v47 = vld [vmem:[%s12188_s12 + $0x284] ss:$16 sps:$4 sm:$0xff]  }
 0x1bd   : > { %6799 = vmatprep.subr.bf16.mxu0 %v9345_v54  ;;  %7332 = vmatprep.subr.bf16.mxu1 %v9347_v55  ;;  %v9428_v48 = vld [vmem:[%s12188_s12 + $0x28c] ss:$16 sps:$4 sm:$0xff]   ;;  %v9423_v49 = vld [vmem:[%s12188_s12 + $0x280] ss:$16 sps:$4 sm:$0xff]   ;;  %v9426_v50 = vld [vmem:[%s12188_s12 + $0x288] ss:$16 sps:$4 sm:$0xff]  }
 0x1be   : > { %v9431_v51 = vld [vmem:[%s12188_s12 + $0x2a4] ss:$16 sps:$4 sm:$0xff]   ;;  %v9434_v52 = vld [vmem:[%s12188_s12 + $0x2ac] ss:$16 sps:$4 sm:$0xff]   ;;  %v9429_v53 = vld [vmem:[%s12188_s12 + $0x2a0] ss:$16 sps:$4 sm:$0xff]  }
 0x1bf   : > { %v9432_v54 = vld [vmem:[%s12188_s12 + $0x2a8] ss:$16 sps:$4 sm:$0xff]   ;;  %v9437_v55 = vld [vmem:[%s12188_s12 + $0x2c4] ss:$16 sps:$4 sm:$0xff]   ;;  %s13197_s21 = smov (!%p1845_p8, %s8296_s21), 1 }
 0x1c0   : > { %6800 = vmatpush1.bf16.msra.mxu0 %v9349_v56  ;;  %7333 = vmatpush1.bf16.msra.mxu1 %v9350_v57  ;;  %v9440_v56 = vld [vmem:[%s12188_s12 + $0x2cc] ss:$16 sps:$4 sm:$0xff]   ;;  %v9435_v57 = vld [vmem:[%s12188_s12 + $0x2c0] ss:$16 sps:$4 sm:$0xff]   ;;  %s9130_s23 = sshll.u32 %s13197_s21, 8  ;;  %s8303_s29 = sshll.u32 %s13197_s21, 2 }
 0x1c1   : > { %6801 = vmatprep.subr.bf16.mxu0 %v9351_v58  ;;  %7334 = vmatprep.subr.bf16.mxu1 %v9353_v59  ;;  %v9438_v58 = vld [vmem:[%s12188_s12 + $0x2c8] ss:$16 sps:$4 sm:$0xff]   ;;  %v9443_v59 = vld [vmem:[%s12188_s12 + $0x2e4] ss:$16 sps:$4 sm:$0xff]   ;;  %s12998_s27 = scalar_lea.vmem %s13190_s3, %s9130_s23  ;;  %s1848_s7 = scalar_lea.vmem %s13189_s2, %s8303_s29 }
 0x1c2   : > { %s1856_s10 = scalar_lea.vmem %s13191_s4, %s13197_s21  ;;  %s8306_s11 = sshll.u32 %s13197_s21, 1 }
 0x1c3   : > { %s1860_s14 = scalar_lea.vmem %s13192_s5, %s8306_s11 }
 0x1c4   : > { %6802 = vmatpush1.bf16.msra.mxu0 %v9355_v60  ;;  %7335 = vmatpush1.bf16.msra.mxu1 %v9356_v61  ;;  %v9446_v60 = vld [vmem:[%s12188_s12 + $0x2ec] ss:$16 sps:$4 sm:$0xff]   ;;  %v9441_v61 = vld [vmem:[%s12188_s12 + $0x2e0] ss:$16 sps:$4 sm:$0xff]  }
 0x1c5   : > { %6803 = vmatprep.subr.bf16.mxu0 %v9357_v62  ;;  %7336 = vmatprep.subr.bf16.mxu1 %v9359_v63  ;;  %v9444_v62 = vld [vmem:[%s12188_s12 + $0x2e8] ss:$16 sps:$4 sm:$0xff]   ;;  %v9449_v63 = vld [vmem:[%s12188_s12 + $0x304] ss:$16 sps:$4 sm:$0xff]  }
 0x1c8   : > { %6804 = vmatpush1.bf16.msra.mxu0 %v9361_v0  ;;  %7337 = vmatpush1.bf16.msra.mxu1 %v9362_v1  ;;  %v9452_v0 = vld [vmem:[%s12188_s12 + $0x30c] ss:$16 sps:$4 sm:$0xff]   ;;  %v9447_v1 = vld [vmem:[%s12188_s12 + $0x300] ss:$16 sps:$4 sm:$0xff]  }
 0x1c9   : > { %6805 = vmatprep.subr.bf16.mxu0 %v9363_v2  ;;  %7338 = vmatprep.subr.bf16.mxu1 %v9365_v3  ;;  %v9450_v2 = vld [vmem:[%s12188_s12 + $0x308] ss:$16 sps:$4 sm:$0xff]   ;;  %v9455_v3 = vld [vmem:[%s12188_s12 + $0x324] ss:$16 sps:$4 sm:$0xff]  }
 0x1cc   : > { %6806 = vmatpush1.bf16.msra.mxu0 %v9367_v4  ;;  %7339 = vmatpush1.bf16.msra.mxu1 %v9368_v5  ;;  %v9458_v4 = vld [vmem:[%s12188_s12 + $0x32c] ss:$16 sps:$4 sm:$0xff]   ;;  %v9453_v5 = vld [vmem:[%s12188_s12 + $0x320] ss:$16 sps:$4 sm:$0xff]  }
 0x1cd   : > { %6807 = vmatprep.subr.bf16.mxu0 %v9369_v6  ;;  %7340 = vmatprep.subr.bf16.mxu1 %v9371_v7  ;;  %v9456_v6 = vld [vmem:[%s12188_s12 + $0x328] ss:$16 sps:$4 sm:$0xff]   ;;  %v9461_v7 = vld [vmem:[%s12188_s12 + $0x344] ss:$16 sps:$4 sm:$0xff]  }
 0x1d0   : > { %6808 = vmatpush1.bf16.msra.mxu0 %v9373_v8  ;;  %7341 = vmatpush1.bf16.msra.mxu1 %v9374_v9  ;;  %v9464_v8 = vld [vmem:[%s12188_s12 + $0x34c] ss:$16 sps:$4 sm:$0xff]   ;;  %v9459_v9 = vld [vmem:[%s12188_s12 + $0x340] ss:$16 sps:$4 sm:$0xff]  }
 0x1d1   : > { %6809 = vmatprep.subr.bf16.mxu0 %v9375_v10  ;;  %7342 = vmatprep.subr.bf16.mxu1 %v9377_v11  ;;  %v9462_v10 = vld [vmem:[%s12188_s12 + $0x348] ss:$16 sps:$4 sm:$0xff]   ;;  %v9467_v11 = vld [vmem:[%s12188_s12 + $0x364] ss:$16 sps:$4 sm:$0xff]  }
 0x1d4   : > { %6810 = vmatpush1.bf16.msra.mxu0 %v9379_v12  ;;  %7343 = vmatpush1.bf16.msra.mxu1 %v9380_v13  ;;  %v9470_v12 = vld [vmem:[%s12188_s12 + $0x36c] ss:$16 sps:$4 sm:$0xff]   ;;  %v9465_v13 = vld [vmem:[%s12188_s12 + $0x360] ss:$16 sps:$4 sm:$0xff]  }
 0x1d5   : > { %6811 = vmatprep.subr.bf16.mxu0 %v9381_v14  ;;  %7344 = vmatprep.subr.bf16.mxu1 %v9383_v15  ;;  %v9468_v14 = vld [vmem:[%s12188_s12 + $0x368] ss:$16 sps:$4 sm:$0xff]   ;;  %v9473_v15 = vld [vmem:[%s12188_s12 + $0x384] ss:$16 sps:$4 sm:$0xff]  }
 0x1d8   : > { %6812 = vmatpush1.bf16.msra.mxu0 %v9385_v16  ;;  %7345 = vmatpush1.bf16.msra.mxu1 %v9386_v17  ;;  %v9476_v16 = vld [vmem:[%s12188_s12 + $0x38c] ss:$16 sps:$4 sm:$0xff]   ;;  %v9471_v17 = vld [vmem:[%s12188_s12 + $0x380] ss:$16 sps:$4 sm:$0xff]  }
 0x1d9   : > { %6813 = vmatprep.subr.bf16.mxu0 %v9387_v18  ;;  %7346 = vmatprep.subr.bf16.mxu1 %v9389_v21  ;;  %v9474_v18 = vld [vmem:[%s12188_s12 + $0x388] ss:$16 sps:$4 sm:$0xff]   ;;  %v9479_v21 = vld [vmem:[%s12188_s12 + $0x3a4] ss:$16 sps:$4 sm:$0xff]  }
 0x1dc   : > { %6814 = vmatpush1.bf16.msra.mxu0 %v9391_v22  ;;  %7347 = vmatpush1.bf16.msra.mxu1 %v9392_v23  ;;  %v9482_v22 = vld [vmem:[%s12188_s12 + $0x3ac] ss:$16 sps:$4 sm:$0xff]   ;;  %v9477_v23 = vld [vmem:[%s12188_s12 + $0x3a0] ss:$16 sps:$4 sm:$0xff]  }
 0x1dd   : > { %6815 = vmatprep.subr.bf16.mxu0 %v9393_v25  ;;  %7348 = vmatprep.subr.bf16.mxu1 %v9395_v26  ;;  %v9480_v25 = vld [vmem:[%s12188_s12 + $0x3a8] ss:$16 sps:$4 sm:$0xff]   ;;  %v9485_v26 = vld [vmem:[%s12188_s12 + $0x3c4] ss:$16 sps:$4 sm:$0xff]  }
 0x1e0   : > { %6816 = vmatpush1.bf16.msra.mxu0 %v9397_v27  ;;  %7349 = vmatpush1.bf16.msra.mxu1 %v9398_v29  ;;  %v9488_v27 = vld [vmem:[%s12188_s12 + $0x3cc] ss:$16 sps:$4 sm:$0xff]   ;;  %v2676_v29 = vcombine.high %v12186_v20, %v12186_v20  ;;  %v9497_v20 = vld [vmem:[%s12188_s12 + $0x404] ss:$16 sps:$4 sm:$0xff]  }
 0x1e1   : > { %6826 = vmatprep.subr.bf16.mxu0 %v9401_v30  ;;  %7359 = vmatprep.subr.bf16.mxu1 %v9404_v31  ;;  %v9483_v30 = vld [vmem:[%s12188_s12 + $0x3c0] ss:$16 sps:$4 sm:$0xff]   ;;  %v9486_v31 = vld [vmem:[%s12188_s12 + $0x3c8] ss:$16 sps:$4 sm:$0xff]  }
 0x1e3   : > { %6818 = vmatmul.mubr.bf16.vlgmr.msra.gmra.mrb[0].mxu0 %v12274_v34  ;;  %7351 = vmatmul.mubr.bf16.vlgmr.msra.gmra.mrb[0].mxu1 %v12274_v34 }
 0x1e4   : > { %6827 = vmatpush1.bf16.msra.mxu0 %v9399_v32  ;;  %7360 = vmatpush1.bf16.msra.mxu1 %v9402_v33  ;;  %v9491_v32 = vld [vmem:[%s12188_s12 + $0x3e4] ss:$16 sps:$4 sm:$0xff]   ;;  %v9494_v33 = vld [vmem:[%s12188_s12 + $0x3ec] ss:$16 sps:$4 sm:$0xff]  }
 0x1e5   : > { %6828 = vmatprep.subr.bf16.mxu0 %v9407_v35  ;;  %7361 = vmatprep.subr.bf16.mxu1 %v9410_v36  ;;  %v12341_v35 = vrot.slane %v2676_v29, %v12193_v24  ;;  %v9489_v36 = vld [vmem:[%s12188_s12 + $0x3e0] ss:$16 sps:$4 sm:$0xff]   ;;  %v9570_v29 = vld [vmem:[%s12188_s12 + $0x588] ss:$16 sps:$4 sm:$0xff]  }
 0x1e6   : > { %6858 = vmatprep.mubr.bf16.mxu0 %v2723_v38  ;;  %7391 = vmatprep.mubr.bf16.mxu1 %v2723_v38  ;;  %v9492_v38 = vld [vmem:[%s12188_s12 + $0x3e8] ss:$16 sps:$4 sm:$0xff]  }
 0x1e8   : > { %6829 = vmatpush1.bf16.msra.mxu0 %v9405_v39  ;;  %7362 = vmatpush1.bf16.msra.mxu1 %v9408_v28  ;;  %v9500_v39 = vld [vmem:[%s12188_s12 + $0x40c] ss:$16 sps:$4 sm:$0xff]   ;;  %v2692_v28 = vcombine.high %v12341_v35, %v12341_v35 }
 0x1e9   : > { %6830 = vmatprep.subr.bf16.mxu0 %v9413_v40  ;;  %7363 = vmatprep.subr.bf16.mxu1 %v9416_v41  ;;  %v9495_v40 = vld [vmem:[%s12188_s12 + $0x400] ss:$16 sps:$4 sm:$0xff]   ;;  %v9498_v41 = vld [vmem:[%s12188_s12 + $0x408] ss:$16 sps:$4 sm:$0xff]  }
 0x1ec   : > { %6831 = vmatpush1.bf16.msra.mxu0 %v9411_v37  ;;  %7364 = vmatpush1.bf16.msra.mxu1 %v9414_v42  ;;  %v2721_v37 = vcombine.high %v12274_v34, %v12274_v34  ;;  %v9503_v42 = vld [vmem:[%s12188_s12 + $0x424] ss:$16 sps:$4 sm:$0xff]  }
 0x1ed   : > { %6832 = vmatprep.subr.bf16.mxu0 %v9419_v43  ;;  %7365 = vmatprep.subr.bf16.mxu1 %v9422_v44  ;;  %v9506_v43 = vld [vmem:[%s12188_s12 + $0x42c] ss:$16 sps:$4 sm:$0xff]   ;;  %v12356_v44 = vrot.slane %v2692_v28, %v12193_v24  ;;  %v9509_v34 = vld [vmem:[%s12188_s12 + $0x444] ss:$16 sps:$4 sm:$0xff]  }
 0x1ee   : > { %v9587_v28 = vld [vmem:[%s12188_s12 + $0x5e4] ss:$16 sps:$4 sm:$0xff]  }
 0x1f0   : > { %6833 = vmatpush1.bf16.msra.mxu0 %v9417_v45  ;;  %7366 = vmatpush1.bf16.msra.mxu1 %v9420_v46  ;;  %v9501_v45 = vld [vmem:[%s12188_s12 + $0x420] ss:$16 sps:$4 sm:$0xff]   ;;  %v9504_v46 = vld [vmem:[%s12188_s12 + $0x428] ss:$16 sps:$4 sm:$0xff]  }
 0x1f1   : > { %6834 = vmatprep.subr.bf16.mxu0 %v9425_v47  ;;  %7367 = vmatprep.subr.bf16.mxu1 %v9428_v48  ;;  %v9512_v47 = vld [vmem:[%s12188_s12 + $0x44c] ss:$16 sps:$4 sm:$0xff]   ;;  %v9507_v48 = vld [vmem:[%s12188_s12 + $0x440] ss:$16 sps:$4 sm:$0xff]  }
 0x1f4   : > { %6835 = vmatpush1.bf16.msra.mxu0 %v9423_v49  ;;  %7368 = vmatpush1.bf16.msra.mxu1 %v9426_v50  ;;  %v9510_v49 = vld [vmem:[%s12188_s12 + $0x448] ss:$16 sps:$4 sm:$0xff]   ;;  %v9515_v50 = vld [vmem:[%s12188_s12 + $0x464] ss:$16 sps:$4 sm:$0xff]  }
 0x1f5   : > { %6836 = vmatprep.subr.bf16.mxu0 %v9431_v51  ;;  %7369 = vmatprep.subr.bf16.mxu1 %v9434_v52  ;;  %v9518_v51 = vld [vmem:[%s12188_s12 + $0x46c] ss:$16 sps:$4 sm:$0xff]   ;;  %v9513_v52 = vld [vmem:[%s12188_s12 + $0x460] ss:$16 sps:$4 sm:$0xff]  }
 0x1f8   : > { %6837 = vmatpush1.bf16.msra.mxu0 %v9429_v53  ;;  %7370 = vmatpush1.bf16.msra.mxu1 %v9432_v54  ;;  %v9516_v53 = vld [vmem:[%s12188_s12 + $0x468] ss:$16 sps:$4 sm:$0xff]   ;;  %v9521_v54 = vld [vmem:[%s12188_s12 + $0x484] ss:$16 sps:$4 sm:$0xff]  }
 0x1f9   : > { %6838 = vmatprep.subr.bf16.mxu0 %v9437_v55  ;;  %7371 = vmatprep.subr.bf16.mxu1 %v9440_v56  ;;  %v9524_v55 = vld [vmem:[%s12188_s12 + $0x48c] ss:$16 sps:$4 sm:$0xff]   ;;  %v9519_v56 = vld [vmem:[%s12188_s12 + $0x480] ss:$16 sps:$4 sm:$0xff]  }
 0x1fc   : > { %6839 = vmatpush1.bf16.msra.mxu0 %v9435_v57  ;;  %7372 = vmatpush1.bf16.msra.mxu1 %v9438_v58  ;;  %v9522_v57 = vld [vmem:[%s12188_s12 + $0x488] ss:$16 sps:$4 sm:$0xff]   ;;  %v9527_v58 = vld [vmem:[%s12188_s12 + $0x4a4] ss:$16 sps:$4 sm:$0xff]  }
 0x1fd   : > { %6840 = vmatprep.subr.bf16.mxu0 %v9443_v59  ;;  %7373 = vmatprep.subr.bf16.mxu1 %v9446_v60  ;;  %v9530_v59 = vld [vmem:[%s12188_s12 + $0x4ac] ss:$16 sps:$4 sm:$0xff]   ;;  %v9525_v60 = vld [vmem:[%s12188_s12 + $0x4a0] ss:$16 sps:$4 sm:$0xff]  }
 0x200   : > { %6841 = vmatpush1.bf16.msra.mxu0 %v9441_v61  ;;  %7374 = vmatpush1.bf16.msra.mxu1 %v9444_v62  ;;  %v9528_v61 = vld [vmem:[%s12188_s12 + $0x4a8] ss:$16 sps:$4 sm:$0xff]   ;;  %v9533_v62 = vld [vmem:[%s12188_s12 + $0x4c4] ss:$16 sps:$4 sm:$0xff]  }
 0x201   : > { %6842 = vmatprep.subr.bf16.mxu0 %v9449_v63  ;;  %7375 = vmatprep.subr.bf16.mxu1 %v9452_v0  ;;  %v9536_v63 = vld [vmem:[%s12188_s12 + $0x4cc] ss:$16 sps:$4 sm:$0xff]   ;;  %v9531_v0 = vld [vmem:[%s12188_s12 + $0x4c0] ss:$16 sps:$4 sm:$0xff]  }
 0x204   : > { %6843 = vmatpush1.bf16.msra.mxu0 %v9447_v1  ;;  %7376 = vmatpush1.bf16.msra.mxu1 %v9450_v2  ;;  %v9534_v1 = vld [vmem:[%s12188_s12 + $0x4c8] ss:$16 sps:$4 sm:$0xff]   ;;  %v9539_v2 = vld [vmem:[%s12188_s12 + $0x4e4] ss:$16 sps:$4 sm:$0xff]  }
 0x205   : > { %6844 = vmatprep.subr.bf16.mxu0 %v9455_v3  ;;  %7377 = vmatprep.subr.bf16.mxu1 %v9458_v4  ;;  %v9542_v3 = vld [vmem:[%s12188_s12 + $0x4ec] ss:$16 sps:$4 sm:$0xff]   ;;  %v9537_v4 = vld [vmem:[%s12188_s12 + $0x4e0] ss:$16 sps:$4 sm:$0xff]  }
 0x208   : > { %6845 = vmatpush1.bf16.msra.mxu0 %v9453_v5  ;;  %7378 = vmatpush1.bf16.msra.mxu1 %v9456_v6  ;;  %v9540_v5 = vld [vmem:[%s12188_s12 + $0x4e8] ss:$16 sps:$4 sm:$0xff]   ;;  %v9545_v6 = vld [vmem:[%s12188_s12 + $0x504] ss:$16 sps:$4 sm:$0xff]  }
 0x209   : > { %6846 = vmatprep.subr.bf16.mxu0 %v9461_v7  ;;  %7379 = vmatprep.subr.bf16.mxu1 %v9464_v8  ;;  %v9548_v7 = vld [vmem:[%s12188_s12 + $0x50c] ss:$16 sps:$4 sm:$0xff]   ;;  %v9543_v8 = vld [vmem:[%s12188_s12 + $0x500] ss:$16 sps:$4 sm:$0xff]  }
 0x20c   : > { %6847 = vmatpush1.bf16.msra.mxu0 %v9459_v9  ;;  %7380 = vmatpush1.bf16.msra.mxu1 %v9462_v10  ;;  %v9546_v9 = vld [vmem:[%s12188_s12 + $0x508] ss:$16 sps:$4 sm:$0xff]   ;;  %v9551_v10 = vld [vmem:[%s12188_s12 + $0x524] ss:$16 sps:$4 sm:$0xff]  }
 0x20d   : > { %6848 = vmatprep.subr.bf16.mxu0 %v9467_v11  ;;  %7381 = vmatprep.subr.bf16.mxu1 %v9470_v12  ;;  %v9554_v11 = vld [vmem:[%s12188_s12 + $0x52c] ss:$16 sps:$4 sm:$0xff]   ;;  %v9549_v12 = vld [vmem:[%s12188_s12 + $0x520] ss:$16 sps:$4 sm:$0xff]  }
 0x210   : > { %6849 = vmatpush1.bf16.msra.mxu0 %v9465_v13  ;;  %7382 = vmatpush1.bf16.msra.mxu1 %v9468_v14  ;;  %v9552_v13 = vld [vmem:[%s12188_s12 + $0x528] ss:$16 sps:$4 sm:$0xff]   ;;  %v9557_v14 = vld [vmem:[%s12188_s12 + $0x544] ss:$16 sps:$4 sm:$0xff]  }
 0x211   : > { %6850 = vmatprep.subr.bf16.mxu0 %v9473_v15  ;;  %7383 = vmatprep.subr.bf16.mxu1 %v9476_v16  ;;  %v9560_v15 = vld [vmem:[%s12188_s12 + $0x54c] ss:$16 sps:$4 sm:$0xff]   ;;  %v9555_v16 = vld [vmem:[%s12188_s12 + $0x540] ss:$16 sps:$4 sm:$0xff]  }
 0x214   : > { %6851 = vmatpush1.bf16.msra.mxu0 %v9471_v17  ;;  %7384 = vmatpush1.bf16.msra.mxu1 %v9474_v18  ;;  %v9558_v17 = vld [vmem:[%s12188_s12 + $0x548] ss:$16 sps:$4 sm:$0xff]   ;;  %v9563_v18 = vld [vmem:[%s12188_s12 + $0x564] ss:$16 sps:$4 sm:$0xff]  }
 0x215   : > { %6852 = vmatprep.subr.bf16.mxu0 %v9479_v21  ;;  %7385 = vmatprep.subr.bf16.mxu1 %v9482_v22  ;;  %v9566_v21 = vld [vmem:[%s12188_s12 + $0x56c] ss:$16 sps:$4 sm:$0xff]   ;;  %v9561_v22 = vld [vmem:[%s12188_s12 + $0x560] ss:$16 sps:$4 sm:$0xff]  }
 0x218   : > { %6853 = vmatpush1.bf16.msra.mxu0 %v9477_v23  ;;  %7386 = vmatpush1.bf16.msra.mxu1 %v9480_v25  ;;  %v9564_v23 = vld [vmem:[%s12188_s12 + $0x568] ss:$16 sps:$4 sm:$0xff]   ;;  %v9569_v25 = vld [vmem:[%s12188_s12 + $0x584] ss:$16 sps:$4 sm:$0xff]  }
 0x219   : > { %6854 = vmatprep.subr.bf16.mxu0 %v9485_v26  ;;  %7387 = vmatprep.subr.bf16.mxu1 %v9488_v27  ;;  %v9572_v26 = vld [vmem:[%s12188_s12 + $0x58c] ss:$16 sps:$4 sm:$0xff]   ;;  %v9567_v27 = vld [vmem:[%s12188_s12 + $0x580] ss:$16 sps:$4 sm:$0xff]  }
 0x21c   : > { %6855 = vmatpush1.bf16.msra.mxu0 %v9483_v30  ;;  %7388 = vmatpush1.bf16.msra.mxu1 %v9486_v31  ;;  %v9575_v30 = vld [vmem:[%s12188_s12 + $0x5a4] ss:$16 sps:$4 sm:$0xff]   ;;  %v9578_v31 = vld [vmem:[%s12188_s12 + $0x5ac] ss:$16 sps:$4 sm:$0xff]  }
 0x21d   : > { %6856 = vmatprep.subr.bf16.mxu0 %v9491_v32  ;;  %7389 = vmatprep.subr.bf16.mxu1 %v9494_v33  ;;  %v9573_v32 = vld [vmem:[%s12188_s12 + $0x5a0] ss:$16 sps:$4 sm:$0xff]   ;;  %v9576_v33 = vld [vmem:[%s12188_s12 + $0x5a8] ss:$16 sps:$4 sm:$0xff]  }
 0x220   : > { %6857 = vmatpush1.bf16.msra.mxu0 %v9489_v36  ;;  %7390 = vmatpush1.bf16.msra.mxu1 %v9492_v38  ;;  %v9581_v36 = vld [vmem:[%s12188_s12 + $0x5c4] ss:$16 sps:$4 sm:$0xff]   ;;  %v9584_v38 = vld [vmem:[%s12188_s12 + $0x5cc] ss:$16 sps:$4 sm:$0xff]  }
 0x221   : > { %6867 = vmatprep.subr.bf16.mxu0 %v9497_v20  ;;  %7400 = vmatprep.subr.bf16.mxu1 %v9500_v39  ;;  %v9579_v20 = vld [vmem:[%s12188_s12 + $0x5c0] ss:$16 sps:$4 sm:$0xff]   ;;  %v9582_v39 = vld [vmem:[%s12188_s12 + $0x5c8] ss:$16 sps:$4 sm:$0xff]  }
 0x223   : > { %6859 = vmatmul.mubr.bf16.vlgmr.msra.gmra.mrb[0].mxu0 %v2721_v37  ;;  %7392 = vmatmul.mubr.bf16.vlgmr.msra.gmra.mrb[0].mxu1 %v2721_v37  ;;  %v9588_v37 = vld [vmem:[%s12188_s12 + $0x5e8] ss:$16 sps:$4 sm:$0xff]  }
 0x224   : > { %6868 = vmatpush1.bf16.msra.mxu0 %v9495_v40  ;;  %7401 = vmatpush1.bf16.msra.mxu1 %v9498_v41  ;;  %v9590_v40 = vld [vmem:[%s12188_s12 + $0x5ec] ss:$16 sps:$4 sm:$0xff]   ;;  %v9585_v41 = vld [vmem:[%s12188_s12 + $0x5e0] ss:$16 sps:$4 sm:$0xff]  }
 0x225   : > { %6869 = vmatprep.subr.bf16.mxu0 %v9503_v42  ;;  %7402 = vmatprep.subr.bf16.mxu1 %v9506_v43  ;;  %v9594_v42 = vld [vmem:[%s12188_s12 + $0x604] ss:$16 sps:$4 sm:$0xff]   ;;  %v9597_v43 = vld [vmem:[%s12188_s12 + $0x60c] ss:$16 sps:$4 sm:$0xff]  }
 0x226   : > { %6899 = vmatprep.mubr.bf16.mxu0 %v12356_v44  ;;  %7432 = vmatprep.mubr.bf16.mxu1 %v12356_v44 }
 0x228   : > { %6870 = vmatpush1.bf16.msra.mxu0 %v9501_v45  ;;  %7403 = vmatpush1.bf16.msra.mxu1 %v9504_v46  ;;  %v9592_v45 = vld [vmem:[%s12188_s12 + $0x600] ss:$16 sps:$4 sm:$0xff]   ;;  %v9595_v46 = vld [vmem:[%s12188_s12 + $0x608] ss:$16 sps:$4 sm:$0xff]  }
 0x229   : > { %6871 = vmatprep.subr.bf16.mxu0 %v9509_v34  ;;  %7404 = vmatprep.subr.bf16.mxu1 %v9512_v47  ;;  %v12424_v34 = vrot.slane %v12341_v35, %v12193_v24  ;;  %v9600_v47 = vld [vmem:[%s12188_s12 + $0x624] ss:$16 sps:$4 sm:$0xff]   ;;  %v9601_v35 = vld [vmem:[%s12188_s12 + $0x628] ss:$16 sps:$4 sm:$0xff]  }
 0x22c   : > { %6872 = vmatpush1.bf16.msra.mxu0 %v9507_v48  ;;  %7405 = vmatpush1.bf16.msra.mxu1 %v9510_v49  ;;  %v9603_v48 = vld [vmem:[%s12188_s12 + $0x62c] ss:$16 sps:$4 sm:$0xff]   ;;  %v2724_v49 = vcombine.high %v12356_v44, %v12356_v44  ;;  %v9604_v44 = vld [vmem:[%s12188_s12 + $0x640] ss:$16 sps:$4 sm:$0xff]  }
 0x22d   : > { %6873 = vmatprep.subr.bf16.mxu0 %v9515_v50  ;;  %7406 = vmatprep.subr.bf16.mxu1 %v9518_v51  ;;  %v9598_v50 = vld [vmem:[%s12188_s12 + $0x620] ss:$16 sps:$4 sm:$0xff]   ;;  %v9606_v51 = vld [vmem:[%s12188_s12 + $0x644] ss:$16 sps:$4 sm:$0xff]  }
 0x230   : > { %6874 = vmatpush1.bf16.msra.mxu0 %v9513_v52  ;;  %7407 = vmatpush1.bf16.msra.mxu1 %v9516_v53  ;;  %v9609_v52 = vld [vmem:[%s12188_s12 + $0x64c] ss:$16 sps:$4 sm:$0xff]   ;;  %v9607_v53 = vld [vmem:[%s12188_s12 + $0x648] ss:$16 sps:$4 sm:$0xff]  }
 0x231   : > { %6875 = vmatprep.subr.bf16.mxu0 %v9521_v54  ;;  %7408 = vmatprep.subr.bf16.mxu1 %v9524_v55  ;;  %v9612_v54 = vld [vmem:[%s12188_s12 + $0x664] ss:$16 sps:$4 sm:$0xff]   ;;  %v9615_v55 = vld [vmem:[%s12188_s12 + $0x66c] ss:$16 sps:$4 sm:$0xff]  }
 0x234   : > { %6876 = vmatpush1.bf16.msra.mxu0 %v9519_v56  ;;  %7409 = vmatpush1.bf16.msra.mxu1 %v9522_v57  ;;  %v9610_v56 = vld [vmem:[%s12188_s12 + $0x660] ss:$16 sps:$4 sm:$0xff]   ;;  %v9613_v57 = vld [vmem:[%s12188_s12 + $0x668] ss:$16 sps:$4 sm:$0xff]  }
 0x235   : > { %6877 = vmatprep.subr.bf16.mxu0 %v9527_v58  ;;  %7410 = vmatprep.subr.bf16.mxu1 %v9530_v59  ;;  %v9618_v58 = vld [vmem:[%s12188_s12 + $0x684] ss:$16 sps:$4 sm:$0xff]   ;;  %v9621_v59 = vld [vmem:[%s12188_s12 + $0x68c] ss:$16 sps:$4 sm:$0xff]  }
 0x238   : > { %6878 = vmatpush1.bf16.msra.mxu0 %v9525_v60  ;;  %7411 = vmatpush1.bf16.msra.mxu1 %v9528_v61  ;;  %v9616_v60 = vld [vmem:[%s12188_s12 + $0x680] ss:$16 sps:$4 sm:$0xff]   ;;  %v9619_v61 = vld [vmem:[%s12188_s12 + $0x688] ss:$16 sps:$4 sm:$0xff]  }
 0x239   : > { %6879 = vmatprep.subr.bf16.mxu0 %v9533_v62  ;;  %7412 = vmatprep.subr.bf16.mxu1 %v9536_v63  ;;  %v9624_v62 = vld [vmem:[%s12188_s12 + $0x6a4] ss:$16 sps:$4 sm:$0xff]   ;;  %v9627_v63 = vld [vmem:[%s12188_s12 + $0x6ac] ss:$16 sps:$4 sm:$0xff]  }
 0x23c   : > { %6880 = vmatpush1.bf16.msra.mxu0 %v9531_v0  ;;  %7413 = vmatpush1.bf16.msra.mxu1 %v9534_v1  ;;  %v9622_v0 = vld [vmem:[%s12188_s12 + $0x6a0] ss:$16 sps:$4 sm:$0xff]   ;;  %v9625_v1 = vld [vmem:[%s12188_s12 + $0x6a8] ss:$16 sps:$4 sm:$0xff]  }
 0x23d   : > { %6881 = vmatprep.subr.bf16.mxu0 %v9539_v2  ;;  %7414 = vmatprep.subr.bf16.mxu1 %v9542_v3  ;;  %v9630_v2 = vld [vmem:[%s12188_s12 + $0x6c4] ss:$16 sps:$4 sm:$0xff]   ;;  %v9633_v3 = vld [vmem:[%s12188_s12 + $0x6cc] ss:$16 sps:$4 sm:$0xff]  }
 0x240   : > { %6882 = vmatpush1.bf16.msra.mxu0 %v9537_v4  ;;  %7415 = vmatpush1.bf16.msra.mxu1 %v9540_v5  ;;  %v9628_v4 = vld [vmem:[%s12188_s12 + $0x6c0] ss:$16 sps:$4 sm:$0xff]   ;;  %v9631_v5 = vld [vmem:[%s12188_s12 + $0x6c8] ss:$16 sps:$4 sm:$0xff]  }
 0x241   : > { %6883 = vmatprep.subr.bf16.mxu0 %v9545_v6  ;;  %7416 = vmatprep.subr.bf16.mxu1 %v9548_v7  ;;  %v9636_v6 = vld [vmem:[%s12188_s12 + $0x6e4] ss:$16 sps:$4 sm:$0xff]   ;;  %v9639_v7 = vld [vmem:[%s12188_s12 + $0x6ec] ss:$16 sps:$4 sm:$0xff]  }
 0x244   : > { %6884 = vmatpush1.bf16.msra.mxu0 %v9543_v8  ;;  %7417 = vmatpush1.bf16.msra.mxu1 %v9546_v9  ;;  %v9634_v8 = vld [vmem:[%s12188_s12 + $0x6e0] ss:$16 sps:$4 sm:$0xff]   ;;  %v9637_v9 = vld [vmem:[%s12188_s12 + $0x6e8] ss:$16 sps:$4 sm:$0xff]  }
 0x245   : > { %6885 = vmatprep.subr.bf16.mxu0 %v9551_v10  ;;  %7418 = vmatprep.subr.bf16.mxu1 %v9554_v11  ;;  %v9642_v10 = vld [vmem:[%s12188_s12 + $0x704] ss:$16 sps:$4 sm:$0xff]   ;;  %v9645_v11 = vld [vmem:[%s12188_s12 + $0x70c] ss:$16 sps:$4 sm:$0xff]  }
 0x248   : > { %6886 = vmatpush1.bf16.msra.mxu0 %v9549_v12  ;;  %7419 = vmatpush1.bf16.msra.mxu1 %v9552_v13  ;;  %v9640_v12 = vld [vmem:[%s12188_s12 + $0x700] ss:$16 sps:$4 sm:$0xff]   ;;  %v9643_v13 = vld [vmem:[%s12188_s12 + $0x708] ss:$16 sps:$4 sm:$0xff]  }
 0x249   : > { %6887 = vmatprep.subr.bf16.mxu0 %v9557_v14  ;;  %7420 = vmatprep.subr.bf16.mxu1 %v9560_v15  ;;  %v9648_v14 = vld [vmem:[%s12188_s12 + $0x724] ss:$16 sps:$4 sm:$0xff]   ;;  %v9651_v15 = vld [vmem:[%s12188_s12 + $0x72c] ss:$16 sps:$4 sm:$0xff]  }
 0x24c   : > { %6888 = vmatpush1.bf16.msra.mxu0 %v9555_v16  ;;  %7421 = vmatpush1.bf16.msra.mxu1 %v9558_v17  ;;  %v9646_v16 = vld [vmem:[%s12188_s12 + $0x720] ss:$16 sps:$4 sm:$0xff]   ;;  %v9649_v17 = vld [vmem:[%s12188_s12 + $0x728] ss:$16 sps:$4 sm:$0xff]  }
 0x24d   : > { %6889 = vmatprep.subr.bf16.mxu0 %v9563_v18  ;;  %7422 = vmatprep.subr.bf16.mxu1 %v9566_v21  ;;  %v9654_v18 = vld [vmem:[%s12188_s12 + $0x744] ss:$16 sps:$4 sm:$0xff]   ;;  %v9657_v21 = vld [vmem:[%s12188_s12 + $0x74c] ss:$16 sps:$4 sm:$0xff]  }
 0x250   : > { %6890 = vmatpush1.bf16.msra.mxu0 %v9561_v22  ;;  %7423 = vmatpush1.bf16.msra.mxu1 %v9564_v23  ;;  %v9652_v22 = vld [vmem:[%s12188_s12 + $0x740] ss:$16 sps:$4 sm:$0xff]   ;;  %v9655_v23 = vld [vmem:[%s12188_s12 + $0x748] ss:$16 sps:$4 sm:$0xff]  }
 0x251   : > { %6891 = vmatprep.subr.bf16.mxu0 %v9569_v25  ;;  %7424 = vmatprep.subr.bf16.mxu1 %v9572_v26  ;;  %v9660_v25 = vld [vmem:[%s12188_s12 + $0x764] ss:$16 sps:$4 sm:$0xff]   ;;  %v9663_v26 = vld [vmem:[%s12188_s12 + $0x76c] ss:$16 sps:$4 sm:$0xff]  }
 0x254   : > { %6892 = vmatpush1.bf16.msra.mxu0 %v9567_v27  ;;  %7425 = vmatpush1.bf16.msra.mxu1 %v9570_v29  ;;  %v9658_v27 = vld [vmem:[%s12188_s12 + $0x760] ss:$16 sps:$4 sm:$0xff]   ;;  %v9661_v29 = vld [vmem:[%s12188_s12 + $0x768] ss:$16 sps:$4 sm:$0xff]  }
 0x255   : > { %6893 = vmatprep.subr.bf16.mxu0 %v9575_v30  ;;  %7426 = vmatprep.subr.bf16.mxu1 %v9578_v31  ;;  %v9666_v30 = vld [vmem:[%s12188_s12 + $0x784] ss:$16 sps:$4 sm:$0xff]   ;;  %v9669_v31 = vld [vmem:[%s12188_s12 + $0x78c] ss:$16 sps:$4 sm:$0xff]  }
 0x258   : > { %6894 = vmatpush1.bf16.msra.mxu0 %v9573_v32  ;;  %7427 = vmatpush1.bf16.msra.mxu1 %v9576_v33  ;;  %v9664_v32 = vld [vmem:[%s12188_s12 + $0x780] ss:$16 sps:$4 sm:$0xff]   ;;  %v9667_v33 = vld [vmem:[%s12188_s12 + $0x788] ss:$16 sps:$4 sm:$0xff]  }
 0x259   : > { %6895 = vmatprep.subr.bf16.mxu0 %v9581_v36  ;;  %7428 = vmatprep.subr.bf16.mxu1 %v9584_v38  ;;  %v9672_v36 = vld [vmem:[%s12188_s12 + $0x7a4] ss:$16 sps:$4 sm:$0xff]   ;;  %v9675_v38 = vld [vmem:[%s12188_s12 + $0x7ac] ss:$16 sps:$4 sm:$0xff]  }
 0x25c   : > { %6896 = vmatpush1.bf16.msra.mxu0 %v9579_v20  ;;  %7429 = vmatpush1.bf16.msra.mxu1 %v9582_v39  ;;  %v9670_v20 = vld [vmem:[%s12188_s12 + $0x7a0] ss:$16 sps:$4 sm:$0xff]   ;;  %v9673_v39 = vld [vmem:[%s12188_s12 + $0x7a8] ss:$16 sps:$4 sm:$0xff]  }
 0x25d   : > { %6897 = vmatprep.subr.bf16.mxu0 %v9587_v28  ;;  %7430 = vmatprep.subr.bf16.mxu1 %v9590_v40  ;;  %v9678_v28 = vld [vmem:[%s12188_s12 + $0x7c4] ss:$16 sps:$4 sm:$0xff]   ;;  %v9681_v40 = vld [vmem:[%s12188_s12 + $0x7cc] ss:$16 sps:$4 sm:$0xff]  }
 0x260   : > { %6898 = vmatpush1.bf16.msra.mxu0 %v9585_v41  ;;  %7431 = vmatpush1.bf16.msra.mxu1 %v9588_v37  ;;  %v9676_v41 = vld [vmem:[%s12188_s12 + $0x7c0] ss:$16 sps:$4 sm:$0xff]   ;;  %v12488_v37 = vld.sshfl [vmem:[%s13187_s0 + $0x8] sm:$0xff pattern:$0x75316420] }
 0x261   : > { %6908 = vmatprep.subr.bf16.mxu0 %v9594_v42  ;;  %7441 = vmatprep.subr.bf16.mxu1 %v9597_v43  ;;  %v9679_v42 = vld [vmem:[%s12188_s12 + $0x7c8] ss:$16 sps:$4 sm:$0xff]   ;;  %v9684_v43 = vld [vmem:[%s12188_s12 + $0x7e4] ss:$16 sps:$4 sm:$0xff]  }
 0x263   : > { %6900 = vmatmul.mubr.bf16.vlgmr.msra.gmra.mrb[0].mxu0 %v12424_v34  ;;  %7433 = vmatmul.mubr.bf16.vlgmr.msra.gmra.mrb[0].mxu1 %v12424_v34 }
 0x264   : > { %6909 = vmatpush1.bf16.msra.mxu0 %v9592_v45  ;;  %7442 = vmatpush1.bf16.msra.mxu1 %v9595_v46  ;;  %v9687_v45 = vld [vmem:[%s12188_s12 + $0x7ec] ss:$16 sps:$4 sm:$0xff]   ;;  %v9682_v46 = vld [vmem:[%s12188_s12 + $0x7e0] ss:$16 sps:$4 sm:$0xff]  }
 0x265   : > { %6910 = vmatprep.subr.bf16.mxu0 %v9600_v47  ;;  %7443 = vmatprep.subr.bf16.mxu1 %v9603_v48  ;;  %v9685_v47 = vld [vmem:[%s12188_s12 + $0x7e8] ss:$16 sps:$4 sm:$0xff]   ;;  %v9690_v48 = vld [vmem:[%s12188_s12 + $0x804] ss:$16 sps:$4 sm:$0xff]  }
 0x266   : > { %6940 = vmatprep.mubr.bf16.mxu0 %v2724_v49  ;;  %7473 = vmatprep.mubr.bf16.mxu1 %v2724_v49  ;;  %v9693_v49 = vld [vmem:[%s12188_s12 + $0x80c] ss:$16 sps:$4 sm:$0xff]  }
 0x268   : > { %6911 = vmatpush1.bf16.msra.mxu0 %v9598_v50  ;;  %7444 = vmatpush1.bf16.msra.mxu1 %v9601_v35  ;;  %v2740_v50 = vcombine.high %v12488_v37, %v12488_v37  ;;  %v9688_v35 = vld [vmem:[%s12188_s12 + $0x800] ss:$16 sps:$4 sm:$0xff]  }
 0x269   : > { %6912 = vmatprep.subr.bf16.mxu0 %v9606_v51  ;;  %7445 = vmatprep.subr.bf16.mxu1 %v9609_v52  ;;  %v2722_v51 = vcombine.high %v12424_v34, %v12424_v34  ;;  %v9691_v52 = vld [vmem:[%s12188_s12 + $0x808] ss:$16 sps:$4 sm:$0xff]   ;;  %v9694_v34 = vld [vmem:[%s12188_s12 + $0x820] ss:$16 sps:$4 sm:$0xff]  }
 0x26c   : > { %6913 = vmatpush1.bf16.msra.mxu0 %v9604_v44  ;;  %7446 = vmatpush1.bf16.msra.mxu1 %v9607_v53  ;;  %v9696_v44 = vld [vmem:[%s12188_s12 + $0x824] ss:$16 sps:$4 sm:$0xff]   ;;  %v9699_v53 = vld [vmem:[%s12188_s12 + $0x82c] ss:$16 sps:$4 sm:$0xff]  }
 0x26d   : > { %6914 = vmatprep.subr.bf16.mxu0 %v9612_v54  ;;  %7447 = vmatprep.subr.bf16.mxu1 %v9615_v55  ;;  %v12506_v54 = vrot.slane %v2740_v50, %v12193_v24  ;;  %v9697_v55 = vld [vmem:[%s12188_s12 + $0x828] ss:$16 sps:$4 sm:$0xff]   ;;  %v9780_v50 = vld [vmem:[%s12188_s12 + $0x9e4] ss:$16 sps:$4 sm:$0xff]  }
 0x270   : > { %6915 = vmatpush1.bf16.msra.mxu0 %v9610_v56  ;;  %7448 = vmatpush1.bf16.msra.mxu1 %v9613_v57  ;;  %v9702_v56 = vld [vmem:[%s12188_s12 + $0x844] ss:$16 sps:$4 sm:$0xff]   ;;  %v9705_v57 = vld [vmem:[%s12188_s12 + $0x84c] ss:$16 sps:$4 sm:$0xff]  }
 0x271   : > { %6916 = vmatprep.subr.bf16.mxu0 %v9618_v58  ;;  %7449 = vmatprep.subr.bf16.mxu1 %v9621_v59  ;;  %v9700_v58 = vld [vmem:[%s12188_s12 + $0x840] ss:$16 sps:$4 sm:$0xff]   ;;  %v9703_v59 = vld [vmem:[%s12188_s12 + $0x848] ss:$16 sps:$4 sm:$0xff]  }
 0x274   : > { %6917 = vmatpush1.bf16.msra.mxu0 %v9616_v60  ;;  %7450 = vmatpush1.bf16.msra.mxu1 %v9619_v61  ;;  %v9708_v60 = vld [vmem:[%s12188_s12 + $0x864] ss:$16 sps:$4 sm:$0xff]   ;;  %v9711_v61 = vld [vmem:[%s12188_s12 + $0x86c] ss:$16 sps:$4 sm:$0xff]  }
 0x275   : > { %6918 = vmatprep.subr.bf16.mxu0 %v9624_v62  ;;  %7451 = vmatprep.subr.bf16.mxu1 %v9627_v63  ;;  %v9706_v62 = vld [vmem:[%s12188_s12 + $0x860] ss:$16 sps:$4 sm:$0xff]   ;;  %v9709_v63 = vld [vmem:[%s12188_s12 + $0x868] ss:$16 sps:$4 sm:$0xff]  }
 0x278   : > { %6919 = vmatpush1.bf16.msra.mxu0 %v9622_v0  ;;  %7452 = vmatpush1.bf16.msra.mxu1 %v9625_v1  ;;  %v9714_v0 = vld [vmem:[%s12188_s12 + $0x884] ss:$16 sps:$4 sm:$0xff]   ;;  %v9717_v1 = vld [vmem:[%s12188_s12 + $0x88c] ss:$16 sps:$4 sm:$0xff]  }
 0x279   : > { %6920 = vmatprep.subr.bf16.mxu0 %v9630_v2  ;;  %7453 = vmatprep.subr.bf16.mxu1 %v9633_v3  ;;  %v9712_v2 = vld [vmem:[%s12188_s12 + $0x880] ss:$16 sps:$4 sm:$0xff]   ;;  %v9715_v3 = vld [vmem:[%s12188_s12 + $0x888] ss:$16 sps:$4 sm:$0xff]  }
 0x27c   : > { %6921 = vmatpush1.bf16.msra.mxu0 %v9628_v4  ;;  %7454 = vmatpush1.bf16.msra.mxu1 %v9631_v5  ;;  %v9720_v4 = vld [vmem:[%s12188_s12 + $0x8a4] ss:$16 sps:$4 sm:$0xff]   ;;  %v9723_v5 = vld [vmem:[%s12188_s12 + $0x8ac] ss:$16 sps:$4 sm:$0xff]  }
 0x27d   : > { %6922 = vmatprep.subr.bf16.mxu0 %v9636_v6  ;;  %7455 = vmatprep.subr.bf16.mxu1 %v9639_v7  ;;  %v9718_v6 = vld [vmem:[%s12188_s12 + $0x8a0] ss:$16 sps:$4 sm:$0xff]   ;;  %v9721_v7 = vld [vmem:[%s12188_s12 + $0x8a8] ss:$16 sps:$4 sm:$0xff]  }
 0x280   : > { %6923 = vmatpush1.bf16.msra.mxu0 %v9634_v8  ;;  %7456 = vmatpush1.bf16.msra.mxu1 %v9637_v9  ;;  %v9726_v8 = vld [vmem:[%s12188_s12 + $0x8c4] ss:$16 sps:$4 sm:$0xff]   ;;  %v9729_v9 = vld [vmem:[%s12188_s12 + $0x8cc] ss:$16 sps:$4 sm:$0xff]  }
 0x281   : > { %6924 = vmatprep.subr.bf16.mxu0 %v9642_v10  ;;  %7457 = vmatprep.subr.bf16.mxu1 %v9645_v11  ;;  %v9724_v10 = vld [vmem:[%s12188_s12 + $0x8c0] ss:$16 sps:$4 sm:$0xff]   ;;  %v9727_v11 = vld [vmem:[%s12188_s12 + $0x8c8] ss:$16 sps:$4 sm:$0xff]  }
 0x284   : > { %6925 = vmatpush1.bf16.msra.mxu0 %v9640_v12  ;;  %7458 = vmatpush1.bf16.msra.mxu1 %v9643_v13  ;;  %v9732_v12 = vld [vmem:[%s12188_s12 + $0x8e4] ss:$16 sps:$4 sm:$0xff]   ;;  %v9735_v13 = vld [vmem:[%s12188_s12 + $0x8ec] ss:$16 sps:$4 sm:$0xff]  }
 0x285   : > { %6926 = vmatprep.subr.bf16.mxu0 %v9648_v14  ;;  %7459 = vmatprep.subr.bf16.mxu1 %v9651_v15  ;;  %v9730_v14 = vld [vmem:[%s12188_s12 + $0x8e0] ss:$16 sps:$4 sm:$0xff]   ;;  %v9733_v15 = vld [vmem:[%s12188_s12 + $0x8e8] ss:$16 sps:$4 sm:$0xff]  }
 0x288   : > { %6927 = vmatpush1.bf16.msra.mxu0 %v9646_v16  ;;  %7460 = vmatpush1.bf16.msra.mxu1 %v9649_v17  ;;  %v9738_v16 = vld [vmem:[%s12188_s12 + $0x904] ss:$16 sps:$4 sm:$0xff]   ;;  %v9741_v17 = vld [vmem:[%s12188_s12 + $0x90c] ss:$16 sps:$4 sm:$0xff]  }
 0x289   : > { %6928 = vmatprep.subr.bf16.mxu0 %v9654_v18  ;;  %7461 = vmatprep.subr.bf16.mxu1 %v9657_v21  ;;  %v9736_v18 = vld [vmem:[%s12188_s12 + $0x900] ss:$16 sps:$4 sm:$0xff]   ;;  %v9739_v21 = vld [vmem:[%s12188_s12 + $0x908] ss:$16 sps:$4 sm:$0xff]  }
 0x28c   : > { %6929 = vmatpush1.bf16.msra.mxu0 %v9652_v22  ;;  %7462 = vmatpush1.bf16.msra.mxu1 %v9655_v23  ;;  %v9744_v22 = vld [vmem:[%s12188_s12 + $0x924] ss:$16 sps:$4 sm:$0xff]   ;;  %v9747_v23 = vld [vmem:[%s12188_s12 + $0x92c] ss:$16 sps:$4 sm:$0xff]  }
 0x28d   : > { %6930 = vmatprep.subr.bf16.mxu0 %v9660_v25  ;;  %7463 = vmatprep.subr.bf16.mxu1 %v9663_v26  ;;  %v9742_v25 = vld [vmem:[%s12188_s12 + $0x920] ss:$16 sps:$4 sm:$0xff]   ;;  %v9745_v26 = vld [vmem:[%s12188_s12 + $0x928] ss:$16 sps:$4 sm:$0xff]  }
 0x290   : > { %6931 = vmatpush1.bf16.msra.mxu0 %v9658_v27  ;;  %7464 = vmatpush1.bf16.msra.mxu1 %v9661_v29  ;;  %v9750_v27 = vld [vmem:[%s12188_s12 + $0x944] ss:$16 sps:$4 sm:$0xff]   ;;  %v9753_v29 = vld [vmem:[%s12188_s12 + $0x94c] ss:$16 sps:$4 sm:$0xff]  }
 0x291   : > { %6932 = vmatprep.subr.bf16.mxu0 %v9666_v30  ;;  %7465 = vmatprep.subr.bf16.mxu1 %v9669_v31  ;;  %v9748_v30 = vld [vmem:[%s12188_s12 + $0x940] ss:$16 sps:$4 sm:$0xff]   ;;  %v9751_v31 = vld [vmem:[%s12188_s12 + $0x948] ss:$16 sps:$4 sm:$0xff]  }
 0x294   : > { %6933 = vmatpush1.bf16.msra.mxu0 %v9664_v32  ;;  %7466 = vmatpush1.bf16.msra.mxu1 %v9667_v33  ;;  %v9756_v32 = vld [vmem:[%s12188_s12 + $0x964] ss:$16 sps:$4 sm:$0xff]   ;;  %v9759_v33 = vld [vmem:[%s12188_s12 + $0x96c] ss:$16 sps:$4 sm:$0xff]  }
 0x295   : > { %6934 = vmatprep.subr.bf16.mxu0 %v9672_v36  ;;  %7467 = vmatprep.subr.bf16.mxu1 %v9675_v38  ;;  %v9754_v36 = vld [vmem:[%s12188_s12 + $0x960] ss:$16 sps:$4 sm:$0xff]   ;;  %v9757_v38 = vld [vmem:[%s12188_s12 + $0x968] ss:$16 sps:$4 sm:$0xff]  }
 0x298   : > { %6935 = vmatpush1.bf16.msra.mxu0 %v9670_v20  ;;  %7468 = vmatpush1.bf16.msra.mxu1 %v9673_v39  ;;  %v9762_v20 = vld [vmem:[%s12188_s12 + $0x984] ss:$16 sps:$4 sm:$0xff]   ;;  %v9765_v39 = vld [vmem:[%s12188_s12 + $0x98c] ss:$16 sps:$4 sm:$0xff]  }
 0x299   : > { %6936 = vmatprep.subr.bf16.mxu0 %v9678_v28  ;;  %7469 = vmatprep.subr.bf16.mxu1 %v9681_v40  ;;  %v9760_v28 = vld [vmem:[%s12188_s12 + $0x980] ss:$16 sps:$4 sm:$0xff]   ;;  %v9763_v40 = vld [vmem:[%s12188_s12 + $0x988] ss:$16 sps:$4 sm:$0xff]  }
 0x29c   : > { %6937 = vmatpush1.bf16.msra.mxu0 %v9676_v41  ;;  %7470 = vmatpush1.bf16.msra.mxu1 %v9679_v42  ;;  %v9768_v41 = vld [vmem:[%s12188_s12 + $0x9a4] ss:$16 sps:$4 sm:$0xff]   ;;  %v9771_v42 = vld [vmem:[%s12188_s12 + $0x9ac] ss:$16 sps:$4 sm:$0xff]  }
 0x29d   : > { %6938 = vmatprep.subr.bf16.mxu0 %v9684_v43  ;;  %7471 = vmatprep.subr.bf16.mxu1 %v9687_v45  ;;  %v9766_v43 = vld [vmem:[%s12188_s12 + $0x9a0] ss:$16 sps:$4 sm:$0xff]   ;;  %v9769_v45 = vld [vmem:[%s12188_s12 + $0x9a8] ss:$16 sps:$4 sm:$0xff]  }
 0x2a0   : > { %6939 = vmatpush1.bf16.msra.mxu0 %v9682_v46  ;;  %7472 = vmatpush1.bf16.msra.mxu1 %v9685_v47  ;;  %v9774_v46 = vld [vmem:[%s12188_s12 + $0x9c4] ss:$16 sps:$4 sm:$0xff]   ;;  %v9777_v47 = vld [vmem:[%s12188_s12 + $0x9cc] ss:$16 sps:$4 sm:$0xff]  }
 0x2a1   : > { %6949 = vmatprep.subr.bf16.mxu0 %v9690_v48  ;;  %7482 = vmatprep.subr.bf16.mxu1 %v9693_v49  ;;  %v9772_v48 = vld [vmem:[%s12188_s12 + $0x9c0] ss:$16 sps:$4 sm:$0xff]   ;;  %v9775_v49 = vld [vmem:[%s12188_s12 + $0x9c8] ss:$16 sps:$4 sm:$0xff]  }
 0x2a3   : > { %6941 = vmatmul.mubr.bf16.vlgmr.msra.gmra.mrb[0].mxu0 %v2722_v51  ;;  %7474 = vmatmul.mubr.bf16.vlgmr.msra.gmra.mrb[0].mxu1 %v2722_v51  ;;  %v9778_v51 = vld [vmem:[%s12188_s12 + $0x9e0] ss:$16 sps:$4 sm:$0xff]  }
 0x2a4   : > { %6950 = vmatpush1.bf16.msra.mxu0 %v9688_v35  ;;  %7483 = vmatpush1.bf16.msra.mxu1 %v9691_v52  ;;  %v9783_v35 = vld [vmem:[%s12188_s12 + $0x9ec] ss:$16 sps:$4 sm:$0xff]   ;;  %v9781_v52 = vld [vmem:[%s12188_s12 + $0x9e8] ss:$16 sps:$4 sm:$0xff]  }
 0x2a5   : > { %6951 = vmatprep.subr.bf16.mxu0 %v9696_v44  ;;  %7484 = vmatprep.subr.bf16.mxu1 %v9699_v53  ;;  %v9786_v44 = vld [vmem:[%s12188_s12 + $0xa04] ss:$16 sps:$4 sm:$0xff]   ;;  %v9789_v53 = vld [vmem:[%s12188_s12 + $0xa0c] ss:$16 sps:$4 sm:$0xff]  }
 0x2a6   : > { %6981 = vmatprep.mubr.bf16.mxu0 %v12506_v54  ;;  %7514 = vmatprep.mubr.bf16.mxu1 %v12506_v54 }
 0x2a8   : > { %6952 = vmatpush1.bf16.msra.mxu0 %v9694_v34  ;;  %7485 = vmatpush1.bf16.msra.mxu1 %v9697_v55  ;;  %v12572_v34 = vrot.slane %v12488_v37, %v12193_v24  ;;  %v9784_v55 = vld [vmem:[%s12188_s12 + $0xa00] ss:$16 sps:$4 sm:$0xff]  }
 0x2a9   : > { %6953 = vmatprep.subr.bf16.mxu0 %v9702_v56  ;;  %7486 = vmatprep.subr.bf16.mxu1 %v9705_v57  ;;  %v9787_v56 = vld [vmem:[%s12188_s12 + $0xa08] ss:$16 sps:$4 sm:$0xff]   ;;  %v9792_v57 = vld [vmem:[%s12188_s12 + $0xa24] ss:$16 sps:$4 sm:$0xff]   ;;  %v9790_v37 = vld [vmem:[%s12188_s12 + $0xa20] ss:$16 sps:$4 sm:$0xff]  }
 0x2ac   : > { %6954 = vmatpush1.bf16.msra.mxu0 %v9700_v58  ;;  %7487 = vmatpush1.bf16.msra.mxu1 %v9703_v59  ;;  %v9795_v58 = vld [vmem:[%s12188_s12 + $0xa2c] ss:$16 sps:$4 sm:$0xff]   ;;  %v2772_v59 = vcombine.high %v12506_v54, %v12506_v54  ;;  %v9796_v54 = vld [vmem:[%s12188_s12 + $0xa40] ss:$16 sps:$4 sm:$0xff]  }
 0x2ad   : > { %6955 = vmatprep.subr.bf16.mxu0 %v9708_v60  ;;  %7488 = vmatprep.subr.bf16.mxu1 %v9711_v61  ;;  %v9793_v60 = vld [vmem:[%s12188_s12 + $0xa28] ss:$16 sps:$4 sm:$0xff]   ;;  %v9798_v61 = vld [vmem:[%s12188_s12 + $0xa44] ss:$16 sps:$4 sm:$0xff]  }
 0x2b0   : > { %6956 = vmatpush1.bf16.msra.mxu0 %v9706_v62  ;;  %7489 = vmatpush1.bf16.msra.mxu1 %v9709_v63  ;;  %v9801_v62 = vld [vmem:[%s12188_s12 + $0xa4c] ss:$16 sps:$4 sm:$0xff]   ;;  %v9799_v63 = vld [vmem:[%s12188_s12 + $0xa48] ss:$16 sps:$4 sm:$0xff]  }
 0x2b1   : > { %6957 = vmatprep.subr.bf16.mxu0 %v9714_v0  ;;  %7490 = vmatprep.subr.bf16.mxu1 %v9717_v1  ;;  %v9804_v0 = vld [vmem:[%s12188_s12 + $0xa64] ss:$16 sps:$4 sm:$0xff]   ;;  %v9807_v1 = vld [vmem:[%s12188_s12 + $0xa6c] ss:$16 sps:$4 sm:$0xff]  }
 0x2b4   : > { %6958 = vmatpush1.bf16.msra.mxu0 %v9712_v2  ;;  %7491 = vmatpush1.bf16.msra.mxu1 %v9715_v3  ;;  %v9802_v2 = vld [vmem:[%s12188_s12 + $0xa60] ss:$16 sps:$4 sm:$0xff]   ;;  %v9805_v3 = vld [vmem:[%s12188_s12 + $0xa68] ss:$16 sps:$4 sm:$0xff]  }
 0x2b5   : > { %6959 = vmatprep.subr.bf16.mxu0 %v9720_v4  ;;  %7492 = vmatprep.subr.bf16.mxu1 %v9723_v5  ;;  %v9810_v4 = vld [vmem:[%s12188_s12 + $0xa84] ss:$16 sps:$4 sm:$0xff]   ;;  %v9813_v5 = vld [vmem:[%s12188_s12 + $0xa8c] ss:$16 sps:$4 sm:$0xff]  }
 0x2b8   : > { %6960 = vmatpush1.bf16.msra.mxu0 %v9718_v6  ;;  %7493 = vmatpush1.bf16.msra.mxu1 %v9721_v7  ;;  %v9808_v6 = vld [vmem:[%s12188_s12 + $0xa80] ss:$16 sps:$4 sm:$0xff]   ;;  %v9811_v7 = vld [vmem:[%s12188_s12 + $0xa88] ss:$16 sps:$4 sm:$0xff]  }
 0x2b9   : > { %6961 = vmatprep.subr.bf16.mxu0 %v9726_v8  ;;  %7494 = vmatprep.subr.bf16.mxu1 %v9729_v9  ;;  %v9816_v8 = vld [vmem:[%s12188_s12 + $0xaa4] ss:$16 sps:$4 sm:$0xff]   ;;  %v9819_v9 = vld [vmem:[%s12188_s12 + $0xaac] ss:$16 sps:$4 sm:$0xff]  }
 0x2bc   : > { %6962 = vmatpush1.bf16.msra.mxu0 %v9724_v10  ;;  %7495 = vmatpush1.bf16.msra.mxu1 %v9727_v11  ;;  %v9814_v10 = vld [vmem:[%s12188_s12 + $0xaa0] ss:$16 sps:$4 sm:$0xff]   ;;  %v9817_v11 = vld [vmem:[%s12188_s12 + $0xaa8] ss:$16 sps:$4 sm:$0xff]  }
 0x2bd   : > { %6963 = vmatprep.subr.bf16.mxu0 %v9732_v12  ;;  %7496 = vmatprep.subr.bf16.mxu1 %v9735_v13  ;;  %v9822_v12 = vld [vmem:[%s12188_s12 + $0xac4] ss:$16 sps:$4 sm:$0xff]   ;;  %v9825_v13 = vld [vmem:[%s12188_s12 + $0xacc] ss:$16 sps:$4 sm:$0xff]  }
 0x2c0   : > { %6964 = vmatpush1.bf16.msra.mxu0 %v9730_v14  ;;  %7497 = vmatpush1.bf16.msra.mxu1 %v9733_v15  ;;  %v9820_v14 = vld [vmem:[%s12188_s12 + $0xac0] ss:$16 sps:$4 sm:$0xff]   ;;  %v9823_v15 = vld [vmem:[%s12188_s12 + $0xac8] ss:$16 sps:$4 sm:$0xff]  }
 0x2c1   : > { %6965 = vmatprep.subr.bf16.mxu0 %v9738_v16  ;;  %7498 = vmatprep.subr.bf16.mxu1 %v9741_v17  ;;  %v9828_v16 = vld [vmem:[%s12188_s12 + $0xae4] ss:$16 sps:$4 sm:$0xff]   ;;  %v9831_v17 = vld [vmem:[%s12188_s12 + $0xaec] ss:$16 sps:$4 sm:$0xff]  }
 0x2c4   : > { %6966 = vmatpush1.bf16.msra.mxu0 %v9736_v18  ;;  %7499 = vmatpush1.bf16.msra.mxu1 %v9739_v21  ;;  %v9826_v18 = vld [vmem:[%s12188_s12 + $0xae0] ss:$16 sps:$4 sm:$0xff]   ;;  %v9829_v21 = vld [vmem:[%s12188_s12 + $0xae8] ss:$16 sps:$4 sm:$0xff]  }
 0x2c5   : > { %6967 = vmatprep.subr.bf16.mxu0 %v9744_v22  ;;  %7500 = vmatprep.subr.bf16.mxu1 %v9747_v23  ;;  %v9834_v22 = vld [vmem:[%s12188_s12 + $0xb04] ss:$16 sps:$4 sm:$0xff]   ;;  %v9837_v23 = vld [vmem:[%s12188_s12 + $0xb0c] ss:$16 sps:$4 sm:$0xff]  }
 0x2c8   : > { %6968 = vmatpush1.bf16.msra.mxu0 %v9742_v25  ;;  %7501 = vmatpush1.bf16.msra.mxu1 %v9745_v26  ;;  %v9832_v25 = vld [vmem:[%s12188_s12 + $0xb00] ss:$16 sps:$4 sm:$0xff]   ;;  %v9835_v26 = vld [vmem:[%s12188_s12 + $0xb08] ss:$16 sps:$4 sm:$0xff]  }
 0x2c9   : > { %6969 = vmatprep.subr.bf16.mxu0 %v9750_v27  ;;  %7502 = vmatprep.subr.bf16.mxu1 %v9753_v29  ;;  %v9840_v27 = vld [vmem:[%s12188_s12 + $0xb24] ss:$16 sps:$4 sm:$0xff]   ;;  %v9843_v29 = vld [vmem:[%s12188_s12 + $0xb2c] ss:$16 sps:$4 sm:$0xff]  }
 0x2cc   : > { %6970 = vmatpush1.bf16.msra.mxu0 %v9748_v30  ;;  %7503 = vmatpush1.bf16.msra.mxu1 %v9751_v31  ;;  %v9838_v30 = vld [vmem:[%s12188_s12 + $0xb20] ss:$16 sps:$4 sm:$0xff]   ;;  %v9841_v31 = vld [vmem:[%s12188_s12 + $0xb28] ss:$16 sps:$4 sm:$0xff]  }
 0x2cd   : > { %6971 = vmatprep.subr.bf16.mxu0 %v9756_v32  ;;  %7504 = vmatprep.subr.bf16.mxu1 %v9759_v33  ;;  %v9846_v32 = vld [vmem:[%s12188_s12 + $0xb44] ss:$16 sps:$4 sm:$0xff]   ;;  %v9849_v33 = vld [vmem:[%s12188_s12 + $0xb4c] ss:$16 sps:$4 sm:$0xff]  }
 0x2d0   : > { %6972 = vmatpush1.bf16.msra.mxu0 %v9754_v36  ;;  %7505 = vmatpush1.bf16.msra.mxu1 %v9757_v38  ;;  %v9844_v36 = vld [vmem:[%s12188_s12 + $0xb40] ss:$16 sps:$4 sm:$0xff]   ;;  %v9847_v38 = vld [vmem:[%s12188_s12 + $0xb48] ss:$16 sps:$4 sm:$0xff]  }
 0x2d1   : > { %6973 = vmatprep.subr.bf16.mxu0 %v9762_v20  ;;  %7506 = vmatprep.subr.bf16.mxu1 %v9765_v39  ;;  %v9852_v20 = vld [vmem:[%s12188_s12 + $0xb64] ss:$16 sps:$4 sm:$0xff]   ;;  %v9855_v39 = vld [vmem:[%s12188_s12 + $0xb6c] ss:$16 sps:$4 sm:$0xff]  }
 0x2d4   : > { %6974 = vmatpush1.bf16.msra.mxu0 %v9760_v28  ;;  %7507 = vmatpush1.bf16.msra.mxu1 %v9763_v40  ;;  %v9850_v28 = vld [vmem:[%s12188_s12 + $0xb60] ss:$16 sps:$4 sm:$0xff]   ;;  %v9853_v40 = vld [vmem:[%s12188_s12 + $0xb68] ss:$16 sps:$4 sm:$0xff]  }
 0x2d5   : > { %6975 = vmatprep.subr.bf16.mxu0 %v9768_v41  ;;  %7508 = vmatprep.subr.bf16.mxu1 %v9771_v42  ;;  %v9858_v41 = vld [vmem:[%s12188_s12 + $0xb84] ss:$16 sps:$4 sm:$0xff]   ;;  %v9861_v42 = vld [vmem:[%s12188_s12 + $0xb8c] ss:$16 sps:$4 sm:$0xff]  }
 0x2d8   : > { %6976 = vmatpush1.bf16.msra.mxu0 %v9766_v43  ;;  %7509 = vmatpush1.bf16.msra.mxu1 %v9769_v45  ;;  %v9856_v43 = vld [vmem:[%s12188_s12 + $0xb80] ss:$16 sps:$4 sm:$0xff]   ;;  %v9859_v45 = vld [vmem:[%s12188_s12 + $0xb88] ss:$16 sps:$4 sm:$0xff]  }
 0x2d9   : > { %6977 = vmatprep.subr.bf16.mxu0 %v9774_v46  ;;  %7510 = vmatprep.subr.bf16.mxu1 %v9777_v47  ;;  %v9864_v46 = vld [vmem:[%s12188_s12 + $0xba4] ss:$16 sps:$4 sm:$0xff]   ;;  %v9867_v47 = vld [vmem:[%s12188_s12 + $0xbac] ss:$16 sps:$4 sm:$0xff]  }
 0x2dc   : > { %6978 = vmatpush1.bf16.msra.mxu0 %v9772_v48  ;;  %7511 = vmatpush1.bf16.msra.mxu1 %v9775_v49  ;;  %v9862_v48 = vld [vmem:[%s12188_s12 + $0xba0] ss:$16 sps:$4 sm:$0xff]   ;;  %v9865_v49 = vld [vmem:[%s12188_s12 + $0xba8] ss:$16 sps:$4 sm:$0xff]  }
 0x2dd   : > { %6979 = vmatprep.subr.bf16.mxu0 %v9780_v50  ;;  %7512 = vmatprep.subr.bf16.mxu1 %v9783_v35  ;;  %v9870_v50 = vld [vmem:[%s12188_s12 + $0xbc4] ss:$16 sps:$4 sm:$0xff]   ;;  %v9873_v35 = vld [vmem:[%s12188_s12 + $0xbcc] ss:$16 sps:$4 sm:$0xff]  }
 0x2e0   : > { %6980 = vmatpush1.bf16.msra.mxu0 %v9778_v51  ;;  %7513 = vmatpush1.bf16.msra.mxu1 %v9781_v52  ;;  %v10514_v51 = vld [vmem:[%s13187_s0 + $0x8] sm:$0xff] }
 0x2e1   : > { %6990 = vmatprep.subr.bf16.mxu0 %v9786_v44  ;;  %7523 = vmatprep.subr.bf16.mxu1 %v9789_v53  ;;  %v2725_v52 = vcombine.high %v10514_v51, %v10514_v51  ;;  %v9868_v44 = vld [vmem:[%s12188_s12 + $0xbc0] ss:$16 sps:$4 sm:$0xff]   ;;  %v9871_v53 = vld [vmem:[%s12188_s12 + $0xbc8] ss:$16 sps:$4 sm:$0xff]  }
 0x2e2   : > { %v9952_v51 = vld [vmem:[%s12188_s12 + $0xd80] ss:$16 sps:$4 sm:$0xff]  }
 0x2e3   : > { %6982 = vmatmul.mubr.bf16.vlgmr.msra.gmra.mrb[0].mxu0 %v12572_v34  ;;  %7515 = vmatmul.mubr.bf16.vlgmr.msra.gmra.mrb[0].mxu1 %v12572_v34 }
 0x2e4   : > { %6991 = vmatpush1.bf16.msra.mxu0 %v9784_v55  ;;  %7524 = vmatpush1.bf16.msra.mxu1 %v9787_v56  ;;  %v9876_v55 = vld [vmem:[%s12188_s12 + $0xbe4] ss:$16 sps:$4 sm:$0xff]   ;;  %v9879_v56 = vld [vmem:[%s12188_s12 + $0xbec] ss:$16 sps:$4 sm:$0xff]  }
 0x2e5   : > { %6992 = vmatprep.subr.bf16.mxu0 %v9792_v57  ;;  %7525 = vmatprep.subr.bf16.mxu1 %v9795_v58  ;;  %v12642_v57 = vrot.slane %v2725_v52, %v12193_v24  ;;  %v9874_v58 = vld [vmem:[%s12188_s12 + $0xbe0] ss:$16 sps:$4 sm:$0xff]   ;;  %v9955_v52 = vld [vmem:[%s12188_s12 + $0xd88] ss:$16 sps:$4 sm:$0xff]  }
 0x2e6   : > { %7022 = vmatprep.mubr.bf16.mxu0 %v2772_v59  ;;  %7555 = vmatprep.mubr.bf16.mxu1 %v2772_v59  ;;  %v9877_v59 = vld [vmem:[%s12188_s12 + $0xbe8] ss:$16 sps:$4 sm:$0xff]  }
 0x2e8   : > { %6993 = vmatpush1.bf16.msra.mxu0 %v9790_v37  ;;  %7526 = vmatpush1.bf16.msra.mxu1 %v9793_v60  ;;  %v9882_v37 = vld [vmem:[%s12188_s12 + $0xc04] ss:$16 sps:$4 sm:$0xff]   ;;  %v9885_v60 = vld [vmem:[%s12188_s12 + $0xc0c] ss:$16 sps:$4 sm:$0xff]  }
 0x2e9   : > { %6994 = vmatprep.subr.bf16.mxu0 %v9798_v61  ;;  %7527 = vmatprep.subr.bf16.mxu1 %v9801_v62  ;;  %v2741_v61 = vcombine.high %v12642_v57, %v12642_v57  ;;  %v2770_v62 = vcombine.high %v12572_v34, %v12572_v34  ;;  %v9886_v34 = vld [vmem:[%s12188_s12 + $0xc20] ss:$16 sps:$4 sm:$0xff]  }
 0x2ec   : > { %6995 = vmatpush1.bf16.msra.mxu0 %v9796_v54  ;;  %7528 = vmatpush1.bf16.msra.mxu1 %v9799_v63  ;;  %v9880_v54 = vld [vmem:[%s12188_s12 + $0xc00] ss:$16 sps:$4 sm:$0xff]   ;;  %v9883_v63 = vld [vmem:[%s12188_s12 + $0xc08] ss:$16 sps:$4 sm:$0xff]  }
 0x2ed   : > { %6996 = vmatprep.subr.bf16.mxu0 %v9804_v0  ;;  %7529 = vmatprep.subr.bf16.mxu1 %v9807_v1  ;;  %v9888_v0 = vld [vmem:[%s12188_s12 + $0xc24] ss:$16 sps:$4 sm:$0xff]   ;;  %v9891_v1 = vld [vmem:[%s12188_s12 + $0xc2c] ss:$16 sps:$4 sm:$0xff]  }
 0x2f0   : > { %6997 = vmatpush1.bf16.msra.mxu0 %v9802_v2  ;;  %7530 = vmatpush1.bf16.msra.mxu1 %v9805_v3  ;;  %v12657_v2 = vrot.slane %v2741_v61, %v12193_v24  ;;  %v9889_v3 = vld [vmem:[%s12188_s12 + $0xc28] ss:$16 sps:$4 sm:$0xff]   ;;  %v9972_v61 = vld [vmem:[%s12188_s12 + $0xde4] ss:$16 sps:$4 sm:$0xff]  }
 0x2f1   : > { %6998 = vmatprep.subr.bf16.mxu0 %v9810_v4  ;;  %7531 = vmatprep.subr.bf16.mxu1 %v9813_v5  ;;  %v9894_v4 = vld [vmem:[%s12188_s12 + $0xc44] ss:$16 sps:$4 sm:$0xff]   ;;  %v9897_v5 = vld [vmem:[%s12188_s12 + $0xc4c] ss:$16 sps:$4 sm:$0xff]  }
 0x2f4   : > { %6999 = vmatpush1.bf16.msra.mxu0 %v9808_v6  ;;  %7532 = vmatpush1.bf16.msra.mxu1 %v9811_v7  ;;  %v9892_v6 = vld [vmem:[%s12188_s12 + $0xc40] ss:$16 sps:$4 sm:$0xff]   ;;  %v9895_v7 = vld [vmem:[%s12188_s12 + $0xc48] ss:$16 sps:$4 sm:$0xff]  }
 0x2f5   : > { %7000 = vmatprep.subr.bf16.mxu0 %v9816_v8  ;;  %7533 = vmatprep.subr.bf16.mxu1 %v9819_v9  ;;  %v9900_v8 = vld [vmem:[%s12188_s12 + $0xc64] ss:$16 sps:$4 sm:$0xff]   ;;  %v9903_v9 = vld [vmem:[%s12188_s12 + $0xc6c] ss:$16 sps:$4 sm:$0xff]  }
 0x2f8   : > { %7001 = vmatpush1.bf16.msra.mxu0 %v9814_v10  ;;  %7534 = vmatpush1.bf16.msra.mxu1 %v9817_v11  ;;  %v9898_v10 = vld [vmem:[%s12188_s12 + $0xc60] ss:$16 sps:$4 sm:$0xff]   ;;  %v9901_v11 = vld [vmem:[%s12188_s12 + $0xc68] ss:$16 sps:$4 sm:$0xff]  }
 0x2f9   : > { %7002 = vmatprep.subr.bf16.mxu0 %v9822_v12  ;;  %7535 = vmatprep.subr.bf16.mxu1 %v9825_v13  ;;  %v9906_v12 = vld [vmem:[%s12188_s12 + $0xc84] ss:$16 sps:$4 sm:$0xff]   ;;  %v9909_v13 = vld [vmem:[%s12188_s12 + $0xc8c] ss:$16 sps:$4 sm:$0xff]  }
 0x2fc   : > { %7003 = vmatpush1.bf16.msra.mxu0 %v9820_v14  ;;  %7536 = vmatpush1.bf16.msra.mxu1 %v9823_v15  ;;  %v9904_v14 = vld [vmem:[%s12188_s12 + $0xc80] ss:$16 sps:$4 sm:$0xff]   ;;  %v9907_v15 = vld [vmem:[%s12188_s12 + $0xc88] ss:$16 sps:$4 sm:$0xff]  }
 0x2fd   : > { %7004 = vmatprep.subr.bf16.mxu0 %v9828_v16  ;;  %7537 = vmatprep.subr.bf16.mxu1 %v9831_v17  ;;  %v9912_v16 = vld [vmem:[%s12188_s12 + $0xca4] ss:$16 sps:$4 sm:$0xff]   ;;  %v9915_v17 = vld [vmem:[%s12188_s12 + $0xcac] ss:$16 sps:$4 sm:$0xff]  }
 0x300   : > { %7005 = vmatpush1.bf16.msra.mxu0 %v9826_v18  ;;  %7538 = vmatpush1.bf16.msra.mxu1 %v9829_v21  ;;  %v9910_v18 = vld [vmem:[%s12188_s12 + $0xca0] ss:$16 sps:$4 sm:$0xff]   ;;  %v9913_v21 = vld [vmem:[%s12188_s12 + $0xca8] ss:$16 sps:$4 sm:$0xff]  }
 0x301   : > { %7006 = vmatprep.subr.bf16.mxu0 %v9834_v22  ;;  %7539 = vmatprep.subr.bf16.mxu1 %v9837_v23  ;;  %v9918_v22 = vld [vmem:[%s12188_s12 + $0xcc4] ss:$16 sps:$4 sm:$0xff]   ;;  %v9921_v23 = vld [vmem:[%s12188_s12 + $0xccc] ss:$16 sps:$4 sm:$0xff]  }
 0x304   : > { %7007 = vmatpush1.bf16.msra.mxu0 %v9832_v25  ;;  %7540 = vmatpush1.bf16.msra.mxu1 %v9835_v26  ;;  %v9916_v25 = vld [vmem:[%s12188_s12 + $0xcc0] ss:$16 sps:$4 sm:$0xff]   ;;  %v9919_v26 = vld [vmem:[%s12188_s12 + $0xcc8] ss:$16 sps:$4 sm:$0xff]  }
 0x305   : > { %7008 = vmatprep.subr.bf16.mxu0 %v9840_v27  ;;  %7541 = vmatprep.subr.bf16.mxu1 %v9843_v29  ;;  %v9924_v27 = vld [vmem:[%s12188_s12 + $0xce4] ss:$16 sps:$4 sm:$0xff]   ;;  %v9927_v29 = vld [vmem:[%s12188_s12 + $0xcec] ss:$16 sps:$4 sm:$0xff]  }
 0x308   : > { %7009 = vmatpush1.bf16.msra.mxu0 %v9838_v30  ;;  %7542 = vmatpush1.bf16.msra.mxu1 %v9841_v31  ;;  %v9922_v30 = vld [vmem:[%s12188_s12 + $0xce0] ss:$16 sps:$4 sm:$0xff]   ;;  %v9925_v31 = vld [vmem:[%s12188_s12 + $0xce8] ss:$16 sps:$4 sm:$0xff]  }
 0x309   : > { %7010 = vmatprep.subr.bf16.mxu0 %v9846_v32  ;;  %7543 = vmatprep.subr.bf16.mxu1 %v9849_v33  ;;  %v9930_v32 = vld [vmem:[%s12188_s12 + $0xd04] ss:$16 sps:$4 sm:$0xff]   ;;  %v9933_v33 = vld [vmem:[%s12188_s12 + $0xd0c] ss:$16 sps:$4 sm:$0xff]  }
 0x30c   : > { %7011 = vmatpush1.bf16.msra.mxu0 %v9844_v36  ;;  %7544 = vmatpush1.bf16.msra.mxu1 %v9847_v38  ;;  %v9928_v36 = vld [vmem:[%s12188_s12 + $0xd00] ss:$16 sps:$4 sm:$0xff]   ;;  %v9931_v38 = vld [vmem:[%s12188_s12 + $0xd08] ss:$16 sps:$4 sm:$0xff]  }
 0x30d   : > { %7012 = vmatprep.subr.bf16.mxu0 %v9852_v20  ;;  %7545 = vmatprep.subr.bf16.mxu1 %v9855_v39  ;;  %v9936_v20 = vld [vmem:[%s12188_s12 + $0xd24] ss:$16 sps:$4 sm:$0xff]   ;;  %v9939_v39 = vld [vmem:[%s12188_s12 + $0xd2c] ss:$16 sps:$4 sm:$0xff]  }
 0x310   : > { %7013 = vmatpush1.bf16.msra.mxu0 %v9850_v28  ;;  %7546 = vmatpush1.bf16.msra.mxu1 %v9853_v40  ;;  %v9934_v28 = vld [vmem:[%s12188_s12 + $0xd20] ss:$16 sps:$4 sm:$0xff]   ;;  %v9937_v40 = vld [vmem:[%s12188_s12 + $0xd28] ss:$16 sps:$4 sm:$0xff]  }
 0x311   : > { %7014 = vmatprep.subr.bf16.mxu0 %v9858_v41  ;;  %7547 = vmatprep.subr.bf16.mxu1 %v9861_v42  ;;  %v9942_v41 = vld [vmem:[%s12188_s12 + $0xd44] ss:$16 sps:$4 sm:$0xff]   ;;  %v9945_v42 = vld [vmem:[%s12188_s12 + $0xd4c] ss:$16 sps:$4 sm:$0xff]  }
 0x314   : > { %7015 = vmatpush1.bf16.msra.mxu0 %v9856_v43  ;;  %7548 = vmatpush1.bf16.msra.mxu1 %v9859_v45  ;;  %v9940_v43 = vld [vmem:[%s12188_s12 + $0xd40] ss:$16 sps:$4 sm:$0xff]   ;;  %v9943_v45 = vld [vmem:[%s12188_s12 + $0xd48] ss:$16 sps:$4 sm:$0xff]  }
 0x315   : > { %7016 = vmatprep.subr.bf16.mxu0 %v9864_v46  ;;  %7549 = vmatprep.subr.bf16.mxu1 %v9867_v47  ;;  %v9948_v46 = vld [vmem:[%s12188_s12 + $0xd64] ss:$16 sps:$4 sm:$0xff]   ;;  %v9951_v47 = vld [vmem:[%s12188_s12 + $0xd6c] ss:$16 sps:$4 sm:$0xff]  }
 0x318   : > { %7017 = vmatpush1.bf16.msra.mxu0 %v9862_v48  ;;  %7550 = vmatpush1.bf16.msra.mxu1 %v9865_v49  ;;  %v9946_v48 = vld [vmem:[%s12188_s12 + $0xd60] ss:$16 sps:$4 sm:$0xff]   ;;  %v9949_v49 = vld [vmem:[%s12188_s12 + $0xd68] ss:$16 sps:$4 sm:$0xff]  }
 0x319   : > { %7018 = vmatprep.subr.bf16.mxu0 %v9870_v50  ;;  %7551 = vmatprep.subr.bf16.mxu1 %v9873_v35  ;;  %v9954_v50 = vld [vmem:[%s12188_s12 + $0xd84] ss:$16 sps:$4 sm:$0xff]   ;;  %v9957_v35 = vld [vmem:[%s12188_s12 + $0xd8c] ss:$16 sps:$4 sm:$0xff]  }
 0x31c   : > { %7019 = vmatpush1.bf16.msra.mxu0 %v9868_v44  ;;  %7552 = vmatpush1.bf16.msra.mxu1 %v9871_v53  ;;  %v9960_v44 = vld [vmem:[%s12188_s12 + $0xda4] ss:$16 sps:$4 sm:$0xff]   ;;  %v9963_v53 = vld [vmem:[%s12188_s12 + $0xdac] ss:$16 sps:$4 sm:$0xff]  }
 0x31d   : > { %7020 = vmatprep.subr.bf16.mxu0 %v9876_v55  ;;  %7553 = vmatprep.subr.bf16.mxu1 %v9879_v56  ;;  %v9958_v55 = vld [vmem:[%s12188_s12 + $0xda0] ss:$16 sps:$4 sm:$0xff]   ;;  %v9961_v56 = vld [vmem:[%s12188_s12 + $0xda8] ss:$16 sps:$4 sm:$0xff]  }
 0x320   : > { %7021 = vmatpush1.bf16.msra.mxu0 %v9874_v58  ;;  %7554 = vmatpush1.bf16.msra.mxu1 %v9877_v59  ;;  %v9966_v58 = vld [vmem:[%s12188_s12 + $0xdc4] ss:$16 sps:$4 sm:$0xff]   ;;  %v9969_v59 = vld [vmem:[%s12188_s12 + $0xdcc] ss:$16 sps:$4 sm:$0xff]  }
 0x321   : > { %7031 = vmatprep.subr.bf16.mxu0 %v9882_v37  ;;  %7564 = vmatprep.subr.bf16.mxu1 %v9885_v60  ;;  %v9964_v37 = vld [vmem:[%s12188_s12 + $0xdc0] ss:$16 sps:$4 sm:$0xff]   ;;  %v9967_v60 = vld [vmem:[%s12188_s12 + $0xdc8] ss:$16 sps:$4 sm:$0xff]  }
 0x323   : > { %7023 = vmatmul.mubr.bf16.vlgmr.msra.gmra.mrb[0].mxu0 %v2770_v62  ;;  %7556 = vmatmul.mubr.bf16.vlgmr.msra.gmra.mrb[0].mxu1 %v2770_v62  ;;  %v9975_v62 = vld [vmem:[%s12188_s12 + $0xdec] ss:$16 sps:$4 sm:$0xff]  }
 0x324   : > { %7032 = vmatpush1.bf16.msra.mxu0 %v9880_v54  ;;  %7565 = vmatpush1.bf16.msra.mxu1 %v9883_v63  ;;  %v9970_v54 = vld [vmem:[%s12188_s12 + $0xde0] ss:$16 sps:$4 sm:$0xff]   ;;  %v9973_v63 = vld [vmem:[%s12188_s12 + $0xde8] ss:$16 sps:$4 sm:$0xff]  }
 0x325   : > { %7033 = vmatprep.subr.bf16.mxu0 %v9888_v0  ;;  %7566 = vmatprep.subr.bf16.mxu1 %v9891_v1  ;;  %v9979_v0 = vld [vmem:[%s12188_s12 + $0xe04] ss:$16 sps:$4 sm:$0xff]   ;;  %v9982_v1 = vld [vmem:[%s12188_s12 + $0xe0c] ss:$16 sps:$4 sm:$0xff]  }
 0x326   : > { %7063 = vmatprep.mubr.bf16.mxu0 %v12657_v2  ;;  %7596 = vmatprep.mubr.bf16.mxu1 %v12657_v2 }
 0x328   : > { %7034 = vmatpush1.bf16.msra.mxu0 %v9886_v34  ;;  %7567 = vmatpush1.bf16.msra.mxu1 %v9889_v3  ;;  %v12723_v34 = vrot.slane %v12642_v57, %v12193_v24  ;;  %v9977_v3 = vld [vmem:[%s12188_s12 + $0xe00] ss:$16 sps:$4 sm:$0xff]  }
 0x329   : > { %7035 = vmatprep.subr.bf16.mxu0 %v9894_v4  ;;  %7568 = vmatprep.subr.bf16.mxu1 %v9897_v5  ;;  %v9980_v4 = vld [vmem:[%s12188_s12 + $0xe08] ss:$16 sps:$4 sm:$0xff]   ;;  %v9985_v5 = vld [vmem:[%s12188_s12 + $0xe24] ss:$16 sps:$4 sm:$0xff]   ;;  %v9983_v57 = vld [vmem:[%s12188_s12 + $0xe20] ss:$16 sps:$4 sm:$0xff]  }
 0x32c   : > { %7036 = vmatpush1.bf16.msra.mxu0 %v9892_v6  ;;  %7569 = vmatpush1.bf16.msra.mxu1 %v9895_v7  ;;  %v9988_v6 = vld [vmem:[%s12188_s12 + $0xe2c] ss:$16 sps:$4 sm:$0xff]   ;;  %v2773_v7 = vcombine.high %v12657_v2, %v12657_v2  ;;  %v9989_v2 = vld [vmem:[%s12188_s12 + $0xe40] ss:$16 sps:$4 sm:$0xff]  }
 0x32d   : > { %7037 = vmatprep.subr.bf16.mxu0 %v9900_v8  ;;  %7570 = vmatprep.subr.bf16.mxu1 %v9903_v9  ;;  %v9986_v8 = vld [vmem:[%s12188_s12 + $0xe28] ss:$16 sps:$4 sm:$0xff]   ;;  %v9991_v9 = vld [vmem:[%s12188_s12 + $0xe44] ss:$16 sps:$4 sm:$0xff]  }
 0x330   : > { %7038 = vmatpush1.bf16.msra.mxu0 %v9898_v10  ;;  %7571 = vmatpush1.bf16.msra.mxu1 %v9901_v11  ;;  %v9994_v10 = vld [vmem:[%s12188_s12 + $0xe4c] ss:$16 sps:$4 sm:$0xff]   ;;  %v9992_v11 = vld [vmem:[%s12188_s12 + $0xe48] ss:$16 sps:$4 sm:$0xff]  }
 0x331   : > { %7039 = vmatprep.subr.bf16.mxu0 %v9906_v12  ;;  %7572 = vmatprep.subr.bf16.mxu1 %v9909_v13  ;;  %v9997_v12 = vld [vmem:[%s12188_s12 + $0xe64] ss:$16 sps:$4 sm:$0xff]   ;;  %v10000_v13 = vld [vmem:[%s12188_s12 + $0xe6c] ss:$16 sps:$4 sm:$0xff]  }
 0x334   : > { %7040 = vmatpush1.bf16.msra.mxu0 %v9904_v14  ;;  %7573 = vmatpush1.bf16.msra.mxu1 %v9907_v15  ;;  %v9995_v14 = vld [vmem:[%s12188_s12 + $0xe60] ss:$16 sps:$4 sm:$0xff]   ;;  %v9998_v15 = vld [vmem:[%s12188_s12 + $0xe68] ss:$16 sps:$4 sm:$0xff]  }
 0x335   : > { %7041 = vmatprep.subr.bf16.mxu0 %v9912_v16  ;;  %7574 = vmatprep.subr.bf16.mxu1 %v9915_v17  ;;  %v10003_v16 = vld [vmem:[%s12188_s12 + $0xe84] ss:$16 sps:$4 sm:$0xff]   ;;  %v10006_v17 = vld [vmem:[%s12188_s12 + $0xe8c] ss:$16 sps:$4 sm:$0xff]  }
 0x338   : > { %7042 = vmatpush1.bf16.msra.mxu0 %v9910_v18  ;;  %7575 = vmatpush1.bf16.msra.mxu1 %v9913_v21  ;;  %v10001_v18 = vld [vmem:[%s12188_s12 + $0xe80] ss:$16 sps:$4 sm:$0xff]   ;;  %v10004_v21 = vld [vmem:[%s12188_s12 + $0xe88] ss:$16 sps:$4 sm:$0xff]  }
 0x339   : > { %7043 = vmatprep.subr.bf16.mxu0 %v9918_v22  ;;  %7576 = vmatprep.subr.bf16.mxu1 %v9921_v23  ;;  %v10009_v22 = vld [vmem:[%s12188_s12 + $0xea4] ss:$16 sps:$4 sm:$0xff]   ;;  %v10012_v23 = vld [vmem:[%s12188_s12 + $0xeac] ss:$16 sps:$4 sm:$0xff]  }
 0x33c   : > { %7044 = vmatpush1.bf16.msra.mxu0 %v9916_v25  ;;  %7577 = vmatpush1.bf16.msra.mxu1 %v9919_v26  ;;  %v10007_v25 = vld [vmem:[%s12188_s12 + $0xea0] ss:$16 sps:$4 sm:$0xff]   ;;  %v10010_v26 = vld [vmem:[%s12188_s12 + $0xea8] ss:$16 sps:$4 sm:$0xff]  }
 0x33d   : > { %7045 = vmatprep.subr.bf16.mxu0 %v9924_v27  ;;  %7578 = vmatprep.subr.bf16.mxu1 %v9927_v29  ;;  %v10015_v27 = vld [vmem:[%s12188_s12 + $0xec4] ss:$16 sps:$4 sm:$0xff]   ;;  %v10018_v29 = vld [vmem:[%s12188_s12 + $0xecc] ss:$16 sps:$4 sm:$0xff]  }
 0x340   : > { %7046 = vmatpush1.bf16.msra.mxu0 %v9922_v30  ;;  %7579 = vmatpush1.bf16.msra.mxu1 %v9925_v31  ;;  %v10013_v30 = vld [vmem:[%s12188_s12 + $0xec0] ss:$16 sps:$4 sm:$0xff]   ;;  %v10016_v31 = vld [vmem:[%s12188_s12 + $0xec8] ss:$16 sps:$4 sm:$0xff]  }
 0x341   : > { %7047 = vmatprep.subr.bf16.mxu0 %v9930_v32  ;;  %7580 = vmatprep.subr.bf16.mxu1 %v9933_v33  ;;  %v10021_v32 = vld [vmem:[%s12188_s12 + $0xee4] ss:$16 sps:$4 sm:$0xff]   ;;  %v10024_v33 = vld [vmem:[%s12188_s12 + $0xeec] ss:$16 sps:$4 sm:$0xff]  }
 0x344   : > { %7048 = vmatpush1.bf16.msra.mxu0 %v9928_v36  ;;  %7581 = vmatpush1.bf16.msra.mxu1 %v9931_v38  ;;  %v10019_v36 = vld [vmem:[%s12188_s12 + $0xee0] ss:$16 sps:$4 sm:$0xff]   ;;  %v10022_v38 = vld [vmem:[%s12188_s12 + $0xee8] ss:$16 sps:$4 sm:$0xff]  }
 0x345   : > { %7049 = vmatprep.subr.bf16.mxu0 %v9936_v20  ;;  %7582 = vmatprep.subr.bf16.mxu1 %v9939_v39  ;;  %v10027_v20 = vld [vmem:[%s12188_s12 + $0xf04] ss:$16 sps:$4 sm:$0xff]   ;;  %v10030_v39 = vld [vmem:[%s12188_s12 + $0xf0c] ss:$16 sps:$4 sm:$0xff]  }
 0x348   : > { %7050 = vmatpush1.bf16.msra.mxu0 %v9934_v28  ;;  %7583 = vmatpush1.bf16.msra.mxu1 %v9937_v40  ;;  %v10025_v28 = vld [vmem:[%s12188_s12 + $0xf00] ss:$16 sps:$4 sm:$0xff]   ;;  %v10028_v40 = vld [vmem:[%s12188_s12 + $0xf08] ss:$16 sps:$4 sm:$0xff]  }
 0x349   : > { %7051 = vmatprep.subr.bf16.mxu0 %v9942_v41  ;;  %7584 = vmatprep.subr.bf16.mxu1 %v9945_v42  ;;  %v10033_v41 = vld [vmem:[%s12188_s12 + $0xf24] ss:$16 sps:$4 sm:$0xff]   ;;  %v10036_v42 = vld [vmem:[%s12188_s12 + $0xf2c] ss:$16 sps:$4 sm:$0xff]  }
 0x34c   : > { %7052 = vmatpush1.bf16.msra.mxu0 %v9940_v43  ;;  %7585 = vmatpush1.bf16.msra.mxu1 %v9943_v45  ;;  %v10031_v43 = vld [vmem:[%s12188_s12 + $0xf20] ss:$16 sps:$4 sm:$0xff]   ;;  %v10034_v45 = vld [vmem:[%s12188_s12 + $0xf28] ss:$16 sps:$4 sm:$0xff]  }
 0x34d   : > { %7053 = vmatprep.subr.bf16.mxu0 %v9948_v46  ;;  %7586 = vmatprep.subr.bf16.mxu1 %v9951_v47  ;;  %v10039_v46 = vld [vmem:[%s12188_s12 + $0xf44] ss:$16 sps:$4 sm:$0xff]   ;;  %v10042_v47 = vld [vmem:[%s12188_s12 + $0xf4c] ss:$16 sps:$4 sm:$0xff]  }
 0x350   : > { %7054 = vmatpush1.bf16.msra.mxu0 %v9946_v48  ;;  %7587 = vmatpush1.bf16.msra.mxu1 %v9949_v49  ;;  %v10037_v48 = vld [vmem:[%s12188_s12 + $0xf40] ss:$16 sps:$4 sm:$0xff]   ;;  %v10040_v49 = vld [vmem:[%s12188_s12 + $0xf48] ss:$16 sps:$4 sm:$0xff]  }
 0x351   : > { %7055 = vmatprep.subr.bf16.mxu0 %v9954_v50  ;;  %7588 = vmatprep.subr.bf16.mxu1 %v9957_v35  ;;  %v10045_v50 = vld [vmem:[%s12188_s12 + $0xf64] ss:$16 sps:$4 sm:$0xff]   ;;  %v10048_v35 = vld [vmem:[%s12188_s12 + $0xf6c] ss:$16 sps:$4 sm:$0xff]  }
 0x354   : > { %7056 = vmatpush1.bf16.msra.mxu0 %v9952_v51  ;;  %7589 = vmatpush1.bf16.msra.mxu1 %v9955_v52  ;;  %v10043_v51 = vld [vmem:[%s12188_s12 + $0xf60] ss:$16 sps:$4 sm:$0xff]   ;;  %v10046_v52 = vld [vmem:[%s12188_s12 + $0xf68] ss:$16 sps:$4 sm:$0xff]  }
 0x355   : > { %7057 = vmatprep.subr.bf16.mxu0 %v9960_v44  ;;  %7590 = vmatprep.subr.bf16.mxu1 %v9963_v53  ;;  %v10051_v44 = vld [vmem:[%s12188_s12 + $0xf84] ss:$16 sps:$4 sm:$0xff]   ;;  %v10054_v53 = vld [vmem:[%s12188_s12 + $0xf8c] ss:$16 sps:$4 sm:$0xff]  }
 0x358   : > { %7058 = vmatpush1.bf16.msra.mxu0 %v9958_v55  ;;  %7591 = vmatpush1.bf16.msra.mxu1 %v9961_v56  ;;  %v10049_v55 = vld [vmem:[%s12188_s12 + $0xf80] ss:$16 sps:$4 sm:$0xff]   ;;  %v10052_v56 = vld [vmem:[%s12188_s12 + $0xf88] ss:$16 sps:$4 sm:$0xff]  }
 0x359   : > { %7059 = vmatprep.subr.bf16.mxu0 %v9966_v58  ;;  %7592 = vmatprep.subr.bf16.mxu1 %v9969_v59  ;;  %v10057_v58 = vld [vmem:[%s12188_s12 + $0xfa4] ss:$16 sps:$4 sm:$0xff]   ;;  %v10060_v59 = vld [vmem:[%s12188_s12 + $0xfac] ss:$16 sps:$4 sm:$0xff]  }
 0x35c   : > { %7060 = vmatpush1.bf16.msra.mxu0 %v9964_v37  ;;  %7593 = vmatpush1.bf16.msra.mxu1 %v9967_v60  ;;  %v10055_v37 = vld [vmem:[%s12188_s12 + $0xfa0] ss:$16 sps:$4 sm:$0xff]   ;;  %v10058_v60 = vld [vmem:[%s12188_s12 + $0xfa8] ss:$16 sps:$4 sm:$0xff]  }
 0x35d   : > { %7061 = vmatprep.subr.bf16.mxu0 %v9972_v61  ;;  %7594 = vmatprep.subr.bf16.mxu1 %v9975_v62  ;;  %v10063_v61 = vld [vmem:[%s12188_s12 + $0xfc4] ss:$16 sps:$4 sm:$0xff]   ;;  %v10066_v62 = vld [vmem:[%s12188_s12 + $0xfcc] ss:$16 sps:$4 sm:$0xff]  }
 0x360   : > { %7062 = vmatpush1.bf16.msra.mxu0 %v9970_v54  ;;  %7595 = vmatpush1.bf16.msra.mxu1 %v9973_v63  ;;  %v12788_v54 = vld [vmem:[%s13187_s0 + $0x10] sm:$0xff] }
 0x361   : > { %7072 = vmatprep.subr.bf16.mxu0 %v9979_v0  ;;  %7605 = vmatprep.subr.bf16.mxu1 %v9982_v1  ;;  %v10061_v63 = vld [vmem:[%s12188_s12 + $0xfc0] ss:$16 sps:$4 sm:$0xff]   ;;  %v10064_v0 = vld [vmem:[%s12188_s12 + $0xfc8] ss:$16 sps:$4 sm:$0xff]   ;;  %v10069_v1 = vld [vmem:[%s12188_s12 + $0xfe4] ss:$16 sps:$4 sm:$0xff]  }
 0x363   : > { %7064 = vmatmul.mubr.bf16.vlgmr.msra.gmra.mrb[0].mxu0 %v12723_v34  ;;  %7597 = vmatmul.mubr.bf16.vlgmr.msra.gmra.mrb[0].mxu1 %v12723_v34 }
 0x364   : > { %7073 = vmatpush1.bf16.msra.mxu0 %v9977_v3  ;;  %7606 = vmatpush1.bf16.msra.mxu1 %v9980_v4  ;;  %v10072_v3 = vld [vmem:[%s12188_s12 + $0xfec] ss:$16 sps:$4 sm:$0xff]   ;;  %v12796_v4 = vrot.slane %v12788_v54, %v12193_v24 }
 0x365   : > { %7074 = vmatprep.subr.bf16.mxu0 %v9985_v5  ;;  %7607 = vmatprep.subr.bf16.mxu1 %v9988_v6  ;;  %v10067_v5 = vld [vmem:[%s12188_s12 + $0xfe0] ss:$16 sps:$4 sm:$0xff]   ;;  %v10070_v6 = vld [vmem:[%s12188_s12 + $0xfe8] ss:$16 sps:$4 sm:$0xff]  }
 0x366   : > { %7104 = vmatprep.mubr.bf16.mxu0 %v2773_v7  ;;  %7637 = vmatprep.mubr.bf16.mxu1 %v2773_v7  ;;  %v10075_v7 = vld [vmem:[%s12188_s12 + $0x1004] ss:$16 sps:$4 sm:$0xff]  }
 0x368   : > { %7075 = vmatpush1.bf16.msra.mxu0 %v9983_v57  ;;  %7608 = vmatpush1.bf16.msra.mxu1 %v9986_v8  ;;  %v10078_v57 = vld [vmem:[%s12188_s12 + $0x100c] ss:$16 sps:$4 sm:$0xff]   ;;  %v2789_v8 = vcombine.high %v12796_v4, %v12796_v4 }
 0x369   : > { %7076 = vmatprep.subr.bf16.mxu0 %v9991_v9  ;;  %7609 = vmatprep.subr.bf16.mxu1 %v9994_v10  ;;  %v2771_v9 = vcombine.high %v12723_v34, %v12723_v34  ;;  %v10073_v10 = vld [vmem:[%s12188_s12 + $0x1000] ss:$16 sps:$4 sm:$0xff]  }
 0x36a   : > { %v10079_v34 = vld [vmem:[%s12188_s12 + $0x1020] ss:$16 sps:$4 sm:$0xff]  }
 0x36c   : > { %7077 = vmatpush1.bf16.msra.mxu0 %v9989_v2  ;;  %7610 = vmatpush1.bf16.msra.mxu1 %v9992_v11  ;;  %v10076_v2 = vld [vmem:[%s12188_s12 + $0x1008] ss:$16 sps:$4 sm:$0xff]   ;;  %v10081_v11 = vld [vmem:[%s12188_s12 + $0x1024] ss:$16 sps:$4 sm:$0xff]  }
 0x36d   : > { %7078 = vmatprep.subr.bf16.mxu0 %v9997_v12  ;;  %7611 = vmatprep.subr.bf16.mxu1 %v10000_v13  ;;  %v10084_v12 = vld [vmem:[%s12188_s12 + $0x102c] ss:$16 sps:$4 sm:$0xff]   ;;  %v12811_v13 = vrot.slane %v2789_v8, %v12193_v24  ;;  %v10160_v8 = vld [vmem:[%s12188_s12 + $0x11c8] ss:$16 sps:$4 sm:$0xff]  }
 0x370   : > { %7079 = vmatpush1.bf16.msra.mxu0 %v9995_v14  ;;  %7612 = vmatpush1.bf16.msra.mxu1 %v9998_v15  ;;  %v10082_v14 = vld [vmem:[%s12188_s12 + $0x1028] ss:$16 sps:$4 sm:$0xff]   ;;  %v10087_v15 = vld [vmem:[%s12188_s12 + $0x1044] ss:$16 sps:$4 sm:$0xff]  }
 0x371   : > { %7080 = vmatprep.subr.bf16.mxu0 %v10003_v16  ;;  %7613 = vmatprep.subr.bf16.mxu1 %v10006_v17  ;;  %v10090_v16 = vld [vmem:[%s12188_s12 + $0x104c] ss:$16 sps:$4 sm:$0xff]   ;;  %v10085_v17 = vld [vmem:[%s12188_s12 + $0x1040] ss:$16 sps:$4 sm:$0xff]  }
 0x374   : > { %7081 = vmatpush1.bf16.msra.mxu0 %v10001_v18  ;;  %7614 = vmatpush1.bf16.msra.mxu1 %v10004_v21  ;;  %v10088_v18 = vld [vmem:[%s12188_s12 + $0x1048] ss:$16 sps:$4 sm:$0xff]   ;;  %v10093_v21 = vld [vmem:[%s12188_s12 + $0x1064] ss:$16 sps:$4 sm:$0xff]  }
 0x375   : > { %7082 = vmatprep.subr.bf16.mxu0 %v10009_v22  ;;  %7615 = vmatprep.subr.bf16.mxu1 %v10012_v23  ;;  %v10096_v22 = vld [vmem:[%s12188_s12 + $0x106c] ss:$16 sps:$4 sm:$0xff]   ;;  %v10091_v23 = vld [vmem:[%s12188_s12 + $0x1060] ss:$16 sps:$4 sm:$0xff]  }
 0x378   : > { %7083 = vmatpush1.bf16.msra.mxu0 %v10007_v25  ;;  %7616 = vmatpush1.bf16.msra.mxu1 %v10010_v26  ;;  %v10094_v25 = vld [vmem:[%s12188_s12 + $0x1068] ss:$16 sps:$4 sm:$0xff]   ;;  %v10099_v26 = vld [vmem:[%s12188_s12 + $0x1084] ss:$16 sps:$4 sm:$0xff]  }
 0x379   : > { %7084 = vmatprep.subr.bf16.mxu0 %v10015_v27  ;;  %7617 = vmatprep.subr.bf16.mxu1 %v10018_v29  ;;  %v10102_v27 = vld [vmem:[%s12188_s12 + $0x108c] ss:$16 sps:$4 sm:$0xff]   ;;  %v10097_v29 = vld [vmem:[%s12188_s12 + $0x1080] ss:$16 sps:$4 sm:$0xff]  }
 0x37c   : > { %7085 = vmatpush1.bf16.msra.mxu0 %v10013_v30  ;;  %7618 = vmatpush1.bf16.msra.mxu1 %v10016_v31  ;;  %v10100_v30 = vld [vmem:[%s12188_s12 + $0x1088] ss:$16 sps:$4 sm:$0xff]   ;;  %v10105_v31 = vld [vmem:[%s12188_s12 + $0x10a4] ss:$16 sps:$4 sm:$0xff]  }
 0x37d   : > { %7086 = vmatprep.subr.bf16.mxu0 %v10021_v32  ;;  %7619 = vmatprep.subr.bf16.mxu1 %v10024_v33  ;;  %v10108_v32 = vld [vmem:[%s12188_s12 + $0x10ac] ss:$16 sps:$4 sm:$0xff]   ;;  %v10103_v33 = vld [vmem:[%s12188_s12 + $0x10a0] ss:$16 sps:$4 sm:$0xff]  }
 0x380   : > { %7087 = vmatpush1.bf16.msra.mxu0 %v10019_v36  ;;  %7620 = vmatpush1.bf16.msra.mxu1 %v10022_v38  ;;  %v10106_v36 = vld [vmem:[%s12188_s12 + $0x10a8] ss:$16 sps:$4 sm:$0xff]   ;;  %v10111_v38 = vld [vmem:[%s12188_s12 + $0x10c4] ss:$16 sps:$4 sm:$0xff]  }
 0x381   : > { %7088 = vmatprep.subr.bf16.mxu0 %v10027_v20  ;;  %7621 = vmatprep.subr.bf16.mxu1 %v10030_v39  ;;  %v10114_v20 = vld [vmem:[%s12188_s12 + $0x10cc] ss:$16 sps:$4 sm:$0xff]   ;;  %v10109_v39 = vld [vmem:[%s12188_s12 + $0x10c0] ss:$16 sps:$4 sm:$0xff]  }
 0x384   : > { %7089 = vmatpush1.bf16.msra.mxu0 %v10025_v28  ;;  %7622 = vmatpush1.bf16.msra.mxu1 %v10028_v40  ;;  %v10112_v28 = vld [vmem:[%s12188_s12 + $0x10c8] ss:$16 sps:$4 sm:$0xff]   ;;  %v10117_v40 = vld [vmem:[%s12188_s12 + $0x10e4] ss:$16 sps:$4 sm:$0xff]  }
 0x385   : > { %7090 = vmatprep.subr.bf16.mxu0 %v10033_v41  ;;  %7623 = vmatprep.subr.bf16.mxu1 %v10036_v42  ;;  %v10120_v41 = vld [vmem:[%s12188_s12 + $0x10ec] ss:$16 sps:$4 sm:$0xff]   ;;  %v10115_v42 = vld [vmem:[%s12188_s12 + $0x10e0] ss:$16 sps:$4 sm:$0xff]  }
 0x388   : > { %7091 = vmatpush1.bf16.msra.mxu0 %v10031_v43  ;;  %7624 = vmatpush1.bf16.msra.mxu1 %v10034_v45  ;;  %v10118_v43 = vld [vmem:[%s12188_s12 + $0x10e8] ss:$16 sps:$4 sm:$0xff]   ;;  %v10123_v45 = vld [vmem:[%s12188_s12 + $0x1104] ss:$16 sps:$4 sm:$0xff]  }
 0x389   : > { %7092 = vmatprep.subr.bf16.mxu0 %v10039_v46  ;;  %7625 = vmatprep.subr.bf16.mxu1 %v10042_v47  ;;  %v10126_v46 = vld [vmem:[%s12188_s12 + $0x110c] ss:$16 sps:$4 sm:$0xff]   ;;  %v10121_v47 = vld [vmem:[%s12188_s12 + $0x1100] ss:$16 sps:$4 sm:$0xff]  }
 0x38c   : > { %7093 = vmatpush1.bf16.msra.mxu0 %v10037_v48  ;;  %7626 = vmatpush1.bf16.msra.mxu1 %v10040_v49  ;;  %v10124_v48 = vld [vmem:[%s12188_s12 + $0x1108] ss:$16 sps:$4 sm:$0xff]   ;;  %v10129_v49 = vld [vmem:[%s12188_s12 + $0x1124] ss:$16 sps:$4 sm:$0xff]  }
 0x38d   : > { %7094 = vmatprep.subr.bf16.mxu0 %v10045_v50  ;;  %7627 = vmatprep.subr.bf16.mxu1 %v10048_v35  ;;  %v10132_v50 = vld [vmem:[%s12188_s12 + $0x112c] ss:$16 sps:$4 sm:$0xff]   ;;  %v10127_v35 = vld [vmem:[%s12188_s12 + $0x1120] ss:$16 sps:$4 sm:$0xff]  }
 0x390   : > { %7095 = vmatpush1.bf16.msra.mxu0 %v10043_v51  ;;  %7628 = vmatpush1.bf16.msra.mxu1 %v10046_v52  ;;  %v10130_v51 = vld [vmem:[%s12188_s12 + $0x1128] ss:$16 sps:$4 sm:$0xff]   ;;  %v10135_v52 = vld [vmem:[%s12188_s12 + $0x1144] ss:$16 sps:$4 sm:$0xff]  }
 0x391   : > { %7096 = vmatprep.subr.bf16.mxu0 %v10051_v44  ;;  %7629 = vmatprep.subr.bf16.mxu1 %v10054_v53  ;;  %v10138_v44 = vld [vmem:[%s12188_s12 + $0x114c] ss:$16 sps:$4 sm:$0xff]   ;;  %v10133_v53 = vld [vmem:[%s12188_s12 + $0x1140] ss:$16 sps:$4 sm:$0xff]  }
 0x394   : > { %7097 = vmatpush1.bf16.msra.mxu0 %v10049_v55  ;;  %7630 = vmatpush1.bf16.msra.mxu1 %v10052_v56  ;;  %v10136_v55 = vld [vmem:[%s12188_s12 + $0x1148] ss:$16 sps:$4 sm:$0xff]   ;;  %v10141_v56 = vld [vmem:[%s12188_s12 + $0x1164] ss:$16 sps:$4 sm:$0xff]  }
 0x395   : > { %7098 = vmatprep.subr.bf16.mxu0 %v10057_v58  ;;  %7631 = vmatprep.subr.bf16.mxu1 %v10060_v59  ;;  %v10144_v58 = vld [vmem:[%s12188_s12 + $0x116c] ss:$16 sps:$4 sm:$0xff]   ;;  %v10139_v59 = vld [vmem:[%s12188_s12 + $0x1160] ss:$16 sps:$4 sm:$0xff]  }
 0x398   : > { %7099 = vmatpush1.bf16.msra.mxu0 %v10055_v37  ;;  %7632 = vmatpush1.bf16.msra.mxu1 %v10058_v60  ;;  %v10142_v37 = vld [vmem:[%s12188_s12 + $0x1168] ss:$16 sps:$4 sm:$0xff]   ;;  %v10147_v60 = vld [vmem:[%s12188_s12 + $0x1184] ss:$16 sps:$4 sm:$0xff]  }
 0x399   : > { %7100 = vmatprep.subr.bf16.mxu0 %v10063_v61  ;;  %7633 = vmatprep.subr.bf16.mxu1 %v10066_v62  ;;  %v10150_v61 = vld [vmem:[%s12188_s12 + $0x118c] ss:$16 sps:$4 sm:$0xff]   ;;  %v10145_v62 = vld [vmem:[%s12188_s12 + $0x1180] ss:$16 sps:$4 sm:$0xff]  }
 0x39c   : > { %7101 = vmatpush1.bf16.msra.mxu0 %v10061_v63  ;;  %7634 = vmatpush1.bf16.msra.mxu1 %v10064_v0  ;;  %v10148_v63 = vld [vmem:[%s12188_s12 + $0x1188] ss:$16 sps:$4 sm:$0xff]   ;;  %v10153_v0 = vld [vmem:[%s12188_s12 + $0x11a4] ss:$16 sps:$4 sm:$0xff]  }
 0x39d   : > { %7102 = vmatprep.subr.bf16.mxu0 %v10069_v1  ;;  %7635 = vmatprep.subr.bf16.mxu1 %v10072_v3  ;;  %v10156_v1 = vld [vmem:[%s12188_s12 + $0x11ac] ss:$16 sps:$4 sm:$0xff]   ;;  %v10151_v3 = vld [vmem:[%s12188_s12 + $0x11a0] ss:$16 sps:$4 sm:$0xff]  }
 0x3a0   : > { %7103 = vmatpush1.bf16.msra.mxu0 %v10067_v5  ;;  %7636 = vmatpush1.bf16.msra.mxu1 %v10070_v6  ;;  %v10154_v5 = vld [vmem:[%s12188_s12 + $0x11a8] ss:$16 sps:$4 sm:$0xff]   ;;  %v10159_v6 = vld [vmem:[%s12188_s12 + $0x11c4] ss:$16 sps:$4 sm:$0xff]  }
 0x3a1   : > { %7113 = vmatprep.subr.bf16.mxu0 %v10075_v7  ;;  %7646 = vmatprep.subr.bf16.mxu1 %v10078_v57  ;;  %v10162_v7 = vld [vmem:[%s12188_s12 + $0x11cc] ss:$16 sps:$4 sm:$0xff]   ;;  %v10157_v57 = vld [vmem:[%s12188_s12 + $0x11c0] ss:$16 sps:$4 sm:$0xff]  }
 0x3a3   : > { %7105 = vmatmul.mubr.bf16.vlgmr.msra.gmra.mrb[0].mxu0 %v2771_v9  ;;  %7638 = vmatmul.mubr.bf16.vlgmr.msra.gmra.mrb[0].mxu1 %v2771_v9  ;;  %v10165_v9 = vld [vmem:[%s12188_s12 + $0x11e4] ss:$16 sps:$4 sm:$0xff]  }
 0x3a4   : > { %7114 = vmatpush1.bf16.msra.mxu0 %v10073_v10  ;;  %7647 = vmatpush1.bf16.msra.mxu1 %v10076_v2  ;;  %v10168_v10 = vld [vmem:[%s12188_s12 + $0x11ec] ss:$16 sps:$4 sm:$0xff]   ;;  %v10163_v2 = vld [vmem:[%s12188_s12 + $0x11e0] ss:$16 sps:$4 sm:$0xff]  }
 0x3a5   : > { %7115 = vmatprep.subr.bf16.mxu0 %v10081_v11  ;;  %7648 = vmatprep.subr.bf16.mxu1 %v10084_v12  ;;  %v10166_v11 = vld [vmem:[%s12188_s12 + $0x11e8] ss:$16 sps:$4 sm:$0xff]   ;;  %v10171_v12 = vld [vmem:[%s12188_s12 + $0x1204] ss:$16 sps:$4 sm:$0xff]  }
 0x3a6   : > { %7145 = vmatprep.mubr.bf16.mxu0 %v12811_v13  ;;  %7678 = vmatprep.mubr.bf16.mxu1 %v12811_v13 }
 0x3a8   : > { %7116 = vmatpush1.bf16.msra.mxu0 %v10079_v34  ;;  %7649 = vmatpush1.bf16.msra.mxu1 %v10082_v14  ;;  %v10174_v34 = vld [vmem:[%s12188_s12 + $0x120c] ss:$16 sps:$4 sm:$0xff]   ;;  %v12877_v14 = vrot.slane %v12796_v4, %v12193_v24  ;;  %v10175_v4 = vld [vmem:[%s12188_s12 + $0x1220] ss:$16 sps:$4 sm:$0xff]  }
 0x3a9   : > { %7117 = vmatprep.subr.bf16.mxu0 %v10087_v15  ;;  %7650 = vmatprep.subr.bf16.mxu1 %v10090_v16  ;;  %v10169_v15 = vld [vmem:[%s12188_s12 + $0x1200] ss:$16 sps:$4 sm:$0xff]   ;;  %v10172_v16 = vld [vmem:[%s12188_s12 + $0x1208] ss:$16 sps:$4 sm:$0xff]  }
 0x3ac   : > { %7118 = vmatpush1.bf16.msra.mxu0 %v10085_v17  ;;  %7651 = vmatpush1.bf16.msra.mxu1 %v10088_v18  ;;  %v10177_v17 = vld [vmem:[%s12188_s12 + $0x1224] ss:$16 sps:$4 sm:$0xff]   ;;  %v10180_v18 = vld [vmem:[%s12188_s12 + $0x122c] ss:$16 sps:$4 sm:$0xff]  }
 0x3ad   : > { %7119 = vmatprep.subr.bf16.mxu0 %v10093_v21  ;;  %7652 = vmatprep.subr.bf16.mxu1 %v10096_v22  ;;  %v2821_v21 = vcombine.high %v12811_v13, %v12811_v13  ;;  %v10178_v22 = vld [vmem:[%s12188_s12 + $0x1228] ss:$16 sps:$4 sm:$0xff]   ;;  %v10181_v13 = vld [vmem:[%s12188_s12 + $0x1240] ss:$16 sps:$4 sm:$0xff]  }
 0x3b0   : > { %7120 = vmatpush1.bf16.msra.mxu0 %v10091_v23  ;;  %7653 = vmatpush1.bf16.msra.mxu1 %v10094_v25  ;;  %v10183_v23 = vld [vmem:[%s12188_s12 + $0x1244] ss:$16 sps:$4 sm:$0xff]   ;;  %v10186_v25 = vld [vmem:[%s12188_s12 + $0x124c] ss:$16 sps:$4 sm:$0xff]  }
 0x3b1   : > { %7121 = vmatprep.subr.bf16.mxu0 %v10099_v26  ;;  %7654 = vmatprep.subr.bf16.mxu1 %v10102_v27  ;;  %v10184_v26 = vld [vmem:[%s12188_s12 + $0x1248] ss:$16 sps:$4 sm:$0xff]   ;;  %v10189_v27 = vld [vmem:[%s12188_s12 + $0x1264] ss:$16 sps:$4 sm:$0xff]  }
 0x3b4   : > { %7122 = vmatpush1.bf16.msra.mxu0 %v10097_v29  ;;  %7655 = vmatpush1.bf16.msra.mxu1 %v10100_v30  ;;  %v10192_v29 = vld [vmem:[%s12188_s12 + $0x126c] ss:$16 sps:$4 sm:$0xff]   ;;  %v10187_v30 = vld [vmem:[%s12188_s12 + $0x1260] ss:$16 sps:$4 sm:$0xff]  }
 0x3b5   : > { %7123 = vmatprep.subr.bf16.mxu0 %v10105_v31  ;;  %7656 = vmatprep.subr.bf16.mxu1 %v10108_v32  ;;  %v10190_v31 = vld [vmem:[%s12188_s12 + $0x1268] ss:$16 sps:$4 sm:$0xff]   ;;  %v10195_v32 = vld [vmem:[%s12188_s12 + $0x1284] ss:$16 sps:$4 sm:$0xff]  }
 0x3b8   : > { %7124 = vmatpush1.bf16.msra.mxu0 %v10103_v33  ;;  %7657 = vmatpush1.bf16.msra.mxu1 %v10106_v36  ;;  %v10198_v33 = vld [vmem:[%s12188_s12 + $0x128c] ss:$16 sps:$4 sm:$0xff]   ;;  %v10193_v36 = vld [vmem:[%s12188_s12 + $0x1280] ss:$16 sps:$4 sm:$0xff]  }
 0x3b9   : > { %7125 = vmatprep.subr.bf16.mxu0 %v10111_v38  ;;  %7658 = vmatprep.subr.bf16.mxu1 %v10114_v20  ;;  %v10196_v38 = vld [vmem:[%s12188_s12 + $0x1288] ss:$16 sps:$4 sm:$0xff]   ;;  %v10201_v20 = vld [vmem:[%s12188_s12 + $0x12a4] ss:$16 sps:$4 sm:$0xff]  }
 0x3bc   : > { %7126 = vmatpush1.bf16.msra.mxu0 %v10109_v39  ;;  %7659 = vmatpush1.bf16.msra.mxu1 %v10112_v28  ;;  %v10204_v39 = vld [vmem:[%s12188_s12 + $0x12ac] ss:$16 sps:$4 sm:$0xff]   ;;  %v10199_v28 = vld [vmem:[%s12188_s12 + $0x12a0] ss:$16 sps:$4 sm:$0xff]  }
 0x3bd   : > { %7127 = vmatprep.subr.bf16.mxu0 %v10117_v40  ;;  %7660 = vmatprep.subr.bf16.mxu1 %v10120_v41  ;;  %v10202_v40 = vld [vmem:[%s12188_s12 + $0x12a8] ss:$16 sps:$4 sm:$0xff]   ;;  %v10207_v41 = vld [vmem:[%s12188_s12 + $0x12c4] ss:$16 sps:$4 sm:$0xff]  }
 0x3c0   : > { %7128 = vmatpush1.bf16.msra.mxu0 %v10115_v42  ;;  %7661 = vmatpush1.bf16.msra.mxu1 %v10118_v43  ;;  %v10210_v42 = vld [vmem:[%s12188_s12 + $0x12cc] ss:$16 sps:$4 sm:$0xff]   ;;  %v10205_v43 = vld [vmem:[%s12188_s12 + $0x12c0] ss:$16 sps:$4 sm:$0xff]  }
 0x3c1   : > { %7129 = vmatprep.subr.bf16.mxu0 %v10123_v45  ;;  %7662 = vmatprep.subr.bf16.mxu1 %v10126_v46  ;;  %v10208_v45 = vld [vmem:[%s12188_s12 + $0x12c8] ss:$16 sps:$4 sm:$0xff]   ;;  %v10213_v46 = vld [vmem:[%s12188_s12 + $0x12e4] ss:$16 sps:$4 sm:$0xff]  }
 0x3c4   : > { %7130 = vmatpush1.bf16.msra.mxu0 %v10121_v47  ;;  %7663 = vmatpush1.bf16.msra.mxu1 %v10124_v48  ;;  %v10216_v47 = vld [vmem:[%s12188_s12 + $0x12ec] ss:$16 sps:$4 sm:$0xff]   ;;  %v10211_v48 = vld [vmem:[%s12188_s12 + $0x12e0] ss:$16 sps:$4 sm:$0xff]  }
 0x3c5   : > { %7131 = vmatprep.subr.bf16.mxu0 %v10129_v49  ;;  %7664 = vmatprep.subr.bf16.mxu1 %v10132_v50  ;;  %v10214_v49 = vld [vmem:[%s12188_s12 + $0x12e8] ss:$16 sps:$4 sm:$0xff]   ;;  %v10219_v50 = vld [vmem:[%s12188_s12 + $0x1304] ss:$16 sps:$4 sm:$0xff]  }
 0x3c8   : > { %7132 = vmatpush1.bf16.msra.mxu0 %v10127_v35  ;;  %7665 = vmatpush1.bf16.msra.mxu1 %v10130_v51  ;;  %v10222_v35 = vld [vmem:[%s12188_s12 + $0x130c] ss:$16 sps:$4 sm:$0xff]   ;;  %v10217_v51 = vld [vmem:[%s12188_s12 + $0x1300] ss:$16 sps:$4 sm:$0xff]  }
 0x3c9   : > { %7133 = vmatprep.subr.bf16.mxu0 %v10135_v52  ;;  %7666 = vmatprep.subr.bf16.mxu1 %v10138_v44  ;;  %v10220_v52 = vld [vmem:[%s12188_s12 + $0x1308] ss:$16 sps:$4 sm:$0xff]   ;;  %v10225_v44 = vld [vmem:[%s12188_s12 + $0x1324] ss:$16 sps:$4 sm:$0xff]  }
 0x3cc   : > { %7134 = vmatpush1.bf16.msra.mxu0 %v10133_v53  ;;  %7667 = vmatpush1.bf16.msra.mxu1 %v10136_v55  ;;  %v10228_v53 = vld [vmem:[%s12188_s12 + $0x132c] ss:$16 sps:$4 sm:$0xff]   ;;  %v10223_v55 = vld [vmem:[%s12188_s12 + $0x1320] ss:$16 sps:$4 sm:$0xff]  }
 0x3cd   : > { %7135 = vmatprep.subr.bf16.mxu0 %v10141_v56  ;;  %7668 = vmatprep.subr.bf16.mxu1 %v10144_v58  ;;  %v10226_v56 = vld [vmem:[%s12188_s12 + $0x1328] ss:$16 sps:$4 sm:$0xff]   ;;  %v10231_v58 = vld [vmem:[%s12188_s12 + $0x1344] ss:$16 sps:$4 sm:$0xff]  }
 0x3d0   : > { %7136 = vmatpush1.bf16.msra.mxu0 %v10139_v59  ;;  %7669 = vmatpush1.bf16.msra.mxu1 %v10142_v37  ;;  %v10234_v59 = vld [vmem:[%s12188_s12 + $0x134c] ss:$16 sps:$4 sm:$0xff]   ;;  %v10229_v37 = vld [vmem:[%s12188_s12 + $0x1340] ss:$16 sps:$4 sm:$0xff]  }
 0x3d1   : > { %7137 = vmatprep.subr.bf16.mxu0 %v10147_v60  ;;  %7670 = vmatprep.subr.bf16.mxu1 %v10150_v61  ;;  %v10232_v60 = vld [vmem:[%s12188_s12 + $0x1348] ss:$16 sps:$4 sm:$0xff]   ;;  %v10237_v61 = vld [vmem:[%s12188_s12 + $0x1364] ss:$16 sps:$4 sm:$0xff]  }
 0x3d4   : > { %7138 = vmatpush1.bf16.msra.mxu0 %v10145_v62  ;;  %7671 = vmatpush1.bf16.msra.mxu1 %v10148_v63  ;;  %v10240_v62 = vld [vmem:[%s12188_s12 + $0x136c] ss:$16 sps:$4 sm:$0xff]   ;;  %v10235_v63 = vld [vmem:[%s12188_s12 + $0x1360] ss:$16 sps:$4 sm:$0xff]  }
 0x3d5   : > { %7139 = vmatprep.subr.bf16.mxu0 %v10153_v0  ;;  %7672 = vmatprep.subr.bf16.mxu1 %v10156_v1  ;;  %v10238_v0 = vld [vmem:[%s12188_s12 + $0x1368] ss:$16 sps:$4 sm:$0xff]   ;;  %v10243_v1 = vld [vmem:[%s12188_s12 + $0x1384] ss:$16 sps:$4 sm:$0xff]  }
 0x3d8   : > { %7140 = vmatpush1.bf16.msra.mxu0 %v10151_v3  ;;  %7673 = vmatpush1.bf16.msra.mxu1 %v10154_v5  ;;  %v10246_v3 = vld [vmem:[%s12188_s12 + $0x138c] ss:$16 sps:$4 sm:$0xff]   ;;  %v10241_v5 = vld [vmem:[%s12188_s12 + $0x1380] ss:$16 sps:$4 sm:$0xff]  }
 0x3d9   : > { %7141 = vmatprep.subr.bf16.mxu0 %v10159_v6  ;;  %7674 = vmatprep.subr.bf16.mxu1 %v10162_v7  ;;  %v10244_v6 = vld [vmem:[%s12188_s12 + $0x1388] ss:$16 sps:$4 sm:$0xff]   ;;  %v10249_v7 = vld [vmem:[%s12188_s12 + $0x13a4] ss:$16 sps:$4 sm:$0xff]  }
 0x3dc   : > { %7142 = vmatpush1.bf16.msra.mxu0 %v10157_v57  ;;  %7675 = vmatpush1.bf16.msra.mxu1 %v10160_v8  ;;  %v10252_v57 = vld [vmem:[%s12188_s12 + $0x13ac] ss:$16 sps:$4 sm:$0xff]   ;;  %v10247_v8 = vld [vmem:[%s12188_s12 + $0x13a0] ss:$16 sps:$4 sm:$0xff]  }
 0x3dd   : > { %7143 = vmatprep.subr.bf16.mxu0 %v10165_v9  ;;  %7676 = vmatprep.subr.bf16.mxu1 %v10168_v10  ;;  %v10250_v9 = vld [vmem:[%s12188_s12 + $0x13a8] ss:$16 sps:$4 sm:$0xff]   ;;  %v10255_v10 = vld [vmem:[%s12188_s12 + $0x13c4] ss:$16 sps:$4 sm:$0xff]  }
 0x3e0   : > { %7144 = vmatpush1.bf16.msra.mxu0 %v10163_v2  ;;  %7677 = vmatpush1.bf16.msra.mxu1 %v10166_v11  ;;  %v10258_v2 = vld [vmem:[%s12188_s12 + $0x13cc] ss:$16 sps:$4 sm:$0xff]   ;;  %v2774_v11 = vcombine.high %v12788_v54, %v12788_v54  ;;  %v10259_v54 = vld [vmem:[%s12188_s12 + $0x13e0] ss:$16 sps:$4 sm:$0xff]  }
 0x3e1   : > { %7154 = vmatprep.subr.bf16.mxu0 %v10171_v12  ;;  %7687 = vmatprep.subr.bf16.mxu1 %v10174_v34  ;;  %v10253_v12 = vld [vmem:[%s12188_s12 + $0x13c0] ss:$16 sps:$4 sm:$0xff]   ;;  %v10256_v34 = vld [vmem:[%s12188_s12 + $0x13c8] ss:$16 sps:$4 sm:$0xff]  }
 0x3e3   : > { %7146 = vmatmul.mubr.bf16.vlgmr.msra.gmra.mrb[0].mxu0 %v12877_v14  ;;  %7679 = vmatmul.mubr.bf16.vlgmr.msra.gmra.mrb[0].mxu1 %v12877_v14 }
 0x3e4   : > { %7155 = vmatpush1.bf16.msra.mxu0 %v10169_v15  ;;  %7688 = vmatpush1.bf16.msra.mxu1 %v10172_v16  ;;  %v10261_v15 = vld [vmem:[%s12188_s12 + $0x13e4] ss:$16 sps:$4 sm:$0xff]   ;;  %v10264_v16 = vld [vmem:[%s12188_s12 + $0x13ec] ss:$16 sps:$4 sm:$0xff]  }
 0x3e5   : > { %7156 = vmatprep.subr.bf16.mxu0 %v10177_v17  ;;  %7689 = vmatprep.subr.bf16.mxu1 %v10180_v18  ;;  %v12946_v17 = vrot.slane %v2774_v11, %v12193_v24  ;;  %v10262_v18 = vld [vmem:[%s12188_s12 + $0x13e8] ss:$16 sps:$4 sm:$0xff]  }
 0x3e6   : > { %7186 = vmatprep.mubr.bf16.mxu0 %v2821_v21  ;;  %7719 = vmatprep.mubr.bf16.mxu1 %v2821_v21  ;;  %v10267_v21 = vld [vmem:[%s12188_s12 + $0x1404] ss:$16 sps:$4 sm:$0xff]   ;;  %v10340_v11 = vld [vmem:[%s12188_s12 + $0x1588] ss:$16 sps:$4 sm:$0xff]  }
 0x3e8   : > { %7157 = vmatpush1.bf16.msra.mxu0 %v10175_v4  ;;  %7690 = vmatpush1.bf16.msra.mxu1 %v10178_v22  ;;  %v10270_v4 = vld [vmem:[%s12188_s12 + $0x140c] ss:$16 sps:$4 sm:$0xff]   ;;  %v2790_v22 = vcombine.high %v12946_v17, %v12946_v17 }
 0x3e9   : > { %7158 = vmatprep.subr.bf16.mxu0 %v10183_v23  ;;  %7691 = vmatprep.subr.bf16.mxu1 %v10186_v25  ;;  %v2819_v23 = vcombine.high %v12877_v14, %v12877_v14  ;;  %v10265_v25 = vld [vmem:[%s12188_s12 + $0x1400] ss:$16 sps:$4 sm:$0xff]  }
 0x3ea   : > { %v10271_v14 = vld [vmem:[%s12188_s12 + $0x1420] ss:$16 sps:$4 sm:$0xff]  }
 0x3ec   : > { %7159 = vmatpush1.bf16.msra.mxu0 %v10181_v13  ;;  %7692 = vmatpush1.bf16.msra.mxu1 %v10184_v26  ;;  %v10268_v13 = vld [vmem:[%s12188_s12 + $0x1408] ss:$16 sps:$4 sm:$0xff]   ;;  %v10273_v26 = vld [vmem:[%s12188_s12 + $0x1424] ss:$16 sps:$4 sm:$0xff]  }
 0x3ed   : > { %7160 = vmatprep.subr.bf16.mxu0 %v10189_v27  ;;  %7693 = vmatprep.subr.bf16.mxu1 %v10192_v29  ;;  %v10276_v27 = vld [vmem:[%s12188_s12 + $0x142c] ss:$16 sps:$4 sm:$0xff]   ;;  %v12961_v29 = vrot.slane %v2790_v22, %v12193_v24  ;;  %v10357_v22 = vld [vmem:[%s12188_s12 + $0x15e4] ss:$16 sps:$4 sm:$0xff]  }
 0x3f0   : > { %7161 = vmatpush1.bf16.msra.mxu0 %v10187_v30  ;;  %7694 = vmatpush1.bf16.msra.mxu1 %v10190_v31  ;;  %v10274_v30 = vld [vmem:[%s12188_s12 + $0x1428] ss:$16 sps:$4 sm:$0xff]   ;;  %v10279_v31 = vld [vmem:[%s12188_s12 + $0x1444] ss:$16 sps:$4 sm:$0xff]  }
 0x3f1   : > { %7162 = vmatprep.subr.bf16.mxu0 %v10195_v32  ;;  %7695 = vmatprep.subr.bf16.mxu1 %v10198_v33  ;;  %v10282_v32 = vld [vmem:[%s12188_s12 + $0x144c] ss:$16 sps:$4 sm:$0xff]   ;;  %v10277_v33 = vld [vmem:[%s12188_s12 + $0x1440] ss:$16 sps:$4 sm:$0xff]  }
 0x3f4   : > { %7163 = vmatpush1.bf16.msra.mxu0 %v10193_v36  ;;  %7696 = vmatpush1.bf16.msra.mxu1 %v10196_v38  ;;  %v10280_v36 = vld [vmem:[%s12188_s12 + $0x1448] ss:$16 sps:$4 sm:$0xff]   ;;  %v10285_v38 = vld [vmem:[%s12188_s12 + $0x1464] ss:$16 sps:$4 sm:$0xff]  }
 0x3f5   : > { %7164 = vmatprep.subr.bf16.mxu0 %v10201_v20  ;;  %7697 = vmatprep.subr.bf16.mxu1 %v10204_v39  ;;  %v10288_v20 = vld [vmem:[%s12188_s12 + $0x146c] ss:$16 sps:$4 sm:$0xff]   ;;  %v10283_v39 = vld [vmem:[%s12188_s12 + $0x1460] ss:$16 sps:$4 sm:$0xff]  }
 0x3f8   : > { %7165 = vmatpush1.bf16.msra.mxu0 %v10199_v28  ;;  %7698 = vmatpush1.bf16.msra.mxu1 %v10202_v40  ;;  %v10286_v28 = vld [vmem:[%s12188_s12 + $0x1468] ss:$16 sps:$4 sm:$0xff]   ;;  %v10291_v40 = vld [vmem:[%s12188_s12 + $0x1484] ss:$16 sps:$4 sm:$0xff]  }
 0x3f9   : > { %7166 = vmatprep.subr.bf16.mxu0 %v10207_v41  ;;  %7699 = vmatprep.subr.bf16.mxu1 %v10210_v42  ;;  %v10294_v41 = vld [vmem:[%s12188_s12 + $0x148c] ss:$16 sps:$4 sm:$0xff]   ;;  %v10289_v42 = vld [vmem:[%s12188_s12 + $0x1480] ss:$16 sps:$4 sm:$0xff]  }
 0x3fc   : > { %7167 = vmatpush1.bf16.msra.mxu0 %v10205_v43  ;;  %7700 = vmatpush1.bf16.msra.mxu1 %v10208_v45  ;;  %v10292_v43 = vld [vmem:[%s12188_s12 + $0x1488] ss:$16 sps:$4 sm:$0xff]   ;;  %v10297_v45 = vld [vmem:[%s12188_s12 + $0x14a4] ss:$16 sps:$4 sm:$0xff]  }
 0x3fd   : > { %7168 = vmatprep.subr.bf16.mxu0 %v10213_v46  ;;  %7701 = vmatprep.subr.bf16.mxu1 %v10216_v47  ;;  %v10300_v46 = vld [vmem:[%s12188_s12 + $0x14ac] ss:$16 sps:$4 sm:$0xff]   ;;  %v10295_v47 = vld [vmem:[%s12188_s12 + $0x14a0] ss:$16 sps:$4 sm:$0xff]  }
 0x400   : > { %7169 = vmatpush1.bf16.msra.mxu0 %v10211_v48  ;;  %7702 = vmatpush1.bf16.msra.mxu1 %v10214_v49  ;;  %v10298_v48 = vld [vmem:[%s12188_s12 + $0x14a8] ss:$16 sps:$4 sm:$0xff]   ;;  %v10303_v49 = vld [vmem:[%s12188_s12 + $0x14c4] ss:$16 sps:$4 sm:$0xff]  }
 0x401   : > { %7170 = vmatprep.subr.bf16.mxu0 %v10219_v50  ;;  %7703 = vmatprep.subr.bf16.mxu1 %v10222_v35  ;;  %v10306_v50 = vld [vmem:[%s12188_s12 + $0x14cc] ss:$16 sps:$4 sm:$0xff]   ;;  %v10301_v35 = vld [vmem:[%s12188_s12 + $0x14c0] ss:$16 sps:$4 sm:$0xff]  }
 0x404   : > { %7171 = vmatpush1.bf16.msra.mxu0 %v10217_v51  ;;  %7704 = vmatpush1.bf16.msra.mxu1 %v10220_v52  ;;  %v10304_v51 = vld [vmem:[%s12188_s12 + $0x14c8] ss:$16 sps:$4 sm:$0xff]   ;;  %v10309_v52 = vld [vmem:[%s12188_s12 + $0x14e4] ss:$16 sps:$4 sm:$0xff]  }
 0x405   : > { %7172 = vmatprep.subr.bf16.mxu0 %v10225_v44  ;;  %7705 = vmatprep.subr.bf16.mxu1 %v10228_v53  ;;  %v10312_v44 = vld [vmem:[%s12188_s12 + $0x14ec] ss:$16 sps:$4 sm:$0xff]   ;;  %v10307_v53 = vld [vmem:[%s12188_s12 + $0x14e0] ss:$16 sps:$4 sm:$0xff]  }
 0x408   : > { %7173 = vmatpush1.bf16.msra.mxu0 %v10223_v55  ;;  %7706 = vmatpush1.bf16.msra.mxu1 %v10226_v56  ;;  %v10310_v55 = vld [vmem:[%s12188_s12 + $0x14e8] ss:$16 sps:$4 sm:$0xff]   ;;  %v10315_v56 = vld [vmem:[%s12188_s12 + $0x1504] ss:$16 sps:$4 sm:$0xff]  }
 0x409   : > { %7174 = vmatprep.subr.bf16.mxu0 %v10231_v58  ;;  %7707 = vmatprep.subr.bf16.mxu1 %v10234_v59  ;;  %v10318_v58 = vld [vmem:[%s12188_s12 + $0x150c] ss:$16 sps:$4 sm:$0xff]   ;;  %v10313_v59 = vld [vmem:[%s12188_s12 + $0x1500] ss:$16 sps:$4 sm:$0xff]  }
 0x40c   : > { %7175 = vmatpush1.bf16.msra.mxu0 %v10229_v37  ;;  %7708 = vmatpush1.bf16.msra.mxu1 %v10232_v60  ;;  %v10316_v37 = vld [vmem:[%s12188_s12 + $0x1508] ss:$16 sps:$4 sm:$0xff]   ;;  %v10321_v60 = vld [vmem:[%s12188_s12 + $0x1524] ss:$16 sps:$4 sm:$0xff]  }
 0x40d   : > { %7176 = vmatprep.subr.bf16.mxu0 %v10237_v61  ;;  %7709 = vmatprep.subr.bf16.mxu1 %v10240_v62  ;;  %v10324_v61 = vld [vmem:[%s12188_s12 + $0x152c] ss:$16 sps:$4 sm:$0xff]   ;;  %v10319_v62 = vld [vmem:[%s12188_s12 + $0x1520] ss:$16 sps:$4 sm:$0xff]  }
 0x410   : > { %7177 = vmatpush1.bf16.msra.mxu0 %v10235_v63  ;;  %7710 = vmatpush1.bf16.msra.mxu1 %v10238_v0  ;;  %v10322_v63 = vld [vmem:[%s12188_s12 + $0x1528] ss:$16 sps:$4 sm:$0xff]   ;;  %v10327_v0 = vld [vmem:[%s12188_s12 + $0x1544] ss:$16 sps:$4 sm:$0xff]  }
 0x411   : > { %7178 = vmatprep.subr.bf16.mxu0 %v10243_v1  ;;  %7711 = vmatprep.subr.bf16.mxu1 %v10246_v3  ;;  %v10330_v1 = vld [vmem:[%s12188_s12 + $0x154c] ss:$16 sps:$4 sm:$0xff]   ;;  %v10325_v3 = vld [vmem:[%s12188_s12 + $0x1540] ss:$16 sps:$4 sm:$0xff]  }
 0x414   : > { %7179 = vmatpush1.bf16.msra.mxu0 %v10241_v5  ;;  %7712 = vmatpush1.bf16.msra.mxu1 %v10244_v6  ;;  %v10328_v5 = vld [vmem:[%s12188_s12 + $0x1548] ss:$16 sps:$4 sm:$0xff]   ;;  %v10333_v6 = vld [vmem:[%s12188_s12 + $0x1564] ss:$16 sps:$4 sm:$0xff]  }
 0x415   : > { %7180 = vmatprep.subr.bf16.mxu0 %v10249_v7  ;;  %7713 = vmatprep.subr.bf16.mxu1 %v10252_v57  ;;  %v10336_v7 = vld [vmem:[%s12188_s12 + $0x156c] ss:$16 sps:$4 sm:$0xff]   ;;  %v10331_v57 = vld [vmem:[%s12188_s12 + $0x1560] ss:$16 sps:$4 sm:$0xff]  }
 0x418   : > { %7181 = vmatpush1.bf16.msra.mxu0 %v10247_v8  ;;  %7714 = vmatpush1.bf16.msra.mxu1 %v10250_v9  ;;  %v10334_v8 = vld [vmem:[%s12188_s12 + $0x1568] ss:$16 sps:$4 sm:$0xff]   ;;  %v10339_v9 = vld [vmem:[%s12188_s12 + $0x1584] ss:$16 sps:$4 sm:$0xff]  }
 0x419   : > { %7182 = vmatprep.subr.bf16.mxu0 %v10255_v10  ;;  %7715 = vmatprep.subr.bf16.mxu1 %v10258_v2  ;;  %v10342_v10 = vld [vmem:[%s12188_s12 + $0x158c] ss:$16 sps:$4 sm:$0xff]   ;;  %v10337_v2 = vld [vmem:[%s12188_s12 + $0x1580] ss:$16 sps:$4 sm:$0xff]  }
 0x41c   : > { %7183 = vmatpush1.bf16.msra.mxu0 %v10253_v12  ;;  %7716 = vmatpush1.bf16.msra.mxu1 %v10256_v34  ;;  %v10345_v12 = vld [vmem:[%s12188_s12 + $0x15a4] ss:$16 sps:$4 sm:$0xff]   ;;  %v10348_v34 = vld [vmem:[%s12188_s12 + $0x15ac] ss:$16 sps:$4 sm:$0xff]  }
 0x41d   : > { %7184 = vmatprep.subr.bf16.mxu0 %v10261_v15  ;;  %7717 = vmatprep.subr.bf16.mxu1 %v10264_v16  ;;  %v10343_v15 = vld [vmem:[%s12188_s12 + $0x15a0] ss:$16 sps:$4 sm:$0xff]   ;;  %v10346_v16 = vld [vmem:[%s12188_s12 + $0x15a8] ss:$16 sps:$4 sm:$0xff]  }
 0x420   : > { %7185 = vmatpush1.bf16.msra.mxu0 %v10259_v54  ;;  %7718 = vmatpush1.bf16.msra.mxu1 %v10262_v18  ;;  %v10351_v54 = vld [vmem:[%s12188_s12 + $0x15c4] ss:$16 sps:$4 sm:$0xff]   ;;  %v10354_v18 = vld [vmem:[%s12188_s12 + $0x15cc] ss:$16 sps:$4 sm:$0xff]  }
 0x421   : > { %7195 = vmatprep.subr.bf16.mxu0 %v10267_v21  ;;  %7728 = vmatprep.subr.bf16.mxu1 %v10270_v4  ;;  %v10349_v21 = vld [vmem:[%s12188_s12 + $0x15c0] ss:$16 sps:$4 sm:$0xff]   ;;  %v10352_v4 = vld [vmem:[%s12188_s12 + $0x15c8] ss:$16 sps:$4 sm:$0xff]  }
 0x423   : > { %7187 = vmatmul.mubr.bf16.vlgmr.msra.gmra.mrb[0].mxu0 %v2819_v23  ;;  %7720 = vmatmul.mubr.bf16.vlgmr.msra.gmra.mrb[0].mxu1 %v2819_v23  ;;  %v10360_v23 = vld [vmem:[%s12188_s12 + $0x15ec] ss:$16 sps:$4 sm:$0xff]  }
 0x424   : > { %7196 = vmatpush1.bf16.msra.mxu0 %v10265_v25  ;;  %7729 = vmatpush1.bf16.msra.mxu1 %v10268_v13  ;;  %v10355_v25 = vld [vmem:[%s12188_s12 + $0x15e0] ss:$16 sps:$4 sm:$0xff]   ;;  %v10358_v13 = vld [vmem:[%s12188_s12 + $0x15e8] ss:$16 sps:$4 sm:$0xff]  }
 0x425   : > { %7197 = vmatprep.subr.bf16.mxu0 %v10273_v26  ;;  %7730 = vmatprep.subr.bf16.mxu1 %v10276_v27  ;;  %v10364_v26 = vld [vmem:[%s12188_s12 + $0x1604] ss:$16 sps:$4 sm:$0xff]   ;;  %v10367_v27 = vld [vmem:[%s12188_s12 + $0x160c] ss:$16 sps:$4 sm:$0xff]  }
 0x426   : > { %7227 = vmatprep.mubr.bf16.mxu0 %v12961_v29  ;;  %7760 = vmatprep.mubr.bf16.mxu1 %v12961_v29 }
 0x428   : > { %7198 = vmatpush1.bf16.msra.mxu0 %v10271_v14  ;;  %7731 = vmatpush1.bf16.msra.mxu1 %v10274_v30  ;;  %v13039_v14 = vrot.slane %v12946_v17, %v12193_v24  ;;  %v10362_v30 = vld [vmem:[%s12188_s12 + $0x1600] ss:$16 sps:$4 sm:$0xff]  }
 0x429   : > { %7199 = vmatprep.subr.bf16.mxu0 %v10279_v31  ;;  %7732 = vmatprep.subr.bf16.mxu1 %v10282_v32  ;;  %v10365_v31 = vld [vmem:[%s12188_s12 + $0x1608] ss:$16 sps:$4 sm:$0xff]   ;;  %v10370_v32 = vld [vmem:[%s12188_s12 + $0x1624] ss:$16 sps:$4 sm:$0xff]   ;;  %v10368_v17 = vld [vmem:[%s12188_s12 + $0x1620] ss:$16 sps:$4 sm:$0xff]  }
 0x42c   : > { %7200 = vmatpush1.bf16.msra.mxu0 %v10277_v33  ;;  %7733 = vmatpush1.bf16.msra.mxu1 %v10280_v36  ;;  %v10373_v33 = vld [vmem:[%s12188_s12 + $0x162c] ss:$16 sps:$4 sm:$0xff]   ;;  %v2822_v36 = vcombine.high %v12961_v29, %v12961_v29  ;;  %v10374_v29 = vld [vmem:[%s12188_s12 + $0x1640] ss:$16 sps:$4 sm:$0xff]  }
 0x42d   : > { %7201 = vmatprep.subr.bf16.mxu0 %v10285_v38  ;;  %7734 = vmatprep.subr.bf16.mxu1 %v10288_v20  ;;  %v10371_v38 = vld [vmem:[%s12188_s12 + $0x1628] ss:$16 sps:$4 sm:$0xff]   ;;  %v10376_v20 = vld [vmem:[%s12188_s12 + $0x1644] ss:$16 sps:$4 sm:$0xff]  }
 0x430   : > { %7202 = vmatpush1.bf16.msra.mxu0 %v10283_v39  ;;  %7735 = vmatpush1.bf16.msra.mxu1 %v10286_v28  ;;  %v10379_v39 = vld [vmem:[%s12188_s12 + $0x164c] ss:$16 sps:$4 sm:$0xff]   ;;  %v10377_v28 = vld [vmem:[%s12188_s12 + $0x1648] ss:$16 sps:$4 sm:$0xff]  }
 0x431   : > { %7203 = vmatprep.subr.bf16.mxu0 %v10291_v40  ;;  %7736 = vmatprep.subr.bf16.mxu1 %v10294_v41  ;;  %v10382_v40 = vld [vmem:[%s12188_s12 + $0x1664] ss:$16 sps:$4 sm:$0xff]   ;;  %v10385_v41 = vld [vmem:[%s12188_s12 + $0x166c] ss:$16 sps:$4 sm:$0xff]  }
 0x434   : > { %7204 = vmatpush1.bf16.msra.mxu0 %v10289_v42  ;;  %7737 = vmatpush1.bf16.msra.mxu1 %v10292_v43  ;;  %v10380_v42 = vld [vmem:[%s12188_s12 + $0x1660] ss:$16 sps:$4 sm:$0xff]   ;;  %v10383_v43 = vld [vmem:[%s12188_s12 + $0x1668] ss:$16 sps:$4 sm:$0xff]  }
 0x435   : > { %7205 = vmatprep.subr.bf16.mxu0 %v10297_v45  ;;  %7738 = vmatprep.subr.bf16.mxu1 %v10300_v46  ;;  %v10388_v45 = vld [vmem:[%s12188_s12 + $0x1684] ss:$16 sps:$4 sm:$0xff]   ;;  %v10391_v46 = vld [vmem:[%s12188_s12 + $0x168c] ss:$16 sps:$4 sm:$0xff]  }
 0x438   : > { %7206 = vmatpush1.bf16.msra.mxu0 %v10295_v47  ;;  %7739 = vmatpush1.bf16.msra.mxu1 %v10298_v48  ;;  %v10386_v47 = vld [vmem:[%s12188_s12 + $0x1680] ss:$16 sps:$4 sm:$0xff]   ;;  %v10389_v48 = vld [vmem:[%s12188_s12 + $0x1688] ss:$16 sps:$4 sm:$0xff]  }
 0x439   : > { %7207 = vmatprep.subr.bf16.mxu0 %v10303_v49  ;;  %7740 = vmatprep.subr.bf16.mxu1 %v10306_v50  ;;  %v10394_v49 = vld [vmem:[%s12188_s12 + $0x16a4] ss:$16 sps:$4 sm:$0xff]   ;;  %v10397_v50 = vld [vmem:[%s12188_s12 + $0x16ac] ss:$16 sps:$4 sm:$0xff]  }
 0x43c   : > { %7208 = vmatpush1.bf16.msra.mxu0 %v10301_v35  ;;  %7741 = vmatpush1.bf16.msra.mxu1 %v10304_v51  ;;  %v10392_v35 = vld [vmem:[%s12188_s12 + $0x16a0] ss:$16 sps:$4 sm:$0xff]   ;;  %v10395_v51 = vld [vmem:[%s12188_s12 + $0x16a8] ss:$16 sps:$4 sm:$0xff]  }
 0x43d   : > { %7209 = vmatprep.subr.bf16.mxu0 %v10309_v52  ;;  %7742 = vmatprep.subr.bf16.mxu1 %v10312_v44  ;;  %v10400_v52 = vld [vmem:[%s12188_s12 + $0x16c4] ss:$16 sps:$4 sm:$0xff]   ;;  %v10403_v44 = vld [vmem:[%s12188_s12 + $0x16cc] ss:$16 sps:$4 sm:$0xff]  }
 0x440   : > { %7210 = vmatpush1.bf16.msra.mxu0 %v10307_v53  ;;  %7743 = vmatpush1.bf16.msra.mxu1 %v10310_v55  ;;  %v10398_v53 = vld [vmem:[%s12188_s12 + $0x16c0] ss:$16 sps:$4 sm:$0xff]   ;;  %v10401_v55 = vld [vmem:[%s12188_s12 + $0x16c8] ss:$16 sps:$4 sm:$0xff]  }
 0x441   : > { %7211 = vmatprep.subr.bf16.mxu0 %v10315_v56  ;;  %7744 = vmatprep.subr.bf16.mxu1 %v10318_v58  ;;  %v10406_v56 = vld [vmem:[%s12188_s12 + $0x16e4] ss:$16 sps:$4 sm:$0xff]   ;;  %v10409_v58 = vld [vmem:[%s12188_s12 + $0x16ec] ss:$16 sps:$4 sm:$0xff]  }
 0x444   : > { %7212 = vmatpush1.bf16.msra.mxu0 %v10313_v59  ;;  %7745 = vmatpush1.bf16.msra.mxu1 %v10316_v37  ;;  %v10404_v59 = vld [vmem:[%s12188_s12 + $0x16e0] ss:$16 sps:$4 sm:$0xff]   ;;  %v10407_v37 = vld [vmem:[%s12188_s12 + $0x16e8] ss:$16 sps:$4 sm:$0xff]  }
 0x445   : > { %7213 = vmatprep.subr.bf16.mxu0 %v10321_v60  ;;  %7746 = vmatprep.subr.bf16.mxu1 %v10324_v61  ;;  %v10412_v60 = vld [vmem:[%s12188_s12 + $0x1704] ss:$16 sps:$4 sm:$0xff]   ;;  %v10415_v61 = vld [vmem:[%s12188_s12 + $0x170c] ss:$16 sps:$4 sm:$0xff]  }
 0x448   : > { %7214 = vmatpush1.bf16.msra.mxu0 %v10319_v62  ;;  %7747 = vmatpush1.bf16.msra.mxu1 %v10322_v63  ;;  %v10410_v62 = vld [vmem:[%s12188_s12 + $0x1700] ss:$16 sps:$4 sm:$0xff]   ;;  %v10413_v63 = vld [vmem:[%s12188_s12 + $0x1708] ss:$16 sps:$4 sm:$0xff]  }
 0x449   : > { %7215 = vmatprep.subr.bf16.mxu0 %v10327_v0  ;;  %7748 = vmatprep.subr.bf16.mxu1 %v10330_v1  ;;  %v10418_v0 = vld [vmem:[%s12188_s12 + $0x1724] ss:$16 sps:$4 sm:$0xff]   ;;  %v10421_v1 = vld [vmem:[%s12188_s12 + $0x172c] ss:$16 sps:$4 sm:$0xff]  }
 0x44c   : > { %7216 = vmatpush1.bf16.msra.mxu0 %v10325_v3  ;;  %7749 = vmatpush1.bf16.msra.mxu1 %v10328_v5  ;;  %v10416_v3 = vld [vmem:[%s12188_s12 + $0x1720] ss:$16 sps:$4 sm:$0xff]   ;;  %v10419_v5 = vld [vmem:[%s12188_s12 + $0x1728] ss:$16 sps:$4 sm:$0xff]  }
 0x44d   : > { %7217 = vmatprep.subr.bf16.mxu0 %v10333_v6  ;;  %7750 = vmatprep.subr.bf16.mxu1 %v10336_v7  ;;  %v10424_v6 = vld [vmem:[%s12188_s12 + $0x1744] ss:$16 sps:$4 sm:$0xff]   ;;  %v10427_v7 = vld [vmem:[%s12188_s12 + $0x174c] ss:$16 sps:$4 sm:$0xff]  }
 0x450   : > { %7218 = vmatpush1.bf16.msra.mxu0 %v10331_v57  ;;  %7751 = vmatpush1.bf16.msra.mxu1 %v10334_v8  ;;  %v10422_v57 = vld [vmem:[%s12188_s12 + $0x1740] ss:$16 sps:$4 sm:$0xff]   ;;  %v10425_v8 = vld [vmem:[%s12188_s12 + $0x1748] ss:$16 sps:$4 sm:$0xff]  }
 0x451   : > { %7219 = vmatprep.subr.bf16.mxu0 %v10339_v9  ;;  %7752 = vmatprep.subr.bf16.mxu1 %v10342_v10  ;;  %v10430_v9 = vld [vmem:[%s12188_s12 + $0x1764] ss:$16 sps:$4 sm:$0xff]   ;;  %v10433_v10 = vld [vmem:[%s12188_s12 + $0x176c] ss:$16 sps:$4 sm:$0xff]  }
 0x454   : > { %7220 = vmatpush1.bf16.msra.mxu0 %v10337_v2  ;;  %7753 = vmatpush1.bf16.msra.mxu1 %v10340_v11  ;;  %v10428_v2 = vld [vmem:[%s12188_s12 + $0x1760] ss:$16 sps:$4 sm:$0xff]   ;;  %v10431_v11 = vld [vmem:[%s12188_s12 + $0x1768] ss:$16 sps:$4 sm:$0xff]  }
 0x455   : > { %7221 = vmatprep.subr.bf16.mxu0 %v10345_v12  ;;  %7754 = vmatprep.subr.bf16.mxu1 %v10348_v34  ;;  %v10436_v12 = vld [vmem:[%s12188_s12 + $0x1784] ss:$16 sps:$4 sm:$0xff]   ;;  %v10439_v34 = vld [vmem:[%s12188_s12 + $0x178c] ss:$16 sps:$4 sm:$0xff]  }
 0x458   : > { %7222 = vmatpush1.bf16.msra.mxu0 %v10343_v15  ;;  %7755 = vmatpush1.bf16.msra.mxu1 %v10346_v16  ;;  %v10434_v15 = vld [vmem:[%s12188_s12 + $0x1780] ss:$16 sps:$4 sm:$0xff]   ;;  %v10437_v16 = vld [vmem:[%s12188_s12 + $0x1788] ss:$16 sps:$4 sm:$0xff]  }
 0x459   : > { %7223 = vmatprep.subr.bf16.mxu0 %v10351_v54  ;;  %7756 = vmatprep.subr.bf16.mxu1 %v10354_v18  ;;  %v10442_v54 = vld [vmem:[%s12188_s12 + $0x17a4] ss:$16 sps:$4 sm:$0xff]   ;;  %v10445_v18 = vld [vmem:[%s12188_s12 + $0x17ac] ss:$16 sps:$4 sm:$0xff]  }
 0x45c   : > { %7224 = vmatpush1.bf16.msra.mxu0 %v10349_v21  ;;  %7757 = vmatpush1.bf16.msra.mxu1 %v10352_v4  ;;  %v10440_v21 = vld [vmem:[%s12188_s12 + $0x17a0] ss:$16 sps:$4 sm:$0xff]   ;;  %v10443_v4 = vld [vmem:[%s12188_s12 + $0x17a8] ss:$16 sps:$4 sm:$0xff]  }
 0x45d   : > { %7225 = vmatprep.subr.bf16.mxu0 %v10357_v22  ;;  %7758 = vmatprep.subr.bf16.mxu1 %v10360_v23  ;;  %v10448_v22 = vld [vmem:[%s12188_s12 + $0x17c4] ss:$16 sps:$4 sm:$0xff]   ;;  %v10451_v23 = vld [vmem:[%s12188_s12 + $0x17cc] ss:$16 sps:$4 sm:$0xff]  }
 0x460   : > { %7226 = vmatpush1.bf16.msra.mxu0 %v10355_v25  ;;  %7759 = vmatpush1.bf16.msra.mxu1 %v10358_v13  ;;  %v10446_v25 = vld [vmem:[%s12188_s12 + $0x17c0] ss:$16 sps:$4 sm:$0xff]   ;;  %v10449_v13 = vld [vmem:[%s12188_s12 + $0x17c8] ss:$16 sps:$4 sm:$0xff]  }
 0x461   : > { %7236 = vmatprep.subr.bf16.mxu0 %v10364_v26  ;;  %7769 = vmatprep.subr.bf16.mxu1 %v10367_v27  ;;  %v10454_v26 = vld [vmem:[%s12188_s12 + $0x17e4] ss:$16 sps:$4 sm:$0xff]   ;;  %v10457_v27 = vld [vmem:[%s12188_s12 + $0x17ec] ss:$16 sps:$4 sm:$0xff]  }
 0x463   : > { %7228 = vmatmul.mubr.bf16.vlgmr.msra.gmra.mrb[0].mxu0 %v13039_v14  ;;  %7761 = vmatmul.mubr.bf16.vlgmr.msra.gmra.mrb[0].mxu1 %v13039_v14 }
 0x464   : > { %7237 = vmatpush1.bf16.msra.mxu0 %v10362_v30  ;;  %7770 = vmatpush1.bf16.msra.mxu1 %v10365_v31  ;;  %v10452_v30 = vld [vmem:[%s12188_s12 + $0x17e0] ss:$16 sps:$4 sm:$0xff]   ;;  %v10455_v31 = vld [vmem:[%s12188_s12 + $0x17e8] ss:$16 sps:$4 sm:$0xff]  }
 0x465   : > { %7238 = vmatprep.subr.bf16.mxu0 %v10370_v32  ;;  %7771 = vmatprep.subr.bf16.mxu1 %v10373_v33  ;;  %v10460_v32 = vld [vmem:[%s12188_s12 + $0x1804] ss:$16 sps:$4 sm:$0xff]   ;;  %v10463_v33 = vld [vmem:[%s12188_s12 + $0x180c] ss:$16 sps:$4 sm:$0xff]  }
 0x466   : > { %7268 = vmatprep.mubr.bf16.mxu0 %v2822_v36  ;;  %7801 = vmatprep.mubr.bf16.mxu1 %v2822_v36  ;;  %v2820_v36 = vcombine.high %v13039_v14, %v13039_v14  ;;  %v10467_v14 = vld [vmem:[%s12188_s12 + $0x1828] ss:$16 sps:$4 sm:$0xff]  }
 0x468   : > { %7239 = vmatpush1.bf16.msra.mxu0 %v10368_v17  ;;  %7772 = vmatpush1.bf16.msra.mxu1 %v10371_v38  ;;  %v10458_v17 = vld [vmem:[%s12188_s12 + $0x1800] ss:$16 sps:$4 sm:$0xff]   ;;  %v10461_v38 = vld [vmem:[%s12188_s12 + $0x1808] ss:$16 sps:$4 sm:$0xff]  }
 0x469   : > { %7240 = vmatprep.subr.bf16.mxu0 %v10376_v20  ;;  %7773 = vmatprep.subr.bf16.mxu1 %v10379_v39  ;;  %v10466_v20 = vld [vmem:[%s12188_s12 + $0x1824] ss:$16 sps:$4 sm:$0xff]   ;;  %v10469_v39 = vld [vmem:[%s12188_s12 + $0x182c] ss:$16 sps:$4 sm:$0xff]  }
 0x46c   : > { %7241 = vmatpush1.bf16.msra.mxu0 %v10374_v29  ;;  %7774 = vmatpush1.bf16.msra.mxu1 %v10377_v28  ;;  %v10464_v29 = vld [vmem:[%s12188_s12 + $0x1820] ss:$16 sps:$4 sm:$0xff]   ;;  %v10472_v28 = vld [vmem:[%s12188_s12 + $0x1844] ss:$16 sps:$4 sm:$0xff]  }
 0x46d   : > { %7242 = vmatprep.subr.bf16.mxu0 %v10382_v40  ;;  %7775 = vmatprep.subr.bf16.mxu1 %v10385_v41  ;;  %v10475_v40 = vld [vmem:[%s12188_s12 + $0x184c] ss:$16 sps:$4 sm:$0xff]   ;;  %v10541_v41 = vmov 0  }
 0x470   : > { %7243 = vmatpush1.bf16.msra.mxu0 %v10380_v42  ;;  %7776 = vmatpush1.bf16.msra.mxu1 %v10383_v43  ;;  %v10470_v42 = vld [vmem:[%s12188_s12 + $0x1840] ss:$16 sps:$4 sm:$0xff]   ;;  %v10473_v43 = vld [vmem:[%s12188_s12 + $0x1848] ss:$16 sps:$4 sm:$0xff]  }
 0x471   : > { %7244 = vmatprep.subr.bf16.mxu0 %v10388_v45  ;;  %7777 = vmatprep.subr.bf16.mxu1 %v10391_v46  ;;  %v10478_v45 = vld [vmem:[%s12188_s12 + $0x1864] ss:$16 sps:$4 sm:$0xff]   ;;  %v10481_v46 = vld [vmem:[%s12188_s12 + $0x186c] ss:$16 sps:$4 sm:$0xff]  }
 0x474   : > { %7245 = vmatpush1.bf16.msra.mxu0 %v10386_v47  ;;  %7778 = vmatpush1.bf16.msra.mxu1 %v10389_v48  ;;  %v10476_v47 = vld [vmem:[%s12188_s12 + $0x1860] ss:$16 sps:$4 sm:$0xff]   ;;  %v10479_v48 = vld [vmem:[%s12188_s12 + $0x1868] ss:$16 sps:$4 sm:$0xff]  }
 0x475   : > { %7246 = vmatprep.subr.bf16.mxu0 %v10394_v49  ;;  %7779 = vmatprep.subr.bf16.mxu1 %v10397_v50  ;;  %v8307_v49 = vld.sshfl [vmem:[%s13187_s0 + $0x18] sm:$0x1 pattern:$0x75316420]  ;;  %v10482_v50 = vld [vmem:[%s12998_s27 + $0x40] sm:$0xff]  }
 0x478   : > { %7247 = vmatpush1.bf16.msra.mxu0 %v10392_v35  ;;  %7780 = vmatpush1.bf16.msra.mxu1 %v10395_v51  ;;  %v10483_v35 = vld [vmem:[%s12998_s27 + $0xc0] sm:$0xff]   ;;  %v2836_v51 = vrot.slane %v8307_v49, %v12193_v24  ;;  %v10488_v24 = vld [vmem:[%s12998_s27 + $0x8] sm:$0xff]  }
 0x479   : > { %7248 = vmatprep.subr.bf16.mxu0 %v10400_v52  ;;  %7781 = vmatprep.subr.bf16.mxu1 %v10403_v44  ;;  %v10484_v52 = vld [vmem:[%s12998_s27] sm:$0xff]  }
 0x47a   : > { %v10485_v44 = vld [vmem:[%s12998_s27 + $0x80] sm:$0xff]  }
 0x47c   : > { %7249 = vmatpush1.bf16.msra.mxu0 %v10398_v53  ;;  %7782 = vmatpush1.bf16.msra.mxu1 %v10401_v55  ;;  %v10486_v53 = vld [vmem:[%s12998_s27 + $0x48] sm:$0xff]  }
 0x47d   : > { %7250 = vmatprep.subr.bf16.mxu0 %v10406_v56  ;;  %7783 = vmatprep.subr.bf16.mxu1 %v10409_v58  ;;  %v10487_v55 = vld [vmem:[%s12998_s27 + $0xc8] sm:$0xff]   ;;  %v10490_v58 = vld [vmem:[%s12998_s27 + $0x50] sm:$0xff]  }
 0x47e   : > { %v10489_v56 = vld [vmem:[%s12998_s27 + $0x88] sm:$0xff]  }
 0x480   : > { %7251 = vmatpush1.bf16.msra.mxu0 %v10404_v59  ;;  %7784 = vmatpush1.bf16.msra.mxu1 %v10407_v37  ;;  %v10491_v59 = vld [vmem:[%s12998_s27 + $0xd0] sm:$0xff]  }
 0x481   : > { %7252 = vmatprep.subr.bf16.mxu0 %v10412_v60  ;;  %7785 = vmatprep.subr.bf16.mxu1 %v10415_v61  ;;  %v10492_v37 = vld [vmem:[%s12998_s27 + $0x10] sm:$0xff]   ;;  %v10494_v61 = vld [vmem:[%s12998_s27 + $0x58] sm:$0xff]  }
 0x482   : > { %v10493_v60 = vld [vmem:[%s12998_s27 + $0x90] sm:$0xff]  }
 0x484   : > { %7253 = vmatpush1.bf16.msra.mxu0 %v10410_v62  ;;  %7786 = vmatpush1.bf16.msra.mxu1 %v10413_v63  ;;  %v10495_v62 = vld [vmem:[%s12998_s27 + $0xd8] sm:$0xff]  }
 0x485   : > { %7254 = vmatprep.subr.bf16.mxu0 %v10418_v0  ;;  %7787 = vmatprep.subr.bf16.mxu1 %v10421_v1  ;;  %v10496_v63 = vld [vmem:[%s12998_s27 + $0x18] sm:$0xff]   ;;  %v10498_v1 = vld [vmem:[%s12998_s27 + $0x60] sm:$0xff]  }
 0x486   : > { %v10497_v0 = vld [vmem:[%s12998_s27 + $0x98] sm:$0xff]  }
 0x488   : > { %7255 = vmatpush1.bf16.msra.mxu0 %v10416_v3  ;;  %7788 = vmatpush1.bf16.msra.mxu1 %v10419_v5  ;;  %v10499_v3 = vld [vmem:[%s12998_s27 + $0xe0] sm:$0xff]  }
 0x489   : > { %7256 = vmatprep.subr.bf16.mxu0 %v10424_v6  ;;  %7789 = vmatprep.subr.bf16.mxu1 %v10427_v7  ;;  %v10500_v5 = vld [vmem:[%s12998_s27 + $0x20] sm:$0xff]   ;;  %v10502_v7 = vld [vmem:[%s12998_s27 + $0x68] sm:$0xff]  }
 0x48a   : > { %v10501_v6 = vld [vmem:[%s12998_s27 + $0xa0] sm:$0xff]  }
 0x48c   : > { %7257 = vmatpush1.bf16.msra.mxu0 %v10422_v57  ;;  %7790 = vmatpush1.bf16.msra.mxu1 %v10425_v8  ;;  %v10503_v57 = vld [vmem:[%s12998_s27 + $0xe8] sm:$0xff]  }
 0x48d   : > { %7258 = vmatprep.subr.bf16.mxu0 %v10430_v9  ;;  %7791 = vmatprep.subr.bf16.mxu1 %v10433_v10  ;;  %v10504_v8 = vld [vmem:[%s12998_s27 + $0x28] sm:$0xff]   ;;  %v10506_v10 = vld [vmem:[%s12998_s27 + $0x70] sm:$0xff]  }
 0x48e   : > { %v10505_v9 = vld [vmem:[%s12998_s27 + $0xa8] sm:$0xff]  }
 0x490   : > { %7259 = vmatpush1.bf16.msra.mxu0 %v10428_v2  ;;  %7792 = vmatpush1.bf16.msra.mxu1 %v10431_v11  ;;  %v10507_v2 = vld [vmem:[%s12998_s27 + $0xf0] sm:$0xff]  }
 0x491   : > { %7260 = vmatprep.subr.bf16.mxu0 %v10436_v12  ;;  %7793 = vmatprep.subr.bf16.mxu1 %v10439_v34  ;;  %v10508_v11 = vld [vmem:[%s12998_s27 + $0x30] sm:$0xff]   ;;  %v10510_v34 = vld [vmem:[%s12998_s27 + $0x78] sm:$0xff]  }
 0x492   : > { %v10509_v12 = vld [vmem:[%s12998_s27 + $0xb0] sm:$0xff]  }
 0x494   : > { %7261 = vmatpush1.bf16.msra.mxu0 %v10434_v15  ;;  %7794 = vmatpush1.bf16.msra.mxu1 %v10437_v16  ;;  %v10511_v15 = vld [vmem:[%s12998_s27 + $0xf8] sm:$0xff]  }
 0x495   : > { %7262 = vmatprep.subr.bf16.mxu0 %v10442_v54  ;;  %7795 = vmatprep.subr.bf16.mxu1 %v10445_v18  ;;  %v10512_v16 = vld [vmem:[%s12998_s27 + $0x38] sm:$0xff]   ;;  %v2654_v18 = vsub.s32 0, %v12181_v19 }
 0x496   : > { %v10513_v54 = vld [vmem:[%s12998_s27 + $0xb8] sm:$0xff]  }
 0x498   : > { %7263 = vmatpush1.bf16.msra.mxu0 %v10440_v21  ;;  %7796 = vmatpush1.bf16.msra.mxu1 %v10443_v4  ;;  %v2662_v21 = vsub.s32 2, %v12181_v19  ;;  %v2650_v4 = vld [vmem:[%s1848_s7] sm:$0xf] }
 0x499   : > { %7264 = vmatprep.subr.bf16.mxu0 %v10448_v22  ;;  %7797 = vmatprep.subr.bf16.mxu1 %v10451_v23  ;;  %v2658_v22 = vsub.s32 1, %v12181_v19  ;;  %v2666_v23 = vsub.s32 3, %v12181_v19 }
 0x49c   : > { %7265 = vmatpush1.bf16.msra.mxu0 %v10446_v25  ;;  %7798 = vmatpush1.bf16.msra.mxu1 %v10449_v13  ;;  %v2655_v25 = vrot.slane %v2650_v4, %v2654_v18  ;;  %v2663_v13 = vrot.slane %v2650_v4, %v2662_v21 }
 0x49d   : > { %7266 = vmatprep.subr.bf16.mxu0 %v10454_v26  ;;  %7799 = vmatprep.subr.bf16.mxu1 %v10457_v27  ;;  %v2659_v26 = vrot.slane %v2650_v4, %v2658_v22  ;;  %v2667_v27 = vrot.slane %v2650_v4, %v2666_v23 }
 0x4a0   : > { %7267 = vmatpush1.bf16.msra.mxu0 %v10452_v30  ;;  %7800 = vmatpush1.bf16.msra.mxu1 %v10455_v31 }
 0x4a1   : > { %7277 = vmatprep.subr.bf16.mxu0 %v10460_v32  ;;  %7810 = vmatprep.subr.bf16.mxu1 %v10463_v33 }
 0x4a3   : > { %7269 = vmatmul.mubr.bf16.vlgmr.msra.gmra.mrb[0].mxu0 %v2820_v36  ;;  %7802 = vmatmul.mubr.bf16.vlgmr.msra.gmra.mrb[0].mxu1 %v2820_v36 }
 0x4a4   : > { %7278 = vmatpush1.bf16.msra.mxu0 %v10458_v17  ;;  %7811 = vmatpush1.bf16.msra.mxu1 %v10461_v38 }
 0x4a5   : > { %7279 = vmatprep.subr.bf16.mxu0 %v10466_v20  ;;  %7812 = vmatprep.subr.bf16.mxu1 %v10469_v39 }
 0x4a6   : > { %7309 = vmatprep.mubr.bf16.mxu0 %v10541_v41  ;;  %7842 = vmatprep.mubr.bf16.mxu1 %v10541_v41 }
 0x4a8   : > { %7280 = vmatpush1.bf16.msra.mxu0 %v10464_v29  ;;  %7813 = vmatpush1.bf16.msra.mxu1 %v10467_v14 }
 0x4a9   : > { %7281 = vmatprep.subr.bf16.mxu0 %v10472_v28  ;;  %7814 = vmatprep.subr.bf16.mxu1 %v10475_v40 }
 0x4ac   : > { %7282 = vmatpush1.bf16.msra.mxu0 %v10470_v42  ;;  %7815 = vmatpush1.bf16.msra.mxu1 %v10473_v43 }
 0x4ad   : > { %7283 = vmatprep.subr.bf16.mxu0 %v10478_v45  ;;  %7816 = vmatprep.subr.bf16.mxu1 %v10481_v46 }
 0x4b0   : > { %7284 = vmatpush1.bf16.msra.mxu0 %v10476_v47  ;;  %7817 = vmatpush1.bf16.msra.mxu1 %v10479_v48 }
 0x4b1   : > { %9131 = vmatprep.subr.bf16.mxu0 %v10482_v50  ;;  %9153 = vmatprep.subr.bf16.mxu1 %v10483_v35  ;;  %v9094_v50 = vld [vmem:[%s1856_s10] ss:$0 sm:$0xff] }
 0x4b3   : > { %9092 = vmatmul.mubr.msk.bf16.vlgmr.msra.gmra.mrb[0].mxu0 %vm6781_vm0, %v2836_v51  ;;  %9093 = vmatmul.mubr.msk.bf16.vlgmr.msra.gmra.mrb[0].mxu1 %vm6781_vm0, %v2836_v51 }
 0x4b4   : > { %9132 = vmatpush3.bf16.msra.mxu0 %v10484_v52  ;;  %9154 = vmatpush3.bf16.msra.mxu1 %v10485_v44 }
 0x4b5   : > { %9133 = vmatprep.subr.bf16.mxu0 %v10486_v53  ;;  %9155 = vmatprep.subr.bf16.mxu1 %v10487_v55 }
 0x4b8   : > { %9134 = vmatpush3.bf16.msra.mxu0 %v10488_v24  ;;  %9156 = vmatpush3.bf16.msra.mxu1 %v10489_v56 }
 0x4b9   : > { %9135 = vmatprep.subr.bf16.mxu0 %v10490_v58  ;;  %9157 = vmatprep.subr.bf16.mxu1 %v10491_v59 }
 0x4bc   : > { %9136 = vmatpush3.bf16.msra.mxu0 %v10492_v37  ;;  %9158 = vmatpush3.bf16.msra.mxu1 %v10493_v60 }
 0x4bd   : > { %9137 = vmatprep.subr.bf16.mxu0 %v10494_v61  ;;  %9159 = vmatprep.subr.bf16.mxu1 %v10495_v62 }
 0x4c0   : > { %9138 = vmatpush3.bf16.msra.mxu0 %v10496_v63  ;;  %9160 = vmatpush3.bf16.msra.mxu1 %v10497_v0 }
 0x4c1   : > { %9139 = vmatprep.subr.bf16.mxu0 %v10498_v1  ;;  %9161 = vmatprep.subr.bf16.mxu1 %v10499_v3 }
 0x4c4   : > { %9140 = vmatpush3.bf16.msra.mxu0 %v10500_v5  ;;  %9162 = vmatpush3.bf16.msra.mxu1 %v10501_v6 }
 0x4c5   : > { %9141 = vmatprep.subr.bf16.mxu0 %v10502_v7  ;;  %9163 = vmatprep.subr.bf16.mxu1 %v10503_v57 }
 0x4c8   : > { %9142 = vmatpush3.bf16.msra.mxu0 %v10504_v8  ;;  %9164 = vmatpush3.bf16.msra.mxu1 %v10505_v9 }
 0x4c9   : > { %9143 = vmatprep.subr.bf16.mxu0 %v10506_v10  ;;  %9165 = vmatprep.subr.bf16.mxu1 %v10507_v2 }
 0x4cc   : > { %9144 = vmatpush3.bf16.msra.mxu0 %v10508_v11  ;;  %9166 = vmatpush3.bf16.msra.mxu1 %v10509_v12 }
 0x4cd   : > { %9145 = vmatprep.subr.bf16.mxu0 %v10510_v34  ;;  %9167 = vmatprep.subr.bf16.mxu1 %v10511_v15 }
 0x4d0   : > { %9146 = vmatpush3.bf16.msra.mxu0 %v10512_v16  ;;  %9168 = vmatpush3.bf16.msra.mxu1 %v10513_v54 }
 0x586   : > { %v7311_v30 = vpop.f32.mrb[0].mxu0  ;;  %v7844_v31 = vpop.f32.mrb[0].mxu1 }
 0x587   : > { %v9175_v32 = vadd.f32 %v7311_v30, %v2655_v25  ;;  %v9177_v33 = vadd.f32 %v7844_v31, %v2663_v13  ;;  %v7313_v36 = vpop.f32.mrb[1].mxu0  ;;  %v7846_v17 = vpop.f32.mrb[1].mxu1 }
 0x588   : > { %v9176_v38 = vadd.f32 %v7313_v36, %v2659_v26  ;;  %v9178_v20 = vadd.f32 %v7846_v17, %v2667_v27  ;;  %v7315_v39 = vpop.f32.mrb[2].mxu0  ;;  %v7848_v29 = vpop.f32.mrb[2].mxu1 }
 0x589   : > { %v7851_v14 = vmax.f32 %v9175_v32, 0.0  ;;  %v7853_v28 = vmax.f32 %v9177_v33, 0.0  ;;  %v7316_v40 = vpop.f32.mrb[3].mxu0  ;;  %v7849_v41 = vpop.f32.mrb[3].mxu1 }
 0x58a   : > { %v7852_v19 = vmax.f32 %v9176_v38, 0.0  ;;  %v7854_v42 = vmax.f32 %v9178_v20, 0.0 }
 0x58b   : > { %v7855_v46 = vpack.c.bf16 %v7851_v14, %v7851_v14  ;;  %v7857_v47 = vpack.c.bf16 %v7853_v28, %v7853_v28 }
 0x58c   : > { %v7856_v43 = vpack.c.bf16 %v7852_v19, %v7852_v19  ;;  %v7858_v45 = vpack.c.bf16 %v7854_v42, %v7854_v42 }
 0x58e   : > { %8154 = vmatprep.mubr.bf16.mxu0 %v7856_v43  ;;  %8194 = vmatprep.mubr.bf16.mxu1 %v7858_v45 }
 0x58f   : > { %8155 = vmatmul.mubr.bf16.vlgmr.msra.gmra.mrb[4].mxu0 %v7855_v46  ;;  %8195 = vmatmul.mubr.bf16.vlgmr.msra.gmra.mrb[4].mxu1 %v7857_v47 }
 0x662   : > { %v9147_v48 = vpop.f32.mrb[4].mxu0  ;;  %v9169_v49 = vpop.f32.mrb[4].mxu1 }
 0x663   : > { %v9148_v35 = vpop.f32.mrb[5].mxu0  ;;  %v9170_v51 = vpop.f32.mrb[5].mxu1 }
 0x664   : > { %v9149_v52 = vadd.f32 %v9148_v35, %v9147_v48  ;;  %v9171_v44 = vadd.f32 %v9170_v51, %v9169_v49  ;;  %v9150_v53 = vpop.f32.mrb[6].mxu0  ;;  %v9172_v55 = vpop.f32.mrb[6].mxu1 }
 0x665   : > { %v9151_v24 = vpop.f32.mrb[7].mxu0  ;;  %v9173_v56 = vpop.f32.mrb[7].mxu1 }
 0x666   : > { %v8157_v58 = vadd.f32 %v9149_v52, %v9094_v50 }
 0x668   : > { %v8197_v59 = vadd.f32 %v9171_v44, %v8157_v58 }
 0x66a   : > { %8203 = vst.msk [vmem:[%s1860_s14] sm:$0x3] %vm8202_vm1, %v8197_v59 }
 0x66b PF: > { %p12_p9 = scmp.ge.s32.totalorder %s10589_s22, 4   ;;  %s13193_s18 = smov %s10534_s19 }
 0x66c   : > { %s13194_s19 = smov %s10598_s25  ;;  %s13195_s20 = smov %s10589_s22 }
 0x66d   :  { %14 = sbr.rel (!%p12_p9) target bundleno = 2 (0x2), region = 107 }

</bundles_post_ra>
